<compile_context>
chip_gen: v6e
topology: v6e:2x2x1
jax: 0.10.0
libtpu: 0.0.40
codegen_flags: <defaults>
</compile_context>

<pallas_src>
import jax
import jax.numpy as jnp
from jax.experimental import pallas as pl
from jax.experimental.pallas import tpu as pltpu

# ---- model hyperparameters (from args / __init__) --------------------------
D = 128                       # args.embed_dim
S = 40                        # self.sentence_max_size
V = 64                        # args.embed_num   (synthetic, small)
C = 4                         # args.class_num   (synthetic, small)
L3, L4, L5 = S - 3 + 1, S - 4 + 1, S - 5 + 1      # 38, 37, 36

# ---- kernel tiling ----------------------------------------------------------
SP = 48                       # per-sample lane stride: 40 positions + 8 slack
                              # (slack >= max conv tap shift of 4)
TB = 128                      # samples per grid step (TB*SP multiple of 128).
                              # TODO(synk): on v7x with tiny batches, drop TB to a
                              # smaller multiple of 8 so the grid has >=2 steps
                              # and both TensorCores are used.
TRIM = SP - S                 # slack lanes at the end of each sample
_HIGHEST = jax.lax.Precision.HIGHEST


def textcnn_kernel(tok_ref, taps_ref, pmask_ref, seg_ref, lin_ref,
                   conv_ref, logits_ref):
    n = tok_ref.shape[1]                     # TB * SP flattened (sample, pos) lanes
    ne = n - TRIM                            # lanes that can hold a conv output

    # -- fused embedding gather + conv taps on the MXU -------------------------
    tok = tok_ref[...]                                             # (1, n) int32
    vid = jax.lax.broadcasted_iota(jnp.int32, (V, 1), 0)           # (V, 1)
    onehot = jnp.where(vid == tok, 1.0, 0.0).astype(jnp.bfloat16)  # (V, n), exact 0/1

    # taps rows 0..15 = bf16 hi, 16..31 = bf16 lo of the f32 taps (exact split);
    # a single M=32 matmul costs the same vmatmul count as M=16.
    proj2 = jnp.dot(taps_ref[...], onehot,
                    preferred_element_type=jnp.float32)            # (32, n) f32
    proj = proj2[0:16, :] + proj2[16:32, :]                        # (16, n) ~ f32 exact

    # -- conv3/4/5 + ReLU: tap rows grouped by shift (row 3*s + w = width 3+w),
    #    conv biases were folded into taps in the wrapper.
    acc = (proj[0:3,   0:ne]
           + proj[3:6,   1:1 + ne]
           + proj[6:9,   2:2 + ne]
           + proj[9:12,  3:3 + ne]
           + proj[12:15, 4:4 + ne])
    x_stack = jnp.maximum(acc, 0.0)                                # (3, ne) conv maps

    # lane-dense conv output: aligned zero store for the slack tail, then data.
    conv_ref[:, n - 128:n] = jnp.zeros((3, 128), jnp.float32)
    conv_ref[:, 0:ne] = x_stack

    # -- masked average pooling: ONE matmul against the resident 0/1 segment
    #    matrix (validity + 1/L prescale live in pmask, applied to the LHS).
    xm = (x_stack * pmask_ref[:, 0:ne]).astype(jnp.bfloat16)       # (3, ne)
    pooled = jnp.dot(xm, seg_ref[0:ne, :],
                     preferred_element_type=jnp.float32)           # (3, TB) f32

    # -- Linear(3, C): exact f32 on the VPU, single (C, TB) store --------------
    lin = lin_ref[...]                                             # (C, 4) = [W | b]
    logits_ref[...] = (lin[:, 0:1] * pooled[0:1, :]
                       + lin[:, 1:2] * pooled[1:2, :]
                       + lin[:, 2:3] * pooled[2:3, :]
                       + lin[:, 3:4])


def _pack_weights(params):
    """Grid-invariant weight packing (runs once, outside the kernel)."""
    w3 = params["w3"].astype(jnp.float32)            # (3, D)
    w4 = params["w4"].astype(jnp.float32)            # (4, D)
    w5 = params["w5"].astype(jnp.float32)            # (5, D)
    wall = jnp.zeros((16, D), jnp.float32)
    bias = jnp.zeros((16,), jnp.float32)
    for s in range(5):                               # rows grouped by tap shift
        if s < 3:
            wall = wall.at[3 * s + 0].set(w3[s])
            bias = bias.at[3 * s + 0].set(params["b3"].astype(jnp.float32) / 3.0)
        if s < 4:
            wall = wall.at[3 * s + 1].set(w4[s])
            bias = bias.at[3 * s + 1].set(params["b4"].astype(jnp.float32) / 4.0)
        wall = wall.at[3 * s + 2].set(w5[s])
        bias = bias.at[3 * s + 2].set(params["b5"].astype(jnp.float32) / 5.0)

    embed = params["embed"].astype(jnp.float32)      # (V, D)
    taps = jnp.einsum("jd,vd->jv", wall, embed, precision=_HIGHEST)
    taps = taps + bias[:, None]                      # (16, V) f32, biases folded
    taps_hi = taps.astype(jnp.bfloat16)
    taps_lo = (taps - taps_hi.astype(jnp.float32)).astype(jnp.bfloat16)
    taps_hl = jnp.concatenate([taps_hi, taps_lo], axis=0)          # (32, V) bf16

    lin = jnp.concatenate([params["lw"].astype(jnp.float32),
                           params["lb"].astype(jnp.float32)[:, None]],
                          axis=1)                                  # (C, 4)
    return taps_hl, lin


@jax.jit
def textcnn_forward(tokens, params):
    """tokens: int32 (B, T) with T <= S.  Returns (logits, x1, x2, x3)."""
    B, T = tokens.shape
    assert T <= S
    assert (TB * SP) % 128 == 0
    b_pad = ((B + TB - 1) // TB) * TB
    n = TB * SP
    ne = n - TRIM
    steps = b_pad // TB

    # F.pad(..., value=1) + lay samples out at lane stride SP.
    xp = jnp.pad(tokens.astype(jnp.int32), ((0, 0), (0, S - T)),
                 constant_values=1)                                     # (B, S)
    xp = jnp.pad(xp, ((0, b_pad - B), (0, SP - S)), constant_values=1)  # (b_pad, SP)
    tok_row = xp.reshape(1, b_pad * SP)

    taps_hl, lin = _pack_weights(params)

    # per-position pooling masks (validity * 1/L), tiled over one block.
    pos = jnp.arange(SP)
    pmask = jnp.stack([jnp.where(pos < L, 1.0 / L, 0.0)
                       for L in (L3, L4, L5)]).astype(jnp.float32)      # (3, SP)
    pmask = jnp.tile(pmask, (1, TB))                                    # (3, n)

    # 0/1 sample-segment matrix: lane r belongs to sample r // SP.  bf16 (exact),
    # constant index_map -> DMA'd once, stays VMEM-resident.
    seg = (jnp.arange(n)[:, None] // SP ==
           jnp.arange(TB)[None, :]).astype(jnp.bfloat16)                # (n, TB)

    cost = pl.CostEstimate(
        flops=steps * (2 * 32 * V * n + 2 * 3 * ne * TB + 8 * C * TB),
        transcendentals=0,
        bytes_accessed=steps * (4 * n + 4 * 3 * n + 4 * C * TB)
        + 2 * 32 * V + 4 * 3 * n + 2 * n * TB + 4 * C * 4)

    grid_spec = pltpu.PrefetchScalarGridSpec(
        num_scalar_prefetch=0,
        grid=(steps,),
        in_specs=[
            pl.BlockSpec((1, n), lambda b: (0, b)),            # token ids (per block)
            pl.BlockSpec((32, V), lambda b: (0, 0)),           # hi/lo conv taps
            pl.BlockSpec((3, n), lambda b: (0, 0)),            # pooling masks
            pl.BlockSpec((n, TB), lambda b: (0, 0)),           # segment matrix
            pl.BlockSpec((C, 4), lambda b: (0, 0)),            # linear [W | b]
        ],
        out_specs=[
            pl.BlockSpec((3, n), lambda b: (0, b)),            # conv maps
            pl.BlockSpec((C, TB), lambda b: (0, b)),           # logits
        ],
    )

    conv_out, logits_out = pl.pallas_call(
        textcnn_kernel,
        out_shape=(jax.ShapeDtypeStruct((3, b_pad * SP), jnp.float32),
                   jax.ShapeDtypeStruct((C, b_pad), jnp.float32)),
        grid_spec=grid_spec,
        compiler_params=pltpu.CompilerParams(
            dimension_semantics=("parallel",),
            vmem_limit_bytes=32 * 1024 * 1024),
        cost_estimate=cost,
    )(tok_row, taps_hl, pmask, seg, lin)

    conv3d = conv_out.reshape(3, b_pad, SP)
    x1 = conv3d[0, :B, :L3][:, None, :, None]   # (B, 1, 38, 1) like PyTorch x1
    x2 = conv3d[1, :B, :L4][:, None, :, None]
    x3 = conv3d[2, :B, :L5][:, None, :, None]
    logits = logits_out[:, :B].T                # (B, C) matches x.view(-1, C)
    return logits, x1, x2, x3


# ---- pure-JAX reference (for correctness check only) ------------------------
def reference(tokens, params):
    xp = jnp.pad(tokens, ((0, 0), (0, S - tokens.shape[1])), constant_values=1)
    e = params["embed"][xp].astype(jnp.float32)         # (B, S, D)

    def conv_relu(w, b, k):
        length = S - k + 1
        cols = [jnp.sum(e[:, t:t + k, :] * w[None, :, :], axis=(1, 2)) + b
                for t in range(length)]
        return jax.nn.relu(jnp.stack(cols, axis=1))     # (B, length)

    c3 = conv_relu(params["w3"], params["b3"], 3)
    c4 = conv_relu(params["w4"], params["b4"], 4)
    c5 = conv_relu(params["w5"], params["b5"], 5)
    feat = jnp.stack([c3.mean(1), c4.mean(1), c5.mean(1)], axis=1)   # (B, 3)
    logits = feat @ params["lw"].T + params["lb"]
    return logits, c3, c4, c5


if __name__ == "__main__":
    key = jax.random.PRNGKey(0)
    ks = jax.random.split(key, 10)

    params = {
        "embed": jax.random.normal(ks[0], (V, D), jnp.float32) * 0.1,
        "w3": jax.random.normal(ks[1], (3, D), jnp.float32) * 0.1,
        "b3": jax.random.normal(ks[2], (), jnp.float32) * 0.1,
        "w4": jax.random.normal(ks[3], (4, D), jnp.float32) * 0.1,
        "b4": jax.random.normal(ks[4], (), jnp.float32) * 0.1,
        "w5": jax.random.normal(ks[5], (5, D), jnp.float32) * 0.1,
        "b5": jax.random.normal(ks[6], (), jnp.float32) * 0.1,
        "lw": jax.random.normal(ks[7], (C, 3), jnp.float32) * 0.1,
        "lb": jax.random.normal(ks[8], (C,), jnp.float32) * 0.1,
    }

    # small token-id input: batch=2, seq_len=8 (padded to 40 inside forward)
    tokens = jax.random.randint(ks[9], (2, 8), 0, V, dtype=jnp.int32)

    logits, x1, x2, x3 = jax.block_until_ready(textcnn_forward(tokens, params))

    ref_logits, r1, r2, r3 = reference(tokens, params)
    assert jnp.allclose(logits, ref_logits, atol=2e-3, rtol=2e-3)
    assert jnp.allclose(x1[:, 0, :, 0], r1, atol=2e-3, rtol=2e-3)
    assert jnp.allclose(x2[:, 0, :, 0], r2, atol=2e-3, rtol=2e-3)
    assert jnp.allclose(x3[:, 0, :, 0], r3, atol=2e-3, rtol=2e-3)

    print("KERNEL_OK")
</pallas_src>

<mosaic_0001>
module attributes {stable_mosaic.version = 11 : i64} {
  func.func @textcnn_kernel(%arg0: i32, %arg1: memref<1x6144xi32, #tpu.memory_space<vmem>>, %arg2: memref<32x64xbf16, #tpu.memory_space<vmem>>, %arg3: memref<3x6144xf32, #tpu.memory_space<vmem>>, %arg4: memref<6144x128xbf16, #tpu.memory_space<vmem>>, %arg5: memref<4x4xf32, #tpu.memory_space<vmem>>, %arg6: memref<3x6144xf32, #tpu.memory_space<vmem>>, %arg7: memref<4x128xf32, #tpu.memory_space<vmem>>) attributes {dimension_semantics = [#tpu.dimension_semantics<parallel>], iteration_bounds = array<i64: 1>, scalar_prefetch = 0 : i64, scratch_operands = 0 : i64, tpu.core_type = #tpu.core_type<tc>, window_params = [{transform_indices = @transform_0, window_bounds = array<i64: 1, 6144>}, {pipeline_mode = #tpu.pipeline_mode<synchronous>, transform_indices = @transform_1, window_bounds = array<i64: 32, 64>}, {pipeline_mode = #tpu.pipeline_mode<synchronous>, transform_indices = @transform_2, window_bounds = array<i64: 3, 6144>}, {pipeline_mode = #tpu.pipeline_mode<synchronous>, transform_indices = @transform_3, window_bounds = array<i64: 6144, 128>}, {pipeline_mode = #tpu.pipeline_mode<synchronous>, transform_indices = @transform_4, window_bounds = array<i64: 4, 4>}, {transform_indices = @transform_5, window_bounds = array<i64: 3, 6144>}, {transform_indices = @transform_6, window_bounds = array<i64: 4, 128>}]} {
    %c0 = arith.constant 0 : index
    %c0_0 = arith.constant 0 : index
    %0 = vector.load %arg1[%c0, %c0_0] : memref<1x6144xi32, #tpu.memory_space<vmem>>, vector<1x6144xi32>
    %1 = tpu.iota {dimensions = array<i32: 0>} : vector<64x1xi32>
    %2 = vector.broadcast %1 : vector<64x1xi32> to vector<64x6144xi32>
    %3 = vector.broadcast %0 : vector<1x6144xi32> to vector<64x6144xi32>
    %4 = arith.cmpi eq, %2, %3 : vector<64x6144xi32>
    %cst = arith.constant 1.000000e+00 : f32
    %cst_1 = arith.constant 0.000000e+00 : f32
    %5 = vector.broadcast %cst : f32 to vector<64x6144xf32>
    %6 = vector.broadcast %cst_1 : f32 to vector<64x6144xf32>
    %7 = arith.select %4, %5, %6 : vector<64x6144xi1>, vector<64x6144xf32>
    %8 = arith.truncf %7 : vector<64x6144xf32> to vector<64x6144xbf16>
    %c0_2 = arith.constant 0 : index
    %c0_3 = arith.constant 0 : index
    %9 = vector.load %arg2[%c0_2, %c0_3] : memref<32x64xbf16, #tpu.memory_space<vmem>>, vector<32x64xbf16>
    %cst_4 = arith.constant dense<0.000000e+00> : vector<32x6144xf32>
    %10 = tpu.matmul %9, %8, %cst_4 {dimension_numbers = #tpu.dot_dimension_numbers<[1], [0], [0], [1], [0, 0, 1, 1], [], []>} : vector<32x64xbf16>, vector<64x6144xbf16>, vector<32x6144xf32> -> vector<32x6144xf32>
    %11 = vector.extract_strided_slice %10 {offsets = [0, 0], sizes = [16, 6144], strides = [1, 1]} : vector<32x6144xf32> to vector<16x6144xf32>
    %12 = vector.extract_strided_slice %10 {offsets = [16, 0], sizes = [16, 6144], strides = [1, 1]} : vector<32x6144xf32> to vector<16x6144xf32>
    %13 = arith.addf %11, %12 : vector<16x6144xf32>
    %14 = vector.extract_strided_slice %13 {offsets = [0, 0], sizes = [3, 6136], strides = [1, 1]} : vector<16x6144xf32> to vector<3x6136xf32>
    %15 = vector.extract_strided_slice %13 {offsets = [3, 1], sizes = [3, 6136], strides = [1, 1]} : vector<16x6144xf32> to vector<3x6136xf32>
    %16 = arith.addf %14, %15 : vector<3x6136xf32>
    %17 = vector.extract_strided_slice %13 {offsets = [6, 2], sizes = [3, 6136], strides = [1, 1]} : vector<16x6144xf32> to vector<3x6136xf32>
    %18 = arith.addf %16, %17 : vector<3x6136xf32>
    %19 = vector.extract_strided_slice %13 {offsets = [9, 3], sizes = [3, 6136], strides = [1, 1]} : vector<16x6144xf32> to vector<3x6136xf32>
    %20 = arith.addf %18, %19 : vector<3x6136xf32>
    %21 = vector.extract_strided_slice %13 {offsets = [12, 4], sizes = [3, 6136], strides = [1, 1]} : vector<16x6144xf32> to vector<3x6136xf32>
    %22 = arith.addf %20, %21 : vector<3x6136xf32>
    %cst_5 = arith.constant 0.000000e+00 : f32
    %23 = vector.broadcast %cst_5 : f32 to vector<3x6136xf32>
    %24 = arith.maximumf %22, %23 : vector<3x6136xf32>
    %cst_6 = arith.constant 0.000000e+00 : f32
    %25 = vector.broadcast %cst_6 : f32 to vector<3x128xf32>
    %c0_7 = arith.constant 0 : index
    %c6016 = arith.constant 6016 : index
    %26 = vector.load %arg6[%c0_7, %c6016] : memref<3x6144xf32, #tpu.memory_space<vmem>>, vector<3x128xf32>
    tpu.vector_store %arg6[%c0_7, %c6016], %25 {strides = array<i32>} : memref<3x6144xf32, #tpu.memory_space<vmem>>, vector<3x128xf32>,
    %c0_8 = arith.constant 0 : index
    %c0_9 = arith.constant 0 : index
    %27 = vector.load %arg6[%c0_8, %c0_9] : memref<3x6144xf32, #tpu.memory_space<vmem>>, vector<3x6136xf32>
    tpu.vector_store %arg6[%c0_8, %c0_9], %24 {strides = array<i32>} : memref<3x6144xf32, #tpu.memory_space<vmem>>, vector<3x6136xf32>,
    %c0_10 = arith.constant 0 : index
    %c0_11 = arith.constant 0 : index
    %28 = vector.load %arg3[%c0_10, %c0_11] : memref<3x6144xf32, #tpu.memory_space<vmem>>, vector<3x6136xf32>
    %29 = arith.mulf %24, %28 : vector<3x6136xf32>
    %30 = arith.truncf %29 : vector<3x6136xf32> to vector<3x6136xbf16>
    %c0_12 = arith.constant 0 : index
    %c0_13 = arith.constant 0 : index
    %31 = vector.load %arg4[%c0_12, %c0_13] : memref<6144x128xbf16, #tpu.memory_space<vmem>>, vector<6136x128xbf16>
    %cst_14 = arith.constant dense<0.000000e+00> : vector<3x128xf32>
    %32 = tpu.matmul %30, %31, %cst_14 {dimension_numbers = #tpu.dot_dimension_numbers<[1], [0], [0], [1], [0, 0, 1, 1], [], []>} : vector<3x6136xbf16>, vector<6136x128xbf16>, vector<3x128xf32> -> vector<3x128xf32>
    %c0_15 = arith.constant 0 : index
    %c0_16 = arith.constant 0 : index
    %33 = vector.load %arg5[%c0_15, %c0_16] : memref<4x4xf32, #tpu.memory_space<vmem>>, vector<4x4xf32>
    %34 = vector.extract_strided_slice %33 {offsets = [0, 0], sizes = [4, 1], strides = [1, 1]} : vector<4x4xf32> to vector<4x1xf32>
    %35 = vector.extract_strided_slice %32 {offsets = [0, 0], sizes = [1, 128], strides = [1, 1]} : vector<3x128xf32> to vector<1x128xf32>
    %36 = vector.broadcast %34 : vector<4x1xf32> to vector<4x128xf32>
    %37 = vector.broadcast %35 : vector<1x128xf32> to vector<4x128xf32>
    %38 = arith.mulf %36, %37 : vector<4x128xf32>
    %39 = vector.extract_strided_slice %33 {offsets = [0, 1], sizes = [4, 1], strides = [1, 1]} : vector<4x4xf32> to vector<4x1xf32>
    %40 = vector.extract_strided_slice %32 {offsets = [1, 0], sizes = [1, 128], strides = [1, 1]} : vector<3x128xf32> to vector<1x128xf32>
    %41 = vector.broadcast %39 : vector<4x1xf32> to vector<4x128xf32>
    %42 = vector.broadcast %40 : vector<1x128xf32> to vector<4x128xf32>
    %43 = arith.mulf %41, %42 : vector<4x128xf32>
    %44 = arith.addf %38, %43 : vector<4x128xf32>
    %45 = vector.extract_strided_slice %33 {offsets = [0, 2], sizes = [4, 1], strides = [1, 1]} : vector<4x4xf32> to vector<4x1xf32>
    %46 = vector.extract_strided_slice %32 {offsets = [2, 0], sizes = [1, 128], strides = [1, 1]} : vector<3x128xf32> to vector<1x128xf32>
    %47 = vector.broadcast %45 : vector<4x1xf32> to vector<4x128xf32>
    %48 = vector.broadcast %46 : vector<1x128xf32> to vector<4x128xf32>
    %49 = arith.mulf %47, %48 : vector<4x128xf32>
    %50 = arith.addf %44, %49 : vector<4x128xf32>
    %51 = vector.extract_strided_slice %33 {offsets = [0, 3], sizes = [4, 1], strides = [1, 1]} : vector<4x4xf32> to vector<4x1xf32>
    %52 = vector.broadcast %51 : vector<4x1xf32> to vector<4x128xf32>
    %53 = arith.addf %50, %52 : vector<4x128xf32>
    %c0_17 = arith.constant 0 : index
    %c0_18 = arith.constant 0 : index
    %54 = vector.load %arg7[%c0_17, %c0_18] : memref<4x128xf32, #tpu.memory_space<vmem>>, vector<4x128xf32>
    tpu.vector_store %arg7[%c0_17, %c0_18], %53 {strides = array<i32>} : memref<4x128xf32, #tpu.memory_space<vmem>>, vector<4x128xf32>,
    return
  }
  func.func @transform_0(%arg0: i32) -> (i32, i32) {
    %c0_i32 = arith.constant 0 : i32
    %c0_i32_0 = arith.constant 0 : i32
    return %c0_i32, %arg0 : i32, i32
  }
  func.func @transform_1(%arg0: i32) -> (i32, i32) {
    %c0_i32 = arith.constant 0 : i32
    %c0_i32_0 = arith.constant 0 : i32
    %c0_i32_1 = arith.constant 0 : i32
    return %c0_i32, %c0_i32_0 : i32, i32
  }
  func.func @transform_2(%arg0: i32) -> (i32, i32) {
    %c0_i32 = arith.constant 0 : i32
    %c0_i32_0 = arith.constant 0 : i32
    %c0_i32_1 = arith.constant 0 : i32
    return %c0_i32, %c0_i32_0 : i32, i32
  }
  func.func @transform_3(%arg0: i32) -> (i32, i32) {
    %c0_i32 = arith.constant 0 : i32
    %c0_i32_0 = arith.constant 0 : i32
    %c0_i32_1 = arith.constant 0 : i32
    return %c0_i32, %c0_i32_0 : i32, i32
  }
  func.func @transform_4(%arg0: i32) -> (i32, i32) {
    %c0_i32 = arith.constant 0 : i32
    %c0_i32_0 = arith.constant 0 : i32
    %c0_i32_1 = arith.constant 0 : i32
    return %c0_i32, %c0_i32_0 : i32, i32
  }
  func.func @transform_5(%arg0: i32) -> (i32, i32) {
    %c0_i32 = arith.constant 0 : i32
    %c0_i32_0 = arith.constant 0 : i32
    return %c0_i32, %arg0 : i32, i32
  }
  func.func @transform_6(%arg0: i32) -> (i32, i32) {
    %c0_i32 = arith.constant 0 : i32
    %c0_i32_0 = arith.constant 0 : i32
    return %c0_i32, %arg0 : i32, i32
  }
}

</mosaic_0001>

<bundles_post_ra>
// kernel: tile.9
= control target key start
LH: loop header
LB: loop body
LE: loop exit
PB: predicated region body
PF: predicated region fallthrough
CT: control target
= control target key end

     0   :  { %vm68_vm0 = vcmask 1041409   ;;  %vm73_vm1 = vcmask 1043458   ;;  %vm77_vm2 = vcmask 1044484   ;;  %vm82_vm3 = vcmask 1046533   ;;  %s137_s6 = smov 12  ;;  %s146_s11 = smov 96  ;;  %s4341_s0 = inlined_call_operand.vmem [shape: f32[3,128,48], index: 0, kind: input, shape index: {}]   ;;  %s4342_s1 = inlined_call_operand.vmem [shape: f32[3,6144], index: 1, kind: output, shape index: {}]  }
   0x1   :  { %vm86_vm4 = vcmask 1047559   ;;  %v2284_v0 = vld [vmem:[%s4341_s0 + $0x35] sm:$0x1]   ;;  %v2287_v4 = vld [vmem:[%s4341_s0 + $0xa9] sm:$0x10]   ;;  %s71_s24 = smov 12 }
   0x2   :  { %v2285_v1 = vld [vmem:[%s4341_s0 + $0xb4] sm:$0x2]   ;;  %v2289_v5 = vld [vmem:[%s4341_s0 + $0x9e] sm:$0x80]   ;;  %v2275_v12 = vld [vmem:[%s4341_s0 + $0x89] sm:$0x10]  }
   0x3   :  { %v135_v2 = vsel %vm68_vm0, %v2285_v1, %v2284_v0  ;;  %v2286_v3 = vld [vmem:[%s4341_s0 + $0x345] ss:$-264 sm:%s137_s6]   ;;  %s80_s27 = smov 96  ;;  %s170_s5 = smov 12  ;;  %vm333_vm5 = vcmask 1042434   ;;  %vm338_vm6 = vcmask 1044483  }
   0x4   :  { %v140_v6 = vsel %vm73_vm1, %v2286_v3, %v135_v2  ;;  %v2288_v7 = vld [vmem:[%s4341_s0 + $0x655] ss:$-264 sm:%s146_s11]   ;;  %s179_s6 = smov 96  ;;  %s2650_s13 = smov 112   ;;  %vm342_vm7 = vcmask 1045509   ;;  %vm346_vm8 = vcmask 1046534  }
   0x5   :  { %v2272_v8 = vld [vmem:[%s4341_s0 + $0x15] sm:$0x1]   ;;  %v144_v10 = vsel %vm77_vm2, %v2287_v4, %v140_v6  ;;  %v2277_v13 = vld [vmem:[%s4341_s0 + $0x7e] sm:$0x80]   ;;  %v2290_v19 = vld [vmem:[%s4341_s0 + $0x2d] sm:$0x1]  }
   0x6   :  { %v2273_v9 = vld [vmem:[%s4341_s0 + $0x94] sm:$0x2]   ;;  %v149_v14 = vsel %vm82_vm3, %v2288_v7, %v144_v10  ;;  %v2291_v20 = vld [vmem:[%s4341_s0 + $0xac] sm:$0x2]   ;;  %v2293_v24 = vld [vmem:[%s4341_s0 + $0xa1] sm:$0x10]  }
   0x7   :  { %v69_v11 = vsel %vm68_vm0, %v2273_v9, %v2272_v8  ;;  %v2274_v15 = vld [vmem:[%s4341_s0 + $0x325] ss:$-264 sm:%s71_s24]   ;;  %v153_v17 = vsel %vm86_vm4, %v2289_v5, %v149_v14  ;;  %v168_v23 = vsel %vm68_vm0, %v2291_v20, %v2290_v19  ;;  %s104_s18 = smov 12  ;;  %s113_s19 = smov 96  ;;  %vm90_vm9 = vcmask 261120  }
   0x8   :  { %v2276_v16 = vld [vmem:[%s4341_s0 + $0x635] ss:$-264 sm:%s80_s27]   ;;  %v74_v18 = vsel %vm73_vm1, %v2274_v15, %v69_v11  ;;  %154 = vrot.lane.b32.xlu1 %v153_v17, %s2650_s13  ;;  %s236_s7 = smov 12  ;;  %s245_s8 = smov 96  ;;  %vm123_vm10 = vcmask 1048448   ;;  %vm4_vm11 = vcmask 1047556  }
   0x9   :  { %v2292_v21 = vld [vmem:[%s4341_s0 + $0x33d] ss:$-264 sm:%s170_s5]   ;;  %v78_v22 = vsel %vm77_vm2, %v2275_v12, %v74_v18  ;;  %s203_s20 = smov 12  ;;  %s212_s21 = smov 96  ;;  %vm6_vm12 = vcmask 392192   ;;  %vm527_vm13 = vcmask 1048320  }
   0xa   :  { %v2294_v25 = vld [vmem:[%s4341_s0 + $0x5ad] ss:$-232 sm:%s179_s6]   ;;  %v83_v26 = vsel %vm82_vm3, %v2276_v16, %v78_v22  ;;  %v173_v27 = vsel %vm73_vm1, %v2292_v21, %v168_v23  ;;  %s302_s3 = smov 12  ;;  %s311_s4 = smov 96  ;;  %vm494_vm14 = vcmask 130048   ;;  %vm897_vm15 = vcmask 1048192  }
   0xb   :  { %v2295_v28 = vld [vmem:[%s4341_s0 + $0xb6] sm:$0x80]   ;;  %v2278_v29 = vld [vmem:[%s4341_s0 + $0xd] sm:$0x1]   ;;  %v87_v31 = vsel %vm86_vm4, %v2277_v13, %v83_v26  ;;  %v177_v32 = vsel %vm77_vm2, %v2293_v24, %v173_v27  ;;  %v2281_v35 = vld [vmem:[%s4341_s0 + $0x81] sm:$0x10]  }
   0xc   :  { %v2279_v30 = vld [vmem:[%s4341_s0 + $0x8c] sm:$0x2]   ;;  %v2283_v36 = vld [vmem:[%s4341_s0 + $0x96] sm:$0x80]   ;;  %88 = vrot.lane.b32.xlu0 %v87_v31, %s2650_s13  ;;  %v182_v37 = vsel %vm82_vm3, %v2294_v25, %v177_v32  ;;  %v2305_v45 = vld [vmem:[%s4341_s0 + $0xc1] sm:$0x10]  }
   0xd   :  { %v102_v33 = vsel %vm68_vm0, %v2279_v30, %v2278_v29  ;;  %v2280_v34 = vld [vmem:[%s4341_s0 + $0x31d] ss:$-264 sm:%s104_s18]   ;;  %v186_v41 = vsel %vm86_vm4, %v2295_v28, %v182_v37  ;;  %s269_s22 = smov 12  ;;  %s278_s23 = smov 96 }
   0xe   :  { %v107_v38 = vsel %vm73_vm1, %v2280_v34, %v102_v33  ;;  %v2282_v39 = vld [vmem:[%s4341_s0 + $0x58d] ss:$-232 sm:%s113_s19]   ;;  %187 = vrot.lane.b32.xlu1 %v186_v41, %s2650_s13  ;;  %s364_s5 = smov 3  ;;  %s329_s14 = smov 3 }
   0xf   :  { %v2302_v40 = vld [vmem:[%s4341_s0 + $0x4d] sm:$0x1]   ;;  %v111_v42 = vsel %vm77_vm2, %v2281_v35, %v107_v38  ;;  %v2307_v49 = vld [vmem:[%s4341_s0 + $0xd6] sm:$0x80]   ;;  %v2296_v52 = vld [vmem:[%s4341_s0 + $0x55] sm:$0x1]  }
  0x10   :  { %v2303_v43 = vld [vmem:[%s4341_s0 + $0xcc] sm:$0x2]   ;;  %v116_v46 = vsel %vm82_vm3, %v2282_v39, %v111_v42  ;;  %v2297_v53 = vld [vmem:[%s4341_s0 + $0xd4] sm:$0x2]   ;;  %v2301_v61 = vld [vmem:[%s4341_s0 + $0xbe] sm:$0x80]  }
  0x11   :  { %v2304_v44 = vld [vmem:[%s4341_s0 + $0x35d] ss:$-264 sm:%s236_s7]   ;;  %v234_v47 = vsel %vm68_vm0, %v2303_v43, %v2302_v40  ;;  %v120_v50 = vsel %vm86_vm4, %v2283_v36, %v116_v46  ;;  %v201_v56 = vsel %vm68_vm0, %v2297_v53, %v2296_v52  ;;  %s336_s15 = smov 24  ;;  %s508_s28 = smov 12 }
  0x12   :  { %v2306_v48 = vld [vmem:[%s4341_s0 + $0x5cd] ss:$-232 sm:%s245_s8]   ;;  %v239_v51 = vsel %vm73_vm1, %v2304_v44, %v234_v47  ;;  %121 = vrot.lane.b32.xlu0 %v120_v50, %s2650_s13  ;;  %s371_s8 = smov 24  ;;  %s475_s18 = smov 12 }
  0x13   :  { %v2298_v54 = vld [vmem:[%s4341_s0 + $0x365] ss:$-264 sm:%s203_s20]   ;;  %v243_v55 = vsel %vm77_vm2, %v2305_v45, %v239_v51  ;;  %s399_s20 = smov 3  ;;  %s484_s29 = smov 96 }
  0x14   :  { %v2299_v57 = vld [vmem:[%s4341_s0 + $0xc9] sm:$0x10]   ;;  %v248_v59 = vsel %vm82_vm3, %v2306_v48, %v243_v55  ;;  %v206_v60 = vsel %vm73_vm1, %v2298_v54, %v201_v56  ;;  %v2317_v4 = vld [vmem:[%s4341_s0 + $0xe1] sm:$0x10]   ;;  %v2319_v5 = vld [vmem:[%s4341_s0 + $0xf6] sm:$0x80]  }
  0x15   :  { %v2300_v58 = vld [vmem:[%s4341_s0 + $0x675] ss:$-264 sm:%s212_s21]   ;;  %v252_v0 = vsel %vm86_vm4, %v2307_v49, %v248_v59  ;;  %v210_v1 = vsel %vm77_vm2, %v2299_v57, %v206_v60  ;;  %s573_s30 = smov 12  ;;  %s540_s6 = smov 12 }
  0x16   :  { %v2314_v62 = vld [vmem:[%s4341_s0 + $0x6d] sm:$0x1]   ;;  %253 = vrot.lane.b32.xlu1 %v252_v0, %s2650_s13  ;;  %v215_v6 = vsel %vm82_vm3, %v2300_v58, %v210_v1  ;;  %v2308_v9 = vld [vmem:[%s4341_s0 + $0x75] sm:$0x1]   ;;  %v2313_v18 = vld [vmem:[%s4341_s0 + $0xde] sm:$0x80]  }
  0x17   :  { %v2315_v63 = vld [vmem:[%s4341_s0 + $0xec] sm:$0x2]   ;;  %v219_v10 = vsel %vm86_vm4, %v2301_v61, %v215_v6  ;;  %v2309_v12 = vld [vmem:[%s4341_s0 + $0xf4] sm:$0x2]   ;;  %v2321_v33 = vld [vmem:[%s4341_s0 + $0x9b] sm:$0x4]  }
  0x18   :  { %v300_v2 = vsel %vm68_vm0, %v2315_v63, %v2314_v62  ;;  %v2316_v3 = vld [vmem:[%s4341_s0 + $0x37d] ss:$-264 sm:%s302_s3]   ;;  %220 = vrot.lane.b32.xlu0 %v219_v10, %s2650_s13  ;;  %v267_v16 = vsel %vm68_vm0, %v2309_v12, %v2308_v9  ;;  %s434_s3 = smov 3  ;;  %v2350_v1 = vld [vmem:[%s4341_s0 + $0x2] sm:$0x1]   ;;  %s549_s19 = smov 96 }
  0x19   :  { %v305_v7 = vsel %vm73_vm1, %v2316_v3, %v300_v2  ;;  %v2318_v8 = vld [vmem:[%s4341_s0 + $0x5ed] ss:$-232 sm:%s311_s4]   ;;  %s441_s4 = smov 24  ;;  %v2351_v2 = vld [vmem:[%s4341_s0 + $0x81] sm:$0x2]   ;;  %s606_s2 = smov 12 }
  0x1a   :  { %v309_v11 = vsel %vm77_vm2, %v2317_v4, %v305_v7  ;;  %v2310_v13 = vld [vmem:[%s4341_s0 + $0x385] ss:$-264 sm:%s269_s22]   ;;  %v2352_v3 = vld [vmem:[%s4341_s0 + $0x2d2] ss:$-232 sm:%s508_s28]   ;;  %s615_s21 = smov 96  ;;  %s705_s22 = smov 12 }
  0x1b   :  { %v2311_v14 = vld [vmem:[%s4341_s0 + $0xe9] sm:$0x10]   ;;  %v314_v15 = vsel %vm82_vm3, %v2318_v8, %v309_v11  ;;  %v272_v20 = vsel %vm73_vm1, %v2310_v13, %v267_v16  ;;  %v2327_v21 = vld [vmem:[%s4341_s0 + $0x93] sm:$0x4]   ;;  %v2323_v34 = vld [vmem:[%s4341_s0 + $0x38] sm:$0x20]  }
  0x1c   :  { %v2312_v17 = vld [vmem:[%s4341_s0 + $0x695] ss:$-264 sm:%s278_s23]   ;;  %v318_v19 = vsel %vm86_vm4, %v2319_v5, %v314_v15  ;;  %v276_v22 = vsel %vm77_vm2, %v2311_v14, %v272_v20  ;;  %s406_s23 = smov 24  ;;  %v506_v5 = vsel %vm68_vm0, %v2351_v2, %v2350_v1  ;;  %v2353_v6 = vld [vmem:[%s4341_s0 + $0x96] sm:$0x10]   ;;  %s802_s24 = smov 3 }
  0x1d   :  { %319 = vrot.lane.b32.xlu1 %v318_v19, %s2650_s13  ;;  %v2326_v23 = vld [vmem:[%s4341_s0 + $0x11d] ss:$-264 sm:%s364_s5]   ;;  %v281_v25 = vsel %vm82_vm3, %v2312_v17, %v276_v22  ;;  %v2355_v7 = vld [vmem:[%s4341_s0 + $0x8b] sm:$0x80]   ;;  %v511_v9 = vsel %vm73_vm1, %v2352_v3, %v506_v5  ;;  %s582_s5 = smov 96  ;;  %s844_s7 = smov 24 }
  0x1e   :  { %v2329_v24 = vld [vmem:[%s4341_s0 + $0x30] sm:$0x20]   ;;  %v369_v26 = vsel %vm333_vm5, %v2327_v21, %v2326_v23  ;;  %v285_v30 = vsel %vm86_vm4, %v2313_v18, %v281_v25  ;;  %v2324_v38 = vld [vmem:[%s4341_s0 + $0xb7] sm:$0x40]   ;;  %v2344_v11 = vld [vmem:[%s4341_s0 + $0xa] sm:$0x1]   ;;  %v515_v14 = vsel %vm77_vm2, %v2353_v6, %v511_v9 }
  0x1f   :  { %v2328_v27 = vld [vmem:[%s4341_s0 + $0x9d] ss:$40 sm:%s371_s8]   ;;  %286 = vrot.lane.b32.xlu0 %v285_v30, %s2650_s13  ;;  %v2345_v12 = vld [vmem:[%s4341_s0 + $0x89] sm:$0x2]   ;;  %s767_s8 = smov 3  ;;  %s774_s25 = smov 24 }
  0x20   :  { %v2330_v28 = vld [vmem:[%s4341_s0 + $0xaf] sm:$0x40]   ;;  %v374_v31 = vsel %vm338_vm6, %v2328_v27, %v369_v26  ;;  %v2325_v41 = vld [vmem:[%s4341_s0 + $0x136] sm:$0x80]   ;;  %v473_v15 = vsel %vm68_vm0, %v2345_v12, %v2344_v11  ;;  %v2346_v16 = vld [vmem:[%s4341_s0 + $0x31a] ss:$-264 sm:%s475_s18]  }
  0x21   :  { %v2331_v29 = vld [vmem:[%s4341_s0 + $0x12e] sm:$0x80]   ;;  %v378_v35 = vsel %vm342_vm7, %v2329_v24, %v374_v31  ;;  %v2333_v53 = vld [vmem:[%s4341_s0 + $0xdb] sm:$0x4]   ;;  %v2347_v17 = vld [vmem:[%s4341_s0 + $0x7e] sm:$0x10]   ;;  %v478_v19 = vsel %vm73_vm1, %v2346_v16, %v473_v15 }
  0x22   :  { %v2320_v32 = vld [vmem:[%s4341_s0 + $0x105] ss:$-232 sm:%s329_s14]   ;;  %v382_v39 = vsel %vm346_vm8, %v2330_v28, %v378_v35  ;;  %v2348_v20 = vld [vmem:[%s4341_s0 + $0x58a] ss:$-232 sm:%s484_s29]   ;;  %v482_v23 = vsel %vm77_vm2, %v2347_v17, %v478_v19  ;;  %s2651_s14 = smov 96   ;;  %s2652_s11 = smov 80  }
  0x23   :  { %v334_v36 = vsel %vm333_vm5, %v2321_v33, %v2320_v32  ;;  %v2322_v37 = vld [vmem:[%s4341_s0 + $0x105] ss:$8 sm:%s336_s15]   ;;  %v386_v44 = vsel %vm86_vm4, %v2331_v29, %v382_v39  ;;  %s517_s15 = smov 96  ;;  %v2349_v21 = vld [vmem:[%s4341_s0 + $0x93] sm:$0x80]   ;;  %v487_v27 = vsel %vm82_vm3, %v2348_v20, %v482_v23  ;;  %s944_s18 = smov 12 }
  0x24   :  { %v339_v40 = vsel %vm338_vm6, %v2322_v37, %v334_v36  ;;  %v2338_v42 = vld [vmem:[%s4341_s0 + $0x15d] ss:$-264 sm:%s434_s3]   ;;  %387 = vrot.lane.b32.xlu1 %v386_v44, %s2650_s13  ;;  %v2362_v24 = vld [vmem:[%s4341_s0 + $0x22] sm:$0x1]   ;;  %v491_v31 = vsel %vm86_vm4, %v2349_v21, %v487_v27  ;;  %s714_s3 = smov 96  ;;  %s1004_s12 = smov 3 }
  0x25   :  { %v2339_v43 = vld [vmem:[%s4341_s0 + $0xd3] sm:$0x4]   ;;  %v343_v45 = vsel %vm342_vm7, %v2323_v34, %v339_v40  ;;  %v2335_v60 = vld [vmem:[%s4341_s0 + $0x78] sm:$0x20]   ;;  %v2354_v10 = vld [vmem:[%s4341_s0 + $0x642] ss:$-264 sm:%s517_s15]  }
  0x26   :  { %v439_v46 = vsel %vm333_vm5, %v2339_v43, %v2338_v42  ;;  %v2340_v47 = vld [vmem:[%s4341_s0 + $0xdd] ss:$40 sm:%s441_s4]   ;;  %v347_v50 = vsel %vm346_vm8, %v2324_v38, %v343_v45  ;;  %v520_v18 = vsel %vm82_vm3, %v2354_v10, %v515_v14  ;;  %v2363_v25 = vld [vmem:[%s4341_s0 + $0xa1] sm:$0x2]   ;;  %v2365_v29 = vld [vmem:[%s4341_s0 + $0xb6] sm:$0x10]  }
  0x27   :  { %v2341_v48 = vld [vmem:[%s4341_s0 + $0x70] sm:$0x20]   ;;  %v444_v51 = vsel %vm338_vm6, %v2340_v47, %v439_v46  ;;  %v351_v54 = vsel %vm86_vm4, %v2325_v41, %v347_v50  ;;  %v2336_v61 = vld [vmem:[%s4341_s0 + $0xf7] sm:$0x40]   ;;  %v524_v22 = vsel %vm86_vm4, %v2355_v7, %v520_v18  ;;  %v2364_v26 = vld [vmem:[%s4341_s0 + $0x2f2] ss:$-232 sm:%s573_s30]   ;;  %v571_v28 = vsel %vm68_vm0, %v2363_v25, %v2362_v24 }
  0x28   :  { %v2342_v49 = vld [vmem:[%s4341_s0 + $0xef] sm:$0x40]   ;;  %v448_v55 = vsel %vm342_vm7, %v2341_v48, %v444_v51  ;;  %352 = vrot.lane.b32.xlu0 %v351_v54, %s2650_s13  ;;  %v2337_v62 = vld [vmem:[%s4341_s0 + $0x176] sm:$0x80]   ;;  %v576_v32 = vsel %vm73_vm1, %v2364_v26, %v571_v28  ;;  %v2367_v33 = vld [vmem:[%s4341_s0 + $0xab] sm:$0x80]  }
  0x29   :  { %v2343_v52 = vld [vmem:[%s4341_s0 + $0x16e] sm:$0x80]   ;;  %v452_v58 = vsel %vm346_vm8, %v2342_v49, %v448_v55  ;;  %v2366_v30 = vld [vmem:[%s4341_s0 + $0x662] ss:$-264 sm:%s582_s5]   ;;  %v580_v36 = vsel %vm77_vm2, %v2365_v29, %v576_v32  ;;  %s672_s4 = smov 12  ;;  %s809_s5 = smov 24 }
  0x2a   :  { %v2332_v56 = vld [vmem:[%s4341_s0 + $0x145] ss:$-232 sm:%s399_s20]   ;;  %v456_v63 = vsel %vm86_vm4, %v2343_v52, %v452_v58  ;;  %s639_s20 = smov 12  ;;  %v2356_v34 = vld [vmem:[%s4341_s0 + $0x2a] sm:$0x1]   ;;  %v585_v40 = vsel %vm82_vm3, %v2366_v30, %v580_v36  ;;  %s1011_s15 = smov 24 }
  0x2b   :  { %v2334_v57 = vld [vmem:[%s4341_s0 + $0x145] ss:$8 sm:%s406_s23]   ;;  %v404_v59 = vsel %vm333_vm5, %v2333_v53, %v2332_v56  ;;  %457 = vrot.lane.b32.xlu1 %v456_v63, %s2650_s13  ;;  %v2357_v35 = vld [vmem:[%s4341_s0 + $0xa9] sm:$0x2]   ;;  %v589_v45 = vsel %vm86_vm4, %v2367_v33, %v585_v40  ;;  %s681_s23 = smov 96  ;;  %s1080_s16 = smov 12 }
  0x2c   :  { %v409_v0 = vsel %vm338_vm6, %v2334_v57, %v404_v59  ;;  %v538_v37 = vsel %vm68_vm0, %v2357_v35, %v2356_v34  ;;  %v2358_v38 = vld [vmem:[%s4341_s0 + $0x33a] ss:$-264 sm:%s540_s6]   ;;  %s732_s6 = smov 3  ;;  %s2653_s9 = smov 64  }
  0x2d   :  { %v413_v4 = vsel %vm342_vm7, %v2335_v60, %v409_v0  ;;  %v2359_v39 = vld [vmem:[%s4341_s0 + $0x9e] sm:$0x10]   ;;  %v543_v41 = vsel %vm73_vm1, %v2358_v38, %v538_v37  ;;  %v2361_v43 = vld [vmem:[%s4341_s0 + $0xb3] sm:$0x80]   ;;  %v2379_v53 = vld [vmem:[%s4341_s0 + $0xcb] sm:$0x80]  }
  0x2e   :  { %v417_v8 = vsel %vm346_vm8, %v2336_v61, %v413_v4  ;;  %v2360_v42 = vld [vmem:[%s4341_s0 + $0x5aa] ss:$-232 sm:%s549_s19]   ;;  %v547_v46 = vsel %vm77_vm2, %v2359_v39, %v543_v41  ;;  %s739_s19 = smov 24  ;;  %s1155_s17 = smov 96 }
  0x2f   :  { %v421_v13 = vsel %vm86_vm4, %v2337_v62, %v417_v8  ;;  %525 = vrot.lane.b32.xlu1 %v524_v22, %s2651_s14  ;;  %v2374_v44 = vld [vmem:[%s4341_s0 + $0x42] sm:$0x1]   ;;  %v2377_v49 = vld [vmem:[%s4341_s0 + $0xd6] sm:$0x10]   ;;  %v552_v50 = vsel %vm82_vm3, %v2360_v42, %v547_v46  ;;  %v2368_v56 = vld [vmem:[%s4341_s0 + $0x4a] sm:$0x1]  }
  0x30   :  { %422 = vrot.lane.b32.xlu0 %v421_v13, %s2650_s13  ;;  %s648_s13 = smov 96  ;;  %v2375_v47 = vld [vmem:[%s4341_s0 + $0xc1] sm:$0x2]   ;;  %v556_v54 = vsel %vm86_vm4, %v2361_v43, %v552_v50  ;;  %v2369_v57 = vld [vmem:[%s4341_s0 + $0xc9] sm:$0x2]   ;;  %s1323_s10 = smov 96 }
  0x31   :  { %v2376_v48 = vld [vmem:[%s4341_s0 + $0x312] ss:$-232 sm:%s639_s20]   ;;  %v637_v51 = vsel %vm68_vm0, %v2375_v47, %v2374_v44  ;;  %v604_v60 = vsel %vm68_vm0, %v2369_v57, %v2368_v56  ;;  %s837_s20 = smov 3  ;;  %s1389_s30 = smov 96 }
  0x32   :  { %v2378_v52 = vld [vmem:[%s4341_s0 + $0x682] ss:$-264 sm:%s648_s13]   ;;  %v642_v55 = vsel %vm73_vm1, %v2376_v48, %v637_v51  ;;  %s1113_s13 = smov 12  ;;  %s1582_s29 = smov 12 }
  0x33   :  { %590 = vrot.lane.b32.xlu1 %v589_v45, %s2651_s14  ;;  %v2370_v58 = vld [vmem:[%s4341_s0 + $0x35a] ss:$-264 sm:%s606_s2]   ;;  %v646_v59 = vsel %vm77_vm2, %v2377_v49, %v642_v55  ;;  %s911_s2 = smov 12 }
  0x34   :  { %492 = vrot.lane.b32.xlu0 %v491_v31, %s2651_s14  ;;  %v2371_v61 = vld [vmem:[%s4341_s0 + $0xbe] sm:$0x10]   ;;  %v651_v63 = vsel %vm82_vm3, %v2378_v52, %v646_v59  ;;  %v609_v0 = vsel %vm73_vm1, %v2370_v58, %v604_v60  ;;  %v2373_v1 = vld [vmem:[%s4341_s0 + $0xd3] sm:$0x80]   ;;  %v2391_v9 = vld [vmem:[%s4341_s0 + $0xeb] sm:$0x80]  }
  0x35   :  { %v2372_v62 = vld [vmem:[%s4341_s0 + $0x5ca] ss:$-232 sm:%s615_s21]   ;;  %v655_v4 = vsel %vm86_vm4, %v2379_v53, %v651_v63  ;;  %v613_v5 = vsel %vm77_vm2, %v2371_v61, %v609_v0  ;;  %s1089_s21 = smov 96 }
  0x36   :  { %v2386_v2 = vld [vmem:[%s4341_s0 + $0x62] sm:$0x1]   ;;  %v2389_v8 = vld [vmem:[%s4341_s0 + $0xf6] sm:$0x10]   ;;  %v618_v10 = vsel %vm82_vm3, %v2372_v62, %v613_v5  ;;  %v2380_v13 = vld [vmem:[%s4341_s0 + $0x6a] sm:$0x1]  }
  0x37   :  { %v2387_v3 = vld [vmem:[%s4341_s0 + $0xe1] sm:$0x2]   ;;  %656 = vrot.lane.b32.xlu1 %v655_v4, %s2651_s14  ;;  %v622_v14 = vsel %vm86_vm4, %v2373_v1, %v618_v10  ;;  %v2381_v16 = vld [vmem:[%s4341_s0 + $0xe9] sm:$0x2]   ;;  %v2385_v22 = vld [vmem:[%s4341_s0 + $0xf3] sm:$0x80]  }
  0x38   :  { %557 = vrot.lane.b32.xlu0 %v556_v54, %s2651_s14  ;;  %v703_v6 = vsel %vm68_vm0, %v2387_v3, %v2386_v2  ;;  %v2388_v7 = vld [vmem:[%s4341_s0 + $0x332] ss:$-232 sm:%s705_s22]   ;;  %v670_v20 = vsel %vm68_vm0, %v2381_v16, %v2380_v13  ;;  %v2422_v4 = vld [vmem:[%s4341_s0 + $0x37] sm:$0x1]   ;;  %s878_s22 = smov 12 }
  0x39   :  { %v708_v11 = vsel %vm73_vm1, %v2388_v7, %v703_v6  ;;  %v2390_v12 = vld [vmem:[%s4341_s0 + $0x6a2] ss:$-264 sm:%s714_s3]   ;;  %s920_s3 = smov 96  ;;  %v2423_v5 = vld [vmem:[%s4341_s0 + $0xb6] sm:$0x2]  }
  0x3a   :  { %v712_v15 = vsel %vm77_vm2, %v2389_v8, %v708_v11  ;;  %v2382_v17 = vld [vmem:[%s4341_s0 + $0x37a] ss:$-264 sm:%s672_s4]   ;;  %v909_v8 = vsel %vm68_vm0, %v2423_v5, %v2422_v4  ;;  %v2425_v10 = vld [vmem:[%s4341_s0 + $0xab] sm:$0x10]   ;;  %v2427_v11 = vld [vmem:[%s4341_s0 + $0xa0] sm:$0x80]  }
  0x3b   :  { %v2383_v18 = vld [vmem:[%s4341_s0 + $0xde] sm:$0x10]   ;;  %v717_v19 = vsel %vm82_vm3, %v2390_v12, %v712_v15  ;;  %v675_v24 = vsel %vm73_vm1, %v2382_v17, %v670_v20  ;;  %v2405_v26 = vld [vmem:[%s4341_s0 + $0xd0] sm:$0x4]   ;;  %v2411_v49 = vld [vmem:[%s4341_s0 + $0xc8] sm:$0x4]  }
  0x3c   :  { %623 = vrot.lane.b32.xlu0 %v622_v14, %s2651_s14  ;;  %v2384_v21 = vld [vmem:[%s4341_s0 + $0x5ea] ss:$-232 sm:%s681_s23]   ;;  %v721_v23 = vsel %vm86_vm4, %v2391_v9, %v717_v19  ;;  %v679_v28 = vsel %vm77_vm2, %v2383_v18, %v675_v24  ;;  %v2416_v15 = vld [vmem:[%s4341_s0 + $0x17] sm:$0x1]   ;;  %s887_s23 = smov 96  ;;  %s986_s4 = smov 96 }
  0x3d   :  { %v2404_v25 = vld [vmem:[%s4341_s0 + $0x15a] ss:$-264 sm:%s802_s24]   ;;  %722 = vrot.lane.b32.xlu1 %v721_v23, %s2651_s14  ;;  %v684_v32 = vsel %vm82_vm3, %v2384_v21, %v679_v28  ;;  %v2417_v18 = vld [vmem:[%s4341_s0 + $0x96] sm:$0x2]  }
  0x3e   :  { %v2407_v27 = vld [vmem:[%s4341_s0 + $0x6d] sm:$0x20]   ;;  %v807_v29 = vsel %vm333_vm5, %v2405_v26, %v2404_v25  ;;  %v688_v37 = vsel %vm86_vm4, %v2385_v22, %v684_v32  ;;  %v2413_v51 = vld [vmem:[%s4341_s0 + $0x65] sm:$0x20]   ;;  %v2424_v9 = vld [vmem:[%s4341_s0 + $0x347] ss:$-264 sm:%s911_s2]   ;;  %v876_v22 = vsel %vm68_vm0, %v2417_v18, %v2416_v15 }
  0x3f   :  { %v2406_v30 = vld [vmem:[%s4341_s0 + $0xda] ss:$40 sm:%s809_s5]   ;;  %v914_v13 = vsel %vm73_vm1, %v2424_v9, %v909_v8  ;;  %v2426_v14 = vld [vmem:[%s4341_s0 + $0x657] ss:$-264 sm:%s920_s3]   ;;  %s977_s3 = smov 12  ;;  %s1146_s2 = smov 12 }
  0x40   :  { %v2408_v31 = vld [vmem:[%s4341_s0 + $0xec] sm:$0x40]   ;;  %v812_v33 = vsel %vm338_vm6, %v2406_v30, %v807_v29  ;;  %689 = vrot.lane.b32.xlu0 %v688_v37, %s2651_s14  ;;  %v2414_v54 = vld [vmem:[%s4341_s0 + $0xe4] sm:$0x40]   ;;  %v918_v17 = vsel %vm77_vm2, %v2425_v10, %v914_v13  ;;  %v2419_v20 = vld [vmem:[%s4341_s0 + $0x8b] sm:$0x10]  }
  0x41   :  { %v2409_v34 = vld [vmem:[%s4341_s0 + $0x16b] sm:$0x80]   ;;  %v816_v38 = vsel %vm342_vm7, %v2407_v27, %v812_v33  ;;  %v2415_v55 = vld [vmem:[%s4341_s0 + $0x163] sm:$0x80]   ;;  %v2418_v19 = vld [vmem:[%s4341_s0 + $0x327] ss:$-264 sm:%s878_s22]   ;;  %v923_v21 = vsel %vm82_vm3, %v2426_v14, %v918_v17 }
  0x42   :  { %v2392_v35 = vld [vmem:[%s4341_s0 + $0x11a] ss:$-264 sm:%s732_s6]   ;;  %v820_v43 = vsel %vm346_vm8, %v2408_v31, %v816_v38  ;;  %v2420_v23 = vld [vmem:[%s4341_s0 + $0x637] ss:$-264 sm:%s887_s23]   ;;  %v927_v25 = vsel %vm86_vm4, %v2427_v11, %v923_v21  ;;  %v881_v26 = vsel %vm73_vm1, %v2418_v19, %v876_v22  ;;  %s1046_s6 = smov 24  ;;  %s1179_s22 = smov 12 }
  0x43   :  { %v2393_v36 = vld [vmem:[%s4341_s0 + $0x90] sm:$0x4]   ;;  %v824_v47 = vsel %vm86_vm4, %v2409_v34, %v820_v43  ;;  %v2399_v56 = vld [vmem:[%s4341_s0 + $0x88] sm:$0x4]   ;;  %v2421_v24 = vld [vmem:[%s4341_s0 + $0x80] sm:$0x80]   ;;  %v885_v30 = vsel %vm77_vm2, %v2419_v20, %v881_v26 }
  0x44   :  { %v737_v39 = vsel %vm333_vm5, %v2393_v36, %v2392_v35  ;;  %v2394_v40 = vld [vmem:[%s4341_s0 + $0x9a] ss:$40 sm:%s739_s19]   ;;  %825 = vrot.lane.b32.xlu1 %v824_v47, %s2651_s14  ;;  %v2434_v27 = vld [vmem:[%s4341_s0 + $0x77] sm:$0x1]   ;;  %s953_s19 = smov 96  ;;  %v890_v34 = vsel %vm82_vm3, %v2420_v23, %v885_v30  ;;  %s1356_s23 = smov 96 }
  0x45   :  { %v2395_v41 = vld [vmem:[%s4341_s0 + $0x2d] sm:$0x20]   ;;  %v742_v44 = vsel %vm338_vm6, %v2394_v40, %v737_v39  ;;  %v2401_v60 = vld [vmem:[%s4341_s0 + $0x25] sm:$0x20]   ;;  %v2435_v28 = vld [vmem:[%s4341_s0 + $0xf6] sm:$0x2]   ;;  %v894_v39 = vsel %vm86_vm4, %v2421_v24, %v890_v34 }
  0x46   :  { %v2396_v42 = vld [vmem:[%s4341_s0 + $0xac] sm:$0x40]   ;;  %v746_v48 = vsel %vm342_vm7, %v2395_v41, %v742_v44  ;;  %v2402_v0 = vld [vmem:[%s4341_s0 + $0xa4] sm:$0x40]   ;;  %v2436_v29 = vld [vmem:[%s4341_s0 + $0x387] ss:$-264 sm:%s977_s3]   ;;  %v975_v31 = vsel %vm68_vm0, %v2435_v28, %v2434_v27 }
  0x47   :  { %v2397_v45 = vld [vmem:[%s4341_s0 + $0x12b] sm:$0x80]   ;;  %v750_v52 = vsel %vm346_vm8, %v2396_v42, %v746_v48  ;;  %v2403_v3 = vld [vmem:[%s4341_s0 + $0x123] sm:$0x80]   ;;  %v2437_v32 = vld [vmem:[%s4341_s0 + $0xeb] sm:$0x10]   ;;  %v980_v35 = vsel %vm73_vm1, %v2436_v29, %v975_v31 }
  0x48   :  { %v2410_v46 = vld [vmem:[%s4341_s0 + $0x152] ss:$-264 sm:%s837_s20]   ;;  %v754_v57 = vsel %vm86_vm4, %v2397_v45, %v750_v52  ;;  %v2438_v33 = vld [vmem:[%s4341_s0 + $0x697] ss:$-264 sm:%s986_s4]   ;;  %v984_v40 = vsel %vm77_vm2, %v2437_v32, %v980_v35  ;;  %s1039_s3 = smov 3  ;;  %s1206_s4 = smov 3 }
  0x49   :  { %v2412_v50 = vld [vmem:[%s4341_s0 + $0xd2] ss:$40 sm:%s844_s7]   ;;  %v842_v53 = vsel %vm333_vm5, %v2411_v49, %v2410_v46  ;;  %755 = vrot.lane.b32.xlu0 %v754_v57, %s2651_s14  ;;  %v2439_v36 = vld [vmem:[%s4341_s0 + $0xe0] sm:$0x80]   ;;  %v989_v45 = vsel %vm82_vm3, %v2438_v33, %v984_v40  ;;  %s1282_s20 = smov 12  ;;  %s1727_s7 = smov 96 }
  0x4a   :  { %v847_v58 = vsel %vm338_vm6, %v2412_v50, %v842_v53  ;;  %v2398_v59 = vld [vmem:[%s4341_s0 + $0x112] ss:$-264 sm:%s767_s8]   ;;  %v2428_v37 = vld [vmem:[%s4341_s0 + $0x57] sm:$0x1]   ;;  %v2431_v43 = vld [vmem:[%s4341_s0 + $0xcb] sm:$0x10]   ;;  %v993_v49 = vsel %vm86_vm4, %v2439_v36, %v989_v45 }
  0x4b   :  { %v851_v61 = vsel %vm342_vm7, %v2413_v51, %v847_v58  ;;  %v772_v62 = vsel %vm333_vm5, %v2399_v56, %v2398_v59  ;;  %v2400_v63 = vld [vmem:[%s4341_s0 + $0x92] ss:$40 sm:%s774_s25]   ;;  %v2429_v38 = vld [vmem:[%s4341_s0 + $0xd6] sm:$0x2]   ;;  %v2433_v44 = vld [vmem:[%s4341_s0 + $0xc0] sm:$0x80]  }
  0x4c   :  { %v855_v1 = vsel %vm346_vm8, %v2414_v54, %v851_v61  ;;  %v777_v2 = vsel %vm338_vm6, %v2400_v63, %v772_v62  ;;  %v942_v41 = vsel %vm68_vm0, %v2429_v38, %v2428_v37  ;;  %v2430_v42 = vld [vmem:[%s4341_s0 + $0x367] ss:$-264 sm:%s944_s18]   ;;  %v2460_v11 = vld [vmem:[%s4341_s0 + $0x33c] ss:$-264 sm:%s1113_s13]   ;;  %s1188_s13 = smov 96  ;;  %s1241_s18 = smov 3 }
  0x4d   :  { %v859_v6 = vsel %vm86_vm4, %v2415_v55, %v855_v1  ;;  %v781_v7 = vsel %vm342_vm7, %v2401_v60, %v777_v2  ;;  %v947_v46 = vsel %vm73_vm1, %v2430_v42, %v942_v41  ;;  %v2432_v47 = vld [vmem:[%s4341_s0 + $0x677] ss:$-264 sm:%s953_s19]   ;;  %v2452_v19 = vld [vmem:[%s4341_s0 + $0xc] sm:$0x1]   ;;  %v2455_v24 = vld [vmem:[%s4341_s0 + $0x80] sm:$0x10]  }
  0x4e   :  { %860 = vrot.lane.b32.xlu1 %v859_v6, %s2651_s14  ;;  %v785_v12 = vsel %vm346_vm8, %v2402_v0, %v781_v7  ;;  %v2447_v48 = vld [vmem:[%s4341_s0 + $0xdd] sm:$0x4]   ;;  %v951_v50 = vsel %vm77_vm2, %v2431_v43, %v947_v46  ;;  %v2458_v6 = vld [vmem:[%s4341_s0 + $0x2c] sm:$0x1]   ;;  %v2457_v28 = vld [vmem:[%s4341_s0 + $0x95] sm:$0x80]  }
  0x4f   :  { %v789_v16 = vsel %vm86_vm4, %v2403_v3, %v785_v12  ;;  %v2446_v51 = vld [vmem:[%s4341_s0 + $0x147] ss:$-232 sm:%s1039_s3]   ;;  %v956_v53 = vsel %vm82_vm3, %v2432_v47, %v951_v50  ;;  %v2459_v7 = vld [vmem:[%s4341_s0 + $0xab] sm:$0x2]   ;;  %v2461_v12 = vld [vmem:[%s4341_s0 + $0xa0] sm:$0x10]  }
  0x50   :  { %790 = vrot.lane.b32.xlu0 %v789_v16, %s2651_s14  ;;  %v2448_v52 = vld [vmem:[%s4341_s0 + $0x147] ss:$8 sm:%s1046_s6]   ;;  %v1044_v54 = vsel %vm333_vm5, %v2447_v48, %v2446_v51  ;;  %v960_v58 = vsel %vm86_vm4, %v2433_v44, %v956_v53  ;;  %v1111_v10 = vsel %vm68_vm0, %v2459_v7, %v2458_v6  ;;  %v2463_v16 = vld [vmem:[%s4341_s0 + $0xb5] sm:$0x80]   ;;  %s1248_s3 = smov 24  ;;  %s1213_s19 = smov 24 }
  0x51   :  { %v2449_v55 = vld [vmem:[%s4341_s0 + $0x7a] sm:$0x20]   ;;  %v1049_v59 = vsel %vm338_vm6, %v2448_v52, %v1044_v54  ;;  %v1116_v14 = vsel %vm73_vm1, %v2460_v11, %v1111_v10  ;;  %v2453_v20 = vld [vmem:[%s4341_s0 + $0x8b] sm:$0x2]   ;;  %v2473_v34 = vld [vmem:[%s4341_s0 + $0xe0] sm:$0x10]  }
  0x52   :  { %928 = vrot.lane.b32.xlu1 %v927_v25, %s2652_s11  ;;  %v2450_v56 = vld [vmem:[%s4341_s0 + $0xf9] sm:$0x40]   ;;  %v1053_v63 = vsel %vm342_vm7, %v2449_v55, %v1049_v59  ;;  %v1120_v18 = vsel %vm77_vm2, %v2461_v12, %v1116_v14  ;;  %v2454_v21 = vld [vmem:[%s4341_s0 + $0x31c] ss:$-264 sm:%s1080_s16]   ;;  %v1078_v23 = vsel %vm68_vm0, %v2453_v20, %v2452_v19  ;;  %s1314_s6 = smov 12  ;;  %s1380_s14 = smov 12 }
  0x53   :  { %v2451_v57 = vld [vmem:[%s4341_s0 + $0x178] sm:$0x80]   ;;  %v1057_v3 = vsel %vm346_vm8, %v2450_v56, %v1053_v63  ;;  %v2456_v25 = vld [vmem:[%s4341_s0 + $0x58c] ss:$-232 sm:%s1089_s21]   ;;  %v1083_v27 = vsel %vm73_vm1, %v2454_v21, %v1078_v23  ;;  %v2499_v14 = vld [vmem:[%s4341_s0 + $0xaa] sm:$0x80]  }
  0x54   :  { %895 = vrot.lane.b32.xlu0 %v894_v39, %s2652_s11  ;;  %v2440_v60 = vld [vmem:[%s4341_s0 + $0x107] ss:$-232 sm:%s1004_s12]   ;;  %v1061_v8 = vsel %vm86_vm4, %v2451_v57, %v1057_v3  ;;  %v2470_v29 = vld [vmem:[%s4341_s0 + $0x6c] sm:$0x1]   ;;  %v1087_v31 = vsel %vm77_vm2, %v2455_v24, %v1083_v27  ;;  %s1291_s21 = smov 96  ;;  %s1525_s12 = smov 96 }
  0x55   :  { %v2441_v61 = vld [vmem:[%s4341_s0 + $0x9d] sm:$0x4]   ;;  %v2471_v30 = vld [vmem:[%s4341_s0 + $0xeb] sm:$0x2]   ;;  %v1092_v35 = vsel %vm82_vm3, %v2456_v25, %v1087_v31  ;;  %v2475_v38 = vld [vmem:[%s4341_s0 + $0xf5] sm:$0x80]  }
  0x56   :  { %994 = vrot.lane.b32.xlu1 %v993_v49, %s2652_s11  ;;  %v2443_v62 = vld [vmem:[%s4341_s0 + $0x3a] sm:$0x20]   ;;  %v1009_v0 = vsel %vm333_vm5, %v2441_v61, %v2440_v60  ;;  %v1177_v32 = vsel %vm68_vm0, %v2471_v30, %v2470_v29  ;;  %v2472_v33 = vld [vmem:[%s4341_s0 + $0x37c] ss:$-264 sm:%s1179_s22]   ;;  %v1096_v40 = vsel %vm86_vm4, %v2457_v28, %v1092_v35  ;;  %s1347_s22 = smov 12  ;;  %s1616_s16 = smov 24 }
  0x57   :  { %v2442_v1 = vld [vmem:[%s4341_s0 + $0x107] ss:$8 sm:%s1011_s15]   ;;  %s1122_s15 = smov 96  ;;  %v1182_v36 = vsel %vm73_vm1, %v2472_v33, %v1177_v32  ;;  %v2474_v37 = vld [vmem:[%s4341_s0 + $0x5ec] ss:$-232 sm:%s1188_s13]   ;;  %s1442_s13 = smov 3 }
  0x58   :  { %961 = vrot.lane.b32.xlu0 %v960_v58, %s2652_s11  ;;  %v2444_v2 = vld [vmem:[%s4341_s0 + $0xb9] sm:$0x40]   ;;  %v1014_v4 = vsel %vm338_vm6, %v2442_v1, %v1009_v0  ;;  %v2462_v15 = vld [vmem:[%s4341_s0 + $0x5ac] ss:$-232 sm:%s1122_s15]   ;;  %v1186_v41 = vsel %vm77_vm2, %v2473_v34, %v1182_v36  ;;  %s2655_s15 = smov 32  }
  0x59   :  { %v2445_v5 = vld [vmem:[%s4341_s0 + $0x138] sm:$0x80]   ;;  %v1018_v9 = vsel %vm342_vm7, %v2443_v62, %v1014_v4  ;;  %v1125_v22 = vsel %vm82_vm3, %v2462_v15, %v1120_v18  ;;  %v2464_v39 = vld [vmem:[%s4341_s0 + $0x4c] sm:$0x1]   ;;  %v2467_v44 = vld [vmem:[%s4341_s0 + $0xc0] sm:$0x10]   ;;  %v1191_v45 = vsel %vm82_vm3, %v2474_v37, %v1186_v41 }
  0x5a   :  { %1062 = vrot.lane.b32.xlu1 %v1061_v8, %s2652_s11  ;;  %v1022_v13 = vsel %vm346_vm8, %v2444_v2, %v1018_v9  ;;  %v1129_v26 = vsel %vm86_vm4, %v2463_v16, %v1125_v22  ;;  %v2465_v42 = vld [vmem:[%s4341_s0 + $0xcb] sm:$0x2]   ;;  %v2469_v48 = vld [vmem:[%s4341_s0 + $0xd5] sm:$0x80]   ;;  %v1195_v49 = vsel %vm86_vm4, %v2475_v38, %v1191_v45  ;;  %v2483_v52 = vld [vmem:[%s4341_s0 + $0xd2] sm:$0x4]  }
  0x5b   :  { %v1026_v17 = vsel %vm86_vm4, %v2445_v5, %v1022_v13  ;;  %v2466_v43 = vld [vmem:[%s4341_s0 + $0x35c] ss:$-264 sm:%s1146_s2]   ;;  %v1144_v46 = vsel %vm68_vm0, %v2465_v42, %v2464_v39  ;;  %v2494_v8 = vld [vmem:[%s4341_s0 + $0x21] sm:$0x1]   ;;  %v2497_v13 = vld [vmem:[%s4341_s0 + $0xb5] sm:$0x10]  }
  0x5c   :  { %1027 = vrot.lane.b32.xlu0 %v1026_v17, %s2652_s11  ;;  %v2468_v47 = vld [vmem:[%s4341_s0 + $0x5cc] ss:$-232 sm:%s1155_s17]   ;;  %v1149_v50 = vsel %vm73_vm1, %v2466_v43, %v1144_v46  ;;  %v2495_v9 = vld [vmem:[%s4341_s0 + $0xa0] sm:$0x2]   ;;  %s2654_s17 = smov 48   ;;  %s1449_s2 = smov 24 }
  0x5d   :  { %v2482_v51 = vld [vmem:[%s4341_s0 + $0x15c] ss:$-264 sm:%s1241_s18]   ;;  %v1153_v54 = vsel %vm77_vm2, %v2467_v44, %v1149_v50  ;;  %v1312_v12 = vsel %vm68_vm0, %v2495_v9, %v2494_v8  ;;  %v2496_v16 = vld [vmem:[%s4341_s0 + $0x2f1] ss:$-232 sm:%s1314_s6]   ;;  %s1407_s18 = smov 3 }
  0x5e   :  { %1130 = vrot.lane.b32.xlu1 %v1129_v26, %s2653_s9  ;;  %v2485_v53 = vld [vmem:[%s4341_s0 + $0x6f] sm:$0x20]   ;;  %v1246_v55 = vsel %vm333_vm5, %v2483_v52, %v2482_v51  ;;  %v1158_v58 = vsel %vm82_vm3, %v2468_v47, %v1153_v54  ;;  %v2488_v17 = vld [vmem:[%s4341_s0 + $0x1] sm:$0x1]   ;;  %v1317_v19 = vsel %vm73_vm1, %v2496_v16, %v1312_v12  ;;  %v2491_v22 = vld [vmem:[%s4341_s0 + $0x95] sm:$0x10]  }
  0x5f   :  { %v2484_v56 = vld [vmem:[%s4341_s0 + $0xdc] ss:$40 sm:%s1248_s3]   ;;  %v1162_v63 = vsel %vm86_vm4, %v2469_v48, %v1158_v58  ;;  %v2498_v20 = vld [vmem:[%s4341_s0 + $0x661] ss:$-264 sm:%s1323_s10]   ;;  %v1321_v23 = vsel %vm77_vm2, %v2497_v13, %v1317_v19  ;;  %s1516_s3 = smov 12  ;;  %s1591_s10 = smov 96 }
  0x60   :  { %1097 = vrot.lane.b32.xlu0 %v1096_v40, %s2653_s9  ;;  %v2486_v57 = vld [vmem:[%s4341_s0 + $0xee] sm:$0x40]   ;;  %v1251_v59 = vsel %vm338_vm6, %v2484_v56, %v1246_v55  ;;  %v2489_v21 = vld [vmem:[%s4341_s0 + $0x80] sm:$0x2]   ;;  %v2493_v26 = vld [vmem:[%s4341_s0 + $0x8a] sm:$0x80]   ;;  %v1326_v27 = vsel %vm82_vm3, %v2498_v20, %v1321_v23 }
  0x61   :  { %v2487_v60 = vld [vmem:[%s4341_s0 + $0x16d] sm:$0x80]   ;;  %v1255_v0 = vsel %vm342_vm7, %v2485_v53, %v1251_v59  ;;  %v1280_v24 = vsel %vm68_vm0, %v2489_v21, %v2488_v17  ;;  %v2490_v25 = vld [vmem:[%s4341_s0 + $0x2d1] ss:$-232 sm:%s1282_s20]   ;;  %v1330_v32 = vsel %vm86_vm4, %v2499_v14, %v1326_v27  ;;  %v2531_v13 = vld [vmem:[%s4341_s0 + $0xb5] sm:$0x2]  }
  0x62   :  { %1196 = vrot.lane.b32.xlu1 %v1195_v49, %s2653_s9  ;;  %v2476_v61 = vld [vmem:[%s4341_s0 + $0x11c] ss:$-264 sm:%s1206_s4]   ;;  %v1259_v5 = vsel %vm346_vm8, %v2486_v57, %v1255_v0  ;;  %v1285_v28 = vsel %vm73_vm1, %v2490_v25, %v1280_v24  ;;  %v2506_v30 = vld [vmem:[%s4341_s0 + $0x61] sm:$0x1]   ;;  %s1483_s20 = smov 12  ;;  %s1718_s4 = smov 12 }
  0x63   :  { %v2477_v62 = vld [vmem:[%s4341_s0 + $0x92] sm:$0x4]   ;;  %v1263_v10 = vsel %vm86_vm4, %v2487_v60, %v1259_v5  ;;  %v2492_v29 = vld [vmem:[%s4341_s0 + $0x641] ss:$-264 sm:%s1291_s21]   ;;  %v1289_v33 = vsel %vm77_vm2, %v2491_v22, %v1285_v28  ;;  %v2524_v19 = vld [vmem:[%s4341_s0 + $0x16] sm:$0x1]  }
  0x64   :  { %v1211_v1 = vsel %vm333_vm5, %v2477_v62, %v2476_v61  ;;  %v2478_v2 = vld [vmem:[%s4341_s0 + $0x9c] ss:$40 sm:%s1213_s19]   ;;  %1163 = vrot.lane.b32.xlu0 %v1162_v63, %s2653_s9  ;;  %v2507_v31 = vld [vmem:[%s4341_s0 + $0xe0] sm:$0x2]   ;;  %v1294_v38 = vsel %vm82_vm3, %v2492_v29, %v1289_v33  ;;  %s1414_s19 = smov 24  ;;  %s1558_s21 = smov 96 }
  0x65   :  { %v2479_v3 = vld [vmem:[%s4341_s0 + $0x2f] sm:$0x20]   ;;  %v1216_v6 = vsel %vm338_vm6, %v2478_v2, %v1211_v1  ;;  %v1378_v34 = vsel %vm68_vm0, %v2507_v31, %v2506_v30  ;;  %v2508_v35 = vld [vmem:[%s4341_s0 + $0x331] ss:$-232 sm:%s1380_s14]   ;;  %v1298_v42 = vsel %vm86_vm4, %v2493_v26, %v1294_v38  ;;  %v2525_v23 = vld [vmem:[%s4341_s0 + $0x95] sm:$0x2]  }
  0x66   :  { %v2480_v4 = vld [vmem:[%s4341_s0 + $0xae] sm:$0x40]   ;;  %v1220_v11 = vsel %vm342_vm7, %v2479_v3, %v1216_v6  ;;  %1264 = vrot.lane.b32.xlu1 %v1263_v10, %s2653_s9  ;;  %v2509_v36 = vld [vmem:[%s4341_s0 + $0xf5] sm:$0x10]   ;;  %v2511_v37 = vld [vmem:[%s4341_s0 + $0xea] sm:$0x80]   ;;  %v1383_v39 = vsel %vm73_vm1, %v2508_v35, %v1378_v34  ;;  %v1481_v26 = vsel %vm68_vm0, %v2525_v23, %v2524_v19 }
  0x67   :  { %v2481_v7 = vld [vmem:[%s4341_s0 + $0x12d] sm:$0x80]   ;;  %v1224_v15 = vsel %vm346_vm8, %v2480_v4, %v1220_v11  ;;  %v2510_v40 = vld [vmem:[%s4341_s0 + $0x6a1] ss:$-264 sm:%s1389_s30]   ;;  %v1387_v43 = vsel %vm77_vm2, %v2509_v36, %v1383_v39  ;;  %v2530_v10 = vld [vmem:[%s4341_s0 + $0x36] sm:$0x1]  }
  0x68   :  { %v1228_v18 = vsel %vm86_vm4, %v2481_v7, %v1224_v15  ;;  %v2500_v41 = vld [vmem:[%s4341_s0 + $0x41] sm:$0x1]   ;;  %v2503_v46 = vld [vmem:[%s4341_s0 + $0xd5] sm:$0x10]   ;;  %v1392_v47 = vsel %vm82_vm3, %v2510_v40, %v1387_v43  ;;  %v2505_v50 = vld [vmem:[%s4341_s0 + $0xca] sm:$0x80]   ;;  %v1514_v17 = vsel %vm68_vm0, %v2531_v13, %v2530_v10 }
  0x69   :  { %1229 = vrot.lane.b32.xlu0 %v1228_v18, %s2653_s9  ;;  %v2501_v44 = vld [vmem:[%s4341_s0 + $0xc0] sm:$0x2]   ;;  %v1396_v51 = vsel %vm86_vm4, %v2511_v37, %v1392_v47  ;;  %v2519_v54 = vld [vmem:[%s4341_s0 + $0xc7] sm:$0x4]   ;;  %v2533_v15 = vld [vmem:[%s4341_s0 + $0xaa] sm:$0x10]  }
  0x6a   :  { %1331 = vrot.lane.b32.xlu1 %v1330_v32, %s2654_s17  ;;  %v2502_v45 = vld [vmem:[%s4341_s0 + $0x311] ss:$-232 sm:%s1347_s22]   ;;  %v1345_v48 = vsel %vm68_vm0, %v2501_v44, %v2500_v41  ;;  %v2535_v18 = vld [vmem:[%s4341_s0 + $0x9f] sm:$0x80]   ;;  %s1492_s9 = smov 96  ;;  %s1644_s22 = smov 3 }
  0x6b   :  { %v2504_v49 = vld [vmem:[%s4341_s0 + $0x681] ss:$-264 sm:%s1356_s23]   ;;  %v1350_v52 = vsel %vm73_vm1, %v2502_v45, %v1345_v48  ;;  %v2532_v14 = vld [vmem:[%s4341_s0 + $0x346] ss:$-264 sm:%s1516_s3]   ;;  %s1651_s14 = smov 24  ;;  %s1609_s30 = smov 3 }
  0x6c   :  { %v2518_v53 = vld [vmem:[%s4341_s0 + $0x151] ss:$-264 sm:%s1442_s13]   ;;  %v1354_v56 = vsel %vm77_vm2, %v2503_v46, %v1350_v52  ;;  %v1519_v21 = vsel %vm73_vm1, %v2532_v14, %v1514_v17  ;;  %v2534_v22 = vld [vmem:[%s4341_s0 + $0x656] ss:$-264 sm:%s1525_s12]   ;;  %s1549_s12 = smov 12  ;;  %s1784_s13 = smov 12 }
  0x6d   :  { %1299 = vrot.lane.b32.xlu0 %v1298_v42, %s2654_s17  ;;  %v2521_v55 = vld [vmem:[%s4341_s0 + $0x64] sm:$0x20]   ;;  %v1447_v57 = vsel %vm333_vm5, %v2519_v54, %v2518_v53  ;;  %v1359_v60 = vsel %vm82_vm3, %v2504_v49, %v1354_v56  ;;  %v2527_v24 = vld [vmem:[%s4341_s0 + $0x8a] sm:$0x10]   ;;  %v1523_v25 = vsel %vm77_vm2, %v2533_v15, %v1519_v21  ;;  %v2529_v28 = vld [vmem:[%s4341_s0 + $0x7f] sm:$0x80]  }
  0x6e   :  { %1397 = vrot.lane.b32.xlu1 %v1396_v51, %s2654_s17  ;;  %v2520_v58 = vld [vmem:[%s4341_s0 + $0xd1] ss:$40 sm:%s1449_s2]   ;;  %v1363_v1 = vsel %vm86_vm4, %v2505_v50, %v1359_v60  ;;  %v1528_v29 = vsel %vm82_vm3, %v2534_v22, %v1523_v25  ;;  %v2542_v32 = vld [vmem:[%s4341_s0 + $0x76] sm:$0x1]   ;;  %s1793_s2 = smov 96  ;;  %s1818_s23 = smov 24 }
  0x6f   :  { %v2522_v59 = vld [vmem:[%s4341_s0 + $0xe3] sm:$0x40]   ;;  %v1452_v61 = vsel %vm338_vm6, %v2520_v58, %v1447_v57  ;;  %v2526_v27 = vld [vmem:[%s4341_s0 + $0x326] ss:$-264 sm:%s1483_s20]   ;;  %v1532_v34 = vsel %vm86_vm4, %v2535_v18, %v1528_v29  ;;  %v2567_v14 = vld [vmem:[%s4341_s0 + $0xaa] sm:$0x2]  }
  0x70   :  { %v2523_v62 = vld [vmem:[%s4341_s0 + $0x162] sm:$0x80]   ;;  %v1456_v2 = vsel %vm342_vm7, %v2521_v55, %v1452_v61  ;;  %v1486_v30 = vsel %vm73_vm1, %v2526_v27, %v1481_v26  ;;  %v2528_v31 = vld [vmem:[%s4341_s0 + $0x636] ss:$-264 sm:%s1492_s9]   ;;  %v2569_v15 = vld [vmem:[%s4341_s0 + $0x9f] sm:$0x10]  }
  0x71   :  { %v2512_v63 = vld [vmem:[%s4341_s0 + $0x111] ss:$-264 sm:%s1407_s18]   ;;  %1364 = vrot.lane.b32.xlu0 %v1363_v1, %s2654_s17  ;;  %v1460_v7 = vsel %vm346_vm8, %v2522_v59, %v1456_v2  ;;  %v2543_v33 = vld [vmem:[%s4341_s0 + $0xf5] sm:$0x2]   ;;  %v1490_v35 = vsel %vm77_vm2, %v2527_v24, %v1486_v30  ;;  %s1685_s18 = smov 12  ;;  %s1751_s20 = smov 12 }
  0x72   :  { %v2513_v0 = vld [vmem:[%s4341_s0 + $0x87] sm:$0x4]   ;;  %v1464_v11 = vsel %vm86_vm4, %v2523_v62, %v1460_v7  ;;  %v1580_v36 = vsel %vm68_vm0, %v2543_v33, %v2542_v32  ;;  %v2544_v37 = vld [vmem:[%s4341_s0 + $0x386] ss:$-264 sm:%s1582_s29]   ;;  %v1495_v39 = vsel %vm82_vm3, %v2528_v31, %v1490_v35  ;;  %v2571_v19 = vld [vmem:[%s4341_s0 + $0xb4] sm:$0x80]  }
  0x73   :  { %v1412_v3 = vsel %vm333_vm5, %v2513_v0, %v2512_v63  ;;  %v2514_v4 = vld [vmem:[%s4341_s0 + $0x91] ss:$40 sm:%s1414_s19]   ;;  %1465 = vrot.lane.b32.xlu1 %v1464_v11, %s2654_s17  ;;  %v2545_v38 = vld [vmem:[%s4341_s0 + $0xea] sm:$0x10]   ;;  %v1585_v40 = vsel %vm73_vm1, %v2544_v37, %v1580_v36  ;;  %v1499_v43 = vsel %vm86_vm4, %v2529_v28, %v1495_v39  ;;  %s1694_s19 = smov 96  ;;  %s1853_s29 = smov 24 }
  0x74   :  { %v2515_v5 = vld [vmem:[%s4341_s0 + $0x24] sm:$0x20]   ;;  %v1417_v8 = vsel %vm338_vm6, %v2514_v4, %v1412_v3  ;;  %v2546_v41 = vld [vmem:[%s4341_s0 + $0x696] ss:$-264 sm:%s1591_s10]   ;;  %v1589_v44 = vsel %vm77_vm2, %v2545_v38, %v1585_v40  ;;  %v2566_v11 = vld [vmem:[%s4341_s0 + $0x2b] sm:$0x1]  }
  0x75   :  { %v2516_v6 = vld [vmem:[%s4341_s0 + $0xa3] sm:$0x40]   ;;  %v1421_v12 = vsel %vm342_vm7, %v2515_v5, %v1417_v8  ;;  %v2547_v42 = vld [vmem:[%s4341_s0 + $0xdf] sm:$0x80]   ;;  %v2536_v45 = vld [vmem:[%s4341_s0 + $0x56] sm:$0x1]   ;;  %v1594_v48 = vsel %vm82_vm3, %v2546_v41, %v1589_v44  ;;  %v1716_v17 = vsel %vm68_vm0, %v2567_v14, %v2566_v11 }
  0x76   :  { %v2517_v9 = vld [vmem:[%s4341_s0 + $0x122] sm:$0x80]   ;;  %v1425_v16 = vsel %vm346_vm8, %v2516_v6, %v1421_v12  ;;  %v2537_v46 = vld [vmem:[%s4341_s0 + $0xd5] sm:$0x2]   ;;  %v2539_v50 = vld [vmem:[%s4341_s0 + $0xca] sm:$0x10]   ;;  %v1598_v52 = vsel %vm86_vm4, %v2547_v42, %v1594_v48 }
  0x77   :  { %v1429_v20 = vsel %vm86_vm4, %v2517_v9, %v1425_v16  ;;  %1533 = vrot.lane.b32.xlu1 %v1532_v34, %s2655_s15  ;;  %v2538_v47 = vld [vmem:[%s4341_s0 + $0x366] ss:$-264 sm:%s1549_s12]   ;;  %v1547_v49 = vsel %vm68_vm0, %v2537_v46, %v2536_v45  ;;  %v2560_v23 = vld [vmem:[%s4341_s0 + $0xb] sm:$0x1]   ;;  %s2656_s10 = smov 16  }
  0x78   :  { %1430 = vrot.lane.b32.xlu0 %v1429_v20, %s2654_s17  ;;  %v2540_v51 = vld [vmem:[%s4341_s0 + $0x676] ss:$-264 sm:%s1558_s21]   ;;  %v1552_v53 = vsel %vm73_vm1, %v2538_v47, %v1547_v49  ;;  %v2561_v24 = vld [vmem:[%s4341_s0 + $0x8a] sm:$0x2]   ;;  %s1760_s21 = smov 96 }
  0x79   :  { %v2541_v54 = vld [vmem:[%s4341_s0 + $0xbf] sm:$0x80]   ;;  %v2555_v56 = vld [vmem:[%s4341_s0 + $0xdc] sm:$0x4]   ;;  %v1556_v57 = vsel %vm77_vm2, %v2539_v50, %v1552_v53  ;;  %v2568_v18 = vld [vmem:[%s4341_s0 + $0x33b] ss:$-264 sm:%s1718_s4]   ;;  %v1683_v27 = vsel %vm68_vm0, %v2561_v24, %v2560_v23 }
  0x7a   :  { %v2554_v55 = vld [vmem:[%s4341_s0 + $0x146] ss:$-232 sm:%s1644_s22]   ;;  %v1561_v61 = vsel %vm82_vm3, %v2540_v51, %v1556_v57  ;;  %v1721_v21 = vsel %vm73_vm1, %v2568_v18, %v1716_v17  ;;  %v2570_v22 = vld [vmem:[%s4341_s0 + $0x5ab] ss:$-232 sm:%s1727_s7]   ;;  %v155_v44 = vpop.permute.xlu1 %154  }
  0x7b   :  { %1599 = vrot.lane.b32.xlu1 %v1598_v52, %s2655_s15  ;;  %v1649_v58 = vsel %vm333_vm5, %v2555_v56, %v2554_v55  ;;  %v2556_v59 = vld [vmem:[%s4341_s0 + $0x146] ss:$8 sm:%s1651_s14]   ;;  %v1565_v2 = vsel %vm86_vm4, %v2541_v54, %v1561_v61  ;;  %v1725_v26 = vsel %vm77_vm2, %v2569_v15, %v1721_v21  ;;  %v2563_v29 = vld [vmem:[%s4341_s0 + $0x7f] sm:$0x10]   ;;  %158 = vst.msk [vmem:[#allocation0 + $0xa0] sm:$0x7] %vm90_vm9, %v155_v44  }
  0x7c   :  { %1500 = vrot.lane.b32.xlu0 %v1499_v43, %s2655_s15  ;;  %v2557_v60 = vld [vmem:[%s4341_s0 + $0x79] sm:$0x20]   ;;  %v1654_v62 = vsel %vm338_vm6, %v2556_v59, %v1649_v58  ;;  %v2562_v28 = vld [vmem:[%s4341_s0 + $0x31b] ss:$-264 sm:%s1685_s18]   ;;  %v1730_v31 = vsel %vm82_vm3, %v2570_v22, %v1725_v26  ;;  %160 = vst.msk [vmem:[#allocation0 + $0x85] sm:$0x38] %vm90_vm9, %v155_v44  }
  0x7d   :  { %v2558_v63 = vld [vmem:[%s4341_s0 + $0xf8] sm:$0x40]   ;;  %v1658_v3 = vsel %vm342_vm7, %v2557_v60, %v1654_v62  ;;  %v2565_v30 = vld [vmem:[%s4341_s0 + $0x94] sm:$0x80]   ;;  %v1688_v32 = vsel %vm73_vm1, %v2562_v28, %v1683_v27  ;;  %v2578_v34 = vld [vmem:[%s4341_s0 + $0x6b] sm:$0x1]   ;;  %v1734_v35 = vsel %vm86_vm4, %v2571_v19, %v1730_v31 }
  0x7e   :  { %v2559_v0 = vld [vmem:[%s4341_s0 + $0x177] sm:$0x80]   ;;  %v1662_v7 = vsel %vm346_vm8, %v2558_v63, %v1658_v3  ;;  %v2564_v33 = vld [vmem:[%s4341_s0 + $0x58b] ss:$-232 sm:%s1694_s19]   ;;  %v1692_v36 = vsel %vm77_vm2, %v2563_v29, %v1688_v32  ;;  %v89_v59 = vpop.permute.xlu0 %88   ;;  %162 = vst.msk [vmem:[#allocation0 + $0x6a] sm:$0xc0] %vm90_vm9, %v155_v44  }
  0x7f   :  { %v2548_v1 = vld [vmem:[%s4341_s0 + $0x106] ss:$-232 sm:%s1609_s30]   ;;  %v1666_v12 = vsel %vm86_vm4, %v2559_v0, %v1662_v7  ;;  %v2579_v37 = vld [vmem:[%s4341_s0 + $0xea] sm:$0x2]   ;;  %v2581_v39 = vld [vmem:[%s4341_s0 + $0xdf] sm:$0x10]   ;;  %v1697_v40 = vsel %vm82_vm3, %v2564_v33, %v1692_v36 }
  0x80   :  { %v2549_v4 = vld [vmem:[%s4341_s0 + $0x9c] sm:$0x4]   ;;  %1566 = vrot.lane.b32.xlu0 %v1565_v2, %s2655_s15  ;;  %1667 = vrot.lane.b32.xlu1 %v1666_v12, %s2655_s15  ;;  %v1782_v41 = vsel %vm68_vm0, %v2579_v37, %v2578_v34  ;;  %v2583_v43 = vld [vmem:[%s4341_s0 + $0xf4] sm:$0x80]   ;;  %v1701_v45 = vsel %vm86_vm4, %v2565_v30, %v1697_v40  ;;  %92 = vst.msk [vmem:[#allocation0 + $0x40] sm:$0x7] %vm90_vm9, %v89_v59  }
  0x81   :  { %v2550_v5 = vld [vmem:[%s4341_s0 + $0x106] ss:$8 sm:%s1616_s16]   ;;  %v1614_v8 = vsel %vm333_vm5, %v2549_v4, %v2548_v1  ;;  %v2580_v38 = vld [vmem:[%s4341_s0 + $0x37b] ss:$-264 sm:%s1784_s13]   ;;  %94 = vst.msk [vmem:[#allocation0 + $0x25] sm:$0x38] %vm90_vm9, %v89_v59  }
  0x82   :  { %v2551_v6 = vld [vmem:[%s4341_s0 + $0x39] sm:$0x20]   ;;  %v1619_v13 = vsel %vm338_vm6, %v2550_v5, %v1614_v8  ;;  %v2582_v42 = vld [vmem:[%s4341_s0 + $0x5eb] ss:$-232 sm:%s1793_s2]   ;;  %v1787_v46 = vsel %vm73_vm1, %v2580_v38, %v1782_v41  ;;  %96 = vst.msk [vmem:[#allocation0 + $0xa] sm:$0xc0] %vm90_vm9, %v89_v59  }
  0x83   :  { %v2552_v9 = vld [vmem:[%s4341_s0 + $0xb8] sm:$0x40]   ;;  %v1623_v16 = vsel %vm342_vm7, %v2551_v6, %v1619_v13  ;;  %v2572_v47 = vld [vmem:[%s4341_s0 + $0x4b] sm:$0x1]   ;;  %v1791_v50 = vsel %vm77_vm2, %v2581_v39, %v1787_v46  ;;  %v2575_v52 = vld [vmem:[%s4341_s0 + $0xbf] sm:$0x10]   ;;  %v188_v6 = vpop.permute.xlu1 %187  }
  0x84   :  { %v2553_v10 = vld [vmem:[%s4341_s0 + $0x137] sm:$0x80]   ;;  %v1627_v20 = vsel %vm346_vm8, %v2552_v9, %v1623_v16  ;;  %1735 = vrot.lane.b32.xlu1 %v1734_v35, %s2656_s10  ;;  %v2573_v48 = vld [vmem:[%s4341_s0 + $0xca] sm:$0x2]   ;;  %v1796_v54 = vsel %vm82_vm3, %v2582_v42, %v1791_v50  ;;  %v2577_v56 = vld [vmem:[%s4341_s0 + $0xd4] sm:$0x80]   ;;  %v122_v15 = vpop.permute.xlu0 %121  }
  0x85   :  { %v1631_v25 = vsel %vm86_vm4, %v2553_v10, %v1627_v20  ;;  %v2574_v49 = vld [vmem:[%s4341_s0 + $0x35b] ss:$-264 sm:%s1751_s20]   ;;  %v1749_v51 = vsel %vm68_vm0, %v2573_v48, %v2572_v47  ;;  %v1800_v60 = vsel %vm86_vm4, %v2583_v43, %v1796_v54  ;;  %s1811_s20 = smov 3  ;;  %191 = vst.msk [vmem:[#allocation0 + $0x80] sm:$0x7] %vm123_vm10, %v188_v6   ;;  %vm1099_vm0 = vcmask 916992  }
  0x86   :  { %1632 = vrot.lane.b32.xlu0 %v1631_v25, %s2655_s15  ;;  %v2576_v53 = vld [vmem:[%s4341_s0 + $0x5cb] ss:$-232 sm:%s1760_s21]   ;;  %s1846_s15 = smov 3  ;;  %v1754_v55 = vsel %vm73_vm1, %v2574_v49, %v1749_v51  ;;  %193 = vst.msk [vmem:[#allocation0 + $0x65] sm:$0x38] %vm123_vm10, %v188_v6   ;;  %vm1301_vm1 = vcmask 785792  }
  0x87   :  { %v2590_v57 = vld [vmem:[%s4341_s0 + $0x15b] ss:$-264 sm:%s1846_s15]   ;;  %v1758_v61 = vsel %vm77_vm2, %v2575_v52, %v1754_v55  ;;  %195 = vst.msk [vmem:[#allocation0 + $0xaa] sm:$0xc0] %vm123_vm10, %v188_v6   ;;  %125 = vst.msk [vmem:[#allocation0 + $0x20] sm:$0x7] %vm123_vm10, %v122_v15  }
  0x88   :  { %v2591_v58 = vld [vmem:[%s4341_s0 + $0xd1] sm:$0x4]   ;;  %1801 = vrot.lane.b32.xlu1 %v1800_v60, %s2656_s10  ;;  %v1763_v2 = vsel %vm82_vm3, %v2576_v53, %v1758_v61  ;;  %127 = vst.msk [vmem:[#allocation0 + $0x5] sm:$0x38] %vm123_vm10, %v122_v15   ;;  %129 = vst.msk [vmem:[#allocation0 + $0x4a] sm:$0xc0] %vm123_vm10, %v122_v15   ;;  %v254_v23 = vpop.permute.xlu1 %253  }
  0x89   :  { %v1851_v62 = vsel %vm333_vm5, %v2591_v58, %v2590_v57  ;;  %v2592_v63 = vld [vmem:[%s4341_s0 + $0xdb] ss:$40 sm:%s1853_s29]   ;;  %v1767_v7 = vsel %vm86_vm4, %v2577_v56, %v1763_v2  ;;  %v2_v19 = vld [vmem:[%s4341_s0] ss:$8 sm:$0xf]   ;;  %vm1502_vm2 = vcmask 654592  }
  0x8a   :  { %1702 = vrot.lane.b32.xlu0 %v1701_v45, %s2656_s10  ;;  %v2593_v0 = vld [vmem:[%s4341_s0 + $0x6e] sm:$0x20]   ;;  %v1856_v3 = vsel %vm338_vm6, %v2592_v63, %v1851_v62  ;;  %v3_v21 = vld [vmem:[%s4341_s0] ss:$8 sm:$0xf0]   ;;  %v221_v31 = vpop.permute.xlu0 %220   ;;  %vm1704_vm3 = vcmask 523392  }
  0x8b   :  { %v2594_v1 = vld [vmem:[%s4341_s0 + $0xed] sm:$0x40]   ;;  %v1860_v8 = vsel %vm342_vm7, %v2593_v0, %v1856_v3  ;;  %v5_v24 = vsel %vm4_vm11, %v3_v21, %v2_v19  ;;  %v2264_v25 = vld [vmem:[%s4341_s0 + $0x80] ss:$8 sm:$0xf]  }
  0x8c   :  { %v2595_v4 = vld [vmem:[%s4341_s0 + $0x16c] sm:$0x80]   ;;  %v1864_v11 = vsel %vm346_vm8, %v2594_v1, %v1860_v8  ;;  %v2265_v26 = vld [vmem:[%s4341_s0 + $0x80] ss:$8 sm:$0xf0]  }
  0x8d   :  { %v2585_v5 = vld [vmem:[%s4341_s0 + $0x91] sm:$0x4]   ;;  %v1868_v16 = vsel %vm86_vm4, %v2595_v4, %v1864_v11  ;;  %257 = vst.msk [vmem:[#allocation0 + $0xe0] sm:$0x7] %vm123_vm10, %v254_v23   ;;  %259 = vst.msk [vmem:[#allocation0 + $0xc5] sm:$0x38] %vm123_vm10, %v254_v23   ;;  %v25_v28 = vsel %vm4_vm11, %v2265_v26, %v2264_v25 }
  0x8e   :  { %v2584_v9 = vld [vmem:[%s4341_s0 + $0x11b] ss:$-264 sm:%s1811_s20]   ;;  %1768 = vrot.lane.b32.xlu0 %v1767_v7, %s2656_s10  ;;  %1869 = vrot.lane.b32.xlu1 %v1868_v16, %s2656_s10  ;;  %261 = vst.msk [vmem:[#allocation0 + $0x10a] sm:$0xc0] %vm123_vm10, %v254_v23  }
  0x8f   :  { %v2586_v10 = vld [vmem:[%s4341_s0 + $0x9b] ss:$40 sm:%s1818_s23]   ;;  %v1816_v12 = vsel %vm333_vm5, %v2585_v5, %v2584_v9  ;;  %7 = vst.msk [vmem:[#allocation0] ss:$24 sm:$0xf] %vm6_vm12, %v5_v24   ;;  %v320_v38 = vpop.permute.xlu1 %319  }
  0x90   :  { %v2587_v13 = vld [vmem:[%s4341_s0 + $0x2e] sm:$0x20]   ;;  %v1821_v17 = vsel %vm338_vm6, %v2586_v10, %v1816_v12  ;;  %v2268_v29 = vld [vmem:[%s4341_s0 + $0x100] ss:$8 sm:$0xf]  }
  0x91   :  { %v2588_v14 = vld [vmem:[%s4341_s0 + $0xad] sm:$0x40]   ;;  %v1825_v20 = vsel %vm342_vm7, %v2587_v13, %v1821_v17  ;;  %v2269_v30 = vld [vmem:[%s4341_s0 + $0x100] ss:$8 sm:$0xf0]   ;;  %v287_v43 = vpop.permute.xlu0 %286  }
  0x92   :  { %v2589_v18 = vld [vmem:[%s4341_s0 + $0x12c] sm:$0x80]   ;;  %v1829_v22 = vsel %vm346_vm8, %v2588_v14, %v1825_v20  ;;  %8 = vst.msk [vmem:[#allocation0] ss:$24 sm:$0xf0] %vm6_vm12, %v5_v24   ;;  %v47_v32 = vsel %vm4_vm11, %v2269_v30, %v2268_v29 }
  0x93   :  { %v1833_v27 = vsel %vm86_vm4, %v2589_v18, %v1829_v22  ;;  %28 = vst.msk [vmem:[#allocation0 + $0x1] ss:$24 sm:$0xf] %vm6_vm12, %v25_v28   ;;  %30 = vst.msk [vmem:[#allocation0 + $0x1] ss:$24 sm:$0xf0] %vm6_vm12, %v25_v28  }
  0x94   :  { %1834 = vrot.lane.b32.xlu0 %v1833_v27, %s2656_s10  ;;  %v2262_v33 = vld [vmem:[%s4341_s0 + $0x40] ss:$8 sm:$0xf]   ;;  %224 = vst.msk [vmem:[#allocation0 + $0x100] sm:$0x7] %vm90_vm9, %v221_v31  }
  0x95   :  { %v2263_v34 = vld [vmem:[%s4341_s0 + $0x40] ss:$8 sm:$0xf0]   ;;  %226 = vst.msk [vmem:[#allocation0 + $0xe5] sm:$0x38] %vm90_vm9, %v221_v31  }
  0x96   :  { %228 = vst.msk [vmem:[#allocation0 + $0xca] sm:$0xc0] %vm90_vm9, %v221_v31   ;;  %v14_v35 = vsel %vm4_vm11, %v2263_v34, %v2262_v33  ;;  %v2266_v36 = vld [vmem:[%s4341_s0 + $0xc0] ss:$8 sm:$0xf]   ;;  %v388_v44 = vpop.permute.xlu1 %387  }
  0x97   :  { %50 = vst.msk [vmem:[#allocation0 + $0x2] ss:$24 sm:$0xf] %vm6_vm12, %v47_v32   ;;  %52 = vst.msk [vmem:[#allocation0 + $0x2] ss:$24 sm:$0xf0] %vm6_vm12, %v47_v32  }
  0x98   :  { %v2267_v37 = vld [vmem:[%s4341_s0 + $0xc0] ss:$8 sm:$0xf0]   ;;  %17 = vst.msk [vmem:[#allocation0 + $0xc0] ss:$24 sm:$0xf] %vm6_vm12, %v14_v35  }
  0x99   :  { %v36_v39 = vsel %vm4_vm11, %v2267_v37, %v2266_v36  ;;  %v2270_v40 = vld [vmem:[%s4341_s0 + $0x140] ss:$8 sm:$0xf]   ;;  %19 = vst.msk [vmem:[#allocation0 + $0xc0] ss:$24 sm:$0xf0] %vm6_vm12, %v14_v35  }
  0x9a   :  { %v2271_v41 = vld [vmem:[%s4341_s0 + $0x140] ss:$8 sm:$0xf0]   ;;  %323 = vst.msk [vmem:[#allocation0 + $0x140] sm:$0x7] %vm123_vm10, %v320_v38   ;;  %v353_v45 = vpop.permute.xlu0 %352  }
  0x9b   :  { %325 = vst.msk [vmem:[#allocation0 + $0x125] sm:$0x38] %vm123_vm10, %v320_v38   ;;  %327 = vst.msk [vmem:[#allocation0 + $0x16a] sm:$0xc0] %vm123_vm10, %v320_v38   ;;  %v58_v42 = vsel %vm4_vm11, %v2271_v41, %v2270_v40 }
  0x9c   :  { %39 = vst.msk [vmem:[#allocation0 + $0xc1] ss:$24 sm:$0xf] %vm6_vm12, %v36_v39   ;;  %41 = vst.msk [vmem:[#allocation0 + $0xc1] ss:$24 sm:$0xf0] %vm6_vm12, %v36_v39  }
  0x9d   :  { %61 = vst.msk [vmem:[#allocation0 + $0xc2] ss:$24 sm:$0xf] %vm6_vm12, %v58_v42   ;;  %63 = vst.msk [vmem:[#allocation0 + $0xc2] ss:$24 sm:$0xf0] %vm6_vm12, %v58_v42   ;;  %v458_v46 = vpop.permute.xlu1 %457  }
  0x9e   :  { %290 = vst.msk [vmem:[#allocation0 + $0x160] sm:$0x7] %vm90_vm9, %v287_v43   ;;  %292 = vst.msk [vmem:[#allocation0 + $0x145] sm:$0x38] %vm90_vm9, %v287_v43  }
  0x9f   :  { %294 = vst.msk [vmem:[#allocation0 + $0x12a] sm:$0xc0] %vm90_vm9, %v287_v43   ;;  %356 = vst.msk [vmem:[#allocation0 + $0x12] ss:$70 sm:$0x3] %vm90_vm9, %v353_v45  }
  0xa0   :  { %391 = vst.msk [vmem:[#allocation0 + $0x52] ss:$-26 sm:$0x3] %vm123_vm10, %v388_v44   ;;  %393 = vst.msk [vmem:[#allocation0 + $0x37] sm:$0xc] %vm123_vm10, %v388_v44  }
  0xa1   :  { %395 = vst.msk [vmem:[#allocation0 + $0x11a] ss:$-26 sm:$0x30] %vm123_vm10, %v388_v44   ;;  %397 = vst.msk [vmem:[#allocation0 + $0x93] sm:$0xc0] %vm123_vm10, %v388_v44   ;;  %v526_v48 = vpop.permute.xlu1 %525  }
  0xa2   :  { %358 = vst.msk [vmem:[#allocation0 + $0x57] sm:$0xc] %vm90_vm9, %v353_v45   ;;  %360 = vst.msk [vmem:[#allocation0 - $0xa6] ss:$70 sm:$0x30] %vm90_vm9, %v353_v45   ;;  %v423_v47 = vpop.permute.xlu0 %422  }
  0xa3   :  { %362 = vst.msk [vmem:[#allocation0 + $0xb3] sm:$0xc0] %vm90_vm9, %v353_v45   ;;  %426 = vst.msk [vmem:[#allocation0 + $0xd2] ss:$70 sm:$0x3] %vm90_vm9, %v423_v47  }
  0xa4   :  { %461 = vst.msk [vmem:[#allocation0 + $0x112] ss:$-26 sm:$0x3] %vm123_vm10, %v458_v46   ;;  %463 = vst.msk [vmem:[#allocation0 + $0xf7] sm:$0xc] %vm123_vm10, %v458_v46  }
  0xa5   :  { %465 = vst.msk [vmem:[#allocation0 + $0x1da] ss:$-26 sm:$0x30] %vm123_vm10, %v458_v46   ;;  %467 = vst.msk [vmem:[#allocation0 + $0x153] sm:$0xc0] %vm123_vm10, %v458_v46   ;;  %v591_v50 = vpop.permute.xlu1 %590  }
  0xa6   :  { %428 = vst.msk [vmem:[#allocation0 + $0x117] sm:$0xc] %vm90_vm9, %v423_v47   ;;  %430 = vst.msk [vmem:[#allocation0 + $0x1a] ss:$70 sm:$0x30] %vm90_vm9, %v423_v47   ;;  %v493_v49 = vpop.permute.xlu0 %492  }
  0xa7   :  { %432 = vst.msk [vmem:[#allocation0 + $0x173] sm:$0xc0] %vm90_vm9, %v423_v47  }
  0xa8   :  { %528 = vst.msk [vmem:[#allocation0] sm:$0x7] %vm527_vm13, %v526_v48   ;;  %530 = vst.msk [vmem:[#allocation0 + $0x45] sm:$0x38] %vm527_vm13, %v526_v48  }
  0xa9   :  { %532 = vst.msk [vmem:[#allocation0 + $0x2a] sm:$0xc0] %vm527_vm13, %v526_v48   ;;  %594 = vst.msk [vmem:[#allocation0 + $0x60] sm:$0x7] %vm527_vm13, %v591_v50   ;;  %v657_v52 = vpop.permute.xlu1 %656  }
  0xaa   :  { %496 = vst.msk [vmem:[#allocation0 + $0x20] sm:$0x7] %vm494_vm14, %v493_v49   ;;  %498 = vst.msk [vmem:[#allocation0 + $0x5] sm:$0x38] %vm494_vm14, %v493_v49   ;;  %v558_v51 = vpop.permute.xlu0 %557  }
  0xab   :  { %500 = vst.msk [vmem:[#allocation0 + $0x4a] sm:$0xc0] %vm494_vm14, %v493_v49   ;;  %561 = vst.msk [vmem:[#allocation0 + $0x80] sm:$0x7] %vm494_vm14, %v558_v51  }
  0xac   :  { %596 = vst.msk [vmem:[#allocation0 + $0xa5] sm:$0x38] %vm527_vm13, %v591_v50   ;;  %598 = vst.msk [vmem:[#allocation0 + $0x8a] sm:$0xc0] %vm527_vm13, %v591_v50  }
  0xad   :  { %563 = vst.msk [vmem:[#allocation0 + $0x65] sm:$0x38] %vm494_vm14, %v558_v51   ;;  %565 = vst.msk [vmem:[#allocation0 + $0xaa] sm:$0xc0] %vm494_vm14, %v558_v51  }
  0xae   :  { %660 = vst.msk [vmem:[#allocation0 + $0xc0] sm:$0x7] %vm527_vm13, %v657_v52   ;;  %662 = vst.msk [vmem:[#allocation0 + $0x105] sm:$0x38] %vm527_vm13, %v657_v52   ;;  %v624_v53 = vpop.permute.xlu0 %623  }
  0xaf   :  { %664 = vst.msk [vmem:[#allocation0 + $0xea] sm:$0xc0] %vm527_vm13, %v657_v52   ;;  %v723_v54 = vpop.permute.xlu1 %722  }
  0xb0   :  { %627 = vst.msk [vmem:[#allocation0 + $0xe0] sm:$0x7] %vm494_vm14, %v624_v53   ;;  %629 = vst.msk [vmem:[#allocation0 + $0xc5] sm:$0x38] %vm494_vm14, %v624_v53  }
  0xb1   :  { %631 = vst.msk [vmem:[#allocation0 + $0x10a] sm:$0xc0] %vm494_vm14, %v624_v53  }
  0xb2   :  { %726 = vst.msk [vmem:[#allocation0 + $0x120] sm:$0x7] %vm527_vm13, %v723_v54   ;;  %728 = vst.msk [vmem:[#allocation0 + $0x165] sm:$0x38] %vm527_vm13, %v723_v54   ;;  %v690_v55 = vpop.permute.xlu0 %689  }
  0xb3   :  { %730 = vst.msk [vmem:[#allocation0 + $0x14a] sm:$0xc0] %vm527_vm13, %v723_v54  }
  0xb4   :  { %693 = vst.msk [vmem:[#allocation0 + $0x140] sm:$0x7] %vm494_vm14, %v690_v55   ;;  %695 = vst.msk [vmem:[#allocation0 + $0x125] sm:$0x38] %vm494_vm14, %v690_v55  }
  0xb5   :  { %697 = vst.msk [vmem:[#allocation0 + $0x16a] sm:$0xc0] %vm494_vm14, %v690_v55  }
  0xb6   :  { %v826_v56 = vpop.permute.xlu1 %825  }
  0xb7   :  { %829 = vst.msk [vmem:[#allocation0 + $0x112] ss:$-26 sm:$0x3] %vm494_vm14, %v826_v56   ;;  %831 = vst.msk [vmem:[#allocation0 + $0xf7] sm:$0xc] %vm494_vm14, %v826_v56  }
  0xb8   :  { %833 = vst.msk [vmem:[#allocation0 + $0x1da] ss:$-26 sm:$0x30] %vm494_vm14, %v826_v56   ;;  %835 = vst.msk [vmem:[#allocation0 + $0x153] sm:$0xc0] %vm494_vm14, %v826_v56  }
  0xbb   :  { %v756_v57 = vpop.permute.xlu0 %755  }
  0xbc   :  { %759 = vst.msk [vmem:[#allocation0 + $0x52] ss:$-26 sm:$0x3] %vm494_vm14, %v756_v57   ;;  %761 = vst.msk [vmem:[#allocation0 + $0x37] sm:$0xc] %vm494_vm14, %v756_v57  }
  0xbd   :  { %763 = vst.msk [vmem:[#allocation0 + $0x11a] ss:$-26 sm:$0x30] %vm494_vm14, %v756_v57   ;;  %765 = vst.msk [vmem:[#allocation0 + $0x93] sm:$0xc0] %vm494_vm14, %v756_v57  }
  0xc0   :  { %v861_v58 = vpop.permute.xlu1 %860  }
  0xc1   :  { %864 = vst.msk [vmem:[#allocation0 + $0xf2] ss:$-26 sm:$0x3] %vm527_vm13, %v861_v58   ;;  %866 = vst.msk [vmem:[#allocation0 + $0xd7] sm:$0xc] %vm527_vm13, %v861_v58  }
  0xc2   :  { %868 = vst.msk [vmem:[#allocation0 + $0x1ba] ss:$-26 sm:$0x30] %vm527_vm13, %v861_v58   ;;  %870 = vst.msk [vmem:[#allocation0 + $0x133] sm:$0xc0] %vm527_vm13, %v861_v58   ;;  %v791_v59 = vpop.permute.xlu0 %790  }
  0xc3   :  { %794 = vst.msk [vmem:[#allocation0 + $0x32] ss:$-26 sm:$0x3] %vm527_vm13, %v791_v59   ;;  %796 = vst.msk [vmem:[#allocation0 + $0x17] sm:$0xc] %vm527_vm13, %v791_v59  }
  0xc4   :  { %798 = vst.msk [vmem:[#allocation0 + $0xfa] ss:$-26 sm:$0x30] %vm527_vm13, %v791_v59   ;;  %800 = vst.msk [vmem:[#allocation0 + $0x73] sm:$0xc0] %vm527_vm13, %v791_v59   ;;  %v929_v60 = vpop.permute.xlu1 %928  }
  0xc5   :  { %932 = vst.msk [vmem:[#allocation0 + $0xa0] sm:$0x7] %vm897_vm15, %v929_v60   ;;  %934 = vst.msk [vmem:[#allocation0 + $0x85] sm:$0x38] %vm897_vm15, %v929_v60  }
  0xc6   :  { %936 = vst.msk [vmem:[#allocation0 + $0x6a] sm:$0xc0] %vm897_vm15, %v929_v60   ;;  %v896_v61 = vpop.permute.xlu0 %895  }
  0xc7   :  { %899 = vst.msk [vmem:[#allocation0 + $0x40] sm:$0x7] %vm897_vm15, %v896_v61   ;;  %901 = vst.msk [vmem:[#allocation0 + $0x25] sm:$0x38] %vm897_vm15, %v896_v61  }
  0xc8   :  { %903 = vst.msk [vmem:[#allocation0 + $0xa] sm:$0xc0] %vm897_vm15, %v896_v61   ;;  %v995_v62 = vpop.permute.xlu1 %994  }
  0xc9   :  { %998 = vst.msk [vmem:[#allocation0 + $0x160] sm:$0x7] %vm897_vm15, %v995_v62   ;;  %1000 = vst.msk [vmem:[#allocation0 + $0x145] sm:$0x38] %vm897_vm15, %v995_v62  }
  0xca   :  { %1002 = vst.msk [vmem:[#allocation0 + $0x12a] sm:$0xc0] %vm897_vm15, %v995_v62   ;;  %v962_v63 = vpop.permute.xlu0 %961  }
  0xcb   :  { %965 = vst.msk [vmem:[#allocation0 + $0x100] sm:$0x7] %vm897_vm15, %v962_v63   ;;  %967 = vst.msk [vmem:[#allocation0 + $0xe5] sm:$0x38] %vm897_vm15, %v962_v63  }
  0xcc   :  { %969 = vst.msk [vmem:[#allocation0 + $0xca] sm:$0xc0] %vm897_vm15, %v962_v63   ;;  %v1063_v0 = vpop.permute.xlu1 %1062  }
  0xcd   :  { %1066 = vst.msk [vmem:[#allocation0 + $0xd2] ss:$70 sm:$0x3] %vm897_vm15, %v1063_v0   ;;  %1068 = vst.msk [vmem:[#allocation0 + $0x117] sm:$0xc] %vm897_vm15, %v1063_v0  }
  0xce   :  { %1070 = vst.msk [vmem:[#allocation0 + $0x1a] ss:$70 sm:$0x30] %vm897_vm15, %v1063_v0   ;;  %1072 = vst.msk [vmem:[#allocation0 + $0x173] sm:$0xc0] %vm897_vm15, %v1063_v0   ;;  %v1028_v1 = vpop.permute.xlu0 %1027  }
  0xcf   :  { %1031 = vst.msk [vmem:[#allocation0 + $0x12] ss:$70 sm:$0x3] %vm897_vm15, %v1028_v1   ;;  %1033 = vst.msk [vmem:[#allocation0 + $0x57] sm:$0xc] %vm897_vm15, %v1028_v1  }
  0xd0   :  { %1035 = vst.msk [vmem:[#allocation0 - $0xa6] ss:$70 sm:$0x30] %vm897_vm15, %v1028_v1   ;;  %1037 = vst.msk [vmem:[#allocation0 + $0xb3] sm:$0xc0] %vm897_vm15, %v1028_v1   ;;  %v1131_v2 = vpop.permute.xlu1 %1130  }
  0xd1   :  { %1134 = vst.msk [vmem:[#allocation0 + $0x80] sm:$0x7] %vm1099_vm0, %v1131_v2   ;;  %1136 = vst.msk [vmem:[#allocation0 + $0x65] sm:$0x38] %vm1099_vm0, %v1131_v2  }
  0xd2   :  { %1138 = vst.msk [vmem:[#allocation0 + $0xaa] sm:$0xc0] %vm1099_vm0, %v1131_v2   ;;  %v1098_v3 = vpop.permute.xlu0 %1097  }
  0xd3   :  { %1101 = vst.msk [vmem:[#allocation0 + $0x20] sm:$0x7] %vm1099_vm0, %v1098_v3   ;;  %1103 = vst.msk [vmem:[#allocation0 + $0x5] sm:$0x38] %vm1099_vm0, %v1098_v3  }
  0xd4   :  { %1105 = vst.msk [vmem:[#allocation0 + $0x4a] sm:$0xc0] %vm1099_vm0, %v1098_v3   ;;  %v1197_v4 = vpop.permute.xlu1 %1196  }
  0xd5   :  { %1200 = vst.msk [vmem:[#allocation0 + $0x140] sm:$0x7] %vm1099_vm0, %v1197_v4   ;;  %1202 = vst.msk [vmem:[#allocation0 + $0x125] sm:$0x38] %vm1099_vm0, %v1197_v4  }
  0xd6   :  { %1204 = vst.msk [vmem:[#allocation0 + $0x16a] sm:$0xc0] %vm1099_vm0, %v1197_v4   ;;  %v1164_v5 = vpop.permute.xlu0 %1163  }
  0xd7   :  { %1167 = vst.msk [vmem:[#allocation0 + $0xe0] sm:$0x7] %vm1099_vm0, %v1164_v5   ;;  %1169 = vst.msk [vmem:[#allocation0 + $0xc5] sm:$0x38] %vm1099_vm0, %v1164_v5  }
  0xd8   :  { %1171 = vst.msk [vmem:[#allocation0 + $0x10a] sm:$0xc0] %vm1099_vm0, %v1164_v5   ;;  %v1265_v6 = vpop.permute.xlu1 %1264  }
  0xd9   :  { %1268 = vst.msk [vmem:[#allocation0 + $0x112] ss:$-26 sm:$0x3] %vm1099_vm0, %v1265_v6   ;;  %1270 = vst.msk [vmem:[#allocation0 + $0xf7] sm:$0xc] %vm1099_vm0, %v1265_v6  }
  0xda   :  { %1272 = vst.msk [vmem:[#allocation0 + $0x1da] ss:$-26 sm:$0x30] %vm1099_vm0, %v1265_v6   ;;  %1274 = vst.msk [vmem:[#allocation0 + $0x153] sm:$0xc0] %vm1099_vm0, %v1265_v6  }
  0xdb   :  { %v1230_v7 = vpop.permute.xlu0 %1229  }
  0xdc   :  { %1233 = vst.msk [vmem:[#allocation0 + $0x52] ss:$-26 sm:$0x3] %vm1099_vm0, %v1230_v7   ;;  %1235 = vst.msk [vmem:[#allocation0 + $0x37] sm:$0xc] %vm1099_vm0, %v1230_v7   ;;  %v1332_v8 = vpop.permute.xlu1 %1331  }
  0xdd   :  { %1237 = vst.msk [vmem:[#allocation0 + $0x11a] ss:$-26 sm:$0x30] %vm1099_vm0, %v1230_v7   ;;  %1239 = vst.msk [vmem:[#allocation0 + $0x93] sm:$0xc0] %vm1099_vm0, %v1230_v7  }
  0xde   :  { %1335 = vst.msk [vmem:[#allocation0 + $0x60] sm:$0x7] %vm1301_vm1, %v1332_v8   ;;  %1337 = vst.msk [vmem:[#allocation0 + $0xa5] sm:$0x38] %vm1301_vm1, %v1332_v8  }
  0xdf   :  { %1339 = vst.msk [vmem:[#allocation0 + $0x8a] sm:$0xc0] %vm1301_vm1, %v1332_v8   ;;  %v1300_v9 = vpop.permute.xlu0 %1299  }
  0xe0   :  { %1302 = vst.msk [vmem:[#allocation0] sm:$0x7] %vm1301_vm1, %v1300_v9   ;;  %1304 = vst.msk [vmem:[#allocation0 + $0x45] sm:$0x38] %vm1301_vm1, %v1300_v9   ;;  %v1398_v10 = vpop.permute.xlu1 %1397  }
  0xe1   :  { %1306 = vst.msk [vmem:[#allocation0 + $0x2a] sm:$0xc0] %vm1301_vm1, %v1300_v9   ;;  %1401 = vst.msk [vmem:[#allocation0 + $0x120] sm:$0x7] %vm1301_vm1, %v1398_v10  }
  0xe2   :  { %1403 = vst.msk [vmem:[#allocation0 + $0x165] sm:$0x38] %vm1301_vm1, %v1398_v10   ;;  %1405 = vst.msk [vmem:[#allocation0 + $0x14a] sm:$0xc0] %vm1301_vm1, %v1398_v10  }
  0xe3   :  { %v1365_v11 = vpop.permute.xlu0 %1364  }
  0xe4   :  { %1368 = vst.msk [vmem:[#allocation0 + $0xc0] sm:$0x7] %vm1301_vm1, %v1365_v11   ;;  %1370 = vst.msk [vmem:[#allocation0 + $0x105] sm:$0x38] %vm1301_vm1, %v1365_v11  }
  0xe5   :  { %v1965_v12 = vld [vmem:[#allocation0 + $0x60] sm:$0xf]  ;;  %v2028_v13 = vld [vmem:[#allocation0 + $0xa8] sm:$0xf]  ;;  %1372 = vst.msk [vmem:[#allocation0 + $0xea] sm:$0xc0] %vm1301_vm1, %v1365_v11   ;;  %v1466_v14 = vpop.permute.xlu1 %1465  }
  0xe6   :  { %2607 = vst [vmem:[%s4342_s1 + $0x30] sm:$0xf] %v1965_v12  ;;  %2616 = vst [vmem:[%s4342_s1 + $0x54] sm:$0xf] %v2028_v13 }
  0xe7   :  { %v1884_v15 = vld [vmem:[#allocation0] sm:$0xf]  ;;  %v1944_v16 = vld [vmem:[#allocation0 + $0x48] sm:$0xf]  ;;  %1471 = vst.msk [vmem:[#allocation0 + $0xd7] sm:$0xc] %vm1301_vm1, %v1466_v14  }
  0xe8   :  { %1469 = vst.msk [vmem:[#allocation0 + $0xf2] ss:$-26 sm:$0x3] %vm1301_vm1, %v1466_v14   ;;  %1473 = vst.msk [vmem:[#allocation0 + $0x1ba] ss:$-26 sm:$0x30] %vm1301_vm1, %v1466_v14  }
  0xe9   :  { %1475 = vst.msk [vmem:[#allocation0 + $0x133] sm:$0xc0] %vm1301_vm1, %v1466_v14   ;;  %1887 = vst [vmem:[%s4342_s1] sm:$0xf] %v1884_v15  ;;  %v2133_v18 = vld [vmem:[#allocation0 + $0x120] sm:$0xf]  ;;  %v1534_v20 = vpop.permute.xlu1 %1533  }
  0xea   :  { %2604 = vst [vmem:[%s4342_s1 + $0x24] sm:$0xf] %v1944_v16  ;;  %v1431_v17 = vpop.permute.xlu0 %1430   ;;  %v2196_v19 = vld [vmem:[#allocation0 + $0x168] sm:$0xf]  ;;  %2631 = vst [vmem:[%s4342_s1 + $0x90] sm:$0xf] %v2133_v18 }
  0xeb   :  { %1434 = vst.msk [vmem:[#allocation0 + $0x32] ss:$-26 sm:$0x3] %vm1301_vm1, %v1431_v17   ;;  %1436 = vst.msk [vmem:[#allocation0 + $0x17] sm:$0xc] %vm1301_vm1, %v1431_v17  }
  0xec   :  { %1438 = vst.msk [vmem:[#allocation0 + $0xfa] ss:$-26 sm:$0x30] %vm1301_vm1, %v1431_v17   ;;  %1440 = vst.msk [vmem:[#allocation0 + $0x73] sm:$0xc0] %vm1301_vm1, %v1431_v17  }
  0xed   :  { %2640 = vst [vmem:[%s4342_s1 + $0xb4] sm:$0xf] %v2196_v19  ;;  %v2049_v21 = vld [vmem:[#allocation0 + $0xc0] sm:$0xf]  ;;  %v2112_v22 = vld [vmem:[#allocation0 + $0x108] sm:$0xf]  ;;  %v1600_v28 = vpop.permute.xlu1 %1599  }
  0xee   :  { %1537 = vst.msk [vmem:[#allocation0 + $0xa0] sm:$0x7] %vm1502_vm2, %v1534_v20   ;;  %1539 = vst.msk [vmem:[#allocation0 + $0x85] sm:$0x38] %vm1502_vm2, %v1534_v20   ;;  %v1501_v23 = vpop.permute.xlu0 %1500  }
  0xef   :  { %1541 = vst.msk [vmem:[#allocation0 + $0x6a] sm:$0xc0] %vm1502_vm2, %v1534_v20   ;;  %2619 = vst [vmem:[%s4342_s1 + $0x60] sm:$0xf] %v2049_v21  ;;  %v2070_v24 = vld [vmem:[#allocation0 + $0xd8] sm:$0xf] }
  0xf0   :  { %2628 = vst [vmem:[%s4342_s1 + $0x84] sm:$0xf] %v2112_v22  ;;  %v2154_v25 = vld [vmem:[#allocation0 + $0x138] sm:$0xf]  ;;  %v2091_v26 = vld [vmem:[#allocation0 + $0xf0] sm:$0xf] }
  0xf1   :  { %1504 = vst.msk [vmem:[#allocation0 + $0x40] sm:$0x7] %vm1502_vm2, %v1501_v23   ;;  %1506 = vst.msk [vmem:[#allocation0 + $0x25] sm:$0x38] %vm1502_vm2, %v1501_v23   ;;  %v2175_v27 = vld [vmem:[#allocation0 + $0x150] sm:$0xf] }
  0xf2   :  { %1508 = vst.msk [vmem:[#allocation0 + $0xa] sm:$0xc0] %vm1502_vm2, %v1501_v23   ;;  %2622 = vst [vmem:[%s4342_s1 + $0x6c] sm:$0xf] %v2070_v24  ;;  %v1902_v29 = vld [vmem:[#allocation0 + $0x18] sm:$0xf]  ;;  %v1567_v33 = vpop.permute.xlu0 %1566   ;;  %v1668_v36 = vpop.permute.xlu1 %1667  }
  0xf3   :  { %2634 = vst [vmem:[%s4342_s1 + $0x9c] sm:$0xf] %v2154_v25  ;;  %2625 = vst [vmem:[%s4342_s1 + $0x78] sm:$0xf] %v2091_v26  ;;  %v1986_v30 = vld [vmem:[#allocation0 + $0x78] sm:$0xf] }
  0xf4   :  { %v1923_v31 = vld [vmem:[#allocation0 + $0x30] sm:$0xf]  ;;  %2637 = vst [vmem:[%s4342_s1 + $0xa8] sm:$0xf] %v2175_v27  ;;  %1603 = vst.msk [vmem:[#allocation0 + $0x160] sm:$0x7] %vm1502_vm2, %v1600_v28  }
  0xf5   :  { %1605 = vst.msk [vmem:[#allocation0 + $0x145] sm:$0x38] %vm1502_vm2, %v1600_v28   ;;  %1607 = vst.msk [vmem:[#allocation0 + $0x12a] sm:$0xc0] %vm1502_vm2, %v1600_v28   ;;  %v2007_v32 = vld [vmem:[#allocation0 + $0x90] sm:$0xf] }
  0xf6   :  { %2598 = vst [vmem:[%s4342_s1 + $0xc] sm:$0xf] %v1902_v29  ;;  %2610 = vst [vmem:[%s4342_s1 + $0x3c] sm:$0xf] %v1986_v30  ;;  %v2000_v34 = vld [vmem:[#allocation0 + $0x88] sm:$0xf]  ;;  %v1736_v42 = vpop.permute.xlu1 %1735  }
  0xf7   :  { %2601 = vst [vmem:[%s4342_s1 + $0x18] sm:$0xf] %v1923_v31  ;;  %2613 = vst [vmem:[%s4342_s1 + $0x48] sm:$0xf] %v2007_v32  ;;  %v2021_v35 = vld [vmem:[#allocation0 + $0xa0] sm:$0xf] }
  0xf8   :  { %1570 = vst.msk [vmem:[#allocation0 + $0x100] sm:$0x7] %vm1502_vm2, %v1567_v33   ;;  %1572 = vst.msk [vmem:[#allocation0 + $0xe5] sm:$0x38] %vm1502_vm2, %v1567_v33   ;;  %v1916_v37 = vld [vmem:[#allocation0 + $0x28] sm:$0xf]  ;;  %v1633_v41 = vpop.permute.xlu0 %1632  }
  0xf9   :  { %1574 = vst.msk [vmem:[#allocation0 + $0xca] sm:$0xc0] %vm1502_vm2, %v1567_v33   ;;  %2612 = vst [vmem:[%s4342_s1 + $0x44] sm:$0xf] %v2000_v34  ;;  %v1937_v38 = vld [vmem:[#allocation0 + $0x40] sm:$0xf] }
  0xfa   :  { %2615 = vst [vmem:[%s4342_s1 + $0x50] sm:$0xf] %v2021_v35  ;;  %1671 = vst.msk [vmem:[#allocation0 + $0xd2] ss:$70 sm:$0x3] %vm1502_vm2, %v1668_v36   ;;  %v1802_v50 = vpop.permute.xlu1 %1801  }
  0xfb   :  { %1673 = vst.msk [vmem:[#allocation0 + $0x117] sm:$0xc] %vm1502_vm2, %v1668_v36   ;;  %1675 = vst.msk [vmem:[#allocation0 + $0x1a] ss:$70 sm:$0x30] %vm1502_vm2, %v1668_v36  }
  0xfc   :  { %1677 = vst.msk [vmem:[#allocation0 + $0x173] sm:$0xc0] %vm1502_vm2, %v1668_v36   ;;  %2600 = vst [vmem:[%s4342_s1 + $0x14] sm:$0xf] %v1916_v37  ;;  %v2168_v39 = vld [vmem:[#allocation0 + $0x148] sm:$0xf]  ;;  %v1703_v45 = vpop.permute.xlu0 %1702  }
  0xfd   :  { %2603 = vst [vmem:[%s4342_s1 + $0x20] sm:$0xf] %v1937_v38  ;;  %v2189_v40 = vld [vmem:[#allocation0 + $0x160] sm:$0xf]  ;;  %2636 = vst [vmem:[%s4342_s1 + $0xa4] sm:$0xf] %v2168_v39 }
  0xfe   :  { %2639 = vst [vmem:[%s4342_s1 + $0xb0] sm:$0xf] %v2189_v40  ;;  %1636 = vst.msk [vmem:[#allocation0 + $0x12] ss:$70 sm:$0x3] %vm1502_vm2, %v1633_v41  }
  0xff   :  { %1638 = vst.msk [vmem:[#allocation0 + $0x57] sm:$0xc] %vm1502_vm2, %v1633_v41   ;;  %1640 = vst.msk [vmem:[#allocation0 - $0xa6] ss:$70 sm:$0x30] %vm1502_vm2, %v1633_v41  }
 0x100   :  { %1642 = vst.msk [vmem:[#allocation0 + $0xb3] sm:$0xc0] %vm1502_vm2, %v1633_v41   ;;  %v2084_v43 = vld [vmem:[#allocation0 + $0xe8] sm:$0xf]  ;;  %v2105_v44 = vld [vmem:[#allocation0 + $0x100] sm:$0xf]  ;;  %v1769_v55 = vpop.permute.xlu0 %1768   ;;  %v1870_v58 = vpop.permute.xlu1 %1869  }
 0x101   :  { %1739 = vst.msk [vmem:[#allocation0 + $0x80] sm:$0x7] %vm1704_vm3, %v1736_v42   ;;  %1741 = vst.msk [vmem:[#allocation0 + $0x65] sm:$0x38] %vm1704_vm3, %v1736_v42   ;;  %v2063_v48 = vld [vmem:[#allocation0 + $0xd0] sm:$0xf] }
 0x102   :  { %1743 = vst.msk [vmem:[#allocation0 + $0xaa] sm:$0xc0] %vm1704_vm3, %v1736_v42   ;;  %2624 = vst [vmem:[%s4342_s1 + $0x74] sm:$0xf] %v2084_v43  ;;  %v2126_v46 = vld [vmem:[#allocation0 + $0x118] sm:$0xf] }
 0x103   :  { %2627 = vst [vmem:[%s4342_s1 + $0x80] sm:$0xf] %v2105_v44  ;;  %v2210_v47 = vld [vmem:[#allocation0 + $0x178] sm:$0xf]  ;;  %1706 = vst.msk [vmem:[#allocation0 + $0x20] sm:$0x7] %vm1704_vm3, %v1703_v45  }
 0x104   :  { %1708 = vst.msk [vmem:[#allocation0 + $0x5] sm:$0x38] %vm1704_vm3, %v1703_v45   ;;  %1710 = vst.msk [vmem:[#allocation0 + $0x4a] sm:$0xc0] %vm1704_vm3, %v1703_v45   ;;  %v2147_v49 = vld [vmem:[#allocation0 + $0x130] sm:$0xf] }
 0x105   :  { %2630 = vst [vmem:[%s4342_s1 + $0x8c] sm:$0xf] %v2126_v46  ;;  %2642 = vst [vmem:[%s4342_s1 + $0xbc] sm:$0xf] %v2210_v47  ;;  %v1895_v53 = vld [vmem:[#allocation0 + $0x10] sm:$0xf] }
 0x106   :  { %2621 = vst [vmem:[%s4342_s1 + $0x68] sm:$0xf] %v2063_v48  ;;  %2633 = vst [vmem:[%s4342_s1 + $0x98] sm:$0xf] %v2147_v49  ;;  %v1958_v51 = vld [vmem:[#allocation0 + $0x58] sm:$0xf]  ;;  %v1835_v61 = vpop.permute.xlu0 %1834  }
 0x107   :  { %v2042_v52 = vld [vmem:[#allocation0 + $0xb8] sm:$0xf]  ;;  %1805 = vst.msk [vmem:[#allocation0 + $0x140] sm:$0x7] %vm1704_vm3, %v1802_v50   ;;  %1807 = vst.msk [vmem:[#allocation0 + $0x125] sm:$0x38] %vm1704_vm3, %v1802_v50  }
 0x108   :  { %1809 = vst.msk [vmem:[#allocation0 + $0x16a] sm:$0xc0] %vm1704_vm3, %v1802_v50   ;;  %2606 = vst [vmem:[%s4342_s1 + $0x2c] sm:$0xf] %v1958_v51  ;;  %v1979_v54 = vld [vmem:[#allocation0 + $0x70] sm:$0xf] }
 0x109   :  { %2618 = vst [vmem:[%s4342_s1 + $0x5c] sm:$0xf] %v2042_v52  ;;  %2597 = vst [vmem:[%s4342_s1 + $0x8] sm:$0xf] %v1895_v53  ;;  %v1972_v56 = vld [vmem:[#allocation0 + $0x68] sm:$0xf] }
 0x10a   :  { %v1993_v57 = vld [vmem:[#allocation0 + $0x80] sm:$0xf]  ;;  %2609 = vst [vmem:[%s4342_s1 + $0x38] sm:$0xf] %v1979_v54  ;;  %1772 = vst.msk [vmem:[#allocation0 + $0xe0] sm:$0x7] %vm1704_vm3, %v1769_v55  }
 0x10b   :  { %1774 = vst.msk [vmem:[#allocation0 + $0xc5] sm:$0x38] %vm1704_vm3, %v1769_v55   ;;  %1776 = vst.msk [vmem:[#allocation0 + $0x10a] sm:$0xc0] %vm1704_vm3, %v1769_v55   ;;  %v1889_v59 = vld [vmem:[#allocation0 + $0x8] sm:$0xf] }
 0x10c   :  { %2608 = vst [vmem:[%s4342_s1 + $0x34] sm:$0xf] %v1972_v56  ;;  %2611 = vst [vmem:[%s4342_s1 + $0x40] sm:$0xf] %v1993_v57  ;;  %v1909_v60 = vld [vmem:[#allocation0 + $0x20] sm:$0xf] }
 0x10d   :  { %1873 = vst.msk [vmem:[#allocation0 + $0x112] ss:$-26 sm:$0x3] %vm1704_vm3, %v1870_v58   ;;  %1875 = vst.msk [vmem:[#allocation0 + $0xf7] sm:$0xc] %vm1704_vm3, %v1870_v58  }
 0x10e   :  { %1877 = vst.msk [vmem:[#allocation0 + $0x1da] ss:$-26 sm:$0x30] %vm1704_vm3, %v1870_v58   ;;  %1879 = vst.msk [vmem:[#allocation0 + $0x153] sm:$0xc0] %vm1704_vm3, %v1870_v58  }
 0x10f   :  { %2596 = vst [vmem:[%s4342_s1 + $0x4] sm:$0xf] %v1889_v59  ;;  %2599 = vst [vmem:[%s4342_s1 + $0x10] sm:$0xf] %v1909_v60  ;;  %v2140_v62 = vld [vmem:[#allocation0 + $0x128] sm:$0xf] }
 0x110   :  { %v2161_v63 = vld [vmem:[#allocation0 + $0x140] sm:$0xf]  ;;  %1838 = vst.msk [vmem:[#allocation0 + $0x52] ss:$-26 sm:$0x3] %vm1704_vm3, %v1835_v61  }
 0x111   :  { %1840 = vst.msk [vmem:[#allocation0 + $0x37] sm:$0xc] %vm1704_vm3, %v1835_v61   ;;  %1842 = vst.msk [vmem:[#allocation0 + $0x11a] ss:$-26 sm:$0x30] %vm1704_vm3, %v1835_v61  }
 0x112   :  { %1844 = vst.msk [vmem:[#allocation0 + $0x93] sm:$0xc0] %vm1704_vm3, %v1835_v61   ;;  %2632 = vst [vmem:[%s4342_s1 + $0x94] sm:$0xf] %v2140_v62  ;;  %v2056_v0 = vld [vmem:[#allocation0 + $0xc8] sm:$0xf] }
 0x113   :  { %2635 = vst [vmem:[%s4342_s1 + $0xa0] sm:$0xf] %v2161_v63  ;;  %v2077_v1 = vld [vmem:[#allocation0 + $0xe0] sm:$0xf]  ;;  %2620 = vst [vmem:[%s4342_s1 + $0x64] sm:$0xf] %v2056_v0 }
 0x114   :  { %2623 = vst [vmem:[%s4342_s1 + $0x70] sm:$0xf] %v2077_v1  ;;  %v2098_v2 = vld [vmem:[#allocation0 + $0xf8] sm:$0xf]  ;;  %v2119_v4 = vld [vmem:[#allocation0 + $0x110] sm:$0xf] }
 0x115   :  { %v2182_v3 = vld [vmem:[#allocation0 + $0x158] sm:$0xf]  ;;  %2626 = vst [vmem:[%s4342_s1 + $0x7c] sm:$0xf] %v2098_v2  ;;  %v2203_v5 = vld [vmem:[#allocation0 + $0x170] sm:$0xf] }
 0x116   :  { %2638 = vst [vmem:[%s4342_s1 + $0xac] sm:$0xf] %v2182_v3  ;;  %2629 = vst [vmem:[%s4342_s1 + $0x88] sm:$0xf] %v2119_v4 }
 0x117   :  { %2641 = vst [vmem:[%s4342_s1 + $0xb8] sm:$0xf] %v2203_v5  ;;  %v1951_v8 = vld [vmem:[#allocation0 + $0x50] sm:$0xf] }
 0x118   :  { %v1930_v6 = vld [vmem:[#allocation0 + $0x38] sm:$0xf]  ;;  %2605 = vst [vmem:[%s4342_s1 + $0x28] sm:$0xf] %v1951_v8  ;;  %v2035_v9 = vld [vmem:[#allocation0 + $0xb0] sm:$0xf] }
 0x119   :  { %v2014_v7 = vld [vmem:[#allocation0 + $0x98] sm:$0xf]  ;;  %2602 = vst [vmem:[%s4342_s1 + $0x1c] sm:$0xf] %v1930_v6  ;;  %2617 = vst [vmem:[%s4342_s1 + $0x58] sm:$0xf] %v2035_v9 }
 0x11a   :  { %2614 = vst [vmem:[%s4342_s1 + $0x4c] sm:$0xf] %v2014_v7 }

// kernel: textcnn_forward.1
= control target key start
LH: loop header
LB: loop body
LE: loop exit
PB: predicated region body
PF: predicated region fallthrough
CT: control target
= control target key end

     0   :  { %v29_v0 = vlaneseq  ;;  %v10142_v1 = vmov 0   ;;  %v10143_v16 = vmov 1.0|1.0   ;;  %v15031_v39 = vmov 0  ;;  %s10144_s23 = smov 127   ;;  %s10145_s12 = smov 125   ;;  %s14943_s0 = inlined_call_operand.vmem [shape: s32[1,6144], index: 0, kind: input, shape index: {}]   ;;  %s14944_s1 = inlined_call_operand.vmem [shape: bf16[32,64], index: 1, kind: input, shape index: {}]   ;;  %s14945_s3 = inlined_call_operand.vmem [shape: bf16[6144,128], index: 3, kind: input, shape index: {}]   ;;  %s14946_s2 = inlined_call_operand.vmem [shape: f32[3,6144], index: 2, kind: input, shape index: {}]   ;;  %s14947_s5 = inlined_call_operand.vmem [shape: f32[3,6144], index: 5, kind: output, shape index: {0}]   ;;  %s14948_s4 = inlined_call_operand.vmem [shape: f32[4,4], index: 4, kind: input, shape index: {}]   ;;  %s14949_s6 = inlined_call_operand.vmem [shape: f32[4,128], index: 6, kind: output, shape index: {1}]  }
   0x1   :  { %1243 = vmatprep.mubr.bf16.mxu0 %v10142_v1  ;;  %1296 = vmatprep.mubr.bf16.mxu1 %v10142_v1  ;;  %v10195_v3 = vld [vmem:[%s14943_s0] sm:$0xff]  ;;  %v10419_v32 = vld [vmem:[%s14944_s1 + $0x8] sm:$0xff]   ;;  %v10689_v52 = vld [vmem:[%s14943_s0 + $0x10] sm:$0xff]  ;;  %v15050_v51 = vmov 0  ;;  %s10146_s19 = smov 124   ;;  %s10147_s29 = smov 126  }
   0x2   :  { %v10189_v2 = vshrl.u32 %v29_v0, 7  ;;  %9727 = vset.pattern.permute.xlu0 %v10142_v1  ;;  %v10351_v26 = vld [vmem:[%s14944_s1] sm:$0xff]   ;;  %v10428_v33 = vld [vmem:[%s14943_s0 + $0x8] sm:$0xff]  ;;  %v9735_v44 = vld [vmem:[%s14945_s3 + $0x70] sm:$0xff]  }
   0x3   :  { %v11293_v48 = vld [vmem:[%s14943_s0 + $0x20] sm:$0xff]  ;;  %v9737_v47 = vld [vmem:[%s14945_s3 + $0x30] sm:$0xff]  }
   0x4   :  { %v10198_v4 = vadd.s32 48, %v10189_v2  ;;  %v10201_v5 = vadd.s32 56, %v10189_v2  ;;  %v10204_v6 = vsub.s32 1, %v10189_v2  ;;  %v10207_v7 = vsub.s32 3, %v10189_v2  ;;  %v11426_v57 = vld [vmem:[%s14944_s1] sm:$0xff]   ;;  %v9742_v60 = vld [vmem:[%s14945_s3 + $0xb0] sm:$0xff]  }
   0x5   :  { %v10210_v8 = vsub.s32 0, %v10189_v2  ;;  %v10213_v9 = vsub.s32 2, %v10189_v2  ;;  %v10224_v12 = vadd.s32 32, %v10189_v2  ;;  %v10227_v13 = vadd.s32 40, %v10189_v2  ;;  %v9743_v61 = vld [vmem:[%s14945_s3 + $0x60] sm:$0xff]  }
   0x6   :  { %v10217_v10 = vrot.slane %v10195_v3, %v10204_v6  ;;  %v10221_v11 = vrot.slane %v10195_v3, %v10207_v7  ;;  %v10259_v17 = vadd.s32 16, %v10189_v2  ;;  %v10262_v18 = vadd.s32 24, %v10189_v2 }
   0x7   :  { %14953 = vst [vmem:[#allocation2_spill] sm:$0xff] %v10210_v8  ;;  %14954 = vst [vmem:[#allocation3_spill] sm:$0xff] %v10213_v9  ;;  %v10231_v14 = vrot.slane %v10195_v3, %v10210_v8  ;;  %v10235_v15 = vrot.slane %v10195_v3, %v10213_v9  ;;  %v10285_v19 = vadd.s32 8, %v10189_v2  ;;  %v10288_v20 = vsub.s32 5, %v10189_v2 }
   0x8   :  { %vm519_vm0 = vcmp.eq.s32.totalorder %v10198_v4, %v10217_v10  ;;  %vm567_vm1 = vcmp.eq.s32.totalorder %v10201_v5, %v10217_v10  ;;  %vm521_vm2 = vcmp.eq.s32.totalorder %v10198_v4, %v10221_v11  ;;  %vm569_vm3 = vcmp.eq.s32.totalorder %v10201_v5, %v10221_v11 }
   0x9   :  { %vm8371_vm4 = vmpackc.low %vm567_vm1, %vm519_vm0  ;;  %vm518_vm5 = vcmp.eq.s32.totalorder %v10198_v4, %v10231_v14  ;;  %vm566_vm6 = vcmp.eq.s32.totalorder %v10201_v5, %v10231_v14  ;;  %vm520_vm7 = vcmp.eq.s32.totalorder %v10198_v4, %v10235_v15  ;;  %vm568_vm8 = vcmp.eq.s32.totalorder %v10201_v5, %v10235_v15 }
   0xa   :  { %8372 = vmatprep.subr.msk.bf16.mxu0 %vm8371_vm4, %v10143_v16  ;;  %vm8389_vm9 = vmpackc.low %vm569_vm3, %vm521_vm2  ;;  %vm423_vm10 = vcmp.eq.s32.totalorder %v10224_v12, %v10217_v10  ;;  %vm471_vm11 = vcmp.eq.s32.totalorder %v10227_v13, %v10217_v10  ;;  %vm425_vm13 = vcmp.eq.s32.totalorder %v10224_v12, %v10221_v11  ;;  %vm473_vm14 = vcmp.eq.s32.totalorder %v10227_v13, %v10221_v11 }
   0xb   :  { %8390 = vmatprep.subr.msk.bf16.mxu1 %vm8389_vm9, %v10143_v16  ;;  %vm8373_vm12 = vmpackc.low %vm566_vm6, %vm518_vm5  ;;  %vm422_vm0 = vcmp.eq.s32.totalorder %v10224_v12, %v10231_v14  ;;  %vm470_vm1 = vcmp.eq.s32.totalorder %v10227_v13, %v10231_v14  ;;  %vm424_vm3 = vcmp.eq.s32.totalorder %v10224_v12, %v10235_v15  ;;  %vm472_vm4 = vcmp.eq.s32.totalorder %v10227_v13, %v10235_v15 }
   0xc   :  { %8374 = vmatpush1.bf16.msk.msra.mxu0 %vm8373_vm12, %v10143_v16  ;;  %vm8391_vm15 = vmpackc.low %vm568_vm8, %vm520_vm7  ;;  %vm327_vm6 = vcmp.eq.s32.totalorder %v10259_v17, %v10217_v10  ;;  %vm375_vm7 = vcmp.eq.s32.totalorder %v10262_v18, %v10217_v10  ;;  %vm329_vm9 = vcmp.eq.s32.totalorder %v10259_v17, %v10221_v11  ;;  %vm326_vm12 = vcmp.eq.s32.totalorder %v10259_v17, %v10231_v14 }
   0xd   :  { %8392 = vmatpush1.bf16.msk.msra.mxu1 %vm8391_vm15, %v10143_v16  ;;  %vm8375_vm2 = vmpackc.low %vm471_vm11, %vm423_vm10  ;;  %vm377_vm10 = vcmp.eq.s32.totalorder %v10262_v18, %v10221_v11  ;;  %v10301_v21 = vsub.s32 4, %v10189_v2  ;;  %vm328_vm15 = vcmp.eq.s32.totalorder %v10259_v17, %v10235_v15  ;;  %v10315_v22 = vrot.slane %v10195_v3, %v10288_v20 }
   0xe   :  { %8376 = vmatprep.subr.msk.bf16.mxu0 %vm8375_vm2, %v10143_v16  ;;  %vm8393_vm5 = vmpackc.low %vm473_vm14, %vm425_vm13  ;;  %vm374_vm13 = vcmp.eq.s32.totalorder %v10262_v18, %v10231_v14  ;;  %vm231_vm2 = vcmp.eq.s32.totalorder %v10189_v2, %v10217_v10  ;;  %v10332_v24 = vsub.s32 7, %v10189_v2  ;;  %v10340_v25 = vsub.s32 6, %v10189_v2 }
   0xf   :  { %8394 = vmatprep.subr.msk.bf16.mxu1 %vm8393_vm5, %v10143_v16  ;;  %vm8377_vm8 = vmpackc.low %vm470_vm1, %vm422_vm0  ;;  %vm376_vm0 = vcmp.eq.s32.totalorder %v10262_v18, %v10235_v15  ;;  %vm233_vm5 = vcmp.eq.s32.totalorder %v10189_v2, %v10221_v11  ;;  %v10324_v23 = vrot.slane %v10195_v3, %v10301_v21  ;;  %v77_v36 = vrot.slane %v10428_v33, %v10204_v6 }
  0x10   :  { %8378 = vmatpush1.bf16.msk.msra.mxu0 %vm8377_vm8, %v10143_v16  ;;  %vm8395_vm11 = vmpackc.low %vm472_vm4, %vm424_vm3  ;;  %vm279_vm3 = vcmp.eq.s32.totalorder %v10285_v19, %v10217_v10  ;;  %vm230_vm8 = vcmp.eq.s32.totalorder %v10189_v2, %v10231_v14  ;;  %v10364_v27 = vrot.slane %v10195_v3, %v10332_v24  ;;  %v10373_v28 = vrot.slane %v10195_v3, %v10340_v25  ;;  %v9745_v10 = vld [vmem:[%s14945_s3 + $0x20] sm:$0xff]  }
  0x11   :  { %8396 = vmatpush1.bf16.msk.msra.mxu1 %vm8395_vm11, %v10143_v16  ;;  %vm8379_vm14 = vmpackc.low %vm375_vm7, %vm327_vm6  ;;  %vm281_vm6 = vcmp.eq.s32.totalorder %v10285_v19, %v10221_v11  ;;  %vm232_vm11 = vcmp.eq.s32.totalorder %v10189_v2, %v10235_v15  ;;  %v73_v37 = vrot.slane %v10428_v33, %v10210_v8  ;;  %v85_v40 = vrot.slane %v10428_v33, %v10207_v7 }
  0x12   :  { %8380 = vmatprep.subr.msk.bf16.mxu0 %vm8379_vm14, %v10143_v16  ;;  %vm8397_vm1 = vmpackc.low %vm377_vm10, %vm329_vm9  ;;  %vm278_vm9 = vcmp.eq.s32.totalorder %v10285_v19, %v10231_v14  ;;  %vm523_vm14 = vcmp.eq.s32.totalorder %v10198_v4, %v10315_v22  ;;  %v10529_v41 = vrot.slane %v10428_v33, %v10213_v9  ;;  %v93_v45 = vrot.slane %v10428_v33, %v10288_v20 }
  0x13   :  { %8398 = vmatprep.subr.msk.bf16.mxu1 %vm8397_vm1, %v10143_v16  ;;  %vm8381_vm4 = vmpackc.low %vm374_vm13, %vm326_vm12  ;;  %vm280_vm12 = vcmp.eq.s32.totalorder %v10285_v19, %v10235_v15  ;;  %vm522_vm1 = vcmp.eq.s32.totalorder %v10198_v4, %v10324_v23  ;;  %v10588_v46 = vrot.slane %v10428_v33, %v10301_v21  ;;  %v10639_v49 = vrot.slane %v10428_v33, %v10332_v24 }
  0x14   :  { %8382 = vmatpush1.bf16.msk.msra.mxu0 %vm8381_vm4, %v10143_v16  ;;  %vm8399_vm7 = vmpackc.low %vm376_vm0, %vm328_vm15  ;;  %vm571_vm15 = vcmp.eq.s32.totalorder %v10201_v5, %v10315_v22  ;;  %vm14950_vm4 = vcmask 523264   ;;  %v10650_v50 = vrot.slane %v10428_v33, %v10340_v25  ;;  %v10709_v54 = vrot.slane %v10689_v52, %v10204_v6 }
  0x15   :  { %8400 = vmatpush1.bf16.msk.msra.mxu1 %vm8399_vm7, %v10143_v16  ;;  %vm8383_vm10 = vmpackc.low %vm279_vm3, %vm231_vm2  ;;  %vm570_vm2 = vcmp.eq.s32.totalorder %v10201_v5, %v10324_v23  ;;  %v10726_v55 = vrot.slane %v10689_v52, %v10210_v8  ;;  %v10778_v58 = vrot.slane %v10689_v52, %v10207_v7  ;;  %v10797_v59 = vrot.slane %v10689_v52, %v10213_v9 }
  0x16   :  { %8384 = vmatprep.subr.msk.bf16.mxu0 %vm8383_vm10, %v10143_v16  ;;  %vm8401_vm13 = vmpackc.low %vm281_vm6, %vm233_vm5  ;;  %vm427_vm5 = vcmp.eq.s32.totalorder %v10224_v12, %v10315_v22  ;;  %vm475_vm6 = vcmp.eq.s32.totalorder %v10227_v13, %v10315_v22  ;;  %v10844_v62 = vrot.slane %v10689_v52, %v10288_v20  ;;  %v10867_v63 = vrot.slane %v10689_v52, %v10301_v21 }
  0x17   :  { %8402 = vmatprep.subr.msk.bf16.mxu1 %vm8401_vm13, %v10143_v16  ;;  %vm8385_vm0 = vmpackc.low %vm278_vm9, %vm230_vm8  ;;  %vm426_vm8 = vcmp.eq.s32.totalorder %v10224_v12, %v10324_v23  ;;  %vm474_vm9 = vcmp.eq.s32.totalorder %v10227_v13, %v10324_v23  ;;  %v10905_v3 = vrot.slane %v10689_v52, %v10332_v24  ;;  %v10932_v11 = vrot.slane %v10689_v52, %v10340_v25 }
  0x18   :  { %8386 = vmatpush1.bf16.msk.msra.mxu0 %vm8385_vm0, %v10143_v16  ;;  %vm8403_vm3 = vmpackc.low %vm280_vm12, %vm232_vm11  ;;  %vm331_vm11 = vcmp.eq.s32.totalorder %v10259_v17, %v10315_v22  ;;  %vm379_vm12 = vcmp.eq.s32.totalorder %v10262_v18, %v10315_v22  ;;  %v11389_v53 = vrot.slane %v11293_v48, %v10207_v7  ;;  %v11544_v0 = vrot.slane %v11293_v48, %v10301_v21 }
  0x19   :  { %8404 = vmatpush1.bf16.msk.msra.mxu1 %vm8403_vm3, %v10143_v16  ;;  %vm8407_vm7 = vmpackc.low %vm571_vm15, %vm523_vm14  ;;  %vm330_vm14 = vcmp.eq.s32.totalorder %v10259_v17, %v10324_v23  ;;  %vm378_vm15 = vcmp.eq.s32.totalorder %v10262_v18, %v10324_v23  ;;  %v197_v14 = vrot.slane %v11293_v48, %v10332_v24 }
  0x1a   :  { %8408 = vmatprep.subr.msk.bf16.mxu0 %vm8407_vm7, %v10143_v16  ;;  %vm8409_vm10 = vmpackc.low %vm570_vm2, %vm522_vm1  ;;  %vm525_vm1 = vcmp.eq.s32.totalorder %v10198_v4, %v10364_v27  ;;  %vm573_vm2 = vcmp.eq.s32.totalorder %v10201_v5, %v10364_v27 }
  0x1b   :  { %8387 = vmatmul.mubr.msk.bf16.vlgmr.msra.gmra.mxu0 %vm14950_vm4, %v10351_v26  ;;  %vm8411_vm13 = vmpackc.low %vm475_vm6, %vm427_vm5  ;;  %vm524_vm5 = vcmp.eq.s32.totalorder %v10198_v4, %v10373_v28  ;;  %vm572_vm6 = vcmp.eq.s32.totalorder %v10201_v5, %v10373_v28 }
  0x1c   :  { %8405 = vmatmul.mubr.msk.bf16.vlgmr.msra.gmra.mxu1 %vm14950_vm4, %v10351_v26  ;;  %8410 = vmatpush1.bf16.msk.msra.mxu0 %vm8409_vm10, %v10143_v16  ;;  %vm10389_vm0 = vmpackc.low %vm474_vm9, %vm426_vm8  ;;  %vm235_vm8 = vcmp.eq.s32.totalorder %v10189_v2, %v10315_v22  ;;  %vm283_vm9 = vcmp.eq.s32.totalorder %v10285_v19, %v10315_v22  ;;  %v10967_v22 = vld [vmem:[%s14943_s0 + $0x18] sm:$0xff] }
  0x1d   :  { %8412 = vmatprep.subr.msk.bf16.mxu0 %vm8411_vm13, %v10143_v16  ;;  %1253 = vmatprep.mubr.bf16.mxu0 %v10142_v1  ;;  %vm10399_vm3 = vmpackc.low %vm379_vm12, %vm331_vm11  ;;  %vm234_vm11 = vcmp.eq.s32.totalorder %v10189_v2, %v10324_v23  ;;  %vm282_vm12 = vcmp.eq.s32.totalorder %v10285_v19, %v10324_v23  ;;  %v11039_v31 = vrot.slane %v10967_v22, %v10210_v8 }
  0x1e   :  { %1306 = vmatprep.mubr.bf16.mxu1 %v10142_v1  ;;  %vm10408_vm7 = vmpackc.low %vm378_vm15, %vm330_vm14  ;;  %vm429_vm14 = vcmp.eq.s32.totalorder %v10224_v12, %v10364_v27  ;;  %vm477_vm15 = vcmp.eq.s32.totalorder %v10227_v13, %v10364_v27  ;;  %v11066_v33 = vrot.slane %v10967_v22, %v10207_v7  ;;  %v11155_v38 = vrot.slane %v10967_v22, %v10288_v20 }
  0x1f   :  { %vm8425_vm10 = vmpackc.low %vm573_vm2, %vm525_vm1  ;;  %vm476_vm2 = vcmp.eq.s32.totalorder %v10227_v13, %v10373_v28  ;;  %v11219_v42 = vrot.slane %v10967_v22, %v10332_v24 }
  0x20   :  { %8414 = vmatpush1.bf16.msk.msra.mxu0 %vm10389_vm0, %v10143_v16  ;;  %8426 = vmatprep.subr.msk.bf16.mxu1 %vm8425_vm10, %v10143_v16  ;;  %vm8427_vm13 = vmpackc.low %vm572_vm6, %vm524_vm5  ;;  %vm428_vm0 = vcmp.eq.s32.totalorder %v10224_v12, %v10373_v28  ;;  %vm333_vm6 = vcmp.eq.s32.totalorder %v10259_v17, %v10364_v27  ;;  %vm380_vm10 = vcmp.eq.s32.totalorder %v10262_v18, %v10373_v28 }
  0x21   :  { %8416 = vmatprep.subr.msk.bf16.mxu0 %vm10399_vm3, %v10143_v16  ;;  %8428 = vmatpush1.bf16.msk.msra.mxu1 %vm8427_vm13, %v10143_v16  ;;  %vm10442_vm1 = vmpackc.low %vm283_vm9, %vm235_vm8  ;;  %vm381_vm3 = vcmp.eq.s32.totalorder %v10262_v18, %v10364_v27  ;;  %vm332_vm9 = vcmp.eq.s32.totalorder %v10259_v17, %v10373_v28  ;;  %vm285_vm13 = vcmp.eq.s32.totalorder %v10285_v19, %v10364_v27 }
  0x22   :  { %vm10450_vm5 = vmpackc.low %vm282_vm12, %vm234_vm11  ;;  %vm237_vm12 = vcmp.eq.s32.totalorder %v10189_v2, %v10364_v27  ;;  %v9747_v27 = vld [vmem:[%s14945_s3 + $0x58] sm:$0xff]  }
  0x23   :  { %8388 = vmatmul.mubr.msk.bf16.gmra.mxu0 %vm14950_vm4, %v10419_v32  ;;  %vm8429_vm8 = vmpackc.low %vm477_vm15, %vm429_vm14  ;;  %vm284_vm15 = vcmp.eq.s32.totalorder %v10285_v19, %v10373_v28 }
  0x24   :  { %8406 = vmatmul.mubr.msk.bf16.gmra.mxu1 %vm14950_vm4, %v10419_v32  ;;  %8418 = vmatpush1.bf16.msk.msra.mxu0 %vm10408_vm7, %v10143_v16  ;;  %vm8431_vm11 = vmpackc.low %vm476_vm2, %vm428_vm0  ;;  %vm236_vm7 = vcmp.eq.s32.totalorder %v10189_v2, %v10373_v28  ;;  %vm527_vm0 = vcmp.eq.s32.totalorder %v10198_v4, %v77_v36  ;;  %vm575_vm2 = vcmp.eq.s32.totalorder %v10201_v5, %v77_v36 }
  0x25   :  { %8420 = vmatprep.subr.msk.bf16.mxu0 %vm10442_vm1, %v10143_v16  ;;  %8430 = vmatprep.subr.msk.bf16.mxu1 %vm8429_vm8, %v10143_v16  ;;  %vm8433_vm14 = vmpackc.low %vm381_vm3, %vm333_vm6  ;;  %vm526_vm3 = vcmp.eq.s32.totalorder %v10198_v4, %v73_v37  ;;  %vm574_vm8 = vcmp.eq.s32.totalorder %v10201_v5, %v73_v37  ;;  %v10998_v28 = vrot.slane %v10967_v22, %v10204_v6 }
  0x26   :  { %1349 = vmatprep.mubr.bf16.mxu0 %v10142_v1  ;;  %8432 = vmatpush1.bf16.msk.msra.mxu1 %vm8431_vm11, %v10143_v16  ;;  %vm8435_vm1 = vmpackc.low %vm380_vm10, %vm332_vm9  ;;  %vm431_vm10 = vcmp.eq.s32.totalorder %v10224_v12, %v77_v36  ;;  %vm479_vm11 = vcmp.eq.s32.totalorder %v10227_v13, %v77_v36 }
  0x27   :  { %8434 = vmatprep.subr.msk.bf16.mxu1 %vm8433_vm14, %v10143_v16  ;;  %vm10496_vm6 = vmpackc.low %vm285_vm13, %vm237_vm12  ;;  %1402 = vmatprep.mubr.bf16.mxu1 %v10142_v1  ;;  %vm430_vm13 = vcmp.eq.s32.totalorder %v10224_v12, %v73_v37  ;;  %vm478_vm14 = vcmp.eq.s32.totalorder %v10227_v13, %v73_v37 }
  0x28   :  { %8422 = vmatpush1.bf16.msk.msra.mxu0 %vm10450_vm5, %v10143_v16  ;;  %vm10506_vm9 = vmpackc.low %vm284_vm15, %vm236_vm7  ;;  %vm335_vm5 = vcmp.eq.s32.totalorder %v10259_v17, %v77_v36  ;;  %vm383_vm7 = vcmp.eq.s32.totalorder %v10262_v18, %v77_v36  ;;  %vm14969_vm15 = vcmask 523264  }
  0x29   :  { %vm8443_vm12 = vmpackc.low %vm575_vm2, %vm527_vm0  ;;  %vm382_vm2 = vcmp.eq.s32.totalorder %v10262_v18, %v73_v37 }
  0x2a   :  { %8436 = vmatpush1.bf16.msk.msra.mxu1 %vm8435_vm1, %v10143_v16  ;;  %8444 = vmatprep.subr.msk.bf16.mxu0 %vm8443_vm12, %v10143_v16  ;;  %vm8445_vm4 = vmpackc.low %vm574_vm8, %vm526_vm3  ;;  %vm334_vm1 = vcmp.eq.s32.totalorder %v10259_v17, %v73_v37  ;;  %vm287_vm8 = vcmp.eq.s32.totalorder %v10285_v19, %v77_v36  ;;  %vm286_vm12 = vcmp.eq.s32.totalorder %v10285_v19, %v73_v37 }
  0x2b   :  { %8423 = vmatmul.mubr.msk.bf16.vlgmr.msra.gmra.mxu0 %vm14969_vm15, %v10351_v26  ;;  %8438 = vmatprep.subr.msk.bf16.mxu1 %vm10496_vm6, %v10143_v16  ;;  %vm8447_vm0 = vmpackc.low %vm479_vm11, %vm431_vm10  ;;  %vm239_vm6 = vcmp.eq.s32.totalorder %v10189_v2, %v77_v36  ;;  %vm238_vm11 = vcmp.eq.s32.totalorder %v10189_v2, %v73_v37  ;;  %v11105_v36 = vrot.slane %v10967_v22, %v10213_v9 }
  0x2c   :  { %1359 = vmatprep.mubr.bf16.mxu0 %v10142_v1  ;;  %8446 = vmatpush1.bf16.msk.msra.mxu0 %vm8445_vm4, %v10143_v16  ;;  %vm8449_vm3 = vmpackc.low %vm478_vm14, %vm430_vm13  ;;  %vm529_vm13 = vcmp.eq.s32.totalorder %v10198_v4, %v85_v40  ;;  %vm577_vm14 = vcmp.eq.s32.totalorder %v10201_v5, %v85_v40 }
  0x2d   :  { %8448 = vmatprep.subr.msk.bf16.mxu0 %vm8447_vm0, %v10143_v16  ;;  %vm8451_vm10 = vmpackc.low %vm383_vm7, %vm335_vm5  ;;  %vm528_vm5 = vcmp.eq.s32.totalorder %v10198_v4, %v10529_v41  ;;  %vm576_vm7 = vcmp.eq.s32.totalorder %v10201_v5, %v10529_v41  ;;  %vm385_vm0 = vcmp.eq.s32.totalorder %v10262_v18, %v85_v40 }
  0x2e   :  { %8440 = vmatpush1.bf16.msk.msra.mxu1 %vm10506_vm9, %v10143_v16  ;;  %vm10547_vm4 = vmpackc.low %vm382_vm2, %vm334_vm1  ;;  %vm481_vm1 = vcmp.eq.s32.totalorder %v10227_v13, %v85_v40  ;;  %vm14976_vm2 = vcmask 523264  }
  0x2f   :  { %vm10553_vm15 = vmpackc.low %vm287_vm8, %vm239_vm6  ;;  %vm432_vm8 = vcmp.eq.s32.totalorder %v10224_v12, %v10529_v41 }
  0x30   :  { %8450 = vmatpush1.bf16.msk.msra.mxu0 %vm8449_vm3, %v10143_v16  ;;  %vm10562_vm9 = vmpackc.low %vm286_vm12, %vm238_vm11  ;;  %vm480_vm3 = vcmp.eq.s32.totalorder %v10227_v13, %v10529_v41  ;;  %vm337_vm12 = vcmp.eq.s32.totalorder %v10259_v17, %v85_v40 }
  0x31   :  { %8441 = vmatmul.mubr.msk.bf16.vlgmr.msra.gmra.mxu1 %vm14976_vm2, %v10351_v26  ;;  %8452 = vmatprep.subr.msk.bf16.mxu0 %vm8451_vm10, %v10143_v16  ;;  %vm8461_vm6 = vmpackc.low %vm577_vm14, %vm529_vm13  ;;  %vm14978_vm13 = vcmp.eq.s32.totalorder %v10224_v12, %v85_v40 }
  0x32   :  { %1412 = vmatprep.mubr.bf16.mxu1 %v10142_v1  ;;  %8462 = vmatprep.subr.msk.bf16.mxu1 %vm8461_vm6, %v10143_v16  ;;  %vm8463_vm11 = vmpackc.low %vm576_vm7, %vm528_vm5  ;;  %vm336_vm7 = vcmp.eq.s32.totalorder %v10259_v17, %v10529_v41  ;;  %vm241_vm6 = vcmp.eq.s32.totalorder %v10189_v2, %v85_v40 }
  0x33   :  { %vm14977_vm10 = vmmov %vm14976_vm2  ;;  %8464 = vmatpush1.bf16.msk.msra.mxu1 %vm8463_vm11, %v10143_v16  ;;  %vm384_vm2 = vcmp.eq.s32.totalorder %v10262_v18, %v10529_v41  ;;  %vm531_vm11 = vcmp.eq.s32.totalorder %v10198_v4, %v93_v45 }
  0x34   :  { %8424 = vmatmul.mubr.msk.bf16.gmra.mxu0 %vm14977_vm10, %v10419_v32  ;;  %vm8465_vm14 = vmpackc.low %vm481_vm1, %vm14978_vm13  ;;  %vm435_vm10 = vcmp.eq.s32.totalorder %v10224_v12, %v93_v45  ;;  %vm483_vm13 = vcmp.eq.s32.totalorder %v10227_v13, %v93_v45 }
  0x35   :  { %8454 = vmatpush1.bf16.msk.msra.mxu0 %vm10547_vm4, %v10143_v16  ;;  %1455 = vmatprep.mubr.bf16.mxu0 %v10142_v1  ;;  %vm8467_vm5 = vmpackc.low %vm480_vm3, %vm432_vm8  ;;  %vm289_vm4 = vcmp.eq.s32.totalorder %v10285_v19, %v85_v40  ;;  %vm579_vm8 = vcmp.eq.s32.totalorder %v10201_v5, %v93_v45 }
  0x36   :  { %8456 = vmatprep.subr.msk.bf16.mxu0 %vm10553_vm15, %v10143_v16  ;;  %8466 = vmatprep.subr.msk.bf16.mxu1 %vm8465_vm14, %v10143_v16  ;;  %vm8469_vm1 = vmpackc.low %vm385_vm0, %vm337_vm12  ;;  %vm530_vm15 = vcmp.eq.s32.totalorder %v10198_v4, %v10588_v46  ;;  %vm578_vm0 = vcmp.eq.s32.totalorder %v10201_v5, %v10588_v46  ;;  %vm14983_vm14 = vcmask 523264  }
  0x37   :  { %8468 = vmatpush1.bf16.msk.msra.mxu1 %vm8467_vm5, %v10143_v16  ;;  %vm10607_vm3 = vmpackc.low %vm384_vm2, %vm336_vm7  ;;  %vm240_vm5 = vcmp.eq.s32.totalorder %v10189_v2, %v10529_v41  ;;  %vm288_vm7 = vcmp.eq.s32.totalorder %v10285_v19, %v10529_v41  ;;  %v11192_v41 = vrot.slane %v10967_v22, %v10301_v21 }
  0x38   :  { %8470 = vmatprep.subr.msk.bf16.mxu1 %vm8469_vm1, %v10143_v16  ;;  %vm10619_vm12 = vmpackc.low %vm289_vm4, %vm241_vm6  ;;  %vm434_vm1 = vcmp.eq.s32.totalorder %v10224_v12, %v10588_v46  ;;  %vm482_vm6 = vcmp.eq.s32.totalorder %v10227_v13, %v10588_v46 }
  0x39   :  { %8458 = vmatpush1.bf16.msk.msra.mxu0 %vm10562_vm9, %v10143_v16  ;;  %8442 = vmatmul.mubr.msk.bf16.gmra.mxu1 %vm14983_vm14, %v10419_v32  ;;  %vm8479_vm9 = vmpackc.low %vm579_vm8, %vm531_vm11  ;;  %vm339_vm8 = vcmp.eq.s32.totalorder %v10259_v17, %v93_v45 }
  0x3a   :  { %1508 = vmatprep.mubr.bf16.mxu1 %v10142_v1  ;;  %8480 = vmatprep.subr.msk.bf16.mxu0 %vm8479_vm9, %v10143_v16  ;;  %vm8481_vm2 = vmpackc.low %vm578_vm0, %vm530_vm15  ;;  %vm387_vm15 = vcmp.eq.s32.totalorder %v10262_v18, %v93_v45  ;;  %vm338_vm0 = vcmp.eq.s32.totalorder %v10259_v17, %v10588_v46 }
  0x3b   :  { %vm14984_vm4 = vmmov %vm14983_vm14  ;;  %8472 = vmatpush1.bf16.msk.msra.mxu1 %vm10607_vm3, %v10143_v16  ;;  %vm291_vm14 = vcmp.eq.s32.totalorder %v10285_v19, %v93_v45 }
  0x3c   :  { %8459 = vmatmul.mubr.msk.bf16.vlgmr.msra.gmra.mxu0 %vm14984_vm4, %v10351_v26  ;;  %vm8483_vm11 = vmpackc.low %vm483_vm13, %vm435_vm10  ;;  %8474 = vmatprep.subr.msk.bf16.mxu1 %vm10619_vm12, %v10143_v16  ;;  %vm386_vm10 = vcmp.eq.s32.totalorder %v10262_v18, %v10588_v46  ;;  %vm243_vm12 = vcmp.eq.s32.totalorder %v10189_v2, %v93_v45  ;;  %v11258_v45 = vrot.slane %v10967_v22, %v10340_v25 }
  0x3d   :  { %1465 = vmatprep.mubr.bf16.mxu0 %v10142_v1  ;;  %vm8475_vm3 = vmpackc.low %vm288_vm7, %vm240_vm5  ;;  %8482 = vmatpush1.bf16.msk.msra.mxu0 %vm8481_vm2, %v10143_v16  ;;  %vm533_vm5 = vcmp.eq.s32.totalorder %v10198_v4, %v10639_v49  ;;  %vm581_vm7 = vcmp.eq.s32.totalorder %v10201_v5, %v10639_v49  ;;  %v193_v22 = vrot.slane %v11293_v48, %v10340_v25 }
  0x3e   :  { %vm8485_vm13 = vmpackc.low %vm482_vm6, %vm434_vm1  ;;  %8484 = vmatprep.subr.msk.bf16.mxu0 %vm8483_vm11, %v10143_v16  ;;  %vm532_vm1 = vcmp.eq.s32.totalorder %v10198_v4, %v10650_v50  ;;  %vm580_vm6 = vcmp.eq.s32.totalorder %v10201_v5, %v10650_v50  ;;  %vm437_vm11 = vcmp.eq.s32.totalorder %v10224_v12, %v10639_v49 }
  0x3f   :  { %vm8487_vm9 = vmpackc.low %vm387_vm15, %vm339_vm8  ;;  %8476 = vmatpush1.bf16.msk.msra.mxu1 %vm8475_vm3, %v10143_v16  ;;  %vm485_vm8 = vcmp.eq.s32.totalorder %v10227_v13, %v10639_v49  ;;  %vm14989_vm3 = vcmask 523264  }
  0x40   :  { %vm10678_vm2 = vmpackc.low %vm386_vm10, %vm338_vm0  ;;  %vm242_vm0 = vcmp.eq.s32.totalorder %v10189_v2, %v10588_v46  ;;  %vm290_vm10 = vcmp.eq.s32.totalorder %v10285_v19, %v10588_v46 }
  0x41   :  { %vm10691_vm4 = vmpackc.low %vm291_vm14, %vm243_vm12  ;;  %8486 = vmatpush1.bf16.msk.msra.mxu0 %vm8485_vm13, %v10143_v16 }
  0x42   :  { %vm8497_vm15 = vmpackc.low %vm581_vm7, %vm533_vm5  ;;  %8477 = vmatmul.mubr.msk.bf16.vlgmr.msra.gmra.mxu1 %vm14989_vm3, %v10351_v26  ;;  %8488 = vmatprep.subr.msk.bf16.mxu0 %vm8487_vm9, %v10143_v16  ;;  %vm436_vm9 = vcmp.eq.s32.totalorder %v10224_v12, %v10650_v50  ;;  %vm484_vm5 = vcmp.eq.s32.totalorder %v10227_v13, %v10650_v50  ;;  %vm341_vm7 = vcmp.eq.s32.totalorder %v10259_v17, %v10639_v49 }
  0x43   :  { %vm8499_vm12 = vmpackc.low %vm580_vm6, %vm532_vm1  ;;  %1518 = vmatprep.mubr.bf16.mxu1 %v10142_v1  ;;  %8498 = vmatprep.subr.msk.bf16.mxu1 %vm8497_vm15, %v10143_v16  ;;  %vm389_vm1 = vcmp.eq.s32.totalorder %v10262_v18, %v10639_v49 }
  0x44   :  { %vm14990_vm14 = vmmov %vm14989_vm3  ;;  %8500 = vmatpush1.bf16.msk.msra.mxu1 %vm8499_vm12, %v10143_v16  ;;  %vm583_vm3 = vcmp.eq.s32.totalorder %v10201_v5, %v10709_v54  ;;  %vm293_vm12 = vcmp.eq.s32.totalorder %v10285_v19, %v10639_v49 }
  0x45   :  { %8460 = vmatmul.mubr.msk.bf16.gmra.mxu0 %vm14990_vm14, %v10419_v32  ;;  %vm8501_vm13 = vmpackc.low %vm485_vm8, %vm437_vm11  ;;  %vm340_vm11 = vcmp.eq.s32.totalorder %v10259_v17, %v10650_v50  ;;  %vm388_vm8 = vcmp.eq.s32.totalorder %v10262_v18, %v10650_v50 }
  0x46   :  { %1561 = vmatprep.mubr.bf16.mxu0 %v10142_v1  ;;  %8490 = vmatpush1.bf16.msk.msra.mxu0 %vm10678_vm2, %v10143_v16  ;;  %vm8493_vm6 = vmpackc.low %vm290_vm10, %vm242_vm0  ;;  %vm535_vm2 = vcmp.eq.s32.totalorder %v10198_v4, %v10709_v54  ;;  %vm245_vm10 = vcmp.eq.s32.totalorder %v10189_v2, %v10639_v49 }
  0x47   :  { %8492 = vmatprep.subr.msk.bf16.mxu0 %vm10691_vm4, %v10143_v16  ;;  %8502 = vmatprep.subr.msk.bf16.mxu1 %vm8501_vm13, %v10143_v16  ;;  %vm8503_vm15 = vmpackc.low %vm484_vm5, %vm436_vm9  ;;  %vm534_vm4 = vcmp.eq.s32.totalorder %v10198_v4, %v10726_v55  ;;  %vm582_vm13 = vcmp.eq.s32.totalorder %v10201_v5, %v10726_v55  ;;  %vm439_vm5 = vcmp.eq.s32.totalorder %v10224_v12, %v10709_v54 }
  0x48   :  { %vm8505_vm0 = vmpackc.low %vm389_vm1, %vm341_vm7  ;;  %8504 = vmatpush1.bf16.msk.msra.mxu1 %vm8503_vm15, %v10143_v16  ;;  %vm487_vm7 = vcmp.eq.s32.totalorder %v10227_v13, %v10709_v54  ;;  %vm14993_vm1 = vcmask 523264  }
  0x49   :  { %vm10751_vm14 = vmpackc.low %vm388_vm8, %vm340_vm11  ;;  %8506 = vmatprep.subr.msk.bf16.mxu1 %vm8505_vm0, %v10143_v16  ;;  %vm292_vm8 = vcmp.eq.s32.totalorder %v10285_v19, %v10650_v50 }
  0x4a   :  { %8494 = vmatpush1.bf16.msk.msra.mxu0 %vm8493_vm6, %v10143_v16  ;;  %vm8515_vm9 = vmpackc.low %vm583_vm3, %vm535_vm2  ;;  %8478 = vmatmul.mubr.msk.bf16.gmra.mxu1 %vm14993_vm1, %v10419_v32  ;;  %vm244_vm6 = vcmp.eq.s32.totalorder %v10189_v2, %v10650_v50  ;;  %vm438_vm2 = vcmp.eq.s32.totalorder %v10224_v12, %v10726_v55  ;;  %vm486_vm3 = vcmp.eq.s32.totalorder %v10227_v13, %v10726_v55 }
  0x4b   :  { %vm10768_vm11 = vmpackc.low %vm293_vm12, %vm245_vm10  ;;  %1614 = vmatprep.mubr.bf16.mxu1 %v10142_v1  ;;  %8516 = vmatprep.subr.msk.bf16.mxu0 %vm8515_vm9, %v10143_v16  ;;  %vm343_vm12 = vcmp.eq.s32.totalorder %v10259_v17, %v10709_v54  ;;  %vm391_vm9 = vcmp.eq.s32.totalorder %v10262_v18, %v10709_v54  ;;  %v11323_v50 = vrot.slane %v11293_v48, %v10204_v6 }
  0x4c   :  { %vm8517_vm15 = vmpackc.low %vm582_vm13, %vm534_vm4  ;;  %8508 = vmatpush1.bf16.msk.msra.mxu1 %vm10751_vm14, %v10143_v16  ;;  %vm342_vm13 = vcmp.eq.s32.totalorder %v10259_v17, %v10726_v55  ;;  %vm537_vm14 = vcmp.eq.s32.totalorder %v10198_v4, %v10778_v58 }
  0x4d   :  { %vm14996_vm0 = vmmov %vm14993_vm1  ;;  %8510 = vmatprep.subr.msk.bf16.mxu1 %vm10768_vm11, %v10143_v16  ;;  %vm585_vm1 = vcmp.eq.s32.totalorder %v10201_v5, %v10778_v58 }
  0x4e   :  { %8495 = vmatmul.mubr.msk.bf16.vlgmr.msra.gmra.mxu0 %vm14996_vm0, %v10351_v26  ;;  %vm8519_vm10 = vmpackc.low %vm487_vm7, %vm439_vm5  ;;  %vm390_vm5 = vcmp.eq.s32.totalorder %v10262_v18, %v10726_v55  ;;  %vm295_vm0 = vcmp.eq.s32.totalorder %v10285_v19, %v10709_v54 }
  0x4f   :  { %1571 = vmatprep.mubr.bf16.mxu0 %v10142_v1  ;;  %vm8511_vm4 = vmpackc.low %vm292_vm8, %vm244_vm6  ;;  %8518 = vmatpush1.bf16.msk.msra.mxu0 %vm8517_vm15, %v10143_v16  ;;  %vm247_vm8 = vcmp.eq.s32.totalorder %v10189_v2, %v10709_v54  ;;  %vm536_vm15 = vcmp.eq.s32.totalorder %v10198_v4, %v10797_v59  ;;  %v9739_v54 = vld [vmem:[%s14945_s3 + $0x68] sm:$0xff]  }
  0x50   :  { %vm8521_vm7 = vmpackc.low %vm486_vm3, %vm438_vm2  ;;  %8520 = vmatprep.subr.msk.bf16.mxu0 %vm8519_vm10, %v10143_v16  ;;  %vm584_vm2 = vcmp.eq.s32.totalorder %v10201_v5, %v10797_v59  ;;  %8512 = vmatpush1.bf16.msk.msra.mxu1 %vm8511_vm4, %v10143_v16  ;;  %vm441_vm10 = vcmp.eq.s32.totalorder %v10224_v12, %v10778_v58  ;;  %vm246_vm4 = vcmp.eq.s32.totalorder %v10189_v2, %v10726_v55 }
  0x51   :  { %vm8523_vm6 = vmpackc.low %vm391_vm9, %vm343_vm12  ;;  %vm489_vm12 = vcmp.eq.s32.totalorder %v10227_v13, %v10778_v58 }
  0x52   :  { %vm10823_vm11 = vmpackc.low %vm390_vm5, %vm342_vm13  ;;  %vm294_vm13 = vcmp.eq.s32.totalorder %v10285_v19, %v10726_v55  ;;  %v9740_v55 = vld [vmem:[%s14945_s3 + $0xf0] sm:$0xff]  }
  0x53   :  { %vm8533_vm3 = vmpackc.low %vm585_vm1, %vm537_vm14  ;;  %8522 = vmatpush1.bf16.msk.msra.mxu0 %vm8521_vm7, %v10143_v16  ;;  %vm15001_vm7 = vcmask 523264  }
  0x54   :  { %vm10837_vm9 = vmpackc.low %vm295_vm0, %vm247_vm8  ;;  %8534 = vmatprep.subr.msk.bf16.mxu1 %vm8533_vm3, %v10143_v16  ;;  %8524 = vmatprep.subr.msk.bf16.mxu0 %vm8523_vm6, %v10143_v16  ;;  %vm440_vm8 = vcmp.eq.s32.totalorder %v10224_v12, %v10797_v59  ;;  %vm488_vm6 = vcmp.eq.s32.totalorder %v10227_v13, %v10797_v59  ;;  %vm345_vm0 = vcmp.eq.s32.totalorder %v10259_v17, %v10778_v58 }
  0x55   :  { %vm8535_vm5 = vmpackc.low %vm584_vm2, %vm536_vm15  ;;  %vm393_vm15 = vcmp.eq.s32.totalorder %v10262_v18, %v10778_v58  ;;  %vm539_vm3 = vcmp.eq.s32.totalorder %v10198_v4, %v10844_v62 }
  0x56   :  { %8496 = vmatmul.mubr.msk.bf16.gmra.mxu0 %vm15001_vm7, %v10419_v32  ;;  %vm15002_vm14 = vmmov %vm15001_vm7  ;;  %vm344_vm7 = vcmp.eq.s32.totalorder %v10259_v17, %v10797_v59 }
  0x57   :  { %8513 = vmatmul.mubr.msk.bf16.vlgmr.msra.gmra.mxu1 %vm15002_vm14, %v10351_v26  ;;  %vm8537_vm1 = vmpackc.low %vm489_vm12, %vm441_vm10  ;;  %1667 = vmatprep.mubr.bf16.mxu0 %v10142_v1  ;;  %vm587_vm10 = vcmp.eq.s32.totalorder %v10201_v5, %v10844_v62 }
  0x58   :  { %1624 = vmatprep.mubr.bf16.mxu1 %v10142_v1  ;;  %8526 = vmatpush1.bf16.msk.msra.mxu0 %vm10823_vm11, %v10143_v16  ;;  %vm8529_vm2 = vmpackc.low %vm294_vm13, %vm246_vm4  ;;  %vm392_vm11 = vcmp.eq.s32.totalorder %v10262_v18, %v10797_v59  ;;  %vm249_vm13 = vcmp.eq.s32.totalorder %v10189_v2, %v10778_v58 }
  0x59   :  { %8536 = vmatpush1.bf16.msk.msra.mxu1 %vm8535_vm5, %v10143_v16  ;;  %8528 = vmatprep.subr.msk.bf16.mxu0 %vm10837_vm9, %v10143_v16  ;;  %vm8539_vm12 = vmpackc.low %vm488_vm6, %vm440_vm8  ;;  %vm297_vm5 = vcmp.eq.s32.totalorder %v10285_v19, %v10778_v58  ;;  %vm538_vm9 = vcmp.eq.s32.totalorder %v10198_v4, %v10867_v63  ;;  %vm443_vm6 = vcmp.eq.s32.totalorder %v10224_v12, %v10844_v62 }
  0x5a   :  { %8538 = vmatprep.subr.msk.bf16.mxu1 %vm8537_vm1, %v10143_v16  ;;  %vm8541_vm4 = vmpackc.low %vm393_vm15, %vm345_vm0  ;;  %vm586_vm1 = vcmp.eq.s32.totalorder %v10201_v5, %v10867_v63  ;;  %vm491_vm0 = vcmp.eq.s32.totalorder %v10227_v13, %v10844_v62 }
  0x5b   :  { %vm8551_vm14 = vmpackc.low %vm587_vm10, %vm539_vm3  ;;  %vm296_vm3 = vcmp.eq.s32.totalorder %v10285_v19, %v10797_v59  ;;  %vm15007_vm10 = vcmask 523264  }
  0x5c   :  { %8530 = vmatpush1.bf16.msk.msra.mxu0 %vm8529_vm2, %v10143_v16  ;;  %vm10895_vm8 = vmpackc.low %vm392_vm11, %vm344_vm7  ;;  %vm248_vm2 = vcmp.eq.s32.totalorder %v10189_v2, %v10797_v59  ;;  %vm442_vm7 = vcmp.eq.s32.totalorder %v10224_v12, %v10867_v63  ;;  %vm490_vm11 = vcmp.eq.s32.totalorder %v10227_v13, %v10867_v63  ;;  %v11495_v59 = vrot.slane %v11293_v48, %v10288_v20 }
  0x5d   :  { %8540 = vmatpush1.bf16.msk.msra.mxu1 %vm8539_vm12, %v10143_v16  ;;  %vm10908_vm15 = vmpackc.low %vm297_vm5, %vm249_vm13  ;;  %8552 = vmatprep.subr.msk.bf16.mxu0 %vm8551_vm14, %v10143_v16  ;;  %vm347_vm5 = vcmp.eq.s32.totalorder %v10259_v17, %v10844_v62  ;;  %vm395_vm14 = vcmp.eq.s32.totalorder %v10262_v18, %v10844_v62 }
  0x5e   :  { %8542 = vmatprep.subr.msk.bf16.mxu1 %vm8541_vm4, %v10143_v16  ;;  %vm8553_vm12 = vmpackc.low %vm586_vm1, %vm538_vm9  ;;  %vm541_vm1 = vcmp.eq.s32.totalorder %v10198_v4, %v10905_v3 }
  0x5f   :  { %8514 = vmatmul.mubr.msk.bf16.gmra.mxu1 %vm15007_vm10, %v10419_v32  ;;  %vm15008_vm4 = vmmov %vm15007_vm10  ;;  %vm299_vm10 = vcmp.eq.s32.totalorder %v10285_v19, %v10844_v62 }
  0x60   :  { %8531 = vmatmul.mubr.msk.bf16.vlgmr.msra.gmra.mxu0 %vm15008_vm4, %v10351_v26  ;;  %1720 = vmatprep.mubr.bf16.mxu1 %v10142_v1  ;;  %vm8555_vm13 = vmpackc.low %vm491_vm0, %vm443_vm6  ;;  %vm589_vm6 = vcmp.eq.s32.totalorder %v10201_v5, %v10905_v3  ;;  %vm346_vm0 = vcmp.eq.s32.totalorder %v10259_v17, %v10867_v63 }
  0x61   :  { %1677 = vmatprep.mubr.bf16.mxu0 %v10142_v1  ;;  %8544 = vmatpush1.bf16.msk.msra.mxu1 %vm10895_vm8, %v10143_v16  ;;  %vm10941_vm9 = vmpackc.low %vm296_vm3, %vm248_vm2  ;;  %vm394_vm2 = vcmp.eq.s32.totalorder %v10262_v18, %v10867_v63  ;;  %vm251_vm3 = vcmp.eq.s32.totalorder %v10189_v2, %v10844_v62  ;;  %v11519_v62 = vld [vmem:[%s14944_s1 + $0x8] sm:$0xff]  }
  0x62   :  { %8546 = vmatprep.subr.msk.bf16.mxu1 %vm10908_vm15, %v10143_v16  ;;  %8554 = vmatpush1.bf16.msk.msra.mxu0 %vm8553_vm12, %v10143_v16  ;;  %vm10956_vm8 = vmpackc.low %vm490_vm11, %vm442_vm7  ;;  %vm540_vm7 = vcmp.eq.s32.totalorder %v10198_v4, %v10932_v11  ;;  %vm588_vm11 = vcmp.eq.s32.totalorder %v10201_v5, %v10932_v11 }
  0x63   :  { %8556 = vmatprep.subr.msk.bf16.mxu0 %vm8555_vm13, %v10143_v16  ;;  %vm10973_vm15 = vmpackc.low %vm395_vm14, %vm347_vm5  ;;  %vm445_vm13 = vcmp.eq.s32.totalorder %v10224_v12, %v10905_v3  ;;  %vm493_vm5 = vcmp.eq.s32.totalorder %v10227_v13, %v10905_v3 }
  0x64   :  { %vm8569_vm12 = vmpackc.low %vm589_vm6, %vm541_vm1  ;;  %vm298_vm1 = vcmp.eq.s32.totalorder %v10285_v19, %v10867_v63 }
  0x65   :  { %8548 = vmatpush1.bf16.msk.msra.mxu1 %vm10941_vm9, %v10143_v16  ;;  %vm10988_vm4 = vmpackc.low %vm394_vm2, %vm346_vm0  ;;  %vm250_vm9 = vcmp.eq.s32.totalorder %v10189_v2, %v10867_v63  ;;  %vm492_vm0 = vcmp.eq.s32.totalorder %v10227_v13, %v10932_v11  ;;  %vm15019_vm2 = vcmask 523264  }
  0x66   :  { %8558 = vmatpush1.bf16.msk.msra.mxu0 %vm10956_vm8, %v10143_v16  ;;  %vm11003_vm14 = vmpackc.low %vm299_vm10, %vm251_vm3  ;;  %8570 = vmatprep.subr.msk.bf16.mxu1 %vm8569_vm12, %v10143_v16  ;;  %vm444_vm8 = vcmp.eq.s32.totalorder %v10224_v12, %v10932_v11  ;;  %vm349_vm12 = vcmp.eq.s32.totalorder %v10259_v17, %v10905_v3 }
  0x67   :  { %8560 = vmatprep.subr.msk.bf16.mxu0 %vm10973_vm15, %v10143_v16  ;;  %vm8571_vm6 = vmpackc.low %vm588_vm11, %vm540_vm7  ;;  %vm397_vm15 = vcmp.eq.s32.totalorder %v10262_v18, %v10905_v3  ;;  %vm543_vm11 = vcmp.eq.s32.totalorder %v10198_v4, %v10998_v28 }
  0x68   :  { %8532 = vmatmul.mubr.msk.bf16.gmra.mxu0 %vm15019_vm2, %v10419_v32  ;;  %vm15020_vm3 = vmmov %vm15019_vm2  ;;  %vm396_vm2 = vcmp.eq.s32.totalorder %v10262_v18, %v10932_v11 }
  0x69   :  { %8549 = vmatmul.mubr.msk.bf16.vlgmr.msra.gmra.mxu1 %vm15020_vm3, %v10351_v26  ;;  %vm8573_vm10 = vmpackc.low %vm493_vm5, %vm445_vm13  ;;  %1773 = vmatprep.mubr.bf16.mxu0 %v10142_v1  ;;  %vm591_vm13 = vcmp.eq.s32.totalorder %v10201_v5, %v10998_v28 }
  0x6a   :  { %1730 = vmatprep.mubr.bf16.mxu1 %v10142_v1  ;;  %vm11028_vm7 = vmpackc.low %vm298_vm1, %vm250_vm9  ;;  %8562 = vmatpush1.bf16.msk.msra.mxu0 %vm10988_vm4, %v10143_v16  ;;  %vm348_vm1 = vcmp.eq.s32.totalorder %v10259_v17, %v10932_v11  ;;  %vm253_vm4 = vcmp.eq.s32.totalorder %v10189_v2, %v10905_v3 }
  0x6b   :  { %8572 = vmatpush1.bf16.msk.msra.mxu1 %vm8571_vm6, %v10143_v16  ;;  %vm8575_vm5 = vmpackc.low %vm492_vm0, %vm444_vm8  ;;  %8564 = vmatprep.subr.msk.bf16.mxu0 %vm11003_vm14, %v10143_v16  ;;  %vm301_vm6 = vcmp.eq.s32.totalorder %v10285_v19, %v10905_v3  ;;  %vm542_vm0 = vcmp.eq.s32.totalorder %v10198_v4, %v11039_v31  ;;  %vm590_vm14 = vcmp.eq.s32.totalorder %v10201_v5, %v11039_v31 }
  0x6c   :  { %8574 = vmatprep.subr.msk.bf16.mxu1 %vm8573_vm10, %v10143_v16  ;;  %vm8577_vm9 = vmpackc.low %vm397_vm15, %vm349_vm12  ;;  %vm447_vm10 = vcmp.eq.s32.totalorder %v10224_v12, %v10998_v28  ;;  %vm495_vm12 = vcmp.eq.s32.totalorder %v10227_v13, %v10998_v28 }
  0x6d   :  { %vm8587_vm8 = vmpackc.low %vm591_vm13, %vm543_vm11  ;;  %vm300_vm11 = vcmp.eq.s32.totalorder %v10285_v19, %v10932_v11  ;;  %vm15027_vm13 = vcmask 523264  }
  0x6e   :  { %8566 = vmatpush1.bf16.msk.msra.mxu0 %vm11028_vm7, %v10143_v16  ;;  %vm11072_vm3 = vmpackc.low %vm396_vm2, %vm348_vm1  ;;  %vm252_vm7 = vcmp.eq.s32.totalorder %v10189_v2, %v10932_v11  ;;  %vm446_vm1 = vcmp.eq.s32.totalorder %v10224_v12, %v11039_v31 }
  0x6f   :  { %8576 = vmatpush1.bf16.msk.msra.mxu1 %vm8575_vm5, %v10143_v16  ;;  %vm11081_vm15 = vmpackc.low %vm301_vm6, %vm253_vm4  ;;  %8588 = vmatprep.subr.msk.bf16.mxu0 %vm8587_vm8, %v10143_v16  ;;  %vm545_vm6 = vcmp.eq.s32.totalorder %v10198_v4, %v11066_v33  ;;  %vm593_vm8 = vcmp.eq.s32.totalorder %v10201_v5, %v11066_v33 }
  0x70   :  { %8578 = vmatprep.subr.msk.bf16.mxu1 %vm8577_vm9, %v10143_v16  ;;  %vm8589_vm5 = vmpackc.low %vm590_vm14, %vm542_vm0  ;;  %vm494_vm9 = vcmp.eq.s32.totalorder %v10227_v13, %v11039_v31  ;;  %vm351_vm14 = vcmp.eq.s32.totalorder %v10259_v17, %v10998_v28 }
  0x71   :  { %8550 = vmatmul.mubr.msk.bf16.gmra.mxu1 %vm15027_vm13, %v10419_v32  ;;  %vm15028_vm2 = vmmov %vm15027_vm13 }
  0x72   :  { %8567 = vmatmul.mubr.msk.bf16.vlgmr.msra.gmra.mxu0 %vm15028_vm2, %v10351_v26  ;;  %1826 = vmatprep.mubr.bf16.mxu1 %v10142_v1  ;;  %vm8591_vm4 = vmpackc.low %vm495_vm12, %vm447_vm10  ;;  %vm399_vm10 = vcmp.eq.s32.totalorder %v10262_v18, %v10998_v28  ;;  %vm350_vm12 = vcmp.eq.s32.totalorder %v10259_v17, %v11039_v31 }
  0x73   :  { %1783 = vmatprep.mubr.bf16.mxu0 %v10142_v1  ;;  %8580 = vmatpush1.bf16.msk.msra.mxu1 %vm11072_vm3, %v10143_v16  ;;  %vm8583_vm0 = vmpackc.low %vm300_vm11, %vm252_vm7  ;;  %vm398_vm7 = vcmp.eq.s32.totalorder %v10262_v18, %v11039_v31  ;;  %vm255_vm11 = vcmp.eq.s32.totalorder %v10189_v2, %v10998_v28 }
  0x74   :  { %8582 = vmatprep.subr.msk.bf16.mxu1 %vm11081_vm15, %v10143_v16  ;;  %8590 = vmatpush1.bf16.msk.msra.mxu0 %vm8589_vm5, %v10143_v16  ;;  %vm8593_vm3 = vmpackc.low %vm494_vm9, %vm446_vm1  ;;  %vm303_vm15 = vcmp.eq.s32.totalorder %v10285_v19, %v10998_v28  ;;  %vm544_vm1 = vcmp.eq.s32.totalorder %v10198_v4, %v11105_v36  ;;  %vm592_vm9 = vcmp.eq.s32.totalorder %v10201_v5, %v11105_v36  ;;  %v11696_v28 = vld [vmem:[%s14943_s0 + $0x28] sm:$0xff] }
  0x75   :  { %8592 = vmatprep.subr.msk.bf16.mxu0 %vm8591_vm4, %v10143_v16  ;;  %vm8605_vm13 = vmpackc.low %vm593_vm8, %vm545_vm6  ;;  %vm449_vm4 = vcmp.eq.s32.totalorder %v10224_v12, %v11066_v33  ;;  %vm497_vm6 = vcmp.eq.s32.totalorder %v10227_v13, %v11066_v33  ;;  %v205_v29 = vrot.slane %v11696_v28, %v10204_v6  ;;  %v201_v30 = vrot.slane %v11696_v28, %v10210_v8 }
  0x76   :  { %vm8595_vm5 = vmpackc.low %vm399_vm10, %vm351_vm14  ;;  %vm302_vm14 = vcmp.eq.s32.totalorder %v10285_v19, %v11039_v31  ;;  %v11777_v34 = vrot.slane %v11696_v28, %v10301_v21  ;;  %v11795_v21 = vrot.slane %v11696_v28, %v10340_v25 }
  0x77   :  { %8584 = vmatpush1.bf16.msk.msra.mxu1 %vm8583_vm0, %v10143_v16  ;;  %vm11145_vm2 = vmpackc.low %vm398_vm7, %vm350_vm12  ;;  %vm254_vm0 = vcmp.eq.s32.totalorder %v10189_v2, %v11039_v31  ;;  %vm448_vm12 = vcmp.eq.s32.totalorder %v10224_v12, %v11105_v36  ;;  %vm15033_vm7 = vcmask 523264   ;;  %v213_v31 = vrot.slane %v11696_v28, %v10207_v7 }
  0x78   :  { %8594 = vmatpush1.bf16.msk.msra.mxu0 %vm8593_vm3, %v10143_v16  ;;  %vm11158_vm8 = vmpackc.low %vm303_vm15, %vm255_vm11  ;;  %8606 = vmatprep.subr.msk.bf16.mxu1 %vm8605_vm13, %v10143_v16  ;;  %vm496_vm3 = vcmp.eq.s32.totalorder %v10227_v13, %v11105_v36  ;;  %vm401_vm13 = vcmp.eq.s32.totalorder %v10262_v18, %v11066_v33  ;;  %v11770_v7 = vrot.slane %v11696_v28, %v10288_v20 }
  0x79   :  { %v15032_v39 = vsel %vm11158_vm8, 4294967295, %v15031_v39  ;;  %8596 = vmatprep.subr.msk.bf16.mxu0 %vm8595_vm5, %v10143_v16  ;;  %vm8607_vm10 = vmpackc.low %vm592_vm9, %vm544_vm1  ;;  %vm353_vm8 = vcmp.eq.s32.totalorder %v10259_v17, %v11066_v33  ;;  %vm547_vm1 = vcmp.eq.s32.totalorder %v10198_v4, %v11155_v38  ;;  %vm595_vm9 = vcmp.eq.s32.totalorder %v10201_v5, %v11155_v38 }
  0x7a   :  { %8568 = vmatmul.mubr.msk.bf16.gmra.mxu0 %vm15033_vm7, %v10419_v32  ;;  %vm15034_vm11 = vmmov %vm15033_vm7  ;;  %vm400_vm7 = vcmp.eq.s32.totalorder %v10262_v18, %v11105_v36  ;;  %v11785_v20 = vrot.slane %v11696_v28, %v10332_v24  ;;  %v9733_v24 = vld [vmem:[%s14945_s3 + $0x78] sm:$0xff]  }
  0x7b   :  { %8585 = vmatmul.mubr.msk.bf16.vlgmr.msra.gmra.mxu1 %vm15034_vm11, %v10351_v26  ;;  %vm8609_vm15 = vmpackc.low %vm497_vm6, %vm449_vm4  ;;  %1879 = vmatprep.mubr.bf16.mxu0 %v10142_v1  ;;  %vm15037_vm6 = vnez %v15032_v39  ;;  %vm594_vm11 = vcmp.eq.s32.totalorder %v10201_v5, %v11192_v41 }
  0x7c   :  { %1836 = vmatprep.mubr.bf16.mxu1 %v10142_v1  ;;  %vm11181_vm5 = vmpackc.low %vm302_vm14, %vm254_vm0  ;;  %8598 = vmatpush1.bf16.msk.msra.mxu0 %vm11145_vm2, %v10143_v16  ;;  %vm352_vm14 = vcmp.eq.s32.totalorder %v10259_v17, %v11105_v36  ;;  %vm257_vm2 = vcmp.eq.s32.totalorder %v10189_v2, %v11066_v33 }
  0x7d   :  { %8608 = vmatpush1.bf16.msk.msra.mxu1 %vm8607_vm10, %v10143_v16  ;;  %vm8611_vm4 = vmpackc.low %vm496_vm3, %vm448_vm12  ;;  %8600 = vmatprep.subr.msk.bf16.mxu0 %vm15037_vm6, %v10143_v16  ;;  %vm305_vm10 = vcmp.eq.s32.totalorder %v10285_v19, %v11066_v33  ;;  %vm546_vm3 = vcmp.eq.s32.totalorder %v10198_v4, %v11192_v41  ;;  %v209_v33 = vrot.slane %v11696_v28, %v10213_v9 }
  0x7e   :  { %8610 = vmatprep.subr.msk.bf16.mxu1 %vm8609_vm15, %v10143_v16  ;;  %vm8613_vm0 = vmpackc.low %vm401_vm13, %vm353_vm8  ;;  %vm451_vm15 = vcmp.eq.s32.totalorder %v10224_v12, %v11155_v38  ;;  %vm499_vm13 = vcmp.eq.s32.totalorder %v10227_v13, %v11155_v38 }
  0x7f   :  { %vm8623_vm12 = vmpackc.low %vm595_vm9, %vm547_vm1  ;;  %vm304_vm9 = vcmp.eq.s32.totalorder %v10285_v19, %v11105_v36 }
  0x80   :  { %8602 = vmatpush1.bf16.msk.msra.mxu0 %vm11181_vm5, %v10143_v16  ;;  %vm11225_vm8 = vmpackc.low %vm400_vm7, %vm352_vm14  ;;  %vm256_vm5 = vcmp.eq.s32.totalorder %v10189_v2, %v11105_v36  ;;  %vm450_vm14 = vcmp.eq.s32.totalorder %v10224_v12, %v11192_v41 }
  0x81   :  { %8612 = vmatpush1.bf16.msk.msra.mxu1 %vm8611_vm4, %v10143_v16  ;;  %vm11234_vm1 = vmpackc.low %vm305_vm10, %vm257_vm2  ;;  %8624 = vmatprep.subr.msk.bf16.mxu0 %vm8623_vm12, %v10143_v16  ;;  %vm15042_vm4 = vcmask 523264   ;;  %vm549_vm10 = vcmp.eq.s32.totalorder %v10198_v4, %v11219_v42  ;;  %vm597_vm12 = vcmp.eq.s32.totalorder %v10201_v5, %v11219_v42 }
  0x82   :  { %8614 = vmatprep.subr.msk.bf16.mxu1 %vm8613_vm0, %v10143_v16  ;;  %vm8625_vm6 = vmpackc.low %vm594_vm11, %vm546_vm3  ;;  %vm498_vm0 = vcmp.eq.s32.totalorder %v10227_v13, %v11192_v41  ;;  %vm355_vm11 = vcmp.eq.s32.totalorder %v10259_v17, %v11155_v38 }
  0x83   :  { %8586 = vmatmul.mubr.msk.bf16.gmra.mxu1 %vm15042_vm4, %v10419_v32  ;;  %vm15043_vm7 = vmmov %vm15042_vm4 }
  0x84   :  { %8603 = vmatmul.mubr.msk.bf16.vlgmr.msra.gmra.mxu0 %vm15043_vm7, %v10351_v26  ;;  %1932 = vmatprep.mubr.bf16.mxu1 %v10142_v1  ;;  %vm8627_vm2 = vmpackc.low %vm499_vm13, %vm451_vm15  ;;  %vm403_vm15 = vcmp.eq.s32.totalorder %v10262_v18, %v11155_v38  ;;  %vm354_vm13 = vcmp.eq.s32.totalorder %v10259_v17, %v11192_v41 }
  0x85   :  { %1889 = vmatprep.mubr.bf16.mxu0 %v10142_v1  ;;  %8616 = vmatpush1.bf16.msk.msra.mxu1 %vm11225_vm8, %v10143_v16  ;;  %vm11267_vm3 = vmpackc.low %vm304_vm9, %vm256_vm5  ;;  %vm402_vm5 = vcmp.eq.s32.totalorder %v10262_v18, %v11192_v41  ;;  %vm307_vm9 = vcmp.eq.s32.totalorder %v10285_v19, %v11155_v38 }
  0x86   :  { %8618 = vmatprep.subr.msk.bf16.mxu1 %vm11234_vm1, %v10143_v16  ;;  %8626 = vmatpush1.bf16.msk.msra.mxu0 %vm8625_vm6, %v10143_v16  ;;  %vm11282_vm8 = vmpackc.low %vm498_vm0, %vm450_vm14  ;;  %vm259_vm1 = vcmp.eq.s32.totalorder %v10189_v2, %v11155_v38  ;;  %vm548_vm14 = vcmp.eq.s32.totalorder %v10198_v4, %v11258_v45  ;;  %vm596_vm0 = vcmp.eq.s32.totalorder %v10201_v5, %v11258_v45 }
  0x87   :  { %8628 = vmatprep.subr.msk.bf16.mxu0 %vm8627_vm2, %v10143_v16  ;;  %vm8641_vm4 = vmpackc.low %vm597_vm12, %vm549_vm10  ;;  %vm453_vm2 = vcmp.eq.s32.totalorder %v10224_v12, %v11219_v42  ;;  %vm501_vm10 = vcmp.eq.s32.totalorder %v10227_v13, %v11219_v42 }
  0x88   :  { %vm8631_vm6 = vmpackc.low %vm403_vm15, %vm355_vm11  ;;  %vm306_vm11 = vcmp.eq.s32.totalorder %v10285_v19, %v11192_v41 }
  0x89   :  { %8620 = vmatpush1.bf16.msk.msra.mxu1 %vm11267_vm3, %v10143_v16  ;;  %vm11313_vm7 = vmpackc.low %vm402_vm5, %vm354_vm13  ;;  %vm258_vm3 = vcmp.eq.s32.totalorder %v10189_v2, %v11192_v41  ;;  %vm452_vm13 = vcmp.eq.s32.totalorder %v10224_v12, %v11258_v45  ;;  %vm15052_vm5 = vcmask 523264  }
  0x8a   :  { %8630 = vmatpush1.bf16.msk.msra.mxu0 %vm11282_vm8, %v10143_v16  ;;  %vm11328_vm12 = vmpackc.low %vm307_vm9, %vm259_vm1  ;;  %8642 = vmatprep.subr.msk.bf16.mxu1 %vm8641_vm4, %v10143_v16  ;;  %vm500_vm8 = vcmp.eq.s32.totalorder %v10227_v13, %v11258_v45  ;;  %vm405_vm4 = vcmp.eq.s32.totalorder %v10262_v18, %v11219_v42 }
  0x8b   :  { %v15051_v51 = vsel %vm11328_vm12, 4294967295, %v15050_v51  ;;  %8632 = vmatprep.subr.msk.bf16.mxu0 %vm8631_vm6, %v10143_v16  ;;  %vm8643_vm15 = vmpackc.low %vm596_vm0, %vm548_vm14  ;;  %vm357_vm12 = vcmp.eq.s32.totalorder %v10259_v17, %v11219_v42  ;;  %vm551_vm14 = vcmp.eq.s32.totalorder %v10198_v4, %v11323_v50  ;;  %vm599_vm0 = vcmp.eq.s32.totalorder %v10201_v5, %v11323_v50 }
  0x8c   :  { %8604 = vmatmul.mubr.msk.bf16.gmra.mxu0 %vm15052_vm5, %v10419_v32  ;;  %vm15053_vm1 = vmmov %vm15052_vm5  ;;  %vm404_vm5 = vcmp.eq.s32.totalorder %v10262_v18, %v11258_v45 }
  0x8d   :  { %8621 = vmatmul.mubr.msk.bf16.vlgmr.msra.gmra.mxu1 %vm15053_vm1, %v10351_v26  ;;  %vm8645_vm9 = vmpackc.low %vm501_vm10, %vm453_vm2  ;;  %1985 = vmatprep.mubr.bf16.mxu0 %v10142_v1  ;;  %v11362_v26 = vrot.slane %v11293_v48, %v10210_v8  ;;  %vm15056_vm10 = vnez %v15051_v51  ;;  %v9823_v8 = vld [vmem:[%s14945_s3 + $0x248] sm:$0xff]  }
  0x8e   :  { %1942 = vmatprep.mubr.bf16.mxu1 %v10142_v1  ;;  %vm11351_vm6 = vmpackc.low %vm306_vm11, %vm258_vm3  ;;  %8634 = vmatpush1.bf16.msk.msra.mxu0 %vm11313_vm7, %v10143_v16  ;;  %vm356_vm11 = vcmp.eq.s32.totalorder %v10259_v17, %v11258_v45  ;;  %vm261_vm7 = vcmp.eq.s32.totalorder %v10189_v2, %v11219_v42 }
  0x8f   :  { %8644 = vmatpush1.bf16.msk.msra.mxu1 %vm8643_vm15, %v10143_v16  ;;  %vm8647_vm2 = vmpackc.low %vm500_vm8, %vm452_vm13  ;;  %8636 = vmatprep.subr.msk.bf16.mxu0 %vm15056_vm10, %v10143_v16  ;;  %vm309_vm15 = vcmp.eq.s32.totalorder %v10285_v19, %v11219_v42  ;;  %vm550_vm8 = vcmp.eq.s32.totalorder %v10198_v4, %v11362_v26  ;;  %vm598_vm1 = vcmp.eq.s32.totalorder %v10201_v5, %v11362_v26 }
  0x90   :  { %8646 = vmatprep.subr.msk.bf16.mxu1 %vm8645_vm9, %v10143_v16  ;;  %vm8649_vm3 = vmpackc.low %vm405_vm4, %vm357_vm12  ;;  %vm455_vm9 = vcmp.eq.s32.totalorder %v10224_v12, %v11323_v50  ;;  %vm503_vm4 = vcmp.eq.s32.totalorder %v10227_v13, %v11323_v50 }
  0x91   :  { %vm8659_vm13 = vmpackc.low %vm599_vm0, %vm551_vm14  ;;  %vm308_vm0 = vcmp.eq.s32.totalorder %v10285_v19, %v11258_v45 }
  0x92   :  { %8638 = vmatpush1.bf16.msk.msra.mxu0 %vm11351_vm6, %v10143_v16  ;;  %vm11395_vm12 = vmpackc.low %vm404_vm5, %vm356_vm11  ;;  %vm260_vm6 = vcmp.eq.s32.totalorder %v10189_v2, %v11258_v45  ;;  %vm502_vm11 = vcmp.eq.s32.totalorder %v10227_v13, %v11362_v26  ;;  %v9736_v45 = vld [vmem:[%s14945_s3 + $0xf8] sm:$0xff]  }
  0x93   :  { %8648 = vmatpush1.bf16.msk.msra.mxu1 %vm8647_vm2, %v10143_v16  ;;  %vm11404_vm14 = vmpackc.low %vm309_vm15, %vm261_vm7  ;;  %8660 = vmatprep.subr.msk.bf16.mxu0 %vm8659_vm13, %v10143_v16  ;;  %vm15061_vm2 = vcmask 523264   ;;  %vm553_vm15 = vcmp.eq.s32.totalorder %v10198_v4, %v11389_v53  ;;  %vm601_vm13 = vcmp.eq.s32.totalorder %v10201_v5, %v11389_v53 }
  0x94   :  { %8650 = vmatprep.subr.msk.bf16.mxu1 %vm8649_vm3, %v10143_v16  ;;  %vm11415_vm10 = vmpackc.low %vm598_vm1, %vm550_vm8  ;;  %vm454_vm3 = vcmp.eq.s32.totalorder %v10224_v12, %v11362_v26  ;;  %vm359_vm1 = vcmp.eq.s32.totalorder %v10259_v17, %v11323_v50 }
  0x95   :  { %8622 = vmatmul.mubr.msk.bf16.gmra.mxu1 %vm15061_vm2, %v10419_v32  ;;  %vm15064_vm5 = vmmov %vm15061_vm2  ;;  %v11437_v32 = vrot.slane %v11293_v48, %v10213_v9  ;;  %v9738_v48 = vld [vmem:[%s14945_s3 + $0xb8] sm:$0xff]  }
  0x96   :  { %8639 = vmatmul.mubr.msk.bf16.vlgmr.msra.gmra.mxu0 %vm15064_vm5, %v11426_v57  ;;  %2038 = vmatprep.mubr.bf16.mxu1 %v10142_v1  ;;  %vm8663_vm7 = vmpackc.low %vm503_vm4, %vm455_vm9  ;;  %vm407_vm9 = vcmp.eq.s32.totalorder %v10262_v18, %v11323_v50  ;;  %vm358_vm4 = vcmp.eq.s32.totalorder %v10259_v17, %v11362_v26  ;;  %v9958_v9 = vld [vmem:[%s14945_s3 + $0x698] sm:$0xff]  }
  0x97   :  { %1995 = vmatprep.mubr.bf16.mxu0 %v10142_v1  ;;  %8652 = vmatpush1.bf16.msk.msra.mxu1 %vm11395_vm12, %v10143_v16  ;;  %vm8655_vm8 = vmpackc.low %vm308_vm0, %vm260_vm6  ;;  %vm406_vm6 = vcmp.eq.s32.totalorder %v10262_v18, %v11362_v26  ;;  %vm311_vm0 = vcmp.eq.s32.totalorder %v10285_v19, %v11323_v50 }
  0x98   :  { %8654 = vmatprep.subr.msk.bf16.mxu1 %vm11404_vm14, %v10143_v16  ;;  %8662 = vmatpush1.bf16.msk.msra.mxu0 %vm11415_vm10, %v10143_v16  ;;  %vm8665_vm12 = vmpackc.low %vm502_vm11, %vm454_vm3  ;;  %vm263_vm14 = vcmp.eq.s32.totalorder %v10189_v2, %v11323_v50  ;;  %vm552_vm3 = vcmp.eq.s32.totalorder %v10198_v4, %v11437_v32  ;;  %vm600_vm11 = vcmp.eq.s32.totalorder %v10201_v5, %v11437_v32 }
  0x99   :  { %8664 = vmatprep.subr.msk.bf16.mxu0 %vm8663_vm7, %v10143_v16  ;;  %vm8677_vm2 = vmpackc.low %vm601_vm13, %vm553_vm15  ;;  %vm457_vm7 = vcmp.eq.s32.totalorder %v10224_v12, %v11389_v53  ;;  %vm505_vm13 = vcmp.eq.s32.totalorder %v10227_v13, %v11389_v53 }
  0x9a   :  { %vm8667_vm10 = vmpackc.low %vm407_vm9, %vm359_vm1  ;;  %vm310_vm1 = vcmp.eq.s32.totalorder %v10285_v19, %v11362_v26 }
  0x9b   :  { %8656 = vmatpush1.bf16.msk.msra.mxu1 %vm8655_vm8, %v10143_v16  ;;  %vm11485_vm5 = vmpackc.low %vm406_vm6, %vm358_vm4  ;;  %vm262_vm8 = vcmp.eq.s32.totalorder %v10189_v2, %v11362_v26  ;;  %vm504_vm4 = vcmp.eq.s32.totalorder %v10227_v13, %v11437_v32  ;;  %vm15071_vm6 = vcmask 523264  }
  0x9c   :  { %8666 = vmatpush1.bf16.msk.msra.mxu0 %vm8665_vm12, %v10143_v16  ;;  %vm11498_vm15 = vmpackc.low %vm311_vm0, %vm263_vm14  ;;  %8678 = vmatprep.subr.msk.bf16.mxu1 %vm8677_vm2, %v10143_v16  ;;  %vm456_vm12 = vcmp.eq.s32.totalorder %v10224_v12, %v11437_v32  ;;  %vm361_vm2 = vcmp.eq.s32.totalorder %v10259_v17, %v11389_v53 }
  0x9d   :  { %8668 = vmatprep.subr.msk.bf16.mxu0 %vm8667_vm10, %v10143_v16  ;;  %vm11508_vm9 = vmpackc.low %vm600_vm11, %vm552_vm3  ;;  %vm409_vm10 = vcmp.eq.s32.totalorder %v10262_v18, %v11389_v53  ;;  %vm555_vm11 = vcmp.eq.s32.totalorder %v10198_v4, %v11495_v59 }
  0x9e   :  { %8640 = vmatmul.mubr.msk.bf16.gmra.mxu0 %vm15071_vm6, %v11519_v62  ;;  %vm15072_vm14 = vmmov %vm15071_vm6  ;;  %vm313_vm6 = vcmp.eq.s32.totalorder %v10285_v19, %v11389_v53 }
  0x9f   :  { %8657 = vmatmul.mubr.msk.bf16.vlgmr.msra.gmra.mxu1 %vm15072_vm14, %v11426_v57  ;;  %vm8681_vm0 = vmpackc.low %vm505_vm13, %vm457_vm7  ;;  %2091 = vmatprep.mubr.bf16.mxu0 %v10142_v1  ;;  %vm603_vm7 = vcmp.eq.s32.totalorder %v10201_v5, %v11495_v59 }
  0xa0   :  { %2048 = vmatprep.mubr.bf16.mxu1 %v10142_v1  ;;  %vm11533_vm3 = vmpackc.low %vm310_vm1, %vm262_vm8  ;;  %8670 = vmatpush1.bf16.msk.msra.mxu0 %vm11485_vm5, %v10143_v16  ;;  %vm360_vm5 = vcmp.eq.s32.totalorder %v10259_v17, %v11437_v32  ;;  %vm408_vm1 = vcmp.eq.s32.totalorder %v10262_v18, %v11437_v32 }
  0xa1   :  { %8680 = vmatpush1.bf16.msk.msra.mxu1 %vm11508_vm9, %v10143_v16  ;;  %vm8683_vm13 = vmpackc.low %vm504_vm4, %vm456_vm12  ;;  %8672 = vmatprep.subr.msk.bf16.mxu0 %vm11498_vm15, %v10143_v16  ;;  %vm265_vm9 = vcmp.eq.s32.totalorder %v10189_v2, %v11389_v53  ;;  %vm554_vm4 = vcmp.eq.s32.totalorder %v10198_v4, %v11544_v0  ;;  %vm602_vm15 = vcmp.eq.s32.totalorder %v10201_v5, %v11544_v0 }
  0xa2   :  { %8682 = vmatprep.subr.msk.bf16.mxu1 %vm8681_vm0, %v10143_v16  ;;  %vm8685_vm8 = vmpackc.low %vm409_vm10, %vm361_vm2  ;;  %vm459_vm0 = vcmp.eq.s32.totalorder %v10224_v12, %v11495_v59  ;;  %vm507_vm2 = vcmp.eq.s32.totalorder %v10227_v13, %v11495_v59 }
  0xa3   :  { %vm8695_vm12 = vmpackc.low %vm603_vm7, %vm555_vm11  ;;  %vm312_vm11 = vcmp.eq.s32.totalorder %v10285_v19, %v11437_v32  ;;  %vm15079_vm7 = vcmask 523264  }
  0xa4   :  { %8674 = vmatpush1.bf16.msk.msra.mxu0 %vm11533_vm3, %v10143_v16  ;;  %vm11578_vm14 = vmpackc.low %vm408_vm1, %vm360_vm5  ;;  %vm264_vm3 = vcmp.eq.s32.totalorder %v10189_v2, %v11437_v32  ;;  %vm458_vm5 = vcmp.eq.s32.totalorder %v10224_v12, %v11544_v0  ;;  %v9741_v32 = vld [vmem:[%s14945_s3 + $0x28] sm:$0xff]  }
  0xa5   :  { %8684 = vmatpush1.bf16.msk.msra.mxu1 %vm8683_vm13, %v10143_v16  ;;  %vm11587_vm10 = vmpackc.low %vm313_vm6, %vm265_vm9  ;;  %8696 = vmatprep.subr.msk.bf16.mxu0 %vm8695_vm12, %v10143_v16  ;;  %vm363_vm6 = vcmp.eq.s32.totalorder %v10259_v17, %v11495_v59  ;;  %vm411_vm12 = vcmp.eq.s32.totalorder %v10262_v18, %v11495_v59 }
  0xa6   :  { %8686 = vmatprep.subr.msk.bf16.mxu1 %vm8685_vm8, %v10143_v16  ;;  %vm8697_vm13 = vmpackc.low %vm602_vm15, %vm554_vm4  ;;  %vm506_vm8 = vcmp.eq.s32.totalorder %v10227_v13, %v11544_v0 }
  0xa7   :  { %8658 = vmatmul.mubr.msk.bf16.gmra.mxu1 %vm15079_vm7, %v11519_v62  ;;  %vm15080_vm1 = vmmov %vm15079_vm7  ;;  %vm605_vm7 = vcmp.eq.s32.totalorder %v10201_v5, %v197_v14 }
  0xa8   :  { %8675 = vmatmul.mubr.msk.bf16.vlgmr.msra.gmra.mxu0 %vm15080_vm1, %v11426_v57  ;;  %2144 = vmatprep.mubr.bf16.mxu1 %v10142_v1  ;;  %vm8699_vm9 = vmpackc.low %vm507_vm2, %vm459_vm0  ;;  %vm410_vm0 = vcmp.eq.s32.totalorder %v10262_v18, %v11544_v0 }
  0xa9   :  { %2101 = vmatprep.mubr.bf16.mxu0 %v10142_v1  ;;  %8688 = vmatpush1.bf16.msk.msra.mxu1 %vm11578_vm14, %v10143_v16  ;;  %vm11613_vm4 = vmpackc.low %vm312_vm11, %vm264_vm3  ;;  %vm362_vm14 = vcmp.eq.s32.totalorder %v10259_v17, %v11544_v0  ;;  %vm315_vm3 = vcmp.eq.s32.totalorder %v10285_v19, %v11495_v59  ;;  %vm557_vm11 = vcmp.eq.s32.totalorder %v10198_v4, %v197_v14 }
  0xaa   :  { %8690 = vmatprep.subr.msk.bf16.mxu1 %vm11587_vm10, %v10143_v16  ;;  %8698 = vmatpush1.bf16.msk.msra.mxu0 %vm8697_vm13, %v10143_v16  ;;  %vm11623_vm15 = vmpackc.low %vm506_vm8, %vm458_vm5  ;;  %vm267_vm10 = vcmp.eq.s32.totalorder %v10189_v2, %v11495_v59  ;;  %vm556_vm5 = vcmp.eq.s32.totalorder %v10198_v4, %v193_v22  ;;  %vm604_vm8 = vcmp.eq.s32.totalorder %v10201_v5, %v193_v22 }
  0xab   :  { %8700 = vmatprep.subr.msk.bf16.mxu0 %vm8699_vm9, %v10143_v16  ;;  %vm8703_vm2 = vmpackc.low %vm411_vm12, %vm363_vm6  ;;  %vm266_vm6 = vcmp.eq.s32.totalorder %v10189_v2, %v11544_v0  ;;  %vm314_vm12 = vcmp.eq.s32.totalorder %v10285_v19, %v11544_v0  ;;  %v9744_v0 = vld [vmem:[%s14945_s3 + $0xe8] sm:$0xff]  }
  0xac   :  { %vm8713_vm13 = vmpackc.low %vm605_vm7, %vm557_vm11  ;;  %vm508_vm11 = vcmp.eq.s32.totalorder %v10227_v13, %v193_v22 }
  0xad   :  { %8692 = vmatpush1.bf16.msk.msra.mxu1 %vm11613_vm4, %v10143_v16  ;;  %vm11645_vm1 = vmpackc.low %vm410_vm0, %vm362_vm14  ;;  %vm461_vm14 = vcmp.eq.s32.totalorder %v10224_v12, %v197_v14  ;;  %vm509_vm0 = vcmp.eq.s32.totalorder %v10227_v13, %v197_v14 }
  0xae   :  { %8702 = vmatpush1.bf16.msk.msra.mxu0 %vm11623_vm15, %v10143_v16  ;;  %vm11652_vm9 = vmpackc.low %vm315_vm3, %vm267_vm10  ;;  %8714 = vmatprep.subr.msk.bf16.mxu1 %vm8713_vm13, %v10143_v16  ;;  %vm15089_vm15 = vcmask 523264  }
  0xaf   :  { %8704 = vmatprep.subr.msk.bf16.mxu0 %vm8703_vm2, %v10143_v16  ;;  %vm8715_vm4 = vmpackc.low %vm604_vm8, %vm556_vm5  ;;  %vm460_vm2 = vcmp.eq.s32.totalorder %v10224_v12, %v193_v22  ;;  %vm365_vm5 = vcmp.eq.s32.totalorder %v10259_v17, %v197_v14  ;;  %vm413_vm8 = vcmp.eq.s32.totalorder %v10262_v18, %v197_v14 }
  0xb0   :  { %8676 = vmatmul.mubr.msk.bf16.gmra.mxu0 %vm15089_vm15, %v11519_v62  ;;  %vm15090_vm10 = vmmov %vm15089_vm15  ;;  %vm412_vm15 = vcmp.eq.s32.totalorder %v10262_v18, %v193_v22 }
  0xb1   :  { %8693 = vmatmul.mubr.msk.bf16.vlgmr.msra.gmra.mxu1 %vm15090_vm10, %v11426_v57  ;;  %vm8717_vm3 = vmpackc.low %vm509_vm0, %vm461_vm14  ;;  %2197 = vmatprep.mubr.bf16.mxu0 %v10142_v1  ;;  %vm364_vm0 = vcmp.eq.s32.totalorder %v10259_v17, %v193_v22 }
  0xb2   :  { %2154 = vmatprep.mubr.bf16.mxu1 %v10142_v1  ;;  %8706 = vmatpush1.bf16.msk.msra.mxu0 %vm11645_vm1, %v10143_v16  ;;  %vm8709_vm7 = vmpackc.low %vm314_vm12, %vm266_vm6  ;;  %vm317_vm6 = vcmp.eq.s32.totalorder %v10285_v19, %v197_v14 }
  0xb3   :  { %8716 = vmatpush1.bf16.msk.msra.mxu1 %vm8715_vm4, %v10143_v16  ;;  %8708 = vmatprep.subr.msk.bf16.mxu0 %vm11652_vm9, %v10143_v16  ;;  %vm8719_vm13 = vmpackc.low %vm508_vm11, %vm460_vm2  ;;  %vm269_vm9 = vcmp.eq.s32.totalorder %v10189_v2, %v197_v14 }
  0xb4   :  { %8718 = vmatprep.subr.msk.bf16.mxu1 %vm8717_vm3, %v10143_v16  ;;  %vm8721_vm14 = vmpackc.low %vm413_vm8, %vm365_vm5  ;;  %vm316_vm3 = vcmp.eq.s32.totalorder %v10285_v19, %v193_v22  ;;  %vm558_vm8 = vcmp.eq.s32.totalorder %v10198_v4, %v201_v30 }
  0xb5   :  { %vm8723_vm1 = vmpackc.low %vm412_vm15, %vm364_vm0  ;;  %vm463_vm15 = vcmp.eq.s32.totalorder %v10224_v12, %v205_v29 }
  0xb6   :  { %8710 = vmatpush1.bf16.msk.msra.mxu0 %vm8709_vm7, %v10143_v16  ;;  %vm15091_vm12 = vmmov %vm15090_vm10  ;;  %vm268_vm10 = vcmp.eq.s32.totalorder %v10189_v2, %v193_v22  ;;  %vm559_vm7 = vcmp.eq.s32.totalorder %v10198_v4, %v205_v29  ;;  %v9746_v22 = vld [vmem:[%s14945_s3 + $0xa8] sm:$0xff]  }
  0xb7   :  { %8720 = vmatpush1.bf16.msk.msra.mxu1 %vm8719_vm13, %v10143_v16  ;;  %vm8725_vm4 = vmpackc.low %vm317_vm6, %vm269_vm9  ;;  %vm607_vm13 = vcmp.eq.s32.totalorder %v10201_v5, %v205_v29  ;;  %vm462_vm6 = vcmp.eq.s32.totalorder %v10224_v12, %v201_v30 }
  0xb8   :  { %8722 = vmatprep.subr.msk.bf16.mxu1 %vm8721_vm14, %v10143_v16  ;;  %vm15092_vm2 = vmmov %vm15091_vm12  ;;  %vm606_vm14 = vcmp.eq.s32.totalorder %v10201_v5, %v201_v30 }
  0xb9   :  { %8694 = vmatmul.mubr.msk.bf16.gmra.mxu1 %vm15091_vm12, %v11519_v62  ;;  %8711 = vmatmul.mubr.msk.bf16.vlgmr.msra.gmra.mxu0 %vm15092_vm2, %v11426_v57  ;;  %vm8727_vm11 = vmpackc.low %vm316_vm3, %vm268_vm10  ;;  %vm510_vm12 = vcmp.eq.s32.totalorder %v10227_v13, %v201_v30 }
  0xba   :  { %2250 = vmatprep.mubr.bf16.mxu1 %v10142_v1  ;;  %2207 = vmatprep.mubr.bf16.mxu0 %v10142_v1  ;;  %vm8731_vm5 = vmpackc.low %vm607_vm13, %vm559_vm7  ;;  %vm560_vm13 = vcmp.eq.s32.totalorder %v10198_v4, %v209_v33 }
  0xbb   :  { %8724 = vmatpush1.bf16.msk.msra.mxu1 %vm8723_vm1, %v10143_v16  ;;  %8732 = vmatprep.subr.msk.bf16.mxu0 %vm8731_vm5, %v10143_v16  ;;  %vm8733_vm0 = vmpackc.low %vm606_vm14, %vm558_vm8  ;;  %vm511_vm1 = vcmp.eq.s32.totalorder %v10227_v13, %v205_v29  ;;  %vm608_vm5 = vcmp.eq.s32.totalorder %v10201_v5, %v209_v33  ;;  %vm367_vm14 = vcmp.eq.s32.totalorder %v10259_v17, %v205_v29 }
  0xbc   :  { %8726 = vmatprep.subr.msk.bf16.mxu1 %vm8725_vm4, %v10143_v16  ;;  %8734 = vmatpush1.bf16.msk.msra.mxu0 %vm8733_vm0, %v10143_v16  ;;  %vm8735_vm9 = vmpackc.low %vm511_vm1, %vm463_vm15  ;;  %vm415_vm0 = vcmp.eq.s32.totalorder %v10262_v18, %v205_v29  ;;  %vm366_vm1 = vcmp.eq.s32.totalorder %v10259_v17, %v201_v30 }
  0xbd   :  { %vm15093_vm4 = vmmov %vm15092_vm2  ;;  %8736 = vmatprep.subr.msk.bf16.mxu0 %vm8735_vm9, %v10143_v16  ;;  %vm414_vm9 = vcmp.eq.s32.totalorder %v10262_v18, %v201_v30 }
  0xbe   :  { %vm15094_vm10 = vmmov %vm15092_vm2  ;;  %vm561_vm2 = vcmp.eq.s32.totalorder %v10198_v4, %v213_v31 }
  0xbf   :  { %8728 = vmatpush1.bf16.msk.msra.mxu1 %vm8727_vm11, %v10143_v16  ;;  %vm8737_vm3 = vmpackc.low %vm510_vm12, %vm462_vm6  ;;  %vm609_vm11 = vcmp.eq.s32.totalorder %v10201_v5, %v213_v31  ;;  %vm465_vm6 = vcmp.eq.s32.totalorder %v10224_v12, %v213_v31  ;;  %vm513_vm12 = vcmp.eq.s32.totalorder %v10227_v13, %v213_v31 }
  0xc0   :  { %vm8749_vm7 = vmpackc.low %vm609_vm11, %vm561_vm2  ;;  %8738 = vmatpush1.bf16.msk.msra.mxu0 %vm8737_vm3, %v10143_v16  ;;  %vm512_vm3 = vcmp.eq.s32.totalorder %v10227_v13, %v209_v33 }
  0xc1   :  { %8712 = vmatmul.mubr.msk.bf16.gmra.mxu0 %vm15093_vm4, %v11519_v62  ;;  %8750 = vmatprep.subr.msk.bf16.mxu1 %vm8749_vm7, %v10143_v16  ;;  %vm8751_vm8 = vmpackc.low %vm608_vm5, %vm560_vm13  ;;  %vm271_vm7 = vcmp.eq.s32.totalorder %v10189_v2, %v205_v29  ;;  %vm319_vm13 = vcmp.eq.s32.totalorder %v10285_v19, %v205_v29 }
  0xc2   :  { %8729 = vmatmul.mubr.msk.bf16.vlgmr.msra.gmra.mxu1 %vm15094_vm10, %v11426_v57  ;;  %vm8739_vm15 = vmpackc.low %vm415_vm0, %vm367_vm14  ;;  %vm464_vm10 = vcmp.eq.s32.totalorder %v10224_v12, %v209_v33  ;;  %2303 = vmatprep.mubr.bf16.mxu0 %v10142_v1  ;;  %vm318_vm14 = vcmp.eq.s32.totalorder %v10285_v19, %v201_v30  ;;  %vm369_vm0 = vcmp.eq.s32.totalorder %v10259_v17, %v213_v31 }
  0xc3   :  { %2260 = vmatprep.mubr.bf16.mxu1 %v10142_v1  ;;  %8752 = vmatpush1.bf16.msk.msra.mxu1 %vm8751_vm8, %v10143_v16  ;;  %vm8741_vm4 = vmpackc.low %vm414_vm9, %vm366_vm1  ;;  %vm270_vm8 = vcmp.eq.s32.totalorder %v10189_v2, %v201_v30  ;;  %vm15095_vm1 = vcmask 523264   ;;  %v9748_v30 = vld [vmem:[%s14945_s3 + $0xe0] sm:$0xff]  }
  0xc4   :  { %8740 = vmatprep.subr.msk.bf16.mxu0 %vm8739_vm15, %v10143_v16  ;;  %vm8753_vm2 = vmpackc.low %vm513_vm12, %vm465_vm6  ;;  %vm417_vm15 = vcmp.eq.s32.totalorder %v10262_v18, %v213_v31  ;;  %vm368_vm6 = vcmp.eq.s32.totalorder %v10259_v17, %v209_v33  ;;  %vm416_vm12 = vcmp.eq.s32.totalorder %v10262_v18, %v209_v33 }
  0xc5   :  { %8742 = vmatpush1.bf16.msk.msra.mxu0 %vm8741_vm4, %v10143_v16  ;;  %8754 = vmatprep.subr.msk.bf16.mxu1 %vm8753_vm2, %v10143_v16  ;;  %vm8755_vm11 = vmpackc.low %vm512_vm3, %vm464_vm10  ;;  %vm273_vm3 = vcmp.eq.s32.totalorder %v10189_v2, %v213_v31  ;;  %vm321_vm2 = vcmp.eq.s32.totalorder %v10285_v19, %v213_v31 }
  0xc6   :  { %vm8743_vm5 = vmpackc.low %vm319_vm13, %vm271_vm7  ;;  %vm320_vm7 = vcmp.eq.s32.totalorder %v10285_v19, %v209_v33 }
  0xc7   :  { %8756 = vmatpush1.bf16.msk.msra.mxu1 %vm8755_vm11, %v10143_v16  ;;  %8744 = vmatprep.subr.msk.bf16.mxu0 %vm8743_vm5, %v10143_v16  ;;  %vm8745_vm9 = vmpackc.low %vm318_vm14, %vm270_vm8  ;;  %vm272_vm11 = vcmp.eq.s32.totalorder %v10189_v2, %v209_v33  ;;  %vm563_vm14 = vcmp.eq.s32.totalorder %v10198_v4, %v11770_v7 }
  0xc8   :  { %vm8757_vm4 = vmpackc.low %vm417_vm15, %vm369_vm0  ;;  %vm611_vm0 = vcmp.eq.s32.totalorder %v10201_v5, %v11770_v7 }
  0xc9   :  { %8746 = vmatpush1.bf16.msk.msra.mxu0 %vm8745_vm9, %v10143_v16  ;;  %8758 = vmatprep.subr.msk.bf16.mxu1 %vm8757_vm4, %v10143_v16  ;;  %vm8759_vm10 = vmpackc.low %vm416_vm12, %vm368_vm6  ;;  %vm610_vm9 = vcmp.eq.s32.totalorder %v10201_v5, %v11777_v34  ;;  %vm565_vm12 = vcmp.eq.s32.totalorder %v10198_v4, %v11785_v20  ;;  %vm613_vm4 = vcmp.eq.s32.totalorder %v10201_v5, %v11785_v20 }
  0xca   :  { %8730 = vmatmul.mubr.msk.bf16.gmra.mxu1 %vm15095_vm1, %v11519_v62  ;;  %vm8761_vm13 = vmpackc.low %vm321_vm2, %vm273_vm3  ;;  %vm564_vm3 = vcmp.eq.s32.totalorder %v10198_v4, %v11795_v21  ;;  %vm612_vm2 = vcmp.eq.s32.totalorder %v10201_v5, %v11795_v21 }
  0xcb   :  { %2356 = vmatprep.mubr.bf16.mxu1 %v10142_v1  ;;  %8760 = vmatpush1.bf16.msk.msra.mxu1 %vm8759_vm10, %v10143_v16  ;;  %vm15096_vm5 = vmmov %vm15095_vm1  ;;  %vm562_vm1 = vcmp.eq.s32.totalorder %v10198_v4, %v11777_v34 }
  0xcc   :  { %8747 = vmatmul.mubr.msk.bf16.vlgmr.msra.gmra.mxu0 %vm15096_vm5, %v11426_v57  ;;  %8762 = vmatprep.subr.msk.bf16.mxu1 %vm8761_vm13, %v10143_v16  ;;  %vm8763_vm8 = vmpackc.low %vm320_vm7, %vm272_vm11  ;;  %vm467_vm13 = vcmp.eq.s32.totalorder %v10224_v12, %v11770_v7 }
  0xcd   :  { %2313 = vmatprep.mubr.bf16.mxu0 %v10142_v1  ;;  %vm8767_vm15 = vmpackc.low %vm611_vm0, %vm563_vm14  ;;  %vm466_vm14 = vcmp.eq.s32.totalorder %v10224_v12, %v11777_v34  ;;  %vm514_vm0 = vcmp.eq.s32.totalorder %v10227_v13, %v11777_v34 }
  0xce   :  { %8768 = vmatprep.subr.msk.bf16.mxu0 %vm8767_vm15, %v10143_v16  ;;  %vm8769_vm6 = vmpackc.low %vm610_vm9, %vm562_vm1  ;;  %vm469_vm15 = vcmp.eq.s32.totalorder %v10224_v12, %v11785_v20  ;;  %vm517_vm1 = vcmp.eq.s32.totalorder %v10227_v13, %v11785_v20 }
  0xcf   :  { %8764 = vmatpush1.bf16.msk.msra.mxu1 %vm8763_vm8, %v10143_v16  ;;  %8770 = vmatpush1.bf16.msk.msra.mxu0 %vm8769_vm6, %v10143_v16  ;;  %vm8785_vm10 = vmpackc.low %vm613_vm4, %vm565_vm12  ;;  %vm468_vm6 = vcmp.eq.s32.totalorder %v10224_v12, %v11795_v21  ;;  %vm516_vm12 = vcmp.eq.s32.totalorder %v10227_v13, %v11795_v21 }
  0xd0   :  { %vm15097_vm11 = vmmov %vm15096_vm5  ;;  %8786 = vmatprep.subr.msk.bf16.mxu1 %vm8785_vm10, %v10143_v16  ;;  %vm515_vm5 = vcmp.eq.s32.totalorder %v10227_v13, %v11770_v7 }
  0xd1   :  { %vm8787_vm7 = vmpackc.low %vm612_vm2, %vm564_vm3  ;;  %vm371_vm2 = vcmp.eq.s32.totalorder %v10259_v17, %v11770_v7 }
  0xd2   :  { %8765 = vmatmul.mubr.msk.bf16.vlgmr.msra.gmra.mxu1 %vm15097_vm11, %v11426_v57  ;;  %vm8771_vm8 = vmpackc.low %vm515_vm5, %vm467_vm13  ;;  %vm370_vm13 = vcmp.eq.s32.totalorder %v10259_v17, %v11777_v34  ;;  %vm418_vm5 = vcmp.eq.s32.totalorder %v10262_v18, %v11777_v34 }
  0xd3   :  { %8788 = vmatpush1.bf16.msk.msra.mxu1 %vm8787_vm7, %v10143_v16  ;;  %8772 = vmatprep.subr.msk.bf16.mxu0 %vm8771_vm8, %v10143_v16  ;;  %vm8773_vm9 = vmpackc.low %vm514_vm0, %vm466_vm14  ;;  %vm373_vm8 = vcmp.eq.s32.totalorder %v10259_v17, %v11785_v20  ;;  %vm421_vm14 = vcmp.eq.s32.totalorder %v10262_v18, %v11785_v20 }
  0xd4   :  { %2366 = vmatprep.mubr.bf16.mxu1 %v10142_v1  ;;  %vm15098_vm4 = vmmov %vm15097_vm11  ;;  %8774 = vmatpush1.bf16.msk.msra.mxu0 %vm8773_vm9, %v10143_v16  ;;  %vm419_vm11 = vcmp.eq.s32.totalorder %v10262_v18, %v11770_v7 }
  0xd5   :  { %8748 = vmatmul.mubr.msk.bf16.gmra.mxu0 %vm15098_vm4, %v11519_v62  ;;  %vm8789_vm10 = vmpackc.low %vm517_vm1, %vm469_vm15  ;;  %vm372_vm15 = vcmp.eq.s32.totalorder %v10259_v17, %v11795_v21  ;;  %vm420_vm1 = vcmp.eq.s32.totalorder %v10262_v18, %v11795_v21 }
  0xd6   :  { %8790 = vmatprep.subr.msk.bf16.mxu1 %vm8789_vm10, %v10143_v16  ;;  %vm8791_vm3 = vmpackc.low %vm516_vm12, %vm468_vm6  ;;  %2409 = vmatprep.mubr.bf16.mxu0 %v10142_v1  ;;  %vm323_vm10 = vcmp.eq.s32.totalorder %v10285_v19, %v11770_v7 }
  0xd7   :  { %8792 = vmatpush1.bf16.msk.msra.mxu1 %vm8791_vm3, %v10143_v16  ;;  %vm8775_vm7 = vmpackc.low %vm419_vm11, %vm371_vm2  ;;  %vm274_vm2 = vcmp.eq.s32.totalorder %v10189_v2, %v11777_v34  ;;  %vm322_vm11 = vcmp.eq.s32.totalorder %v10285_v19, %v11777_v34  ;;  %v9750_v34 = vld [vmem:[%s14945_s3 + $0xa0] sm:$0xff]  }
  0xd8   :  { %8776 = vmatprep.subr.msk.bf16.mxu0 %vm8775_vm7, %v10143_v16  ;;  %vm8777_vm0 = vmpackc.low %vm418_vm5, %vm370_vm13  ;;  %vm277_vm7 = vcmp.eq.s32.totalorder %v10189_v2, %v11785_v20  ;;  %vm325_vm13 = vcmp.eq.s32.totalorder %v10285_v19, %v11785_v20 }
  0xd9   :  { %vm8793_vm9 = vmpackc.low %vm421_vm14, %vm373_vm8  ;;  %8778 = vmatpush1.bf16.msk.msra.mxu0 %vm8777_vm0, %v10143_v16  ;;  %vm276_vm8 = vcmp.eq.s32.totalorder %v10189_v2, %v11795_v21  ;;  %vm324_vm14 = vcmp.eq.s32.totalorder %v10285_v19, %v11795_v21 }
  0xda   :  { %vm15099_vm6 = vmmov %vm15098_vm4  ;;  %vm275_vm4 = vcmp.eq.s32.totalorder %v10189_v2, %v11770_v7  ;;  %8794 = vmatprep.subr.msk.bf16.mxu1 %vm8793_vm9, %v10143_v16  ;;  %v9749_v7 = vld [vmem:[%s14945_s3 + $0x18] sm:$0xff]  }
  0xdb   :  { %8766 = vmatmul.mubr.msk.bf16.gmra.mxu1 %vm15099_vm6, %v11519_v62  ;;  %vm8795_vm12 = vmpackc.low %vm420_vm1, %vm372_vm15  ;;  %v1245_v4 = vpop.f32.mrf.mxu0 }
  0xdc   :  { %vm8779_vm3 = vmpackc.low %vm323_vm10, %vm275_vm4  ;;  %8796 = vmatpush1.bf16.msk.msra.mxu1 %vm8795_vm12, %v10143_v16  ;;  %2462 = vmatprep.mubr.bf16.mxu1 %v10142_v1  ;;  %v1298_v5 = vpop.f32.mrf.mxu1  ;;  %vm2963_vm4 = vcmask 1041408   ;;  %vm2771_vm10 = vcmask 1039360  }
  0xdd   :  { %8780 = vmatprep.subr.msk.bf16.mxu0 %vm8779_vm3, %v10143_v16  ;;  %vm8781_vm5 = vmpackc.low %vm322_vm11, %vm274_vm2  ;;  %v1247_v2 = vpop.f32.mrf.mxu0  ;;  %vm3492_vm3 = vcmask 1022976   ;;  %vm3780_vm2 = vcmask 1014784   ;;  %vm3204_vm11 = vcmask 1031168  }
  0xde   :  { %vm8797_vm0 = vmpackc.low %vm325_vm13, %vm277_vm7  ;;  %8782 = vmatpush1.bf16.msk.msra.mxu0 %vm8781_vm5, %v10143_v16  ;;  %v1300_v12 = vpop.f32.mrf.mxu1  ;;  %vm7360_vm7 = vcmask 1043456   ;;  %vm4092_vm13 = vcmask 1042432   ;;  %vm4093_vm5 = vcmask 980996  }
  0xdf   :  { %8798 = vmatprep.subr.msk.bf16.mxu1 %vm8797_vm0, %v10143_v16  ;;  %vm8799_vm15 = vmpackc.low %vm324_vm14, %vm276_vm8  ;;  %v1249_v13 = vpop.f32.mrf.mxu0  ;;  %9188 = vmatprep.subr.bf16.mxu0 %v9733_v24  ;;  %vm7356_vm14 = vcmask 982016  }
  0xe0   :  { %8800 = vmatpush1.bf16.msk.msra.mxu1 %vm8799_vm15, %v10143_v16  ;;  %vm15100_vm1 = vmmov %vm15099_vm6  ;;  %v1302_v17 = vpop.f32.mrf.mxu1 }
  0xe1   :  { %8783 = vmatmul.mubr.msk.bf16.vlgmr.msra.gmra.mxu0 %vm15100_vm1, %v11426_v57  ;;  %vm15101_vm9 = vmmov %vm15100_vm1  ;;  %v11884_v18 = vpop.f32.mrf.mxu0  ;;  %9210 = vmatprep.subr.bf16.mxu1 %v9736_v45 }
  0xe2   :  { %2419 = vmatprep.mubr.bf16.mxu0 %v10142_v1  ;;  %v11886_v19 = vpop.f32.mrf.mxu1  ;;  %vm15102_vm6 = vmmov %vm15100_vm1 }
  0xe3   :  { %8801 = vmatmul.mubr.msk.bf16.vlgmr.msra.gmra.mxu1 %vm15101_vm9, %v11426_v57  ;;  %v1255_v16 = vpop.f32.mrf.mxu0  ;;  %vm15103_vm12 = vmmov %vm15100_vm1 }
  0xe4   :  { %2472 = vmatprep.mubr.bf16.mxu1 %v10142_v1  ;;  %v11893_v25 = vadd.f32 %v1255_v16, %v1245_v4  ;;  %v1308_v35 = vpop.f32.mrf.mxu1  ;;  %v9734_v1 = vld [vmem:[%s14945_s3 + $0x38] sm:$0xff]   ;;  %9211 = vmatpush3.bf16.msra.mxu1 %v9738_v48  ;;  %v9758_v48 = vld [vmem:[%s14945_s3 + $0x90] sm:$0xff]   ;;  %vm4094_vm8 = vmor %vm4093_vm5, %vm4092_vm13 }
  0xe5   :  { %v11898_v36 = vadd.f32 %v1308_v35, %v1298_v5  ;;  %v1257_v37 = vpop.f32.mrf.mxu0  ;;  %9189 = vmatpush3.bf16.msra.mxu0 %v9734_v1  ;;  %9212 = vmatprep.subr.bf16.mxu1 %v9740_v55  ;;  %v9755_v35 = vld [vmem:[%s14945_s3 + $0x48] sm:$0xff]  }
  0xe6   :  { %v1310_v38 = vpop.f32.mrf.mxu1  ;;  %v2627_v39 = vrot.slane %v11893_v25, 3  ;;  %v11903_v40 = vadd.f32 %v1257_v37, %v1247_v2  ;;  %9190 = vmatprep.subr.bf16.mxu0 %v9735_v44  ;;  %v2964_v28 = vrot.slane %v11893_v25, 6  ;;  %v9751_v2 = vld [vmem:[%s14945_s3 + $0x50] sm:$0xff]  }
  0xe7   :  { %v11905_v41 = vadd.f32 %v1310_v38, %v1300_v12  ;;  %v1259_v42 = vpop.f32.mrf.mxu0  ;;  %v2629_v43 = vrot.slane %v11898_v36, 3  ;;  %v2970_v31 = vrot.slane %v11898_v36, 6  ;;  %v9752_v12 = vld [vmem:[%s14945_s3 + $0xd8] sm:$0xff]   ;;  %v9756_v38 = vld [vmem:[%s14945_s3 + $0xd0] sm:$0xff]  }
  0xe8   :  { %v1312_v46 = vpop.f32.mrf.mxu1  ;;  %2675 = vrot.lane.b32.xlu1 %v2627_v39, %s10144_s23  ;;  %v2531_v52 = vadd.f32 %v1259_v42, %v1249_v13  ;;  %v2628_v53 = vrot.slane %v11903_v40, 3  ;;  %9213 = vmatpush3.bf16.msra.mxu1 %v9742_v60  ;;  %v9762_v60 = vld [vmem:[%s14945_s3 + $0x88] sm:$0xff]  }
  0xe9   :  { %8784 = vmatmul.mubr.msk.bf16.gmra.mxu0 %vm15102_vm6, %v11519_v62  ;;  %v2533_v49 = vadd.f32 %v1312_v46, %v1302_v17  ;;  %2679 = vrot.lane.b32.xlu0 %v2629_v43, %s10144_s23  ;;  %v1261_v50 = vpop.f32.mrf.mxu0  ;;  %v2630_v51 = vrot.slane %v11905_v41, 3  ;;  %v2973_v39 = vrot.slane %v11905_v41, 6  ;;  %v9757_v46 = vld [vmem:[%s14945_s3 + $0x8] sm:$0xff]  }
  0xea   :  { %9191 = vmatpush3.bf16.msra.mxu0 %v9737_v47  ;;  %v3348_v59 = vrot.slane %v2531_v52, 1  ;;  %v3636_v3 = vrot.slane %v2531_v52, 4  ;;  %v1314_v11 = vpop.f32.mrf.mxu1  ;;  %9214 = vmatprep.subr.bf16.mxu1 %v9744_v0  ;;  %v2532_v20 = vadd.f32 %v1261_v50, %v11884_v18  ;;  %v9753_v18 = vld [vmem:[%s14945_s3 + $0x10] sm:$0xff]   ;;  %v9765_v0 = vld [vmem:[%s14945_s3 + $0x178] sm:$0xff]  }
  0xeb   :  { %8802 = vmatmul.mubr.msk.bf16.gmra.mxu1 %vm15103_vm12, %v11519_v62  ;;  %v11923_v26 = vpop.f32.mrf.mxu0  ;;  %v3350_v57 = vrot.slane %v2533_v49, 1  ;;  %9192 = vmatprep.subr.bf16.mxu0 %v9739_v54  ;;  %v2965_v62 = vrot.slane %v2531_v52, 6  ;;  %v3638_v15 = vrot.slane %v2533_v49, 4  ;;  %v2971_v23 = vrot.slane %v2533_v49, 6  ;;  %v9760_v54 = vld [vmem:[%s14945_s3 + $0xc8] sm:$0xff]  }
  0xec   :  { %2681 = vrot.lane.b32.xlu1 %v2630_v51, %s10144_s23  ;;  %9215 = vmatpush3.bf16.msra.mxu1 %v9746_v22  ;;  %v11973_v33 = vadd.f32 %v1314_v11, %v11886_v19  ;;  %v9754_v19 = vld [vmem:[%s14945_s3 + $0x98] sm:$0xff]   ;;  %v3349_v24 = vrot.slane %v2532_v20, 1  ;;  %v3637_v44 = vrot.slane %v2532_v20, 4  ;;  %v2968_v45 = vrot.slane %v2532_v20, 6  ;;  %v9759_v51 = vld [vmem:[%s14945_s3 + $0x40] sm:$0xff]  }
  0xed   :  { %2677 = vrot.lane.b32.xlu0 %v2628_v53, %s10144_s23  ;;  %v11934_v56 = vpop.f32.mrf.mxu0  ;;  %v2966_v4 = vsel %vm2963_vm4, %v2964_v28, %v2965_v62  ;;  %9216 = vmatprep.subr.bf16.mxu1 %v9748_v30  ;;  %v2972_v5 = vsel %vm2963_vm4, %v2970_v31, %v2971_v23  ;;  %v2967_v49 = vrot.slane %v11903_v40, 6  ;;  %v9764_v62 = vld [vmem:[%s14945_s3 + $0xc0] sm:$0xff]   ;;  %v9770_v28 = vld [vmem:[%s14945_s3 + $0x1f8] sm:$0xff]  }
  0xee   :  { %9193 = vmatpush3.bf16.msra.mxu0 %v9741_v32  ;;  %v3351_v17 = vrot.slane %v11973_v33, 1  ;;  %v2974_v1 = vrot.slane %v11973_v33, 6  ;;  %v9761_v32 = vld [vmem:[%s14945_s3] sm:$0xff]  }
  0xef   :  { %v11939_v58 = vpop.f32.mrf.mxu0  ;;  %9194 = vmatprep.subr.bf16.mxu0 %v9743_v61 }
  0xf0   :  { %3400 = vrot.lane.b32.xlu1 %v3350_v57, %s10145_s12  ;;  %9217 = vmatpush3.bf16.msra.mxu1 %v9750_v34  ;;  %v2975_v47 = vsel %vm2963_vm4, %v2973_v39, %v2974_v1  ;;  %v2969_v57 = vsel %vm2963_vm4, %v2967_v49, %v2968_v45 }
  0xf1   :  { %3396 = vrot.lane.b32.xlu0 %v3348_v59, %s10145_s12  ;;  %v11949_v63 = vpop.f32.mrf.mxu0  ;;  %v11966_v29 = vpop.f32.mrf.mxu1  ;;  %9218 = vmatprep.subr.bf16.mxu1 %v9752_v12 }
  0xf2   :  { %9195 = vmatpush3.bf16.msra.mxu0 %v9745_v10  ;;  %v9766_v10 = vld [vmem:[%s14945_s3 + $0x80] sm:$0xff]  }
  0xf3   :  { %9196 = vmatprep.subr.bf16.mxu0 %v9747_v27  ;;  %v11993_v13 = vpop.f32.mrf.mxu1  ;;  %v3639_v27 = vrot.slane %v11973_v33, 4 }
  0xf4   :  { %v1361_v14 = vpop.f32.mrf.mxu0  ;;  %3684 = vrot.lane.b32.xlu1 %v3636_v3, %s10146_s19  ;;  %9219 = vmatpush3.bf16.msra.mxu1 %v9754_v19 }
  0xf5   :  { %3688 = vrot.lane.b32.xlu0 %v3638_v15, %s10146_s19  ;;  %v1408_v37 = vpop.f32.mrf.mxu1  ;;  %v12014_v42 = vadd.f32 %v1361_v14, %v11923_v26  ;;  %9220 = vmatprep.subr.bf16.mxu1 %v9756_v38 }
  0xf6   :  { %v11982_v21 = vpop.f32.mrf.mxu0  ;;  %9197 = vmatpush3.bf16.msra.mxu0 %v9749_v7 }
  0xf7   :  { %9198 = vmatprep.subr.bf16.mxu0 %v9751_v2  ;;  %v1410_v50 = vpop.f32.mrf.mxu1  ;;  %v2976_v52 = vrot.slane %v12014_v42, 6  ;;  %v2631_v53 = vrot.slane %v12014_v42, 3  ;;  %v12063_v23 = vadd.f32 %v11982_v21, %v11934_v56 }
  0xf8   :  { %3108 = vrot.lane.b32.xlu1 %v2966_v4, %s10147_s29  ;;  %v1365_v16 = vpop.f32.mrf.mxu0  ;;  %9221 = vmatpush3.bf16.msra.mxu1 %v9758_v48 }
  0xf9   :  { %3112 = vrot.lane.b32.xlu0 %v2972_v5, %s10147_s29  ;;  %v2535_v43 = vadd.f32 %v1365_v16, %v11939_v58  ;;  %9222 = vmatprep.subr.bf16.mxu1 %v9760_v54  ;;  %v1414_v58 = vpop.f32.mrf.mxu1  ;;  %v2632_v33 = vrot.slane %v12063_v23, 3  ;;  %v2979_v48 = vrot.slane %v12063_v23, 6 }
  0xfa   :  { %9199 = vmatpush3.bf16.msra.mxu0 %v9753_v18  ;;  %v1367_v55 = vpop.f32.mrf.mxu0  ;;  %v12059_v15 = vadd.f32 %v1414_v58, %v11966_v29 }
  0xfb   :  { %9200 = vmatprep.subr.bf16.mxu0 %v9755_v35  ;;  %v2977_v26 = vrot.slane %v2535_v43, 6  ;;  %v3352_v61 = vrot.slane %v2535_v43, 1  ;;  %v1416_v11 = vpop.f32.mrf.mxu1  ;;  %v3640_v22 = vrot.slane %v2535_v43, 4  ;;  %v2536_v21 = vadd.f32 %v1367_v55, %v11949_v63 }
  0xfc   :  { %3402 = vrot.lane.b32.xlu1 %v3351_v17, %s10145_s12  ;;  %v1457_v59 = vpop.f32.mrf.mxu0  ;;  %9223 = vmatpush3.bf16.msra.mxu1 %v9762_v60  ;;  %v2633_v7 = vrot.slane %v12059_v15, 3  ;;  %v12073_v56 = vadd.f32 %v1416_v11, %v11993_v13  ;;  %v2982_v17 = vrot.slane %v12059_v15, 6 }
  0xfd   :  { %3398 = vrot.lane.b32.xlu0 %v3349_v24, %s10145_s12  ;;  %v2978_v3 = vsel %vm2963_vm4, %v2976_v52, %v2977_v26  ;;  %9224 = vmatprep.subr.bf16.mxu1 %v9764_v62  ;;  %v1418_v30 = vpop.f32.mrf.mxu1  ;;  %v3353_v16 = vrot.slane %v2536_v21, 1  ;;  %v3641_v45 = vrot.slane %v2536_v21, 4 }
  0xfe   :  { %9201 = vmatpush3.bf16.msra.mxu0 %v9757_v46  ;;  %v12055_v14 = vpop.f32.mrf.mxu0  ;;  %v2537_v29 = vadd.f32 %v1418_v30, %v1408_v37  ;;  %v2634_v5 = vrot.slane %v12073_v56, 3  ;;  %v2980_v46 = vrot.slane %v2536_v21, 6  ;;  %v2985_v26 = vrot.slane %v12073_v56, 6 }
  0xff   :  { %9202 = vmatprep.subr.bf16.mxu0 %v9759_v51  ;;  %v1420_v4 = vpop.f32.mrf.mxu1 }
 0x100   :  { %3686 = vrot.lane.b32.xlu1 %v3637_v44, %s10146_s19  ;;  %9225 = vmatpush3.bf16.msra.mxu1 %v9766_v10  ;;  %v1461_v31 = vpop.f32.mrf.mxu0  ;;  %v3354_v20 = vrot.slane %v2537_v29, 1  ;;  %v3642_v13 = vrot.slane %v2537_v29, 4  ;;  %v2983_v18 = vrot.slane %v2537_v29, 6  ;;  %v2538_v19 = vadd.f32 %v1420_v4, %v1410_v50 }
 0x101   :  { %3114 = vrot.lane.b32.xlu0 %v2975_v47, %s10147_s29  ;;  %9254 = vmatprep.subr.bf16.mxu1 %v9770_v28 }
 0x102   :  { %9203 = vmatpush3.bf16.msra.mxu0 %v9761_v32  ;;  %v12077_v34 = vpop.f32.mrf.mxu0  ;;  %v1510_v12 = vpop.f32.mrf.mxu1  ;;  %v2984_v1 = vsel %vm2963_vm4, %v2982_v17, %v2983_v18  ;;  %v3355_v37 = vrot.slane %v2538_v19, 1  ;;  %v2986_v54 = vrot.slane %v2538_v19, 6  ;;  %v3643_v62 = vrot.slane %v2538_v19, 4 }
 0x103   :  { %9232 = vmatprep.subr.bf16.mxu0 %v9765_v0 }
 0x104   :  { %3110 = vrot.lane.b32.xlu1 %v2969_v57, %s10147_s29  ;;  %v1512_v35 = vpop.f32.mrf.mxu1  ;;  %v2987_v58 = vsel %vm2963_vm4, %v2985_v26, %v2986_v54 }
 0x105   :  { %2683 = vrot.lane.b32.xlu0 %v2631_v53, %s10144_s23  ;;  %v1467_v2 = vpop.f32.mrf.mxu0  ;;  %v2981_v53 = vsel %vm2963_vm4, %v2979_v48, %v2980_v46 }
 0x106   :  { %v12087_v63 = vadd.f32 %v1467_v2, %v1457_v59  ;;  %v1514_v39 = vpop.f32.mrf.mxu1 }
 0x107   :  { %v1469_v24 = vpop.f32.mrf.mxu0 }
 0x108   :  { %3116 = vrot.lane.b32.xlu1 %v2978_v3, %s10147_s29  ;;  %v2635_v44 = vrot.slane %v12087_v63, 3  ;;  %v1516_v47 = vpop.f32.mrf.mxu1  ;;  %v2988_v50 = vrot.slane %v12087_v63, 6  ;;  %v12110_v3 = vadd.f32 %v1469_v24, %v12055_v14 }
 0x109   :  { %3404 = vrot.lane.b32.xlu0 %v3352_v61, %s10145_s12  ;;  %v1471_v38 = vpop.f32.mrf.mxu0 }
 0x10a   :  { %v2539_v43 = vadd.f32 %v1471_v38, %v1461_v31  ;;  %v1520_v55 = vpop.f32.mrf.mxu1  ;;  %v2636_v30 = vrot.slane %v12110_v3, 3 }
 0x10b   :  { %v1473_v52 = vpop.f32.mrf.mxu0  ;;  %v12107_v61 = vadd.f32 %v1520_v55, %v1510_v12 }
 0x10c   :  { %3692 = vrot.lane.b32.xlu1 %v3640_v22, %s10146_s19  ;;  %v3356_v49 = vrot.slane %v2539_v43, 1  ;;  %v2989_v51 = vrot.slane %v2539_v43, 6  ;;  %v1522_v59 = vpop.f32.mrf.mxu1  ;;  %v3644_v0 = vrot.slane %v2539_v43, 4  ;;  %v2540_v14 = vadd.f32 %v1473_v52, %v12077_v34 }
 0x10d   :  { %3690 = vrot.lane.b32.xlu0 %v3639_v27, %s10146_s19  ;;  %v12114_v22 = vadd.f32 %v1522_v59, %v1512_v35  ;;  %v2637_v28 = vrot.slane %v12107_v61, 3  ;;  %v2994_v2 = vrot.slane %v12107_v61, 6 }
 0x10e   :  { %v1563_v57 = vpop.f32.mrf.mxu0  ;;  %v2990_v32 = vsel %vm2963_vm4, %v2988_v50, %v2989_v51  ;;  %v1524_v10 = vpop.f32.mrf.mxu1  ;;  %v3645_v38 = vrot.slane %v2540_v14, 4  ;;  %v2992_v43 = vrot.slane %v2540_v14, 6 }
 0x10f   :  { %v2541_v27 = vadd.f32 %v1524_v10, %v1514_v39  ;;  %v2638_v29 = vrot.slane %v12114_v22, 3  ;;  %v2991_v39 = vrot.slane %v12110_v3, 6 }
 0x110   :  { %2687 = vrot.lane.b32.xlu1 %v2633_v7, %s10144_s23  ;;  %v12104_v60 = vpop.f32.mrf.mxu0 }
 0x111   :  { %2685 = vrot.lane.b32.xlu0 %v2632_v33, %s10144_s23  ;;  %v3358_v7 = vrot.slane %v2541_v27, 1  ;;  %v1526_v33 = vpop.f32.mrf.mxu1  ;;  %v3646_v4 = vrot.slane %v2541_v27, 4  ;;  %v2995_v12 = vrot.slane %v2541_v27, 6  ;;  %v2993_v50 = vsel %vm2963_vm4, %v2991_v39, %v2992_v43 }
 0x112   :  { %v1567_v11 = vpop.f32.mrf.mxu0 }
 0x113   :  { %v2996_v19 = vsel %vm2963_vm4, %v2994_v2, %v2995_v12 }
 0x114   :  { %3408 = vrot.lane.b32.xlu1 %v3354_v20, %s10145_s12  ;;  %v12119_v31 = vpop.f32.mrf.mxu0 }
 0x115   :  { %2689 = vrot.lane.b32.xlu0 %v2634_v5, %s10144_s23  ;;  %v3357_v5 = vrot.slane %v2540_v14, 1 }
 0x116   :  { %v1573_v20 = vpop.f32.mrf.mxu0 }
 0x117   :  { %v1616_v21 = vpop.f32.mrf.mxu1  ;;  %v12129_v18 = vadd.f32 %v1573_v20, %v1563_v57 }
 0x118   :  { %3696 = vrot.lane.b32.xlu1 %v3642_v13, %s10146_s19  ;;  %v2542_v13 = vadd.f32 %v1526_v33, %v1516_v47  ;;  %v1575_v17 = vpop.f32.mrf.mxu0 }
 0x119   :  { %3406 = vrot.lane.b32.xlu0 %v3353_v16, %s10145_s12  ;;  %v1618_v34 = vpop.f32.mrf.mxu1  ;;  %v3000_v46 = vrot.slane %v12129_v18, 6 }
 0x11a   :  { %v3359_v16 = vrot.slane %v2542_v13, 1  ;;  %v1577_v24 = vpop.f32.mrf.mxu0  ;;  %v2998_v51 = vrot.slane %v2542_v13, 6 }
 0x11b   :  { %v1620_v35 = vpop.f32.mrf.mxu1 }
 0x11c   :  { %3120 = vrot.lane.b32.xlu1 %v2984_v1, %s10147_s29  ;;  %v2543_v1 = vadd.f32 %v1577_v24, %v1567_v11  ;;  %v1579_v48 = vpop.f32.mrf.mxu0 }
 0x11d   :  { %3410 = vrot.lane.b32.xlu0 %v3355_v37, %s10145_s12  ;;  %v2639_v37 = vrot.slane %v12129_v18, 3 }
 0x11e   :  { %v3001_v47 = vrot.slane %v2543_v1, 6  ;;  %v3648_v59 = vrot.slane %v2543_v1, 4 }
 0x120   :  { %2691 = vrot.lane.b32.xlu1 %v2635_v44, %s10144_s23  ;;  %v1622_v44 = vpop.f32.mrf.mxu1  ;;  %v1669_v26 = vpop.f32.mrf.mxu0 }
 0x121   :  { %3694 = vrot.lane.b32.xlu0 %v3641_v45, %s10146_s19  ;;  %v3360_v45 = vrot.slane %v2543_v1, 1 }
 0x122   :  { %v1626_v52 = vpop.f32.mrf.mxu1  ;;  %v12146_v57 = vpop.f32.mrf.mxu0 }
 0x124   :  { %3412 = vrot.lane.b32.xlu1 %v3356_v49, %s10145_s12  ;;  %v2997_v49 = vrot.slane %v12114_v22, 6  ;;  %v1628_v55 = vpop.f32.mrf.mxu1  ;;  %v1673_v10 = vpop.f32.mrf.mxu0 }
 0x125   :  { %3118 = vrot.lane.b32.xlu0 %v2981_v53, %s10147_s29  ;;  %v3002_v53 = vsel %vm2963_vm4, %v3000_v46, %v3001_v47  ;;  %v12156_v11 = vadd.f32 %v1628_v55, %v1618_v34 }
 0x126   :  { %v2999_v54 = vsel %vm2963_vm4, %v2997_v49, %v2998_v51  ;;  %v12161_v14 = vpop.f32.mrf.mxu0 }
 0x128   :  { %3124 = vrot.lane.b32.xlu1 %v2990_v32, %s10147_s29  ;;  %v12149_v32 = vadd.f32 %v1626_v52, %v1616_v21  ;;  %v1679_v20 = vpop.f32.mrf.mxu0 }
 0x129   :  { %3122 = vrot.lane.b32.xlu0 %v2987_v58, %s10147_s29  ;;  %v3647_v58 = vrot.slane %v2542_v13, 4 }
 0x12a   :  { %v3006_v2 = vrot.slane %v12149_v32, 6 }
 0x12c   :  { %3700 = vrot.lane.b32.xlu1 %v3644_v0, %s10146_s19  ;;  %v1630_v0 = vpop.f32.mrf.mxu1 }
 0x12d   :  { %3698 = vrot.lane.b32.xlu0 %v3643_v62, %s10146_s19  ;;  %v12152_v62 = vadd.f32 %v1575_v17, %v12104_v60  ;;  %v2545_v27 = vadd.f32 %v1630_v0, %v1620_v35  ;;  %v2544_v60 = vadd.f32 %v1579_v48, %v12119_v31  ;;  %v12170_v17 = vadd.f32 %v1679_v20, %v1669_v26  ;;  %v1681_v31 = vpop.f32.mrf.mxu0 }
 0x12e   :  { %v1632_v33 = vpop.f32.mrf.mxu1 }
 0x12f   :  { %v3007_v12 = vrot.slane %v2545_v27, 6  ;;  %v2546_v13 = vadd.f32 %v1632_v33, %v1622_v44  ;;  %v1683_v1 = vpop.f32.mrf.mxu0  ;;  %v3003_v46 = vrot.slane %v12152_v62, 6  ;;  %v3004_v47 = vrot.slane %v2544_v60, 6 }
 0x130   :  { %2695 = vrot.lane.b32.xlu1 %v2637_v28, %s10144_s23  ;;  %v2641_v28 = vrot.slane %v12149_v32, 3  ;;  %v1722_v21 = vpop.f32.mrf.mxu1  ;;  %v2547_v39 = vadd.f32 %v1683_v1, %v1673_v10  ;;  %v3012_v52 = vrot.slane %v12170_v17, 6 }
 0x131   :  { %2693 = vrot.lane.b32.xlu0 %v2636_v30, %s10144_s23  ;;  %v2640_v30 = vrot.slane %v12152_v62, 3  ;;  %v3008_v24 = vsel %vm2963_vm4, %v3006_v2, %v3007_v12  ;;  %v3363_v35 = vrot.slane %v2546_v13, 1  ;;  %v1685_v49 = vpop.f32.mrf.mxu0  ;;  %v3005_v55 = vsel %vm2963_vm4, %v3003_v46, %v3004_v47 }
 0x132   :  { %v1724_v34 = vpop.f32.mrf.mxu1  ;;  %v3364_v51 = vrot.slane %v2547_v39, 1  ;;  %v3013_v26 = vrot.slane %v2547_v39, 6  ;;  %v3652_v20 = vrot.slane %v2547_v39, 4  ;;  %v3651_v2 = vrot.slane %v2546_v13, 4 }
 0x134   :  { %3416 = vrot.lane.b32.xlu1 %v3358_v7, %s10145_s12  ;;  %v3362_v7 = vrot.slane %v2545_v27, 1 }
 0x135   :  { %2697 = vrot.lane.b32.xlu0 %v2638_v29, %s10144_s23  ;;  %v2642_v29 = vrot.slane %v12156_v11, 3 }
 0x138   :  { %3704 = vrot.lane.b32.xlu1 %v3646_v4, %s10146_s19  ;;  %v3650_v4 = vrot.slane %v2545_v27, 4 }
 0x139   :  { %3414 = vrot.lane.b32.xlu0 %v3357_v5, %s10145_s12  ;;  %v3361_v5 = vrot.slane %v2544_v60, 1 }
 0x13c   :  { %3128 = vrot.lane.b32.xlu1 %v2996_v19, %s10147_s29 }
 0x13d   :  { %3418 = vrot.lane.b32.xlu0 %v3359_v16, %s10145_s12 }
 0x140   :  { %2699 = vrot.lane.b32.xlu1 %v2639_v37, %s10144_s23  ;;  %v1726_v37 = vpop.f32.mrf.mxu1 }
 0x141   :  { %3702 = vrot.lane.b32.xlu0 %v3645_v38, %s10146_s19  ;;  %v2643_v38 = vrot.slane %v12170_v17, 3 }
 0x142   :  { %v1728_v48 = vpop.f32.mrf.mxu1 }
 0x144   :  { %3420 = vrot.lane.b32.xlu1 %v3360_v45, %s10145_s12  ;;  %v3649_v45 = vrot.slane %v2544_v60, 4  ;;  %v1732_v0 = vpop.f32.mrf.mxu1 }
 0x145   :  { %3126 = vrot.lane.b32.xlu0 %v2993_v50, %s10147_s29 }
 0x148   :  { %3132 = vrot.lane.b32.xlu1 %v3002_v53, %s10147_s29 }
 0x149   :  { %3130 = vrot.lane.b32.xlu0 %v2999_v54, %s10147_s29  ;;  %v3009_v54 = vrot.slane %v12156_v11, 6 }
 0x14c   :  { %3708 = vrot.lane.b32.xlu1 %v3648_v59, %s10146_s19  ;;  %v3010_v59 = vrot.slane %v2546_v13, 6  ;;  %v12227_v13 = vadd.f32 %v1685_v49, %v12161_v14 }
 0x14d   :  { %3706 = vrot.lane.b32.xlu0 %v3647_v58, %s10146_s19  ;;  %v12194_v58 = vpop.f32.mrf.mxu0 }
 0x14e   :  { %v3011_v60 = vsel %vm2963_vm4, %v3009_v54, %v3010_v59 }
 0x150   :  { %2703 = vrot.lane.b32.xlu1 %v2641_v28, %s10144_s23  ;;  %v3014_v28 = vsel %vm2963_vm4, %v3012_v52, %v3013_v26 }
 0x151   :  { %2701 = vrot.lane.b32.xlu0 %v2640_v30, %s10144_s23  ;;  %v12202_v30 = vpop.f32.mrf.mxu0 }
 0x153   :  { %v12212_v12 = vpop.f32.mrf.mxu0 }
 0x154   :  { %3424 = vrot.lane.b32.xlu1 %v3362_v7, %s10145_s12  ;;  %v12207_v7 = vadd.f32 %v1732_v0, %v1722_v21 }
 0x155   :  { %2705 = vrot.lane.b32.xlu0 %v2642_v29, %s10144_s23  ;;  %v1734_v29 = vpop.f32.mrf.mxu1 }
 0x156   :  { %v2645_v21 = vrot.slane %v12207_v7, 3 }
 0x158   :  { %3712 = vrot.lane.b32.xlu1 %v3650_v4, %s10146_s19  ;;  %v12210_v4 = vadd.f32 %v1681_v31, %v12146_v57  ;;  %v12222_v31 = vpop.f32.mrf.mxu0 }
 0x159   :  { %3422 = vrot.lane.b32.xlu0 %v3361_v5, %s10145_s12 }
 0x15a   :  { %v12173_v19 = vpop.permute.xlu1 %2675  ;;  %v2644_v57 = vrot.slane %v12210_v4, 3 }
 0x15b   :  { %v12175_v16 = vpop.permute.xlu0 %2679 }
 0x15c   :  { %3136 = vrot.lane.b32.xlu1 %v3008_v24, %s10147_s29  ;;  %v1736_v24 = vpop.f32.mrf.mxu1 }
 0x15d   :  { %3426 = vrot.lane.b32.xlu0 %v3363_v35, %s10145_s12  ;;  %v2549_v35 = vadd.f32 %v1736_v24, %v1726_v37  ;;  %v3018_v37 = vrot.slane %v12207_v7, 6 }
 0x15e   :  { %v12181_v43 = vpop.permute.xlu1 %2681 }
 0x15f   :  { %v2678_v44 = vpop.permute.xlu0 %2677  ;;  %v3366_v47 = vrot.slane %v2549_v35, 1  ;;  %v3019_v52 = vrot.slane %v2549_v35, 6 }
 0x160   :  { %2707 = vrot.lane.b32.xlu1 %v2643_v38, %s10144_s23  ;;  %v12219_v38 = vadd.f32 %v1734_v29, %v1724_v34  ;;  %v2772_v34 = vsel %vm2771_vm10, %v12173_v19, %v2678_v44  ;;  %v2774_v19 = vsel %vm2771_vm10, %v12175_v16, %v12181_v43 }
 0x161   :  { %3710 = vrot.lane.b32.xlu0 %v3649_v45, %s10146_s19  ;;  %v1738_v45 = vpop.f32.mrf.mxu1 }
 0x162   :  { %v12186_v50 = vpop.permute.xlu1 %3400  ;;  %v2646_v54 = vrot.slane %v12219_v38, 3  ;;  %v12236_v14 = vadd.f32 %v1738_v45, %v1728_v48 }
 0x163   :  { %v12189_v53 = vpop.permute.xlu0 %3396  ;;  %v12239_v49 = vpop.f32.mrf.mxu1 }
 0x164   :  { %3428 = vrot.lane.b32.xlu1 %v3364_v51, %s10145_s12  ;;  %v2773_v51 = vsel %vm2771_vm10, %v2678_v44, %v12175_v16  ;;  %v2867_v44 = vadd.f32 %v2772_v34, %v11893_v25  ;;  %v3367_v34 = vrot.slane %v12236_v14, 1 }
 0x165   :  { %3134 = vrot.lane.b32.xlu0 %v3005_v55, %s10147_s29  ;;  %v1785_v55 = vpop.f32.mrf.mxu0  ;;  %v2868_v59 = vadd.f32 %v2773_v51, %v11903_v40 }
 0x166   :  { %v12197_v10 = vpop.permute.xlu1 %3684 }
 0x167   :  { %v12199_v27 = vpop.permute.xlu0 %3688  ;;  %v12252_v24 = vpop.f32.mrf.mxu0 }
 0x168   :  { %3140 = vrot.lane.b32.xlu1 %v3014_v28, %s10147_s29  ;;  %v3654_v28 = vrot.slane %v2549_v35, 4  ;;  %v12261_v35 = vadd.f32 %v1785_v55, %v12194_v58 }
 0x169   :  { %3138 = vrot.lane.b32.xlu0 %v3011_v60, %s10147_s29  ;;  %v1789_v55 = vpop.f32.mrf.mxu0 }
 0x16a   :  { %v3109_v33 = vpop.permute.xlu1 %3108 }
 0x16b   :  { %v3113_v5 = vpop.permute.xlu0 %3112 }
 0x16c   :  { %3716 = vrot.lane.b32.xlu1 %v3652_v20, %s10146_s19  ;;  %v3365_v20 = vrot.slane %v12227_v13, 1 }
 0x16d   :  { %3714 = vrot.lane.b32.xlu0 %v3651_v2, %s10146_s19  ;;  %v3020_v2 = vsel %vm2963_vm4, %v3018_v37, %v3019_v52 }
 0x16e   :  { %v12216_v1 = vpop.permute.xlu1 %3402 }
 0x16f   :  { %v3399_v39 = vpop.permute.xlu0 %3398 }
 0x170   :  { %2711 = vrot.lane.b32.xlu1 %v2645_v21, %s10144_s23  ;;  %v3494_v37 = vsel %vm3492_vm3, %v3399_v39, %v12186_v50 }
 0x171   :  { %2709 = vrot.lane.b32.xlu0 %v2644_v57, %s10144_s23  ;;  %v3493_v57 = vsel %vm3492_vm3, %v12189_v53, %v3399_v39 }
 0x172   :  { %v3687_v46 = vpop.permute.xlu1 %3686 }
 0x173   :  { %v3115_v26 = vpop.permute.xlu0 %3114  ;;  %v3781_v53 = vsel %vm3780_vm2, %v12197_v10, %v3687_v46  ;;  %v3782_v39 = vsel %vm3780_vm2, %v3687_v46, %v12199_v27  ;;  %v12288_v10 = vadd.f32 %v1789_v55, %v12212_v12  ;;  %v4097_v12 = vld [vmem:[%s14946_s2 + $0x8] sm:$0x77] }
 0x174   :  { %3432 = vrot.lane.b32.xlu1 %v3366_v47, %s10145_s12  ;;  %v3207_v16 = vsel %vm3204_vm11, %v3113_v5, %v3115_v26 }
 0x175   :  { %2713 = vrot.lane.b32.xlu0 %v2646_v54, %s10144_s23 }
 0x176   :  { %v3111_v0 = vpop.permute.xlu1 %3110 }
 0x177   :  { %v3205_v60 = vsel %vm3204_vm11, %v3109_v33, %v3111_v0  ;;  %v3206_v29 = vsel %vm3204_vm11, %v3111_v0, %v3113_v5  ;;  %v12248_v48 = vpop.permute.xlu0 %2683  ;;  %v2869_v33 = vadd.f32 %v2774_v19, %v11898_v36  ;;  %v12267_v5 = vpop.f32.mrf.mxu1  ;;  %v3015_v0 = vrot.slane %v12210_v4, 6 }
 0x178   :  { %v3300_v21 = vadd.f32 %v3205_v60, %v2867_v44  ;;  %v3301_v25 = vadd.f32 %v3206_v29, %v2868_v59  ;;  %v2775_v40 = vsel %vm2771_vm10, %v12181_v43, %v12248_v48  ;;  %3720 = vrot.lane.b32.xlu1 %v3654_v28, %s10146_s19  ;;  %v4096_v43 = vld [vmem:[%s14946_s2] sm:$0x77]  ;;  %v3495_v60 = vsel %vm3492_vm3, %v12186_v50, %v12216_v1 }
 0x179   :  { %3430 = vrot.lane.b32.xlu0 %v3365_v20, %s10145_s12  ;;  %v2870_v36 = vadd.f32 %v2775_v40, %v11905_v41  ;;  %v3302_v51 = vadd.f32 %v3207_v16, %v2869_v33  ;;  %v4144_v59 = vcombine.high %v4096_v43, %v4096_v43  ;;  %v12290_v28 = vpop.f32.mrf.mxu1  ;;  %v3653_v33 = vrot.slane %v12227_v13, 4 }
 0x17a   :  { %v3588_v45 = vadd.f32 %v3493_v57, %v3300_v21  ;;  %v3589_v47 = vadd.f32 %v3494_v37, %v3301_v25  ;;  %v12274_v58 = vpop.permute.xlu1 %3116  ;;  %v3016_v21 = vrot.slane %v12227_v13, 6 }
 0x17b   :  { %v12281_v52 = vpop.permute.xlu0 %3404  ;;  %v3208_v54 = vsel %vm3204_vm11, %v3115_v26, %v12274_v58  ;;  %v2647_v26 = vrot.slane %v12261_v35, 3  ;;  %v3590_v25 = vadd.f32 %v3495_v60, %v3302_v51  ;;  %v4145_v51 = vcombine.high %v4097_v12, %v4097_v12 }
 0x17c   :  { %v3876_v19 = vadd.f32 %v3781_v53, %v3588_v45  ;;  %v3303_v44 = vadd.f32 %v3208_v54, %v2870_v36  ;;  %3144 = vrot.lane.b32.xlu1 %v3020_v2, %s10147_s29  ;;  %v3877_v41 = vadd.f32 %v3782_v39, %v3589_v47  ;;  %v3496_v46 = vsel %vm3492_vm3, %v12216_v1, %v12281_v52  ;;  %v12312_v45 = vpop.f32.mrf.mxu1 }
 0x17d   :  { %3434 = vrot.lane.b32.xlu0 %v3367_v34, %s10145_s12  ;;  %v3024_v53 = vrot.slane %v12261_v35, 6  ;;  %v3368_v39 = vrot.slane %v12288_v10, 1  ;;  %v3025_v54 = vrot.slane %v12288_v10, 6  ;;  %v3021_v60 = vrot.slane %v12219_v38, 6 }
 0x17e   :  { %v3924_v29 = vmax.f32 %v3876_v19, 0.0  ;;  %v3591_v20 = vadd.f32 %v3496_v46, %v3303_v44  ;;  %v12303_v2 = vpop.permute.xlu1 %3692  ;;  %v3925_v16 = vmax.f32 %v3877_v41, 0.0  ;;  %v12331_v46 = vpop.f32.mrf.mxu0 }
 0x17f   :  { %v3691_v40 = vpop.permute.xlu0 %3690 }
 0x180   :  { %v3783_v57 = vsel %vm3780_vm2, %v12199_v27, %v3691_v40  ;;  %v3784_v50 = vsel %vm3780_vm2, %v3691_v40, %v12303_v2  ;;  %2715 = vrot.lane.b32.xlu1 %v2647_v26, %s10144_s23  ;;  %v4021_v1 = vcombine.low %v3924_v29, %v3925_v16  ;;  %v4192_v37 = vmul.f32 %v4096_v43, %v3924_v29  ;;  %v9767_v43 = vld [vmem:[%s14945_s3 + $0x138] sm:$0xff]   ;;  %v12338_v40 = vpop.f32.mrf.mxu0 }
 0x181   :  { %v3878_v47 = vadd.f32 %v3783_v57, %v3590_v25  ;;  %v3879_v36 = vadd.f32 %v3784_v50, %v3591_v20  ;;  %3718 = vrot.lane.b32.xlu0 %v3653_v33, %s10146_s19  ;;  %v4193_v34 = vmul.f32 %v4144_v59, %v3925_v16  ;;  %v9769_v59 = vld [vmem:[%s14945_s3 + $0x170] sm:$0xff]   ;;  %v3017_v26 = vsel %vm2963_vm4, %v3015_v0, %v3016_v21  ;;  %v1838_v20 = vpop.f32.mrf.mxu1  ;;  %v9772_v21 = vld [vmem:[%s14945_s3 + $0x1b8] sm:$0xff]  }
 0x182   :  { %v12316_v13 = vpop.permute.xlu1 %2687  ;;  %4069 = vst [vmem:[%s14947_s5] sm:$0x77] %v4021_v1  ;;  %v4240_v27 = vpack.c.bf16 %v4192_v37, %v4192_v37  ;;  %v3022_v29 = vrot.slane %v12236_v14, 6  ;;  %v9771_v0 = vld [vmem:[%s14945_s3 + $0x130] sm:$0xff]   ;;  %v3026_v1 = vsel %vm2963_vm4, %v3024_v53, %v3025_v54  ;;  %v9773_v37 = vld [vmem:[%s14945_s3 + $0x168] sm:$0xff]   ;;  %v12365_v53 = vpop.f32.mrf.mxu0  ;;  %v12374_v54 = vadd.f32 %v1838_v20, %v12239_v49 }
 0x183   :  { %v3926_v55 = vmax.f32 %v3878_v47, 0.0  ;;  %v3927_v19 = vmax.f32 %v3879_v36, 0.0  ;;  %v12326_v44 = vpop.permute.xlu0 %2685  ;;  %v4241_v41 = vpack.c.bf16 %v4193_v34, %v4193_v34  ;;  %v9774_v36 = vld [vmem:[%s14945_s3 + $0x1f0] sm:$0xff]   ;;  %v1840_v34 = vpop.f32.mrf.mxu1  ;;  %v9778_v49 = vld [vmem:[%s14945_s3 + $0x1e8] sm:$0xff]  }
 0x184   :  { %3436 = vrot.lane.b32.xlu1 %v3368_v39, %s10145_s12  ;;  %v9775_v39 = vld [vmem:[%s14945_s3 + $0x128] sm:$0xff]  }
 0x185   :  { %v4194_v16 = vmul.f32 %v4097_v12, %v3926_v55  ;;  %v4022_v25 = vcombine.low %v3926_v55, %v3927_v19  ;;  %7396 = vmatprep.mubr.bf16.mxu0 %v4241_v41  ;;  %3142 = vrot.lane.b32.xlu0 %v3017_v26, %s10147_s29  ;;  %v4195_v57 = vmul.f32 %v4145_v51, %v3927_v19  ;;  %v9776_v51 = vld [vmem:[%s14945_s3 + $0x1b0] sm:$0xff]   ;;  %v3656_v19 = vrot.slane %v12288_v10, 4  ;;  %v9777_v41 = vld [vmem:[%s14945_s3 + $0x160] sm:$0xff]  }
 0x186   :  { %7397 = vmatmul.mubr.bf16.vlgmr.msra.gmra.mxu0 %v4240_v27  ;;  %v12340_v33 = vpop.permute.xlu1 %3408  ;;  %v3023_v27 = vsel %vm2963_vm4, %v3021_v60, %v3022_v29  ;;  %v3655_v26 = vrot.slane %v12236_v14, 4  ;;  %v1842_v60 = vpop.f32.mrf.mxu1  ;;  %v9779_v10 = vld [vmem:[%s14945_s3 + $0x120] sm:$0xff]   ;;  %v9780_v14 = vld [vmem:[%s14945_s3 + $0x1a8] sm:$0xff]  }
 0x187   :  { %v4242_v50 = vpack.c.bf16 %v4194_v16, %v4194_v16  ;;  %4070 = vst [vmem:[%s14947_s5 + $0x8] sm:$0x77] %v4022_v25  ;;  %9233 = vmatpush3.bf16.msra.mxu0 %v9767_v43  ;;  %v12351_v12 = vpop.permute.xlu0 %2689  ;;  %v4243_v47 = vpack.c.bf16 %v4195_v57, %v4195_v57  ;;  %v12394_v29 = vpop.f32.mrf.mxu0  ;;  %v2649_v16 = vrot.slane %v12374_v54, 3  ;;  %v9781_v25 = vld [vmem:[%s14945_s3 + $0x158] sm:$0xff]   ;;  %v12412_v57 = vadd.f32 %v1840_v34, %v12267_v5 }
 0x188   :  { %9234 = vmatprep.subr.bf16.mxu0 %v9769_v59  ;;  %3148 = vrot.lane.b32.xlu1 %v3026_v1, %s10147_s29  ;;  %v12384_v59 = vadd.f32 %v12252_v24, %v12202_v30  ;;  %v12403_v24 = vadd.f32 %v1842_v60, %v12290_v28  ;;  %v9782_v28 = vld [vmem:[%s14945_s3 + $0x1e0] sm:$0xff]  }
 0x189   :  { %7436 = vmatprep.mubr.bf16.mxu1 %v4243_v47  ;;  %3146 = vrot.lane.b32.xlu0 %v3023_v27, %s10147_s29  ;;  %v12422_v1 = vpop.f32.mrf.mxu0  ;;  %v9784_v27 = vld [vmem:[%s14945_s3 + $0x1a0] sm:$0xff]  }
 0x18a   :  { %v12368_v43 = vpop.permute.xlu1 %3696  ;;  %7437 = vmatmul.mubr.bf16.vlgmr.msra.gmra.mxu1 %v4242_v50  ;;  %v9783_v50 = vld [vmem:[%s14945_s3 + $0x118] sm:$0xff]  }
 0x18b   :  { %9235 = vmatpush3.bf16.msra.mxu0 %v9771_v0  ;;  %v12376_v55 = vpop.permute.xlu0 %3406  ;;  %9255 = vmatpush3.bf16.msra.mxu1 %v9772_v21  ;;  %v2648_v0 = vrot.slane %v12384_v59, 3  ;;  %v1844_v21 = vpop.f32.mrf.mxu1 }
 0x18c   :  { %9236 = vmatprep.subr.bf16.mxu0 %v9773_v37  ;;  %9256 = vmatprep.subr.bf16.mxu1 %v9774_v36  ;;  %v12430_v37 = vld [vmem:[%s14946_s2 + $0x10] sm:$0x77]  ;;  %v3370_v36 = vrot.slane %v12403_v24, 1  ;;  %v1891_v60 = vpop.f32.mrf.mxu0 }
 0x18d   :  { %3724 = vrot.lane.b32.xlu1 %v3656_v19, %s10146_s19  ;;  %3722 = vrot.lane.b32.xlu0 %v3655_v26, %s10146_s19  ;;  %v12433_v34 = vpop.f32.mrf.mxu1  ;;  %v2777_v19 = vsel %vm2771_vm10, %v12326_v44, %v12316_v13  ;;  %v9785_v26 = vld [vmem:[%s14945_s3 + $0x150] sm:$0xff]  }
 0x18e   :  { %v12397_v30 = vpop.permute.xlu1 %3120 }
 0x18f   :  { %9237 = vmatpush3.bf16.msra.mxu0 %v9775_v39  ;;  %v12405_v20 = vpop.permute.xlu0 %3410  ;;  %9257 = vmatpush3.bf16.msra.mxu1 %v9776_v51  ;;  %v12440_v39 = vadd.f32 %v12331_v46, %v12222_v31  ;;  %v2776_v51 = vsel %vm2771_vm10, %v12248_v48, %v12326_v44  ;;  %v3031_v31 = vrot.slane %v12403_v24, 6  ;;  %v9786_v48 = vld [vmem:[%s14945_s3 + $0x1d8] sm:$0xff]   ;;  %v9787_v44 = vld [vmem:[%s14945_s3 + $0x110] sm:$0xff]   ;;  %v12462_v46 = vadd.f32 %v1844_v21, %v12312_v45  ;;  %v12477_v21 = vpop.f32.mrf.mxu1 }
 0x190   :  { %9238 = vmatprep.subr.bf16.mxu0 %v9777_v41  ;;  %9258 = vmatprep.subr.bf16.mxu1 %v9778_v49  ;;  %v2650_v41 = vrot.slane %v12412_v57, 3  ;;  %v3030_v49 = vrot.slane %v12374_v54, 6  ;;  %v2778_v45 = vsel %vm2771_vm10, %v12316_v13, %v12351_v12 }
 0x191   :  { %2719 = vrot.lane.b32.xlu1 %v2649_v16, %s10144_s23  ;;  %2717 = vrot.lane.b32.xlu0 %v2648_v0, %s10144_s23  ;;  %v2872_v0 = vadd.f32 %v2777_v19, %v12063_v23 }
 0x192   :  { %v12425_v5 = vpop.permute.xlu1 %2691 }
 0x193   :  { %9239 = vmatpush3.bf16.msra.mxu0 %v9779_v10  ;;  %v3695_v47 = vpop.permute.xlu0 %3694  ;;  %9259 = vmatpush3.bf16.msra.mxu1 %v9780_v14  ;;  %v9788_v14 = vld [vmem:[%s14945_s3 + $0x198] sm:$0xff]  }
 0x194   :  { %9240 = vmatprep.subr.bf16.mxu0 %v9781_v25  ;;  %9260 = vmatprep.subr.bf16.mxu1 %v9782_v28  ;;  %v2871_v25 = vadd.f32 %v2776_v51, %v12014_v42  ;;  %v2779_v42 = vsel %vm2771_vm10, %v12351_v12, %v12425_v5  ;;  %v3027_v51 = vrot.slane %v12384_v59, 6  ;;  %v3032_v12 = vsel %vm2963_vm4, %v3030_v49, %v3031_v31 }
 0x195   :  { %3440 = vrot.lane.b32.xlu1 %v3370_v36, %s10145_s12  ;;  %2721 = vrot.lane.b32.xlu0 %v2650_v41, %s10144_s23  ;;  %v3658_v36 = vrot.slane %v12403_v24, 4  ;;  %v9789_v41 = vld [vmem:[%s14945_s3 + $0x148] sm:$0xff]   ;;  %v9790_v24 = vld [vmem:[%s14945_s3 + $0x1d0] sm:$0xff]   ;;  %v2874_v31 = vadd.f32 %v2779_v42, %v12073_v56 }
 0x196   :  { %v12465_v10 = vpop.permute.xlu1 %3412 }
 0x197   :  { %9241 = vmatpush3.bf16.msra.mxu0 %v9783_v50  ;;  %v3119_v28 = vpop.permute.xlu0 %3118  ;;  %9261 = vmatpush3.bf16.msra.mxu1 %v9784_v27  ;;  %v3369_v50 = vrot.slane %v12440_v39, 1  ;;  %v2873_v27 = vadd.f32 %v2778_v45, %v12059_v15  ;;  %v9792_v15 = vld [vmem:[%s14945_s3 + $0x190] sm:$0xff]  }
 0x198   :  { %v3209_v23 = vsel %vm3204_vm11, %v12274_v58, %v3119_v28  ;;  %v3210_v13 = vsel %vm3204_vm11, %v3119_v28, %v12397_v30  ;;  %9242 = vmatprep.subr.bf16.mxu0 %v9785_v26  ;;  %9262 = vmatprep.subr.bf16.mxu1 %v9786_v48  ;;  %v9791_v58 = vld [vmem:[%s14945_s3 + $0x108] sm:$0xff]   ;;  %v3497_v26 = vsel %vm3492_vm3, %v12281_v52, %v12376_v55  ;;  %v12521_v28 = vpop.f32.mrf.mxu1 }
 0x199   :  { %v3304_v19 = vadd.f32 %v3209_v23, %v2871_v25  ;;  %v3305_v16 = vadd.f32 %v3210_v13, %v2872_v0  ;;  %3728 = vrot.lane.b32.xlu1 %v3658_v36, %s10146_s19  ;;  %v3498_v25 = vsel %vm3492_vm3, %v12376_v55, %v12340_v33  ;;  %v12508_v48 = vadd.f32 %v1891_v60, %v12338_v40  ;;  %v12510_v0 = vpop.f32.mrf.mxu0  ;;  %v9793_v60 = vld [vmem:[%s14945_s3 + $0x140] sm:$0xff]  }
 0x19a   :  { %3438 = vrot.lane.b32.xlu0 %v3369_v50, %s10145_s12  ;;  %v12513_v49 = vpop.permute.xlu1 %3124  ;;  %v3785_v52 = vsel %vm3780_vm2, %v12303_v2, %v3695_v47  ;;  %v3786_v36 = vsel %vm3780_vm2, %v3695_v47, %v12368_v43  ;;  %v3371_v2 = vrot.slane %v12462_v46, 1  ;;  %v9795_v47 = vld [vmem:[%s14945_s3 + $0x100] sm:$0xff]  }
 0x19b   :  { %v3592_v45 = vadd.f32 %v3497_v26, %v3304_v19  ;;  %v3593_v55 = vadd.f32 %v3498_v25, %v3305_v16  ;;  %9243 = vmatpush3.bf16.msra.mxu0 %v9787_v44  ;;  %v3123_v40 = vpop.permute.xlu0 %3122  ;;  %9263 = vmatpush3.bf16.msra.mxu1 %v9788_v14  ;;  %v9794_v44 = vld [vmem:[%s14945_s3 + $0x1c8] sm:$0xff]   ;;  %v3028_v16 = vrot.slane %v12440_v39, 6  ;;  %v3499_v14 = vsel %vm3492_vm3, %v12340_v33, %v12405_v20 }
 0x19c   :  { %v3211_v23 = vsel %vm3204_vm11, %v12397_v30, %v3123_v40  ;;  %v3212_v56 = vsel %vm3204_vm11, %v3123_v40, %v12513_v49  ;;  %9244 = vmatprep.subr.bf16.mxu0 %v9789_v41  ;;  %9264 = vmatprep.subr.bf16.mxu1 %v9790_v24  ;;  %v12541_v30 = vld [vmem:[%s14946_s2 + $0x18] sm:$0x77]  ;;  %v1895_v41 = vpop.f32.mrf.mxu0  ;;  %v3500_v24 = vsel %vm3492_vm3, %v12405_v20, %v12465_v10  ;;  %v2651_v20 = vrot.slane %v12508_v48, 3 }
 0x19d   :  { %v3880_v42 = vadd.f32 %v3785_v52, %v3592_v45  ;;  %v3306_v13 = vadd.f32 %v3211_v23, %v2873_v27  ;;  %v3307_v50 = vadd.f32 %v3212_v56, %v2874_v31  ;;  %3152 = vrot.lane.b32.xlu1 %v3032_v12, %s10147_s29  ;;  %v3657_v12 = vrot.slane %v12440_v39, 4  ;;  %v9796_v27 = vld [vmem:[%s14945_s3 + $0x188] sm:$0xff]   ;;  %v12559_v52 = vpop.f32.mrf.mxu1 }
 0x19e   :  { %3442 = vrot.lane.b32.xlu0 %v3371_v2, %s10145_s12  ;;  %v12553_v19 = vpop.permute.xlu1 %3700  ;;  %v3881_v26 = vadd.f32 %v3786_v36, %v3593_v55  ;;  %v12563_v40 = vadd.f32 %v1895_v41, %v12394_v29  ;;  %v9798_v29 = vld [vmem:[%s14945_s3 + $0x1c0] sm:$0xff]   ;;  %v15104_v2 = vcombine.high %v12430_v37, %v12430_v37 }
 0x19f   :  { %v3928_v25 = vmax.f32 %v3880_v42, 0.0  ;;  %9245 = vmatpush3.bf16.msra.mxu0 %v9791_v58  ;;  %v3594_v33 = vadd.f32 %v3499_v14, %v3306_v13  ;;  %v3699_v31 = vpop.permute.xlu0 %3698  ;;  %v3595_v45 = vadd.f32 %v3500_v24, %v3307_v50  ;;  %9265 = vmatpush3.bf16.msra.mxu1 %v9792_v15  ;;  %v9799_v58 = vld [vmem:[%s14945_s3 + $0x278] sm:$0xff]   ;;  %v4147_v50 = vcombine.high %v12541_v30, %v12541_v30  ;;  %v1944_v41 = vpop.f32.mrf.mxu1 }
 0x1a0   :  { %v3787_v39 = vsel %vm3780_vm2, %v12368_v43, %v3699_v31  ;;  %v3788_v23 = vsel %vm3780_vm2, %v3699_v31, %v12553_v19  ;;  %9246 = vmatprep.subr.bf16.mxu0 %v9793_v60  ;;  %v3929_v55 = vmax.f32 %v3881_v26, 0.0  ;;  %9266 = vmatprep.subr.bf16.mxu1 %v9794_v44  ;;  %v9800_v44 = vld [vmem:[%s14945_s3 + $0x180] sm:$0xff]   ;;  %v9801_v13 = vld [vmem:[%s14945_s3 + $0x238] sm:$0xff]   ;;  %v3033_v14 = vrot.slane %v12412_v57, 6  ;;  %v12600_v31 = vpop.f32.mrf.mxu0 }
 0x1a1   :  { %v3882_v36 = vadd.f32 %v3787_v39, %v3594_v33  ;;  %v3883_v56 = vadd.f32 %v3788_v23, %v3595_v45  ;;  %2723 = vrot.lane.b32.xlu1 %v2651_v20, %s10144_s23  ;;  %v4196_v43 = vmul.f32 %v12430_v37, %v3928_v25  ;;  %v9804_v33 = vld [vmem:[%s14945_s3 + $0x2f8] sm:$0xff]   ;;  %v3034_v20 = vrot.slane %v12462_v46, 6 }
 0x1a2   :  { %3726 = vrot.lane.b32.xlu0 %v3657_v12, %s10146_s19  ;;  %v12578_v15 = vpop.permute.xlu1 %2695  ;;  %v4023_v60 = vcombine.low %v3928_v25, %v3929_v55  ;;  %v4197_v42 = vmul.f32 %v15104_v2, %v3929_v55  ;;  %v9803_v25 = vld [vmem:[%s14945_s3 + $0x270] sm:$0xff]   ;;  %v3372_v55 = vrot.slane %v12563_v40, 1 }
 0x1a3   :  { %v3930_v24 = vmax.f32 %v3882_v36, 0.0  ;;  %v3931_v12 = vmax.f32 %v3883_v56, 0.0  ;;  %9247 = vmatpush3.bf16.msra.mxu0 %v9795_v47  ;;  %v12592_v26 = vpop.permute.xlu0 %2693  ;;  %v4244_v37 = vpack.c.bf16 %v4196_v43, %v4196_v43  ;;  %9267 = vmatpush3.bf16.msra.mxu1 %v9796_v27  ;;  %v3029_v47 = vsel %vm2963_vm4, %v3027_v51, %v3028_v16  ;;  %v9805_v16 = vld [vmem:[%s14945_s3 + $0x230] sm:$0xff]  }
 0x1a4   :  { %4071 = vst [vmem:[%s14947_s5 + $0x10] sm:$0x77] %v4023_v60  ;;  %v4245_v45 = vpack.c.bf16 %v4197_v42, %v4197_v42  ;;  %9276 = vmatprep.subr.bf16.mxu0 %v9799_v58  ;;  %9268 = vmatprep.subr.bf16.mxu1 %v9798_v29  ;;  %v3036_v27 = vrot.slane %v12508_v48, 6  ;;  %v3037_v36 = vrot.slane %v12563_v40, 6  ;;  %v12614_v58 = vpop.f32.mrf.mxu0  ;;  %v9806_v60 = vld [vmem:[%s14945_s3 + $0x2b8] sm:$0xff]   ;;  %v9807_v42 = vld [vmem:[%s14945_s3 + $0x268] sm:$0xff]  }
 0x1a5   :  { %v4198_v39 = vmul.f32 %v12541_v30, %v3930_v24  ;;  %v4024_v23 = vcombine.low %v3930_v24, %v3931_v12  ;;  %v4199_v51 = vmul.f32 %v4147_v50, %v3931_v12  ;;  %v1946_v30 = vpop.f32.mrf.mxu1  ;;  %3444 = vrot.lane.b32.xlu1 %v3372_v55, %s10145_s12  ;;  %v3035_v50 = vsel %vm2963_vm4, %v3033_v14, %v3034_v20  ;;  %v9808_v24 = vld [vmem:[%s14945_s3 + $0x2f0] sm:$0xff]   ;;  %v9811_v20 = vld [vmem:[%s14945_s3 + $0x260] sm:$0xff]  }
 0x1a6   :  { %7476 = vmatprep.mubr.bf16.mxu0 %v4245_v45  ;;  %3150 = vrot.lane.b32.xlu0 %v3029_v47, %s10147_s29  ;;  %v12616_v56 = vpop.permute.xlu1 %3416  ;;  %v12637_v12 = vpop.f32.mrf.mxu0  ;;  %v3659_v45 = vrot.slane %v12462_v46, 4  ;;  %v12655_v47 = vadd.f32 %v12510_v0, %v12365_v53  ;;  %v9812_v46 = vld [vmem:[%s14945_s3 + $0x2e8] sm:$0xff]  }
 0x1a7   :  { %4072 = vst [vmem:[%s14947_s5 + $0x18] sm:$0x77] %v4024_v23  ;;  %7477 = vmatmul.mubr.bf16.vlgmr.msra.gmra.mxu0 %v4244_v37  ;;  %v12625_v29 = vpop.permute.xlu0 %2697  ;;  %v4246_v43 = vpack.c.bf16 %v4198_v39, %v4198_v39  ;;  %9269 = vmatpush3.bf16.msra.mxu1 %v9800_v44  ;;  %v4247_v2 = vpack.c.bf16 %v4199_v51, %v4199_v51  ;;  %v9809_v37 = vld [vmem:[%s14945_s3 + $0x228] sm:$0xff]   ;;  %v3660_v39 = vrot.slane %v12563_v40, 4 }
 0x1a8   :  { %9277 = vmatpush3.bf16.msra.mxu0 %v9801_v13  ;;  %9298 = vmatprep.subr.bf16.mxu1 %v9804_v33  ;;  %v3038_v44 = vsel %vm2963_vm4, %v3036_v27, %v3037_v36  ;;  %v9810_v33 = vld [vmem:[%s14945_s3 + $0x2b0] sm:$0xff]   ;;  %v12662_v23 = vadd.f32 %v1944_v41, %v12433_v34  ;;  %v12667_v55 = vpop.f32.mrf.mxu0  ;;  %v9813_v34 = vld [vmem:[%s14945_s3 + $0x220] sm:$0xff]   ;;  %v2652_v40 = vrot.slane %v12655_v47, 3  ;;  %v12680_v41 = vadd.f32 %v1946_v30, %v12477_v21  ;;  %v9814_v36 = vld [vmem:[%s14945_s3 + $0x2a8] sm:$0xff]  }
 0x1a9   :  { %9278 = vmatprep.subr.bf16.mxu0 %v9803_v25  ;;  %7516 = vmatprep.mubr.bf16.mxu1 %v4247_v2  ;;  %v1948_v25 = vpop.f32.mrf.mxu1  ;;  %v9816_v21 = vld [vmem:[%s14945_s3 + $0x2e0] sm:$0xff]   ;;  %v9817_v2 = vld [vmem:[%s14945_s3 + $0x218] sm:$0xff]  }
 0x1aa   :  { %3154 = vrot.lane.b32.xlu0 %v3035_v50, %s10147_s29  ;;  %v12641_v13 = vpop.permute.xlu1 %3704  ;;  %3156 = vrot.lane.b32.xlu1 %v3038_v44, %s10147_s29  ;;  %v2653_v51 = vrot.slane %v12662_v23, 3  ;;  %v12710_v50 = vpop.f32.mrf.mxu0  ;;  %v2780_v44 = vsel %vm2771_vm10, %v12425_v5, %v12592_v26  ;;  %v9820_v5 = vld [vmem:[%s14945_s3 + $0x2d8] sm:$0xff]  }
 0x1ab   :  { %7517 = vmatmul.mubr.bf16.vlgmr.msra.gmra.mxu1 %v4246_v43  ;;  %v12647_v14 = vpop.permute.xlu0 %3414  ;;  %v1950_v0 = vpop.f32.mrf.mxu1  ;;  %v9815_v43 = vld [vmem:[%s14945_s3 + $0x258] sm:$0xff]  }
 0x1ac   :  { %9279 = vmatpush3.bf16.msra.mxu0 %v9805_v16  ;;  %9299 = vmatpush3.bf16.msra.mxu1 %v9806_v60  ;;  %v12687_v16 = vadd.f32 %v1948_v25, %v12521_v28  ;;  %v12699_v60 = vadd.f32 %v12600_v31, %v12422_v1  ;;  %v12716_v1 = vld [vmem:[%s14946_s2 + $0x20] sm:$0x77]  ;;  %v2654_v31 = vrot.slane %v12680_v41, 3  ;;  %v9819_v25 = vld [vmem:[%s14945_s3 + $0x250] sm:$0xff]  }
 0x1ad   :  { %9280 = vmatprep.subr.bf16.mxu0 %v9807_v42  ;;  %9300 = vmatprep.subr.bf16.mxu1 %v9808_v24  ;;  %v12695_v30 = vpop.f32.mrf.mxu1  ;;  %v9818_v42 = vld [vmem:[%s14945_s3 + $0x2a0] sm:$0xff]  }
 0x1ae   :  { %3730 = vrot.lane.b32.xlu0 %v3659_v45, %s10146_s19  ;;  %v12670_v53 = vpop.permute.xlu1 %3128  ;;  %3732 = vrot.lane.b32.xlu1 %v3660_v39, %s10146_s19  ;;  %v9821_v39 = vld [vmem:[%s14945_s3 + $0x210] sm:$0xff]  }
 0x1af   :  { %v12673_v27 = vpop.permute.xlu0 %3418  ;;  %v12729_v45 = vpop.f32.mrf.mxu1 }
 0x1b0   :  { %9281 = vmatpush3.bf16.msra.mxu0 %v9809_v37  ;;  %9301 = vmatpush3.bf16.msra.mxu1 %v9810_v33  ;;  %v2781_v37 = vsel %vm2771_vm10, %v12592_v26, %v12578_v15  ;;  %v3374_v33 = vrot.slane %v12687_v16, 1 }
 0x1b1   :  { %9282 = vmatprep.subr.bf16.mxu0 %v9811_v20  ;;  %9302 = vmatprep.subr.bf16.mxu1 %v9812_v46  ;;  %v3373_v20 = vrot.slane %v12699_v60, 1  ;;  %v9822_v46 = vld [vmem:[%s14945_s3 + $0x298] sm:$0xff]  }
 0x1b2   :  { %2725 = vrot.lane.b32.xlu0 %v2652_v40, %s10144_s23  ;;  %v12702_v28 = vpop.permute.xlu1 %2699  ;;  %2727 = vrot.lane.b32.xlu1 %v2653_v51, %s10144_s23  ;;  %v2875_v40 = vadd.f32 %v2780_v44, %v12087_v63  ;;  %v12749_v51 = vadd.f32 %v1950_v0, %v12559_v52  ;;  %v3043_v0 = vrot.slane %v12687_v16, 6  ;;  %v3662_v44 = vrot.slane %v12687_v16, 4 }
 0x1b3   :  { %v3703_v24 = vpop.permute.xlu0 %3702  ;;  %v2783_v63 = vsel %vm2771_vm10, %v12625_v29, %v12702_v28 }
 0x1b4   :  { %9283 = vmatpush3.bf16.msra.mxu0 %v9813_v34  ;;  %9303 = vmatpush3.bf16.msra.mxu1 %v9814_v36  ;;  %v2876_v36 = vadd.f32 %v2781_v37, %v12110_v3  ;;  %v3042_v34 = vrot.slane %v12662_v23, 6 }
 0x1b5   :  { %9284 = vmatprep.subr.bf16.mxu0 %v9815_v43  ;;  %9304 = vmatprep.subr.bf16.mxu1 %v9816_v21  ;;  %v2782_v43 = vsel %vm2771_vm10, %v12578_v15, %v12625_v29  ;;  %v1997_v21 = vpop.f32.mrf.mxu0  ;;  %v9824_v15 = vld [vmem:[%s14945_s3 + $0x2d0] sm:$0xff]   ;;  %v12771_v29 = vpop.f32.mrf.mxu1 }
 0x1b6   :  { %2729 = vrot.lane.b32.xlu0 %v2654_v31, %s10144_s23  ;;  %v12736_v26 = vpop.permute.xlu1 %3420  ;;  %3448 = vrot.lane.b32.xlu1 %v3374_v33, %s10145_s12 }
 0x1b7   :  { %v3127_v31 = vpop.permute.xlu0 %3126 }
 0x1b8   :  { %9285 = vmatpush3.bf16.msra.mxu0 %v9817_v2  ;;  %9305 = vmatpush3.bf16.msra.mxu1 %v9818_v42  ;;  %v3213_v3 = vsel %vm3204_vm11, %v12513_v49, %v3127_v31  ;;  %v3214_v52 = vsel %vm3204_vm11, %v3127_v31, %v12670_v53  ;;  %v2877_v2 = vadd.f32 %v2782_v43, %v12107_v61  ;;  %v12789_v61 = vpop.f32.mrf.mxu0 }
 0x1b9   :  { %v3308_v37 = vadd.f32 %v3213_v3, %v2875_v40  ;;  %v3309_v33 = vadd.f32 %v3214_v52, %v2876_v36  ;;  %9286 = vmatprep.subr.bf16.mxu0 %v9819_v25  ;;  %9306 = vmatprep.subr.bf16.mxu1 %v9820_v5  ;;  %v3501_v49 = vsel %vm3492_vm3, %v12465_v10, %v12647_v14  ;;  %v9825_v25 = vld [vmem:[%s14945_s3 + $0x208] sm:$0xff]  }
 0x1ba   :  { %v3502_v42 = vsel %vm3492_vm3, %v12647_v14, %v12616_v56  ;;  %v12781_v31 = vadd.f32 %v1997_v21, %v12614_v58  ;;  %3446 = vrot.lane.b32.xlu0 %v3373_v20, %s10145_s12  ;;  %v12784_v16 = vpop.permute.xlu1 %3132  ;;  %v3789_v10 = vsel %vm3780_vm2, %v12553_v19, %v3703_v24  ;;  %v2878_v5 = vadd.f32 %v2783_v63, %v12114_v22  ;;  %v9826_v22 = vld [vmem:[%s14945_s3 + $0x290] sm:$0xff]   ;;  %v9827_v21 = vld [vmem:[%s14945_s3 + $0x240] sm:$0xff]   ;;  %v9828_v52 = vld [vmem:[%s14945_s3 + $0x2c8] sm:$0xff]  }
 0x1bb   :  { %v3596_v40 = vadd.f32 %v3501_v49, %v3308_v37  ;;  %v3597_v14 = vadd.f32 %v3502_v42, %v3309_v33  ;;  %3736 = vrot.lane.b32.xlu1 %v3662_v44, %s10146_s19  ;;  %v3131_v58 = vpop.permute.xlu0 %3130  ;;  %v3375_v20 = vrot.slane %v12749_v51, 1  ;;  %v3790_v36 = vsel %vm3780_vm2, %v3703_v24, %v12641_v13  ;;  %v9829_v33 = vld [vmem:[%s14945_s3 + $0x200] sm:$0xff]   ;;  %v2001_v42 = vpop.f32.mrf.mxu0 }
 0x1bc   :  { %9287 = vmatpush3.bf16.msra.mxu0 %v9821_v39  ;;  %9307 = vmatpush3.bf16.msra.mxu1 %v9822_v46  ;;  %v3215_v43 = vsel %vm3204_vm11, %v12670_v53, %v3131_v58  ;;  %v3216_v19 = vsel %vm3204_vm11, %v3131_v58, %v12784_v16  ;;  %v3039_v63 = vrot.slane %v12655_v47, 6  ;;  %v12809_v46 = vpop.f32.mrf.mxu1  ;;  %v12814_v53 = vld [vmem:[%s14946_s2 + $0x28] sm:$0x77]  ;;  %v3503_v44 = vsel %vm3492_vm3, %v12616_v56, %v12673_v27 }
 0x1bd   :  { %v3884_v3 = vadd.f32 %v3789_v10, %v3596_v40  ;;  %v3310_v24 = vadd.f32 %v3215_v43, %v2877_v2  ;;  %v3311_v39 = vadd.f32 %v3216_v19, %v2878_v5  ;;  %9288 = vmatprep.subr.bf16.mxu0 %v9823_v8  ;;  %9308 = vmatprep.subr.bf16.mxu1 %v9824_v15  ;;  %v9830_v2 = vld [vmem:[%s14945_s3 + $0x288] sm:$0xff]   ;;  %v3661_v56 = vrot.slane %v12699_v60, 4 }
 0x1be   :  { %v3504_v37 = vsel %vm3492_vm3, %v12673_v27, %v12736_v26  ;;  %v3044_v8 = vsel %vm2963_vm4, %v3042_v34, %v3043_v0  ;;  %3450 = vrot.lane.b32.xlu0 %v3375_v20, %s10145_s12  ;;  %v12827_v15 = vpop.permute.xlu1 %3708  ;;  %v3885_v49 = vadd.f32 %v3790_v36, %v3597_v14  ;;  %v12838_v5 = vadd.f32 %v2001_v42, %v12667_v55  ;;  %v9832_v20 = vld [vmem:[%s14945_s3 + $0x2c0] sm:$0xff]   ;;  %v12848_v43 = vpop.f32.mrf.mxu1 }
 0x1bf   :  { %v3932_v10 = vmax.f32 %v3884_v3, 0.0  ;;  %3160 = vrot.lane.b32.xlu1 %v3044_v8, %s10147_s29  ;;  %v3598_v27 = vadd.f32 %v3503_v44, %v3310_v24  ;;  %v3707_v34 = vpop.permute.xlu0 %3706  ;;  %v3599_v0 = vadd.f32 %v3504_v37, %v3311_v39  ;;  %v2655_v36 = vrot.slane %v12781_v31, 3  ;;  %v12876_v42 = vpop.f32.mrf.mxu0 }
 0x1c0   :  { %9289 = vmatpush3.bf16.msra.mxu0 %v9825_v25  ;;  %9309 = vmatpush3.bf16.msra.mxu1 %v9826_v22  ;;  %v3791_v40 = vsel %vm3780_vm2, %v12641_v13, %v3707_v34  ;;  %v3792_v14 = vsel %vm3780_vm2, %v3707_v34, %v12827_v15  ;;  %v3933_v58 = vmax.f32 %v3885_v49, 0.0  ;;  %v9833_v13 = vld [vmem:[%s14945_s3 + $0x378] sm:$0xff]   ;;  %v3040_v22 = vrot.slane %v12699_v60, 6  ;;  %v9837_v34 = vld [vmem:[%s14945_s3 + $0x370] sm:$0xff]  }
 0x1c1   :  { %v3886_v19 = vadd.f32 %v3791_v40, %v3598_v27  ;;  %v3887_v55 = vadd.f32 %v3792_v14, %v3599_v0  ;;  %9290 = vmatprep.subr.bf16.mxu0 %v9827_v21  ;;  %9310 = vmatprep.subr.bf16.mxu1 %v9828_v52  ;;  %v4200_v25 = vmul.f32 %v12716_v1, %v3932_v10  ;;  %v9834_v21 = vld [vmem:[%s14945_s3 + $0x280] sm:$0xff]   ;;  %v3045_v37 = vrot.slane %v12680_v41, 6 }
 0x1c2   :  { %3734 = vrot.lane.b32.xlu0 %v3661_v56, %s10146_s19  ;;  %v12856_v3 = vpop.permute.xlu1 %2703  ;;  %v4025_v24 = vcombine.low %v3932_v10, %v3933_v58  ;;  %v15105_v39 = vcombine.high %v12716_v1, %v12716_v1  ;;  %v4149_v52 = vcombine.high %v12814_v53, %v12814_v53  ;;  %v9835_v1 = vld [vmem:[%s14945_s3 + $0x338] sm:$0xff]   ;;  %v3046_v0 = vrot.slane %v12749_v51, 6 }
 0x1c3   :  { %v3934_v8 = vmax.f32 %v3886_v19, 0.0  ;;  %v3935_v60 = vmax.f32 %v3887_v55, 0.0  ;;  %2731 = vrot.lane.b32.xlu1 %v2655_v36, %s10144_s23  ;;  %v12868_v49 = vpop.permute.xlu0 %2701  ;;  %v9838_v56 = vld [vmem:[%s14945_s3 + $0x3f8] sm:$0xff]   ;;  %v4248_v27 = vpack.c.bf16 %v4200_v25, %v4200_v25  ;;  %v3376_v40 = vrot.slane %v12838_v5, 1  ;;  %v2052_v36 = vpop.f32.mrf.mxu1 }
 0x1c4   :  { %v4201_v44 = vmul.f32 %v15105_v39, %v3933_v58  ;;  %9291 = vmatpush3.bf16.msra.mxu0 %v9829_v33  ;;  %9311 = vmatpush3.bf16.msra.mxu1 %v9830_v2  ;;  %4073 = vst [vmem:[%s14947_s5 + $0x20] sm:$0x77] %v4025_v24  ;;  %v3048_v33 = vrot.slane %v12781_v31, 6  ;;  %v3049_v2 = vrot.slane %v12838_v5, 6  ;;  %v3041_v19 = vsel %vm2963_vm4, %v3039_v63, %v3040_v22  ;;  %v12892_v55 = vpop.f32.mrf.mxu0  ;;  %v9840_v22 = vld [vmem:[%s14945_s3 + $0x3b8] sm:$0xff]  }
 0x1c5   :  { %v4202_v14 = vmul.f32 %v12814_v53, %v3934_v8  ;;  %v4026_v58 = vcombine.low %v3934_v8, %v3935_v60  ;;  %9312 = vmatprep.subr.bf16.mxu1 %v9832_v20  ;;  %9320 = vmatprep.subr.bf16.mxu0 %v9833_v13  ;;  %v4203_v24 = vmul.f32 %v4149_v52, %v3935_v60  ;;  %v9839_v20 = vld [vmem:[%s14945_s3 + $0x330] sm:$0xff]   ;;  %v2054_v39 = vpop.f32.mrf.mxu1 }
 0x1c6   :  { %v4249_v10 = vpack.c.bf16 %v4201_v44, %v4201_v44  ;;  %v12894_v25 = vpop.permute.xlu1 %3424  ;;  %3158 = vrot.lane.b32.xlu0 %v3041_v19, %s10147_s29  ;;  %v9841_v44 = vld [vmem:[%s14945_s3 + $0x368] sm:$0xff]   ;;  %v12912_v52 = vpop.f32.mrf.mxu0  ;;  %v3047_v8 = vsel %vm2963_vm4, %v3045_v37, %v3046_v0  ;;  %v3663_v37 = vrot.slane %v12749_v51, 4  ;;  %v3664_v0 = vrot.slane %v12838_v5, 4  ;;  %v9845_v51 = vld [vmem:[%s14945_s3 + $0x360] sm:$0xff]  }
 0x1c7   :  { %4074 = vst [vmem:[%s14947_s5 + $0x28] sm:$0x77] %v4026_v58  ;;  %3452 = vrot.lane.b32.xlu1 %v3376_v40, %s10145_s12  ;;  %v12901_v53 = vpop.permute.xlu0 %2705  ;;  %v4251_v63 = vpack.c.bf16 %v4203_v24, %v4203_v24  ;;  %v4250_v13 = vpack.c.bf16 %v4202_v14, %v4202_v14  ;;  %v12939_v40 = vadd.f32 %v12848_v43, %v12695_v30  ;;  %v2056_v14 = vpop.f32.mrf.mxu1  ;;  %v9846_v30 = vld [vmem:[%s14945_s3 + $0x3e8] sm:$0xff]   ;;  %v9849_v24 = vld [vmem:[%s14945_s3 + $0x358] sm:$0xff]  }
 0x1c8   :  { %7556 = vmatprep.mubr.bf16.mxu0 %v4249_v10  ;;  %9313 = vmatpush3.bf16.msra.mxu1 %v9834_v21  ;;  %v3050_v21 = vsel %vm2963_vm4, %v3048_v33, %v3049_v2  ;;  %v9842_v10 = vld [vmem:[%s14945_s3 + $0x3f0] sm:$0xff]   ;;  %v9848_v43 = vld [vmem:[%s14945_s3 + $0x3a8] sm:$0xff]   ;;  %v12968_v19 = vadd.f32 %v2052_v36, %v12729_v45  ;;  %v12985_v36 = vadd.f32 %v12876_v42, %v12710_v50 }
 0x1c9   :  { %7557 = vmatmul.mubr.bf16.vlgmr.msra.gmra.mxu0 %v4248_v27  ;;  %9342 = vmatprep.subr.bf16.mxu1 %v9838_v56  ;;  %v9843_v56 = vld [vmem:[%s14945_s3 + $0x328] sm:$0xff]   ;;  %v12931_v27 = vadd.f32 %v12789_v61, %v12637_v12  ;;  %v12945_v12 = vadd.f32 %v2054_v39, %v12771_v29  ;;  %v12947_v61 = vpop.f32.mrf.mxu0  ;;  %v9847_v29 = vld [vmem:[%s14945_s3 + $0x320] sm:$0xff]   ;;  %v12964_v33 = vpop.f32.mrf.mxu1  ;;  %v2784_v50 = vsel %vm2771_vm10, %v12702_v28, %v12868_v49 }
 0x1ca   :  { %9321 = vmatpush3.bf16.msra.mxu0 %v9835_v1  ;;  %7596 = vmatprep.mubr.bf16.mxu1 %v4251_v63  ;;  %v12916_v60 = vpop.permute.xlu1 %3712  ;;  %v9850_v63 = vld [vmem:[%s14945_s3 + $0x3e0] sm:$0xff]   ;;  %v2785_v42 = vsel %vm2771_vm10, %v12868_v49, %v12856_v3 }
 0x1cb   :  { %9322 = vmatprep.subr.bf16.mxu0 %v9837_v34  ;;  %3162 = vrot.lane.b32.xlu0 %v3047_v8, %s10147_s29  ;;  %v12923_v1 = vpop.permute.xlu0 %3422  ;;  %v9844_v34 = vld [vmem:[%s14945_s3 + $0x3b0] sm:$0xff]   ;;  %v2656_v2 = vrot.slane %v12931_v27, 3  ;;  %v12979_v39 = vpop.f32.mrf.mxu0  ;;  %v9851_v8 = vld [vmem:[%s14945_s3 + $0x318] sm:$0xff]  }
 0x1cc   :  { %3164 = vrot.lane.b32.xlu1 %v3050_v21, %s10147_s29  ;;  %7597 = vmatmul.mubr.bf16.vlgmr.msra.gmra.mxu1 %v4250_v13  ;;  %v3054_v13 = vrot.slane %v12939_v40, 6  ;;  %v9852_v21 = vld [vmem:[%s14945_s3 + $0x3a0] sm:$0xff]  }
 0x1cd   :  { %9343 = vmatpush3.bf16.msra.mxu1 %v9840_v22  ;;  %v3055_v22 = vrot.slane %v12945_v12, 6  ;;  %v2103_v28 = vpop.f32.mrf.mxu0 }
 0x1ce   :  { %9323 = vmatpush3.bf16.msra.mxu0 %v9839_v20  ;;  %9344 = vmatprep.subr.bf16.mxu1 %v9842_v10  ;;  %v12949_v58 = vpop.permute.xlu1 %3136  ;;  %v2657_v20 = vrot.slane %v12939_v40, 3  ;;  %v12995_v10 = vpop.f32.mrf.mxu1 }
 0x1cf   :  { %9324 = vmatprep.subr.bf16.mxu0 %v9841_v44  ;;  %3738 = vrot.lane.b32.xlu0 %v3663_v37, %s10146_s19  ;;  %v12956_v5 = vpop.permute.xlu0 %3426  ;;  %v9853_v37 = vld [vmem:[%s14945_s3 + $0x350] sm:$0xff]   ;;  %v3056_v49 = vsel %vm2963_vm4, %v3054_v13, %v3055_v22  ;;  %v9856_v22 = vld [vmem:[%s14945_s3 + $0x398] sm:$0xff]  }
 0x1d0   :  { %3740 = vrot.lane.b32.xlu1 %v3664_v0, %s10146_s19  ;;  %v9854_v0 = vld [vmem:[%s14945_s3 + $0x3d8] sm:$0xff]   ;;  %v9855_v13 = vld [vmem:[%s14945_s3 + $0x310] sm:$0xff]  }
 0x1d1   :  { %9345 = vmatpush3.bf16.msra.mxu1 %v9844_v34  ;;  %v3378_v34 = vrot.slane %v12945_v12, 1 }
 0x1d2   :  { %9325 = vmatpush3.bf16.msra.mxu0 %v9843_v56  ;;  %9346 = vmatprep.subr.bf16.mxu1 %v9846_v30  ;;  %v12981_v45 = vpop.permute.xlu1 %2707  ;;  %v2658_v56 = vrot.slane %v12968_v19, 3 }
 0x1d3   :  { %9326 = vmatprep.subr.bf16.mxu0 %v9845_v51  ;;  %2733 = vrot.lane.b32.xlu0 %v2656_v2, %s10144_s23  ;;  %v3711_v44 = vpop.permute.xlu0 %3710  ;;  %v13012_v51 = vadd.f32 %v2056_v14, %v12809_v46  ;;  %v13020_v2 = vld [vmem:[%s14946_s2 + $0x30] sm:$0x77]  ;;  %v2786_v46 = vsel %vm2771_vm10, %v12856_v3, %v12901_v53 }
 0x1d4   :  { %2735 = vrot.lane.b32.xlu1 %v2657_v20, %s10144_s23  ;;  %v2880_v20 = vadd.f32 %v2785_v42, %v12152_v62  ;;  %v2881_v42 = vadd.f32 %v2786_v46, %v12149_v32 }
 0x1d5   :  { %9347 = vmatpush3.bf16.msra.mxu1 %v9848_v43  ;;  %v2879_v43 = vadd.f32 %v2784_v50, %v12129_v18  ;;  %v2787_v18 = vsel %vm2771_vm10, %v12901_v53, %v12981_v45  ;;  %v4150_v50 = vcombine.high %v13020_v2, %v13020_v2 }
 0x1d6   :  { %9327 = vmatpush3.bf16.msra.mxu0 %v9847_v29  ;;  %9348 = vmatprep.subr.bf16.mxu1 %v9850_v63  ;;  %v13014_v30 = vpop.permute.xlu1 %3428  ;;  %v3377_v29 = vrot.slane %v12985_v36, 1  ;;  %v13033_v63 = vadd.f32 %v2103_v28, %v12892_v55  ;;  %v3666_v55 = vrot.slane %v12945_v12, 4  ;;  %v3506_v12 = vsel %vm3492_vm3, %v12923_v1, %v12894_v25 }
 0x1d7   :  { %9328 = vmatprep.subr.bf16.mxu0 %v9849_v24  ;;  %2737 = vrot.lane.b32.xlu0 %v2658_v56, %s10144_s23  ;;  %v3135_v14 = vpop.permute.xlu0 %3134  ;;  %v13030_v24 = vpop.f32.mrf.mxu1  ;;  %v2882_v28 = vadd.f32 %v2787_v18, %v12156_v11  ;;  %v3793_v11 = vsel %vm3780_vm2, %v12827_v15, %v3711_v44  ;;  %v3379_v18 = vrot.slane %v13012_v51, 1 }
 0x1d8   :  { %3456 = vrot.lane.b32.xlu1 %v3378_v34, %s10145_s12  ;;  %v3217_v62 = vsel %vm3204_vm11, %v12784_v16, %v3135_v14  ;;  %v3218_v3 = vsel %vm3204_vm11, %v3135_v14, %v12949_v58  ;;  %v9857_v16 = vld [vmem:[%s14945_s3 + $0x348] sm:$0xff]   ;;  %v3505_v34 = vsel %vm3492_vm3, %v12736_v26, %v12923_v1  ;;  %v13088_v14 = vld [vmem:[%s14946_s2 + $0x38] sm:$0x77] }
 0x1d9   :  { %9349 = vmatpush3.bf16.msra.mxu1 %v9852_v21  ;;  %v3312_v56 = vadd.f32 %v3217_v62, %v2879_v43  ;;  %v3313_v53 = vadd.f32 %v3218_v3, %v2880_v20  ;;  %v9858_v21 = vld [vmem:[%s14945_s3 + $0x3d0] sm:$0xff]   ;;  %v13069_v20 = vpop.f32.mrf.mxu1  ;;  %v9859_v1 = vld [vmem:[%s14945_s3 + $0x308] sm:$0xff]   ;;  %v13091_v62 = vpop.f32.mrf.mxu0 }
 0x1da   :  { %9329 = vmatpush3.bf16.msra.mxu0 %v9851_v8  ;;  %9350 = vmatprep.subr.bf16.mxu1 %v9854_v0  ;;  %v13061_v8 = vpop.permute.xlu1 %3140  ;;  %v3794_v0 = vsel %vm3780_vm2, %v3711_v44, %v12916_v60 }
 0x1db   :  { %9330 = vmatprep.subr.bf16.mxu0 %v9853_v37  ;;  %v3600_v43 = vadd.f32 %v3505_v34, %v3312_v56  ;;  %v3601_v32 = vadd.f32 %v3506_v12, %v3313_v53  ;;  %3454 = vrot.lane.b32.xlu0 %v3377_v29, %s10145_s12  ;;  %v3139_v26 = vpop.permute.xlu0 %3138  ;;  %v9860_v37 = vld [vmem:[%s14945_s3 + $0x390] sm:$0xff]   ;;  %v3507_v56 = vsel %vm3492_vm3, %v12894_v25, %v12956_v5  ;;  %v3665_v34 = vrot.slane %v12985_v36, 4  ;;  %v13111_v25 = vpop.f32.mrf.mxu1 }
 0x1dc   :  { %3744 = vrot.lane.b32.xlu1 %v3666_v55, %s10146_s19  ;;  %v3219_v29 = vsel %vm3204_vm11, %v12949_v58, %v3139_v26  ;;  %v3220_v46 = vsel %vm3204_vm11, %v3139_v26, %v13061_v8  ;;  %v9861_v58 = vld [vmem:[%s14945_s3 + $0x340] sm:$0xff]   ;;  %v3051_v55 = vrot.slane %v12931_v27, 6  ;;  %v3508_v53 = vsel %vm3492_vm3, %v12956_v5, %v13014_v30 }
 0x1dd   :  { %v3888_v3 = vadd.f32 %v3793_v11, %v3600_v43  ;;  %9351 = vmatpush3.bf16.msra.mxu1 %v9856_v22  ;;  %v3314_v15 = vadd.f32 %v3219_v29, %v2881_v42  ;;  %v3315_v44 = vadd.f32 %v3220_v46, %v2882_v28  ;;  %v9862_v22 = vld [vmem:[%s14945_s3 + $0x3c8] sm:$0xff]   ;;  %v3889_v42 = vadd.f32 %v3794_v0, %v3601_v32  ;;  %v2107_v29 = vpop.f32.mrf.mxu0 }
 0x1de   :  { %9331 = vmatpush3.bf16.msra.mxu0 %v9855_v13  ;;  %9352 = vmatprep.subr.bf16.mxu1 %v9858_v21  ;;  %v13103_v13 = vpop.permute.xlu1 %3716  ;;  %v9863_v21 = vld [vmem:[%s14945_s3 + $0x300] sm:$0xff]   ;;  %v4151_v11 = vcombine.high %v13088_v14, %v13088_v14  ;;  %v2659_v0 = vrot.slane %v13033_v63, 3 }
 0x1df   :  { %9332 = vmatprep.subr.bf16.mxu0 %v9857_v16  ;;  %v3936_v12 = vmax.f32 %v3888_v3, 0.0  ;;  %3458 = vrot.lane.b32.xlu0 %v3379_v18, %s10145_s12  ;;  %v3602_v28 = vadd.f32 %v3507_v56, %v3314_v15  ;;  %v3715_v5 = vpop.permute.xlu0 %3714  ;;  %v3603_v16 = vadd.f32 %v3508_v53, %v3315_v44  ;;  %v3937_v26 = vmax.f32 %v3889_v42, 0.0 }
 0x1e0   :  { %3168 = vrot.lane.b32.xlu1 %v3056_v49, %s10147_s29  ;;  %v3795_v43 = vsel %vm3780_vm2, %v12916_v60, %v3715_v5  ;;  %v3796_v32 = vsel %vm3780_vm2, %v3715_v5, %v13103_v13  ;;  %v9864_v49 = vld [vmem:[%s14945_s3 + $0x388] sm:$0xff]   ;;  %v9866_v60 = vld [vmem:[%s14945_s3 + $0x3c0] sm:$0xff]   ;;  %v3052_v15 = vrot.slane %v12985_v36, 6  ;;  %v13132_v44 = vadd.f32 %v2107_v29, %v12947_v61  ;;  %v13143_v5 = vpop.f32.mrf.mxu1 }
 0x1e1   :  { %9353 = vmatpush3.bf16.msra.mxu1 %v9860_v37  ;;  %v3890_v46 = vadd.f32 %v3795_v43, %v3602_v28  ;;  %v3891_v18 = vadd.f32 %v3796_v32, %v3603_v16  ;;  %v4204_v3 = vmul.f32 %v13020_v2, %v3936_v12  ;;  %v4027_v53 = vcombine.low %v3936_v12, %v3937_v26  ;;  %v9867_v37 = vld [vmem:[%s14945_s3 + $0x478] sm:$0xff]   ;;  %v9868_v2 = vld [vmem:[%s14945_s3 + $0x380] sm:$0xff]   ;;  %v9871_v32 = vld [vmem:[%s14945_s3 + $0x470] sm:$0xff]  }
 0x1e2   :  { %9333 = vmatpush3.bf16.msra.mxu0 %v9859_v1  ;;  %9354 = vmatprep.subr.bf16.mxu1 %v9862_v22  ;;  %v13134_v56 = vpop.permute.xlu1 %2711  ;;  %v4205_v1 = vmul.f32 %v4150_v50, %v3937_v26  ;;  %v3057_v42 = vrot.slane %v12968_v19, 6  ;;  %v3058_v50 = vrot.slane %v13012_v51, 6  ;;  %v3060_v12 = vrot.slane %v13033_v63, 6 }
 0x1e3   :  { %9334 = vmatprep.subr.bf16.mxu0 %v9861_v58  ;;  %v3938_v28 = vmax.f32 %v3890_v46, 0.0  ;;  %v3939_v36 = vmax.f32 %v3891_v18, 0.0  ;;  %3742 = vrot.lane.b32.xlu0 %v3665_v34, %s10146_s19  ;;  %v13147_v61 = vpop.permute.xlu0 %2709  ;;  %4075 = vst [vmem:[%s14947_s5 + $0x30] sm:$0x77] %v4027_v53  ;;  %v4252_v22 = vpack.c.bf16 %v4204_v3, %v4204_v3  ;;  %v9869_v34 = vld [vmem:[%s14945_s3 + $0x438] sm:$0xff]   ;;  %v3380_v26 = vrot.slane %v13132_v44, 1 }
 0x1e4   :  { %2739 = vrot.lane.b32.xlu1 %v2659_v0, %s10144_s23  ;;  %v4253_v58 = vpack.c.bf16 %v4205_v1, %v4205_v1  ;;  %v2109_v0 = vpop.f32.mrf.mxu0  ;;  %v3053_v29 = vsel %vm2963_vm4, %v3051_v55, %v3052_v15  ;;  %v9873_v55 = vld [vmem:[%s14945_s3 + $0x430] sm:$0xff]   ;;  %v9874_v53 = vld [vmem:[%s14945_s3 + $0x4b8] sm:$0xff]   ;;  %v9875_v1 = vld [vmem:[%s14945_s3 + $0x468] sm:$0xff]  }
 0x1e5   :  { %v4206_v16 = vmul.f32 %v13088_v14, %v3938_v28  ;;  %v4028_v43 = vcombine.low %v3938_v28, %v3939_v36  ;;  %9355 = vmatpush3.bf16.msra.mxu1 %v9864_v49  ;;  %v4207_v18 = vmul.f32 %v4151_v11, %v3939_v36  ;;  %v9872_v14 = vld [vmem:[%s14945_s3 + $0x4f8] sm:$0xff]   ;;  %v2160_v49 = vpop.f32.mrf.mxu1  ;;  %v9876_v36 = vld [vmem:[%s14945_s3 + $0x4f0] sm:$0xff]  }
 0x1e6   :  { %9335 = vmatpush3.bf16.msra.mxu0 %v9863_v21  ;;  %7636 = vmatprep.mubr.bf16.mxu0 %v4253_v58  ;;  %v13166_v46 = vpop.permute.xlu1 %3432  ;;  %v3061_v21 = vrot.slane %v13132_v44, 6  ;;  %v13182_v11 = vpop.f32.mrf.mxu0  ;;  %v13198_v58 = vadd.f32 %v13091_v62, %v12912_v52  ;;  %v9878_v52 = vld [vmem:[%s14945_s3 + $0x4b0] sm:$0xff]   ;;  %v3667_v62 = vrot.slane %v13012_v51, 4 }
 0x1e7   :  { %9356 = vmatprep.subr.bf16.mxu1 %v9866_v60  ;;  %4076 = vst [vmem:[%s14947_s5 + $0x38] sm:$0x77] %v4028_v43  ;;  %9364 = vmatprep.subr.bf16.mxu0 %v9867_v37  ;;  %v13176_v60 = vpop.permute.xlu0 %2713  ;;  %v4255_v3 = vpack.c.bf16 %v4207_v18, %v4207_v18  ;;  %v4254_v15 = vpack.c.bf16 %v4206_v16, %v4206_v16  ;;  %v9882_v18 = vld [vmem:[%s14945_s3 + $0x4a8] sm:$0xff]  }
 0x1e8   :  { %3166 = vrot.lane.b32.xlu0 %v3053_v29, %s10147_s29  ;;  %3460 = vrot.lane.b32.xlu1 %v3380_v26, %s10145_s12  ;;  %v3059_v37 = vsel %vm2963_vm4, %v3057_v42, %v3058_v50  ;;  %v9877_v42 = vld [vmem:[%s14945_s3 + $0x428] sm:$0xff]   ;;  %v13209_v50 = vpop.f32.mrf.mxu0  ;;  %v13217_v16 = vadd.f32 %v2109_v0, %v12979_v39  ;;  %v13227_v26 = vadd.f32 %v13111_v25, %v12964_v33  ;;  %v2660_v0 = vrot.slane %v13198_v58, 3 }
 0x1e9   :  { %7637 = vmatmul.mubr.bf16.vlgmr.msra.gmra.mxu0 %v4252_v22  ;;  %9357 = vmatpush3.bf16.msra.mxu1 %v9868_v2  ;;  %v13200_v2 = vpop.f32.mrf.mxu1  ;;  %v3062_v22 = vsel %vm2963_vm4, %v3060_v12, %v3061_v21  ;;  %v9879_v12 = vld [vmem:[%s14945_s3 + $0x460] sm:$0xff]   ;;  %v9880_v39 = vld [vmem:[%s14945_s3 + $0x4e8] sm:$0xff]   ;;  %v13251_v21 = vadd.f32 %v13143_v5, %v12995_v10 }
 0x1ea   :  { %9365 = vmatpush3.bf16.msra.mxu0 %v9869_v34  ;;  %7676 = vmatprep.mubr.bf16.mxu1 %v4255_v3  ;;  %v13191_v28 = vpop.permute.xlu1 %3720  ;;  %v13242_v25 = vpop.f32.mrf.mxu0  ;;  %v9884_v10 = vld [vmem:[%s14945_s3 + $0x4e0] sm:$0xff]   ;;  %v3381_v5 = vrot.slane %v13217_v16, 1 }
 0x1eb   :  { %9366 = vmatprep.subr.bf16.mxu0 %v9871_v32  ;;  %9386 = vmatprep.subr.bf16.mxu1 %v9872_v14  ;;  %v13204_v34 = vpop.permute.xlu0 %3430  ;;  %v13222_v43 = vpop.f32.mrf.mxu1  ;;  %v3668_v32 = vrot.slane %v13132_v44, 4  ;;  %v9881_v44 = vld [vmem:[%s14945_s3 + $0x420] sm:$0xff]  }
 0x1ec   :  { %3170 = vrot.lane.b32.xlu0 %v3059_v37, %s10147_s29  ;;  %3172 = vrot.lane.b32.xlu1 %v3062_v22, %s10147_s29  ;;  %v9886_v22 = vld [vmem:[%s14945_s3 + $0x4a0] sm:$0xff]  }
 0x1ed   :  { %7677 = vmatmul.mubr.bf16.vlgmr.msra.gmra.mxu1 %v4254_v15  ;;  %v13256_v3 = vpop.f32.mrf.mxu1  ;;  %v2661_v15 = vrot.slane %v13227_v26, 3 }
 0x1ee   :  { %9367 = vmatpush3.bf16.msra.mxu0 %v9873_v55  ;;  %9387 = vmatpush3.bf16.msra.mxu1 %v9874_v53  ;;  %v13229_v51 = vpop.permute.xlu1 %3144  ;;  %v9883_v55 = vld [vmem:[%s14945_s3 + $0x458] sm:$0xff]   ;;  %v13260_v53 = vadd.f32 %v2160_v49, %v13030_v24  ;;  %v3669_v24 = vrot.slane %v13217_v16, 4  ;;  %v13275_v49 = vpop.f32.mrf.mxu0 }
 0x1ef   :  { %9368 = vmatprep.subr.bf16.mxu0 %v9875_v1  ;;  %9388 = vmatprep.subr.bf16.mxu1 %v9876_v36  ;;  %v13236_v29 = vpop.permute.xlu0 %3434  ;;  %v9885_v36 = vld [vmem:[%s14945_s3 + $0x418] sm:$0xff]  }
 0x1f0   :  { %3746 = vrot.lane.b32.xlu0 %v3667_v62, %s10146_s19  ;;  %3748 = vrot.lane.b32.xlu1 %v3668_v32, %s10146_s19  ;;  %v2789_v62 = vsel %vm2771_vm10, %v13147_v61, %v13134_v56  ;;  %v13291_v32 = vpop.f32.mrf.mxu1  ;;  %v2209_v33 = vpop.f32.mrf.mxu0 }
 0x1f2   :  { %9369 = vmatpush3.bf16.msra.mxu0 %v9877_v42  ;;  %9389 = vmatpush3.bf16.msra.mxu1 %v9878_v52  ;;  %v13262_v1 = vpop.permute.xlu1 %2715  ;;  %v2662_v42 = vrot.slane %v13251_v21, 3  ;;  %v2788_v52 = vsel %vm2771_vm10, %v12981_v45, %v13147_v61  ;;  %v9888_v45 = vld [vmem:[%s14945_s3 + $0x4d8] sm:$0xff]   ;;  %v3066_v61 = vrot.slane %v13227_v26, 6 }
 0x1f3   :  { %9370 = vmatprep.subr.bf16.mxu0 %v9879_v12  ;;  %9390 = vmatprep.subr.bf16.mxu1 %v9880_v39  ;;  %v13269_v37 = vpop.permute.xlu0 %3718  ;;  %v9887_v12 = vld [vmem:[%s14945_s3 + $0x450] sm:$0xff]   ;;  %v3382_v39 = vrot.slane %v13260_v53, 1 }
 0x1f4   :  { %2741 = vrot.lane.b32.xlu0 %v2660_v0, %s10144_s23  ;;  %2743 = vrot.lane.b32.xlu1 %v2661_v15, %s10144_s23  ;;  %v2884_v15 = vadd.f32 %v2789_v62, %v12210_v4  ;;  %v2791_v4 = vsel %vm2771_vm10, %v13176_v60, %v13262_v1  ;;  %v3670_v62 = vrot.slane %v13260_v53, 4 }
 0x1f6   :  { %9371 = vmatpush3.bf16.msra.mxu0 %v9881_v44  ;;  %9391 = vmatpush3.bf16.msra.mxu1 %v9882_v18  ;;  %v13294_v0 = vpop.permute.xlu1 %3436  ;;  %v3067_v44 = vrot.slane %v13260_v53, 6  ;;  %v2883_v18 = vadd.f32 %v2788_v52, %v12170_v17  ;;  %v13326_v52 = vpop.f32.mrf.mxu1 }
 0x1f7   :  { %9372 = vmatprep.subr.bf16.mxu0 %v9883_v55  ;;  %9392 = vmatprep.subr.bf16.mxu1 %v9884_v10  ;;  %v13306_v55 = vadd.f32 %v13200_v2, %v13069_v20  ;;  %v2790_v10 = vsel %vm2771_vm10, %v13134_v56, %v13176_v60  ;;  %v3143_v14 = vpop.permute.xlu0 %3142  ;;  %v9890_v2 = vld [vmem:[%s14945_s3 + $0x498] sm:$0xff]  }
 0x1f8   :  { %2745 = vrot.lane.b32.xlu0 %v2662_v42, %s10144_s23  ;;  %3464 = vrot.lane.b32.xlu1 %v3382_v39, %s10145_s12  ;;  %v9889_v42 = vld [vmem:[%s14945_s3 + $0x410] sm:$0xff]   ;;  %v3221_v20 = vsel %vm3204_vm11, %v13061_v8, %v3143_v14  ;;  %v3222_v56 = vsel %vm3204_vm11, %v3143_v14, %v13229_v51  ;;  %v13330_v39 = vadd.f32 %v2209_v33, %v13182_v11  ;;  %v9891_v8 = vld [vmem:[%s14945_s3 + $0x448] sm:$0xff]  }
 0x1f9   :  { %v3316_v60 = vadd.f32 %v3221_v20, %v2883_v18  ;;  %v9892_v14 = vld [vmem:[%s14945_s3 + $0x4d0] sm:$0xff]   ;;  %v2885_v17 = vadd.f32 %v2790_v10, %v12207_v7  ;;  %v3509_v11 = vsel %vm3492_vm3, %v13014_v30, %v13204_v34  ;;  %v3510_v33 = vsel %vm3492_vm3, %v13204_v34, %v13166_v46  ;;  %v9895_v20 = vld [vmem:[%s14945_s3 + $0x440] sm:$0xff]  }
 0x1fa   :  { %9373 = vmatpush3.bf16.msra.mxu0 %v9885_v36  ;;  %9393 = vmatpush3.bf16.msra.mxu1 %v9886_v22  ;;  %v3317_v36 = vadd.f32 %v3222_v56, %v2884_v15  ;;  %v13332_v22 = vpop.permute.xlu1 %3148  ;;  %v3068_v53 = vsel %vm2963_vm4, %v3066_v61, %v3067_v44  ;;  %v9894_v7 = vld [vmem:[%s14945_s3 + $0x490] sm:$0xff]   ;;  %v3797_v30 = vsel %vm3780_vm2, %v13103_v13, %v13269_v37  ;;  %v4104_v44 = vld [vmem:[%s14946_s2 + $0x40] sm:$0x77]  ;;  %v3383_v15 = vrot.slane %v13306_v55, 1 }
 0x1fb   :  { %9374 = vmatprep.subr.bf16.mxu0 %v9887_v12  ;;  %9394 = vmatprep.subr.bf16.mxu1 %v9888_v45  ;;  %v9893_v12 = vld [vmem:[%s14945_s3 + $0x408] sm:$0xff]   ;;  %v13355_v45 = vpop.f32.mrf.mxu0  ;;  %v2886_v34 = vadd.f32 %v2791_v4, %v12219_v38  ;;  %v3604_v18 = vadd.f32 %v3509_v11, %v3316_v60  ;;  %v3147_v61 = vpop.permute.xlu0 %3146  ;;  %v3798_v10 = vsel %vm3780_vm2, %v13269_v37, %v13191_v28  ;;  %v3070_v56 = vrot.slane %v13306_v55, 6 }
 0x1fc   :  { %3462 = vrot.lane.b32.xlu0 %v3381_v5, %s10145_s12  ;;  %v3605_v5 = vadd.f32 %v3510_v33, %v3317_v36  ;;  %3752 = vrot.lane.b32.xlu1 %v3670_v62, %s10146_s19  ;;  %v3223_v38 = vsel %vm3204_vm11, %v13229_v51, %v3147_v61  ;;  %v3224_v13 = vsel %vm3204_vm11, %v3147_v61, %v13332_v22  ;;  %v13373_v4 = vpop.f32.mrf.mxu1  ;;  %v9896_v51 = vld [vmem:[%s14945_s3 + $0x4c8] sm:$0xff]  }
 0x1fd   :  { %v3892_v62 = vadd.f32 %v3797_v30, %v3604_v18  ;;  %v3318_v60 = vadd.f32 %v3223_v38, %v2885_v17  ;;  %v3319_v36 = vadd.f32 %v3224_v13, %v2886_v34  ;;  %v3511_v37 = vsel %vm3492_vm3, %v13166_v46, %v13236_v29  ;;  %v4105_v17 = vld [vmem:[%s14946_s2 + $0x48] sm:$0x77]  ;;  %v2213_v11 = vpop.f32.mrf.mxu0 }
 0x1fe   :  { %9375 = vmatpush3.bf16.msra.mxu0 %v9889_v42  ;;  %9395 = vmatpush3.bf16.msra.mxu1 %v9890_v2  ;;  %v3512_v42 = vsel %vm3492_vm3, %v13236_v29, %v13294_v0  ;;  %v9897_v29 = vld [vmem:[%s14945_s3 + $0x400] sm:$0xff]   ;;  %v13399_v18 = vadd.f32 %v2213_v11, %v13242_v25  ;;  %v2663_v38 = vrot.slane %v13330_v39, 3 }
 0x1ff   :  { %9376 = vmatprep.subr.bf16.mxu0 %v9891_v8  ;;  %9396 = vmatprep.subr.bf16.mxu1 %v9892_v14  ;;  %v13392_v2 = vpop.permute.xlu1 %3724  ;;  %v3893_v8 = vadd.f32 %v3798_v10, %v3605_v5  ;;  %v4152_v14 = vcombine.high %v4104_v44, %v4104_v44  ;;  %v3940_v33 = vmax.f32 %v3892_v62, 0.0  ;;  %v3606_v30 = vadd.f32 %v3511_v37, %v3318_v60  ;;  %v3723_v46 = vpop.permute.xlu0 %3722 }
 0x200   :  { %3466 = vrot.lane.b32.xlu0 %v3383_v15, %s10145_s12  ;;  %3176 = vrot.lane.b32.xlu1 %v3068_v53, %s10147_s29  ;;  %v3607_v34 = vadd.f32 %v3512_v42, %v3319_v36  ;;  %v3799_v5 = vsel %vm3780_vm2, %v13191_v28, %v3723_v46  ;;  %v3800_v61 = vsel %vm3780_vm2, %v3723_v46, %v13392_v2  ;;  %v13405_v15 = vpop.f32.mrf.mxu1  ;;  %v9898_v53 = vld [vmem:[%s14945_s3 + $0x488] sm:$0xff]   ;;  %v9900_v28 = vld [vmem:[%s14945_s3 + $0x4c0] sm:$0xff]   ;;  %v3384_v46 = vrot.slane %v13399_v18, 1 }
 0x201   :  { %v3941_v10 = vmax.f32 %v3893_v8, 0.0  ;;  %v3894_v13 = vadd.f32 %v3799_v5, %v3606_v30 }
 0x202   :  { %9377 = vmatpush3.bf16.msra.mxu0 %v9893_v12  ;;  %9397 = vmatpush3.bf16.msra.mxu1 %v9894_v7  ;;  %v3895_v25 = vadd.f32 %v3800_v61, %v3607_v34  ;;  %v4208_v12 = vmul.f32 %v4104_v44, %v3940_v33  ;;  %v3072_v7 = vrot.slane %v13330_v39, 6  ;;  %v13423_v44 = vpop.f32.mrf.mxu0  ;;  %v2266_v11 = vpop.f32.mrf.mxu1 }
 0x203   :  { %9378 = vmatprep.subr.bf16.mxu0 %v9895_v20  ;;  %9398 = vmatprep.subr.bf16.mxu1 %v9896_v51  ;;  %v13418_v62 = vpop.permute.xlu1 %2719  ;;  %v4029_v60 = vcombine.low %v3940_v33, %v3941_v10  ;;  %v4209_v36 = vmul.f32 %v4152_v14, %v3941_v10  ;;  %v9901_v20 = vld [vmem:[%s14945_s3 + $0x578] sm:$0xff]   ;;  %v4153_v51 = vcombine.high %v4105_v17, %v4105_v17  ;;  %v3942_v37 = vmax.f32 %v3894_v13, 0.0  ;;  %v13426_v8 = vpop.permute.xlu0 %2717 }
 0x204   :  { %3750 = vrot.lane.b32.xlu0 %v3669_v24, %s10146_s19  ;;  %v3943_v42 = vmax.f32 %v3895_v25, 0.0  ;;  %2747 = vrot.lane.b32.xlu1 %v2663_v38, %s10144_s23  ;;  %v9902_v24 = vld [vmem:[%s14945_s3 + $0x480] sm:$0xff]   ;;  %v9903_v14 = vld [vmem:[%s14945_s3 + $0x538] sm:$0xff]   ;;  %v4256_v33 = vpack.c.bf16 %v4208_v12, %v4208_v12  ;;  %v13438_v61 = vpop.f32.mrf.mxu0  ;;  %v15107_v38 = vrot.slane %v13198_v58, 6 }
 0x205   :  { %4077 = vst [vmem:[%s14947_s5 + $0x40] sm:$0x77] %v4029_v60  ;;  %v4257_v30 = vpack.c.bf16 %v4209_v36, %v4209_v36  ;;  %v4210_v34 = vmul.f32 %v4105_v17, %v3942_v37  ;;  %v9906_v10 = vld [vmem:[%s14945_s3 + $0x5f8] sm:$0xff]   ;;  %v9905_v12 = vld [vmem:[%s14945_s3 + $0x570] sm:$0xff]   ;;  %v13464_v36 = vpop.f32.mrf.mxu1 }
 0x206   :  { %9379 = vmatpush3.bf16.msra.mxu0 %v9897_v29  ;;  %9399 = vmatpush3.bf16.msra.mxu1 %v9898_v53  ;;  %v4030_v5 = vcombine.low %v3942_v37, %v3943_v42  ;;  %v3073_v29 = vrot.slane %v13399_v18, 6  ;;  %v15106_v53 = vrot.slane %v13217_v16, 6  ;;  %v4211_v17 = vmul.f32 %v4153_v51, %v3943_v42  ;;  %v9908_v51 = vld [vmem:[%s14945_s3 + $0x5b8] sm:$0xff]   ;;  %v13469_v37 = vpop.f32.mrf.mxu0  ;;  %v9909_v42 = vld [vmem:[%s14945_s3 + $0x568] sm:$0xff]  }
 0x207   :  { %9400 = vmatprep.subr.bf16.mxu1 %v9900_v28  ;;  %7716 = vmatprep.mubr.bf16.mxu0 %v4257_v30  ;;  %v13449_v25 = vpop.permute.xlu1 %3440  ;;  %v13459_v16 = vpop.permute.xlu0 %2721  ;;  %v9907_v28 = vld [vmem:[%s14945_s3 + $0x530] sm:$0xff]   ;;  %v4258_v60 = vpack.c.bf16 %v4210_v34, %v4210_v34 }
 0x208   :  { %9408 = vmatprep.subr.bf16.mxu0 %v9901_v20  ;;  %v3065_v13 = vsel %vm2963_vm4, %v15107_v38, %v15106_v53  ;;  %4078 = vst [vmem:[%s14947_s5 + $0x48] sm:$0x77] %v4030_v5  ;;  %3468 = vrot.lane.b32.xlu1 %v3384_v46, %s10145_s12  ;;  %v4259_v20 = vpack.c.bf16 %v4211_v17, %v4211_v17  ;;  %v9910_v34 = vld [vmem:[%s14945_s3 + $0x5f0] sm:$0xff]   ;;  %v3672_v53 = vrot.slane %v13399_v18, 4  ;;  %v9914_v18 = vld [vmem:[%s14945_s3 + $0x5e8] sm:$0xff]  }
 0x209   :  { %3174 = vrot.lane.b32.xlu0 %v3065_v13, %s10147_s29  ;;  %7717 = vmatmul.mubr.bf16.vlgmr.msra.gmra.mxu0 %v4256_v33  ;;  %v15108_v33 = vrot.slane %v13251_v21, 6  ;;  %v3074_v30 = vsel %vm2963_vm4, %v3072_v7, %v3073_v29  ;;  %v3671_v7 = vrot.slane %v13306_v55, 4  ;;  %v9912_v29 = vld [vmem:[%s14945_s3 + $0x5b0] sm:$0xff]   ;;  %v13505_v38 = vadd.f32 %v13373_v4, %v13222_v43  ;;  %v13507_v13 = vpop.f32.mrf.mxu0  ;;  %v9915_v17 = vld [vmem:[%s14945_s3 + $0x520] sm:$0xff]  }
 0x20a   :  { %9401 = vmatpush3.bf16.msra.mxu1 %v9902_v24  ;;  %9409 = vmatpush3.bf16.msra.mxu0 %v9903_v14  ;;  %v13482_v14 = vpop.f32.mrf.mxu1  ;;  %v13520_v43 = vadd.f32 %v2266_v11, %v13291_v32  ;;  %v9916_v32 = vld [vmem:[%s14945_s3 + $0x5a8] sm:$0xff]  }
 0x20b   :  { %9430 = vmatprep.subr.bf16.mxu1 %v9906_v10  ;;  %7756 = vmatprep.mubr.bf16.mxu1 %v4259_v20  ;;  %v3071_v24 = vsel %vm2963_vm4, %v15108_v33, %v3070_v56  ;;  %v13480_v46 = vpop.permute.xlu1 %3728  ;;  %v9911_v56 = vld [vmem:[%s14945_s3 + $0x528] sm:$0xff]   ;;  %v13497_v10 = vadd.f32 %v13355_v45, %v13209_v50  ;;  %v9913_v50 = vld [vmem:[%s14945_s3 + $0x560] sm:$0xff]   ;;  %v2665_v11 = vrot.slane %v13505_v38, 3  ;;  %v9917_v20 = vld [vmem:[%s14945_s3 + $0x558] sm:$0xff]   ;;  %v3078_v33 = vrot.slane %v13505_v38, 6 }
 0x20c   :  { %9410 = vmatprep.subr.bf16.mxu0 %v9905_v12  ;;  %3180 = vrot.lane.b32.xlu1 %v3074_v30, %s10147_s29  ;;  %v13489_v5 = vpop.permute.xlu0 %3438  ;;  %v13512_v55 = vpop.f32.mrf.mxu1 }
 0x20d   :  { %3178 = vrot.lane.b32.xlu0 %v3071_v24, %s10147_s29  ;;  %7757 = vmatmul.mubr.bf16.vlgmr.msra.gmra.mxu1 %v4258_v60  ;;  %v2664_v12 = vrot.slane %v13497_v10, 3  ;;  %v13538_v60 = vpop.f32.mrf.mxu0  ;;  %v3079_v24 = vrot.slane %v13520_v43, 6 }
 0x20e   :  { %9411 = vmatpush3.bf16.msra.mxu0 %v9907_v28  ;;  %9431 = vmatpush3.bf16.msra.mxu1 %v9908_v51  ;;  %v13532_v28 = vadd.f32 %v13405_v15, %v13256_v3  ;;  %v13543_v51 = vpop.f32.mrf.mxu1  ;;  %v9918_v15 = vld [vmem:[%s14945_s3 + $0x5e0] sm:$0xff]  }
 0x20f   :  { %9412 = vmatprep.subr.bf16.mxu0 %v9909_v42  ;;  %9432 = vmatprep.subr.bf16.mxu1 %v9910_v34  ;;  %v13514_v45 = vpop.permute.xlu1 %3152  ;;  %v13552_v42 = vadd.f32 %v13423_v44, %v13275_v49  ;;  %v9919_v34 = vld [vmem:[%s14945_s3 + $0x518] sm:$0xff]   ;;  %v2792_v49 = vsel %vm2771_vm10, %v13262_v1, %v13426_v8  ;;  %v2793_v44 = vsel %vm2771_vm10, %v13426_v8, %v13418_v62  ;;  %v2315_v1 = vpop.f32.mrf.mxu0 }
 0x210   :  { %3756 = vrot.lane.b32.xlu1 %v3672_v53, %s10146_s19  ;;  %v13524_v4 = vpop.permute.xlu0 %3442  ;;  %v9921_v53 = vld [vmem:[%s14945_s3 + $0x550] sm:$0xff]   ;;  %v9922_v8 = vld [vmem:[%s14945_s3 + $0x5d8] sm:$0xff]  }
 0x211   :  { %3754 = vrot.lane.b32.xlu0 %v3671_v7, %s10146_s19  ;;  %v9920_v7 = vld [vmem:[%s14945_s3 + $0x5a0] sm:$0xff]  }
 0x212   :  { %9413 = vmatpush3.bf16.msra.mxu0 %v9911_v56  ;;  %9433 = vmatpush3.bf16.msra.mxu1 %v9912_v29  ;;  %v2666_v56 = vrot.slane %v13532_v28, 3  ;;  %v3386_v29 = vrot.slane %v13520_v43, 1 }
 0x213   :  { %9414 = vmatprep.subr.bf16.mxu0 %v9913_v50  ;;  %9434 = vmatprep.subr.bf16.mxu1 %v9914_v18  ;;  %v13545_v3 = vpop.permute.xlu1 %2723  ;;  %v13577_v50 = vadd.f32 %v13464_v36, %v13326_v52  ;;  %v13579_v18 = vpop.f32.mrf.mxu1  ;;  %v9923_v36 = vld [vmem:[%s14945_s3 + $0x510] sm:$0xff]  }
 0x214   :  { %2751 = vrot.lane.b32.xlu1 %v2665_v11, %s10144_s23  ;;  %v3727_v30 = vpop.permute.xlu0 %3726  ;;  %v3080_v11 = vsel %vm2963_vm4, %v3078_v33, %v3079_v24  ;;  %v9924_v33 = vld [vmem:[%s14945_s3 + $0x598] sm:$0xff]   ;;  %v3674_v24 = vrot.slane %v13520_v43, 4  ;;  %v3514_v43 = vsel %vm3492_vm3, %v13489_v5, %v13449_v25 }
 0x215   :  { %2749 = vrot.lane.b32.xlu0 %v2664_v12, %s10144_s23  ;;  %v2887_v12 = vadd.f32 %v2792_v49, %v12261_v35  ;;  %v2794_v35 = vsel %vm2771_vm10, %v13418_v62, %v13459_v16  ;;  %v2795_v62 = vsel %vm2771_vm10, %v13459_v16, %v13545_v3  ;;  %v9926_v16 = vld [vmem:[%s14945_s3 + $0x5d0] sm:$0xff]  }
 0x216   :  { %9415 = vmatpush3.bf16.msra.mxu0 %v9915_v17  ;;  %9435 = vmatpush3.bf16.msra.mxu1 %v9916_v32  ;;  %v3385_v17 = vrot.slane %v13552_v42, 1  ;;  %v2888_v32 = vadd.f32 %v2793_v44, %v12384_v59  ;;  %v13602_v59 = vadd.f32 %v2315_v1, %v13438_v61  ;;  %v13626_v1 = vpop.f32.mrf.mxu0 }
 0x217   :  { %9416 = vmatprep.subr.bf16.mxu0 %v9917_v20  ;;  %9436 = vmatprep.subr.bf16.mxu1 %v9918_v15  ;;  %v13596_v20 = vld [vmem:[%s14946_s2 + $0x50] sm:$0x77]  ;;  %v13608_v49 = vpop.permute.xlu1 %3444 }
 0x218   :  { %3472 = vrot.lane.b32.xlu1 %v3386_v29, %s10145_s12  ;;  %v3151_v52 = vpop.permute.xlu0 %3150  ;;  %v3513_v29 = vsel %vm3492_vm3, %v13294_v0, %v13489_v5  ;;  %v2889_v0 = vadd.f32 %v2794_v35, %v12374_v54  ;;  %v3802_v54 = vsel %vm3780_vm2, %v3727_v30, %v13480_v46  ;;  %v2890_v35 = vadd.f32 %v2795_v62, %v12412_v57  ;;  %v9929_v57 = vld [vmem:[%s14945_s3 + $0x540] sm:$0xff]  }
 0x219   :  { %2753 = vrot.lane.b32.xlu0 %v2666_v56, %s10144_s23  ;;  %v3225_v15 = vsel %vm3204_vm11, %v13332_v22, %v3151_v52  ;;  %v3226_v56 = vsel %vm3204_vm11, %v3151_v52, %v13514_v45  ;;  %v9925_v22 = vld [vmem:[%s14945_s3 + $0x548] sm:$0xff]   ;;  %v13628_v52 = vpop.f32.mrf.mxu1  ;;  %v3515_v62 = vsel %vm3492_vm3, %v13449_v25, %v13524_v4 }
 0x21a   :  { %9417 = vmatpush3.bf16.msra.mxu0 %v9919_v34  ;;  %9437 = vmatpush3.bf16.msra.mxu1 %v9920_v7  ;;  %v3320_v61 = vadd.f32 %v3225_v15, %v2887_v12  ;;  %v3321_v44 = vadd.f32 %v3226_v56, %v2888_v32  ;;  %v4154_v34 = vcombine.high %v13596_v20, %v13596_v20  ;;  %v3075_v7 = vrot.slane %v13497_v10, 6 }
 0x21b   :  { %9418 = vmatprep.subr.bf16.mxu0 %v9921_v53  ;;  %9438 = vmatprep.subr.bf16.mxu1 %v9922_v8  ;;  %v9927_v53 = vld [vmem:[%s14945_s3 + $0x508] sm:$0xff]   ;;  %v9928_v8 = vld [vmem:[%s14945_s3 + $0x590] sm:$0xff]   ;;  %v3801_v15 = vsel %vm3780_vm2, %v13392_v2, %v3727_v30 }
 0x21c   :  { %v3608_v12 = vadd.f32 %v3513_v29, %v3320_v61  ;;  %v3609_v32 = vadd.f32 %v3514_v43, %v3321_v44  ;;  %3760 = vrot.lane.b32.xlu1 %v3674_v24, %s10146_s19  ;;  %v3155_v5 = vpop.permute.xlu0 %3154  ;;  %v13652_v56 = vpop.permute.xlu1 %3156  ;;  %v13657_v24 = vld [vmem:[%s14946_s2 + $0x58] sm:$0x77]  ;;  %v3387_v61 = vrot.slane %v13577_v50, 1 }
 0x21d   :  { %3470 = vrot.lane.b32.xlu0 %v3385_v17, %s10145_s12  ;;  %v3227_v17 = vsel %vm3204_vm11, %v13514_v45, %v3155_v5  ;;  %v3228_v30 = vsel %vm3204_vm11, %v3155_v5, %v13652_v56  ;;  %v3673_v45 = vrot.slane %v13552_v42, 4  ;;  %v2319_v29 = vpop.f32.mrf.mxu0  ;;  %v13669_v43 = vpop.f32.mrf.mxu1 }
 0x21e   :  { %v3896_v44 = vadd.f32 %v3801_v15, %v3608_v12  ;;  %9419 = vmatpush3.bf16.msra.mxu0 %v9923_v36  ;;  %9439 = vmatpush3.bf16.msra.mxu1 %v9924_v33  ;;  %v3322_v2 = vadd.f32 %v3227_v17, %v2889_v0  ;;  %v3323_v12 = vadd.f32 %v3228_v30, %v2890_v35  ;;  %v9930_v36 = vld [vmem:[%s14945_s3 + $0x5c8] sm:$0xff]   ;;  %v2667_v17 = vrot.slane %v13602_v59, 3 }
 0x21f   :  { %9420 = vmatprep.subr.bf16.mxu0 %v9925_v22  ;;  %9440 = vmatprep.subr.bf16.mxu1 %v9926_v16  ;;  %v3897_v33 = vadd.f32 %v3802_v54, %v3609_v32  ;;  %v13675_v0 = vadd.f32 %v2319_v29, %v13507_v13  ;;  %v3516_v15 = vsel %vm3492_vm3, %v13524_v4, %v13608_v49  ;;  %v9931_v16 = vld [vmem:[%s14945_s3 + $0x500] sm:$0xff]   ;;  %v9932_v4 = vld [vmem:[%s14945_s3 + $0x588] sm:$0xff]   ;;  %v3076_v30 = vrot.slane %v13552_v42, 6 }
 0x220   :  { %v3944_v5 = vmax.f32 %v3896_v44, 0.0  ;;  %3184 = vrot.lane.b32.xlu1 %v3080_v11, %s10147_s29  ;;  %v3610_v25 = vadd.f32 %v3515_v62, %v3322_v2  ;;  %v3731_v22 = vpop.permute.xlu0 %3730  ;;  %v3611_v13 = vadd.f32 %v3516_v15, %v3323_v12  ;;  %v13687_v54 = vpop.permute.xlu1 %3732  ;;  %v4155_v11 = vcombine.high %v13657_v24, %v13657_v24  ;;  %v9934_v2 = vld [vmem:[%s14945_s3 + $0x5c0] sm:$0xff]  }
 0x221   :  { %3474 = vrot.lane.b32.xlu0 %v3387_v61, %s10145_s12  ;;  %v3803_v32 = vsel %vm3780_vm2, %v13480_v46, %v3731_v22  ;;  %v3945_v35 = vmax.f32 %v3897_v33, 0.0  ;;  %v3804_v44 = vsel %vm3780_vm2, %v3731_v22, %v13687_v54  ;;  %v13702_v62 = vpop.f32.mrf.mxu1  ;;  %v3081_v33 = vrot.slane %v13532_v28, 6 }
 0x222   :  { %9421 = vmatpush3.bf16.msra.mxu0 %v9927_v53  ;;  %9441 = vmatpush3.bf16.msra.mxu1 %v9928_v8  ;;  %v3898_v61 = vadd.f32 %v3803_v32, %v3610_v25  ;;  %v4212_v46 = vmul.f32 %v13596_v20, %v3944_v5  ;;  %v3899_v29 = vadd.f32 %v3804_v44, %v3611_v13  ;;  %v9935_v8 = vld [vmem:[%s14945_s3 + $0x678] sm:$0xff]   ;;  %v3082_v20 = vrot.slane %v13577_v50, 6  ;;  %v2321_v32 = vpop.f32.mrf.mxu0 }
 0x223   :  { %9422 = vmatprep.subr.bf16.mxu0 %v9929_v57  ;;  %9442 = vmatprep.subr.bf16.mxu1 %v9930_v36  ;;  %v4031_v12 = vcombine.low %v3944_v5, %v3945_v35  ;;  %v4213_v53 = vmul.f32 %v4154_v34, %v3945_v35  ;;  %v9936_v57 = vld [vmem:[%s14945_s3 + $0x580] sm:$0xff]   ;;  %v3084_v22 = vrot.slane %v13602_v59, 6  ;;  %v9939_v35 = vld [vmem:[%s14945_s3 + $0x670] sm:$0xff]  }
 0x224   :  { %v3946_v15 = vmax.f32 %v3898_v61, 0.0  ;;  %2755 = vrot.lane.b32.xlu1 %v2667_v17, %s10144_s23  ;;  %v13711_v42 = vpop.permute.xlu0 %2725  ;;  %v3947_v34 = vmax.f32 %v3899_v29, 0.0  ;;  %v13716_v36 = vpop.permute.xlu1 %2727  ;;  %v4260_v5 = vpack.c.bf16 %v4212_v46, %v4212_v46  ;;  %v3388_v17 = vrot.slane %v13675_v0, 1 }
 0x225   :  { %3758 = vrot.lane.b32.xlu0 %v3673_v45, %s10146_s19  ;;  %4079 = vst [vmem:[%s14947_s5 + $0x50] sm:$0x77] %v4031_v12  ;;  %v4261_v25 = vpack.c.bf16 %v4213_v53, %v4213_v53  ;;  %v9937_v45 = vld [vmem:[%s14945_s3 + $0x638] sm:$0xff]   ;;  %v13730_v61 = vpop.f32.mrf.mxu1  ;;  %v3077_v46 = vsel %vm2963_vm4, %v3075_v7, %v3076_v30 }
 0x226   :  { %v4214_v13 = vmul.f32 %v13657_v24, %v3946_v15  ;;  %9423 = vmatpush3.bf16.msra.mxu0 %v9931_v16  ;;  %9443 = vmatpush3.bf16.msra.mxu1 %v9932_v4  ;;  %v4032_v44 = vcombine.low %v3946_v15, %v3947_v34  ;;  %v4215_v29 = vmul.f32 %v4155_v11, %v3947_v34  ;;  %v9940_v24 = vld [vmem:[%s14945_s3 + $0x6f8] sm:$0xff]   ;;  %v3085_v16 = vrot.slane %v13675_v0, 6  ;;  %v13739_v4 = vpop.f32.mrf.mxu0 }
 0x227   :  { %7796 = vmatprep.mubr.bf16.mxu0 %v4261_v25  ;;  %9444 = vmatprep.subr.bf16.mxu1 %v9934_v2  ;;  %v9941_v2 = vld [vmem:[%s14945_s3 + $0x630] sm:$0xff]   ;;  %v9942_v30 = vld [vmem:[%s14945_s3 + $0x6b8] sm:$0xff]   ;;  %v13759_v15 = vpop.f32.mrf.mxu1  ;;  %v3083_v34 = vsel %vm2963_vm4, %v3081_v33, %v3082_v20  ;;  %v13767_v25 = vadd.f32 %v13626_v1, %v13469_v37  ;;  %v9945_v33 = vld [vmem:[%s14945_s3 + $0x628] sm:$0xff]   ;;  %v3675_v1 = vrot.slane %v13577_v50, 4 }
 0x228   :  { %9452 = vmatprep.subr.bf16.mxu0 %v9935_v8  ;;  %v13742_v12 = vpop.permute.xlu0 %2729  ;;  %v4262_v53 = vpack.c.bf16 %v4214_v13, %v4214_v13  ;;  %4080 = vst [vmem:[%s14947_s5 + $0x58] sm:$0x77] %v4032_v44  ;;  %3476 = vrot.lane.b32.xlu1 %v3388_v17, %s10145_s12  ;;  %v13751_v7 = vpop.permute.xlu1 %3448  ;;  %v4263_v11 = vpack.c.bf16 %v4215_v29, %v4215_v29  ;;  %v9943_v8 = vld [vmem:[%s14945_s3 + $0x668] sm:$0xff]   ;;  %v9946_v37 = vld [vmem:[%s14945_s3 + $0x6b0] sm:$0xff]   ;;  %v3676_v17 = vrot.slane %v13675_v0, 4 }
 0x229   :  { %3182 = vrot.lane.b32.xlu0 %v3077_v46, %s10147_s29  ;;  %7797 = vmatmul.mubr.bf16.vlgmr.msra.gmra.mxu0 %v4260_v5  ;;  %v9944_v5 = vld [vmem:[%s14945_s3 + $0x6f0] sm:$0xff]   ;;  %v13794_v44 = vadd.f32 %v13628_v52, %v13482_v14  ;;  %v13796_v46 = vpop.f32.mrf.mxu1  ;;  %v2668_v50 = vrot.slane %v13767_v25, 3  ;;  %v9949_v14 = vld [vmem:[%s14945_s3 + $0x620] sm:$0xff]   ;;  %v13813_v0 = vadd.f32 %v13669_v43, %v13512_v55  ;;  %v9951_v55 = vld [vmem:[%s14945_s3 + $0x658] sm:$0xff]  }
 0x22a   :  { %9445 = vmatpush3.bf16.msra.mxu1 %v9936_v57  ;;  %9453 = vmatpush3.bf16.msra.mxu0 %v9937_v45  ;;  %v13769_v57 = vpop.f32.mrf.mxu0  ;;  %v3086_v45 = vsel %vm2963_vm4, %v3084_v22, %v3085_v16  ;;  %v9947_v22 = vld [vmem:[%s14945_s3 + $0x660] sm:$0xff]   ;;  %v9950_v16 = vld [vmem:[%s14945_s3 + $0x6a8] sm:$0xff]  }
 0x22b   :  { %7836 = vmatprep.mubr.bf16.mxu1 %v4263_v11  ;;  %9454 = vmatprep.subr.bf16.mxu0 %v9939_v35  ;;  %v13786_v35 = vadd.f32 %v2321_v32, %v13538_v60  ;;  %v9948_v60 = vld [vmem:[%s14945_s3 + $0x6e8] sm:$0xff]   ;;  %v2669_v43 = vrot.slane %v13794_v44, 3  ;;  %v13830_v11 = vpop.f32.mrf.mxu1 }
 0x22c   :  { %9474 = vmatprep.subr.bf16.mxu1 %v9940_v24  ;;  %v13773_v13 = vpop.permute.xlu0 %3446  ;;  %3188 = vrot.lane.b32.xlu1 %v3086_v45, %s10147_s29  ;;  %v13802_v32 = vpop.f32.mrf.mxu0 }
 0x22d   :  { %3186 = vrot.lane.b32.xlu0 %v3083_v34, %s10147_s29  ;;  %7837 = vmatmul.mubr.bf16.vlgmr.msra.gmra.mxu1 %v4262_v53  ;;  %v13779_v20 = vpop.permute.xlu1 %3736  ;;  %v13824_v53 = vadd.f32 %v13702_v62, %v13543_v51  ;;  %v9953_v34 = vld [vmem:[%s14945_s3 + $0x618] sm:$0xff]   ;;  %v13864_v52 = vpop.f32.mrf.mxu1 }
 0x22e   :  { %9455 = vmatpush3.bf16.msra.mxu0 %v9941_v2  ;;  %9475 = vmatpush3.bf16.msra.mxu1 %v9942_v30  ;;  %v9952_v30 = vld [vmem:[%s14945_s3 + $0x6e0] sm:$0xff]   ;;  %v13836_v51 = vpop.f32.mrf.mxu0 }
 0x22f   :  { %9456 = vmatprep.subr.bf16.mxu0 %v9943_v8  ;;  %9476 = vmatprep.subr.bf16.mxu1 %v9944_v5  ;;  %v3090_v8 = vrot.slane %v13794_v44, 6  ;;  %v2670_v5 = vrot.slane %v13813_v0, 3 }
 0x230   :  { %v13805_v29 = vpop.permute.xlu0 %3450  ;;  %3764 = vrot.lane.b32.xlu1 %v3676_v17, %s10146_s19  ;;  %v9955_v17 = vld [vmem:[%s14945_s3 + $0x650] sm:$0xff]  }
 0x231   :  { %3762 = vrot.lane.b32.xlu0 %v3675_v1, %s10146_s19  ;;  %v13816_v24 = vpop.permute.xlu1 %3160  ;;  %v2796_v1 = vsel %vm2771_vm10, %v13545_v3, %v13711_v42  ;;  %v3389_v3 = vrot.slane %v13786_v35, 1 }
 0x232   :  { %9457 = vmatpush3.bf16.msra.mxu0 %v9945_v33  ;;  %9477 = vmatpush3.bf16.msra.mxu1 %v9946_v37  ;;  %v9954_v33 = vld [vmem:[%s14945_s3 + $0x6a0] sm:$0xff]   ;;  %v3091_v37 = vrot.slane %v13824_v53, 6 }
 0x233   :  { %9458 = vmatprep.subr.bf16.mxu0 %v9947_v22  ;;  %9478 = vmatprep.subr.bf16.mxu1 %v9948_v60  ;;  %v2797_v22 = vsel %vm2771_vm10, %v13711_v42, %v13716_v36  ;;  %v3390_v60 = vrot.slane %v13824_v53, 1  ;;  %v9957_v42 = vld [vmem:[%s14945_s3 + $0x610] sm:$0xff]  }
 0x234   :  { %v3735_v62 = vpop.permute.xlu0 %3734  ;;  %2759 = vrot.lane.b32.xlu1 %v2669_v43, %s10144_s23  ;;  %v2421_v43 = vpop.f32.mrf.mxu0 }
 0x235   :  { %2757 = vrot.lane.b32.xlu0 %v2668_v50, %s10144_s23  ;;  %v13844_v45 = vpop.permute.xlu1 %2731  ;;  %v9956_v50 = vld [vmem:[%s14945_s3 + $0x6d8] sm:$0xff]  }
 0x236   :  { %9459 = vmatpush3.bf16.msra.mxu0 %v9949_v14  ;;  %9479 = vmatpush3.bf16.msra.mxu1 %v9950_v16  ;;  %v13872_v14 = vadd.f32 %v13730_v61, %v13579_v18  ;;  %v2891_v16 = vadd.f32 %v2796_v1, %v12508_v48  ;;  %v2799_v48 = vsel %vm2771_vm10, %v13742_v12, %v13844_v45  ;;  %v9959_v61 = vld [vmem:[%s14945_s3 + $0x648] sm:$0xff]   ;;  %v3678_v1 = vrot.slane %v13824_v53, 4 }
 0x237   :  { %9460 = vmatprep.subr.bf16.mxu0 %v9951_v55  ;;  %9480 = vmatprep.subr.bf16.mxu1 %v9952_v30  ;;  %v2892_v55 = vadd.f32 %v2797_v22, %v12655_v47  ;;  %v2798_v30 = vsel %vm2771_vm10, %v13716_v36, %v13742_v12  ;;  %v9960_v12 = vld [vmem:[%s14945_s3 + $0x6d0] sm:$0xff]   ;;  %v3517_v53 = vsel %vm3492_vm3, %v13608_v49, %v13773_v13 }
 0x238   :  { %3480 = vrot.lane.b32.xlu1 %v3390_v60, %s10145_s12  ;;  %v3159_v2 = vpop.permute.xlu0 %3158  ;;  %v2893_v18 = vadd.f32 %v2798_v30, %v12662_v23  ;;  %v9963_v30 = vld [vmem:[%s14945_s3 + $0x640] sm:$0xff]  }
 0x239   :  { %2761 = vrot.lane.b32.xlu0 %v2670_v5, %s10144_s23  ;;  %v13880_v5 = vpop.permute.xlu1 %3452  ;;  %v3229_v47 = vsel %vm3204_vm11, %v13652_v56, %v3159_v2  ;;  %v3230_v36 = vsel %vm3204_vm11, %v3159_v2, %v13816_v24  ;;  %v13902_v56 = vadd.f32 %v2421_v43, %v13739_v4  ;;  %v13904_v2 = vpop.f32.mrf.mxu0  ;;  %v9961_v4 = vld [vmem:[%s14945_s3 + $0x608] sm:$0xff]  }
 0x23a   :  { %9461 = vmatpush3.bf16.msra.mxu0 %v9953_v34  ;;  %9481 = vmatpush3.bf16.msra.mxu1 %v9954_v33  ;;  %v3324_v22 = vadd.f32 %v3229_v47, %v2891_v16  ;;  %v3325_v60 = vadd.f32 %v3230_v36, %v2892_v55  ;;  %v3092_v34 = vsel %vm2963_vm4, %v3090_v8, %v3091_v37  ;;  %v13906_v33 = vpop.f32.mrf.mxu1  ;;  %v9962_v55 = vld [vmem:[%s14945_s3 + $0x690] sm:$0xff]  }
 0x23b   :  { %9462 = vmatprep.subr.bf16.mxu0 %v9955_v17  ;;  %9482 = vmatprep.subr.bf16.mxu1 %v9956_v50  ;;  %v3518_v17 = vsel %vm3492_vm3, %v13773_v13, %v13751_v7  ;;  %v3805_v8 = vsel %vm3780_vm2, %v13687_v54, %v3735_v62  ;;  %v2894_v37 = vadd.f32 %v2799_v48, %v12680_v41  ;;  %v4108_v13 = vld [vmem:[%s14946_s2 + $0x60] sm:$0x77] }
 0x23c   :  { %v3612_v23 = vadd.f32 %v3517_v53, %v3324_v22  ;;  %v3613_v50 = vadd.f32 %v3518_v17, %v3325_v60  ;;  %3768 = vrot.lane.b32.xlu1 %v3678_v1, %s10146_s19  ;;  %v3806_v16 = vsel %vm3780_vm2, %v3735_v62, %v13779_v20  ;;  %v3519_v1 = vsel %vm3492_vm3, %v13751_v7, %v13805_v29  ;;  %v9965_v7 = vld [vmem:[%s14945_s3 + $0x600] sm:$0xff]  }
 0x23d   :  { %3478 = vrot.lane.b32.xlu0 %v3389_v3, %s10145_s12  ;;  %v3163_v49 = vpop.permute.xlu0 %3162  ;;  %v3391_v3 = vrot.slane %v13872_v14, 1  ;;  %v3520_v22 = vsel %vm3492_vm3, %v13805_v29, %v13880_v5  ;;  %v9966_v29 = vld [vmem:[%s14945_s3 + $0x688] sm:$0xff]  }
 0x23e   :  { %v13923_v43 = vpop.permute.xlu1 %3164  ;;  %9463 = vmatpush3.bf16.msra.mxu0 %v9957_v42  ;;  %9483 = vmatpush3.bf16.msra.mxu1 %v9958_v9  ;;  %v3231_v41 = vsel %vm3204_vm11, %v13816_v24, %v3163_v49  ;;  %v3900_v48 = vadd.f32 %v3805_v8, %v3612_v23  ;;  %v3901_v47 = vadd.f32 %v3806_v16, %v3613_v50  ;;  %v9964_v9 = vld [vmem:[%s14945_s3 + $0x6c8] sm:$0xff]   ;;  %v2425_v24 = vpop.f32.mrf.mxu0 }
 0x23f   :  { %v3232_v54 = vsel %vm3204_vm11, %v3163_v49, %v13923_v43  ;;  %v3326_v36 = vadd.f32 %v3231_v41, %v2893_v18  ;;  %9464 = vmatprep.subr.bf16.mxu0 %v9959_v61  ;;  %v13944_v42 = vpop.f32.mrf.mxu1  ;;  %9484 = vmatprep.subr.bf16.mxu1 %v9960_v12  ;;  %v4109_v18 = vld [vmem:[%s14946_s2 + $0x68] sm:$0x77]  ;;  %v4156_v61 = vcombine.high %v4108_v13, %v4108_v13  ;;  %v2671_v49 = vrot.slane %v13902_v56, 3 }
 0x240   :  { %v3327_v62 = vadd.f32 %v3232_v54, %v2894_v37  ;;  %v3948_v60 = vmax.f32 %v3900_v48, 0.0  ;;  %3192 = vrot.lane.b32.xlu1 %v3092_v34, %s10147_s29  ;;  %v3949_v12 = vmax.f32 %v3901_v47, 0.0  ;;  %v13966_v23 = vadd.f32 %v2425_v24, %v13802_v32  ;;  %v9968_v32 = vld [vmem:[%s14945_s3 + $0x6c0] sm:$0xff]   ;;  %v13977_v54 = vpop.f32.mrf.mxu0 }
 0x241   :  { %3482 = vrot.lane.b32.xlu0 %v3391_v3, %s10145_s12  ;;  %v3614_v53 = vadd.f32 %v3519_v1, %v3326_v36  ;;  %v3739_v17 = vpop.permute.xlu0 %3738  ;;  %v4157_v36 = vcombine.high %v4109_v18, %v4109_v18 }
 0x242   :  { %v3615_v8 = vadd.f32 %v3520_v22, %v3327_v62  ;;  %v13957_v37 = vpop.permute.xlu1 %3740  ;;  %9465 = vmatpush3.bf16.msra.mxu0 %v9961_v4  ;;  %9485 = vmatpush3.bf16.msra.mxu1 %v9962_v55  ;;  %v3807_v34 = vsel %vm3780_vm2, %v13779_v20, %v3739_v17  ;;  %v4033_v41 = vcombine.low %v3948_v60, %v3949_v12  ;;  %v3093_v4 = vrot.slane %v13813_v0, 6  ;;  %v13979_v55 = vpop.f32.mrf.mxu1 }
 0x243   :  { %v3808_v50 = vsel %vm3780_vm2, %v3739_v17, %v13957_v37  ;;  %v3902_v3 = vadd.f32 %v3807_v34, %v3614_v53  ;;  %9466 = vmatprep.subr.bf16.mxu0 %v9963_v30  ;;  %9486 = vmatprep.subr.bf16.mxu1 %v9964_v9  ;;  %v15109_v20 = vrot.slane %v13786_v35, 4  ;;  %v4216_v48 = vmul.f32 %v4108_v13, %v3948_v60  ;;  %v9969_v30 = vld [vmem:[%s14945_s3 + $0x778] sm:$0xff]   ;;  %v9970_v13 = vld [vmem:[%s14945_s3 + $0x680] sm:$0xff]  }
 0x244   :  { %v3903_v16 = vadd.f32 %v3808_v50, %v3615_v8  ;;  %v4217_v47 = vmul.f32 %v4156_v61, %v3949_v12  ;;  %v3094_v62 = vrot.slane %v13872_v14, 6  ;;  %2763 = vrot.lane.b32.xlu1 %v2671_v49, %s10144_s23  ;;  %4081 = vst [vmem:[%s14947_s5 + $0x60] sm:$0x77] %v4033_v41  ;;  %v15110_v61 = vrot.slane %v13786_v35, 6  ;;  %v9974_v49 = vld [vmem:[%s14945_s3 + $0x7f8] sm:$0xff]  }
 0x245   :  { %3766 = vrot.lane.b32.xlu0 %v15109_v20, %s10146_s19  ;;  %v3950_v9 = vmax.f32 %v3902_v3, 0.0  ;;  %v13989_v1 = vpop.permute.xlu0 %2733  ;;  %v15111_v60 = vrot.slane %v13767_v25, 6  ;;  %v3392_v8 = vrot.slane %v13966_v23, 1  ;;  %v4264_v50 = vpack.c.bf16 %v4216_v48, %v4216_v48  ;;  %v9971_v3 = vld [vmem:[%s14945_s3 + $0x738] sm:$0xff]  }
 0x246   :  { %v3951_v24 = vmax.f32 %v3903_v16, 0.0  ;;  %v13991_v22 = vpop.permute.xlu1 %2735  ;;  %9467 = vmatpush3.bf16.msra.mxu0 %v9965_v7  ;;  %9487 = vmatpush3.bf16.msra.mxu1 %v9966_v29  ;;  %v9204_v17 = vpop.f32.mrf.mxu0  ;;  %v3096_v7 = vrot.slane %v13902_v56, 6  ;;  %v4265_v35 = vpack.c.bf16 %v4217_v47, %v4217_v47  ;;  %v3097_v41 = vrot.slane %v13966_v23, 6  ;;  %v9973_v47 = vld [vmem:[%s14945_s3 + $0x770] sm:$0xff]  }
 0x247   :  { %v3089_v53 = vsel %vm2963_vm4, %v15111_v60, %v15110_v61  ;;  %v4218_v12 = vmul.f32 %v4109_v18, %v3950_v9  ;;  %9488 = vmatprep.subr.bf16.mxu1 %v9968_v32  ;;  %v14009_v29 = vpop.f32.mrf.mxu1  ;;  %9496 = vmatprep.subr.bf16.mxu0 %v9969_v30  ;;  %v14032_v61 = vadd.f32 %v13904_v2, %v13769_v57 }
 0x248   :  { %v4034_v34 = vcombine.low %v3950_v9, %v3951_v24  ;;  %v9205_v18 = vpop.f32.mrf.mxu0  ;;  %v4219_v16 = vmul.f32 %v4157_v36, %v3951_v24  ;;  %3484 = vrot.lane.b32.xlu1 %v3392_v8, %s10145_s12  ;;  %7876 = vmatprep.mubr.bf16.mxu0 %v4265_v35  ;;  %v9975_v24 = vld [vmem:[%s14945_s3 + $0x730] sm:$0xff]   ;;  %v3098_v57 = vsel %vm2963_vm4, %v3096_v7, %v3097_v41 }
 0x249   :  { %3190 = vrot.lane.b32.xlu0 %v3089_v53, %s10147_s29  ;;  %v14020_v32 = vpop.permute.xlu0 %2737  ;;  %v9206_v48 = vadd.f32 %v9205_v18, %v9204_v17  ;;  %v4266_v30 = vpack.c.bf16 %v4218_v12, %v4218_v12  ;;  %7877 = vmatmul.mubr.bf16.vlgmr.msra.gmra.mxu0 %v4264_v50  ;;  %v9976_v53 = vld [vmem:[%s14945_s3 + $0x7b8] sm:$0xff]   ;;  %v9978_v8 = vld [vmem:[%s14945_s3 + $0x7f0] sm:$0xff]   ;;  %v2672_v7 = vrot.slane %v14032_v61, 3  ;;  %v9982_v18 = vld [vmem:[%s14945_s3 + $0x7e8] sm:$0xff]   ;;  %v14074_v41 = vadd.f32 %v13979_v55, %v13830_v11 }
 0x24a   :  { %4082 = vst [vmem:[%s14947_s5 + $0x68] sm:$0x77] %v4034_v34  ;;  %v14022_v20 = vpop.permute.xlu1 %3456  ;;  %9489 = vmatpush3.bf16.msra.mxu1 %v9970_v13  ;;  %v4267_v36 = vpack.c.bf16 %v4219_v16, %v4219_v16  ;;  %v9207_v9 = vpop.f32.mrf.mxu0  ;;  %9497 = vmatpush3.bf16.msra.mxu0 %v9971_v3  ;;  %v3095_v13 = vsel %vm2963_vm4, %v3093_v4, %v3094_v62  ;;  %v9977_v34 = vld [vmem:[%s14945_s3 + $0x768] sm:$0xff]   ;;  %v3679_v4 = vrot.slane %v13872_v14, 4  ;;  %v9980_v14 = vld [vmem:[%s14945_s3 + $0x7b0] sm:$0xff]   ;;  %v3680_v3 = vrot.slane %v13966_v23, 4 }
 0x24b   :  { %9518 = vmatprep.subr.bf16.mxu1 %v9974_v49  ;;  %v9226_v60 = vpop.f32.mrf.mxu1  ;;  %9498 = vmatprep.subr.bf16.mxu0 %v9973_v47  ;;  %v14053_v62 = vadd.f32 %v13906_v33, %v13759_v15  ;;  %v9979_v49 = vld [vmem:[%s14945_s3 + $0x728] sm:$0xff]   ;;  %v14066_v15 = vadd.f32 %v13944_v42, %v13796_v46  ;;  %v3099_v16 = vrot.slane %v14032_v61, 6  ;;  %v9981_v23 = vld [vmem:[%s14945_s3 + $0x760] sm:$0xff]  }
 0x24c   :  { %7916 = vmatprep.mubr.bf16.mxu1 %v4267_v36  ;;  %v9208_v17 = vpop.f32.mrf.mxu0  ;;  %3196 = vrot.lane.b32.xlu1 %v3098_v57, %s10147_s29  ;;  %v9983_v11 = vld [vmem:[%s14945_s3 + $0x720] sm:$0xff]   ;;  %v9984_v9 = vld [vmem:[%s14945_s3 + $0x7a8] sm:$0xff]   ;;  %v2801_v57 = vsel %vm2771_vm10, %v13989_v1, %v13991_v22 }
 0x24d   :  { %3194 = vrot.lane.b32.xlu0 %v3095_v13, %s10147_s29  ;;  %v14045_v12 = vpop.permute.xlu0 %3454  ;;  %7917 = vmatmul.mubr.bf16.vlgmr.msra.gmra.mxu1 %v4266_v30  ;;  %v9227_v50 = vpop.f32.mrf.mxu1  ;;  %v2673_v30 = vrot.slane %v14053_v62, 3  ;;  %v3102_v55 = vrot.slane %v14053_v62, 6  ;;  %v9985_v13 = vld [vmem:[%s14945_s3 + $0x758] sm:$0xff]   ;;  %v3105_v17 = vrot.slane %v14066_v15, 6 }
 0x24e   :  { %v14043_v2 = vpop.permute.xlu1 %3744  ;;  %9519 = vmatpush3.bf16.msra.mxu1 %v9976_v53  ;;  %v9228_v35 = vadd.f32 %v9227_v50, %v9226_v60  ;;  %9499 = vmatpush3.bf16.msra.mxu0 %v9975_v24  ;;  %v2674_v24 = vrot.slane %v14066_v15, 3  ;;  %v9986_v60 = vld [vmem:[%s14945_s3 + $0x7e0] sm:$0xff]   ;;  %v3103_v53 = vrot.slane %v14074_v41, 6 }
 0x24f   :  { %9520 = vmatprep.subr.bf16.mxu1 %v9978_v8  ;;  %v9229_v33 = vpop.f32.mrf.mxu1  ;;  %9500 = vmatprep.subr.bf16.mxu0 %v9977_v34  ;;  %v2800_v8 = vsel %vm2771_vm10, %v13844_v45, %v13989_v1  ;;  %v9987_v34 = vld [vmem:[%s14945_s3 + $0x718] sm:$0xff]   ;;  %v9988_v50 = vld [vmem:[%s14945_s3 + $0x7a0] sm:$0xff]   ;;  %v14128_v45 = vadd.f32 %v14009_v29, %v13864_v52  ;;  %v9989_v52 = vld [vmem:[%s14945_s3 + $0x750] sm:$0xff]   ;;  %v3394_v29 = vrot.slane %v14074_v41, 1 }
 0x250   :  { %v14076_v47 = vadd.f32 %v9228_v35, %v9206_v48  ;;  %3772 = vrot.lane.b32.xlu1 %v3680_v3, %s10146_s19  ;;  %v14094_v48 = vadd.f32 %v13977_v54, %v13836_v51  ;;  %v9990_v1 = vld [vmem:[%s14945_s3 + $0x7d8] sm:$0xff]   ;;  %v2895_v35 = vadd.f32 %v2800_v8, %v12781_v31  ;;  %v3104_v3 = vsel %vm2963_vm4, %v3102_v55, %v3103_v53 }
 0x251   :  { %3770 = vrot.lane.b32.xlu0 %v3679_v4, %s10146_s19  ;;  %v14081_v42 = vpop.permute.xlu0 %3458  ;;  %v9230_v36 = vpop.f32.mrf.mxu1 }
 0x252   :  { %v14079_v46 = vpop.permute.xlu1 %3168  ;;  %9521 = vmatpush3.bf16.msra.mxu1 %v9980_v14  ;;  %9501 = vmatpush3.bf16.msra.mxu0 %v9979_v49  ;;  %v3100_v4 = vrot.slane %v14094_v48, 6  ;;  %v3393_v49 = vrot.slane %v14094_v48, 1  ;;  %v2896_v14 = vadd.f32 %v2801_v57, %v12931_v27  ;;  %v9992_v36 = vld [vmem:[%s14945_s3 + $0x798] sm:$0xff]  }
 0x253   :  { %9522 = vmatprep.subr.bf16.mxu1 %v9982_v18  ;;  %9502 = vmatprep.subr.bf16.mxu0 %v9981_v23  ;;  %v2802_v18 = vsel %vm2771_vm10, %v13991_v22, %v14020_v32  ;;  %v3682_v22 = vrot.slane %v14074_v41, 4  ;;  %v3522_v41 = vsel %vm3492_vm3, %v14045_v12, %v14022_v20 }
 0x254   :  { %2767 = vrot.lane.b32.xlu1 %v2673_v30, %s10144_s23  ;;  %v9991_v30 = vld [vmem:[%s14945_s3 + $0x710] sm:$0xff]   ;;  %v3101_v53 = vsel %vm2963_vm4, %v3099_v16, %v3100_v4 }
 0x255   :  { %2765 = vrot.lane.b32.xlu0 %v2672_v7, %s10144_s23  ;;  %v3743_v51 = vpop.permute.xlu0 %3742  ;;  %v3681_v7 = vrot.slane %v14094_v48, 4  ;;  %v10004_v48 = vld [vmem:[%s14945_s3 + $0x780] sm:$0xff]  }
 0x256   :  { %v14105_v54 = vpop.permute.xlu1 %2739  ;;  %9523 = vmatpush3.bf16.msra.mxu1 %v9984_v9  ;;  %9503 = vmatpush3.bf16.msra.mxu0 %v9983_v11  ;;  %v9993_v9 = vld [vmem:[%s14945_s3 + $0x748] sm:$0xff]  }
 0x257   :  { %9524 = vmatprep.subr.bf16.mxu1 %v9986_v60  ;;  %9504 = vmatprep.subr.bf16.mxu0 %v9985_v13  ;;  %v2803_v11 = vsel %vm2771_vm10, %v14020_v32, %v14105_v54  ;;  %v3521_v60 = vsel %vm3492_vm3, %v13880_v5, %v14045_v12  ;;  %v9994_v32 = vld [vmem:[%s14945_s3 + $0x7d0] sm:$0xff]   ;;  %v2897_v13 = vadd.f32 %v2802_v18, %v12939_v40 }
 0x258   :  { %3200 = vrot.lane.b32.xlu1 %v3104_v3, %s10147_s29  ;;  %v4110_v12 = vld [vmem:[%s14946_s2 + $0x70] sm:$0x77]  ;;  %v2898_v16 = vadd.f32 %v2803_v11, %v12968_v19 }
 0x259   :  { %2769 = vrot.lane.b32.xlu0 %v2674_v24, %s10144_s23  ;;  %v3106_v24 = vrot.slane %v14128_v45, 6 }
 0x25a   :  { %v3167_v33 = vpop.permute.xlu0 %3166  ;;  %v14150_v23 = vpop.permute.xlu1 %3460  ;;  %9525 = vmatpush3.bf16.msra.mxu1 %v9988_v50  ;;  %9505 = vmatpush3.bf16.msra.mxu0 %v9987_v34  ;;  %v3809_v34 = vsel %vm3780_vm2, %v13957_v37, %v3743_v51  ;;  %v3810_v50 = vsel %vm3780_vm2, %v3743_v51, %v14043_v2  ;;  %v9996_v37 = vld [vmem:[%s14945_s3 + $0x790] sm:$0xff]  }
 0x25b   :  { %v3233_v31 = vsel %vm3204_vm11, %v13923_v43, %v3167_v33  ;;  %v3234_v27 = vsel %vm3204_vm11, %v3167_v33, %v14079_v46  ;;  %9526 = vmatprep.subr.bf16.mxu1 %v9990_v1  ;;  %9506 = vmatprep.subr.bf16.mxu0 %v9989_v52  ;;  %v9995_v1 = vld [vmem:[%s14945_s3 + $0x708] sm:$0xff]   ;;  %v4158_v52 = vcombine.high %v4110_v12, %v4110_v12 }
 0x25c   :  { %v3328_v43 = vadd.f32 %v3233_v31, %v2895_v35  ;;  %v3329_v55 = vadd.f32 %v3234_v27, %v2896_v14  ;;  %3486 = vrot.lane.b32.xlu1 %v3393_v49, %s10145_s12  ;;  %v3523_v49 = vsel %vm3492_vm3, %v14022_v20, %v14081_v42  ;;  %v9998_v33 = vld [vmem:[%s14945_s3 + $0x7c8] sm:$0xff]   ;;  %v3524_v18 = vsel %vm3492_vm3, %v14081_v42, %v14150_v23  ;;  %v9997_v20 = vld [vmem:[%s14945_s3 + $0x740] sm:$0xff]  }
 0x25d   :  { %3488 = vrot.lane.b32.xlu0 %v3394_v29, %s10145_s12 }
 0x25e   :  { %v3616_v8 = vadd.f32 %v3521_v60, %v3328_v43  ;;  %v3617_v57 = vadd.f32 %v3522_v41, %v3329_v55  ;;  %v3171_v5 = vpop.permute.xlu0 %3170  ;;  %v14191_v4 = vpop.permute.xlu1 %3172  ;;  %9527 = vmatpush3.bf16.msra.mxu1 %v9992_v36  ;;  %9507 = vmatpush3.bf16.msra.mxu0 %v9991_v30  ;;  %v10148_v36 = vmov 0.0   ;;  %v10000_v60 = vld [vmem:[%s14945_s3 + $0x788] sm:$0xff]  }
 0x25f   :  { %v3235_v40 = vsel %vm3204_vm11, %v14079_v46, %v3171_v5  ;;  %v3236_v19 = vsel %vm3204_vm11, %v3171_v5, %v14191_v4  ;;  %v4111_v46 = vld [vmem:[%s14946_s2 + $0x78] sm:$0x77]  ;;  %9528 = vmatprep.subr.bf16.mxu1 %v9994_v32  ;;  %9508 = vmatprep.subr.bf16.mxu0 %v9993_v9  ;;  %3972 = vst [vmem:[%s14947_s5 + $0xbc] sm:$0x7] %v10148_v36  ;;  %v10012_v36 = vld [vmem:[%s14945_s3 + $0x8f0] sm:$0xff]  }
 0x260   :  { %v3904_v35 = vadd.f32 %v3809_v34, %v3616_v8  ;;  %v3905_v14 = vadd.f32 %v3810_v50, %v3617_v57  ;;  %v3330_v51 = vadd.f32 %v3235_v40, %v2897_v13  ;;  %v3331_v3 = vadd.f32 %v3236_v19, %v2898_v16  ;;  %3776 = vrot.lane.b32.xlu1 %v3682_v22, %s10146_s19  ;;  %v10002_v13 = vld [vmem:[%s14945_s3 + $0x7c0] sm:$0xff]   ;;  %v10003_v34 = vld [vmem:[%s14945_s3 + $0x878] sm:$0xff]   ;;  %v10007_v19 = vld [vmem:[%s14945_s3 + $0x870] sm:$0xff]  }
 0x261   :  { %3198 = vrot.lane.b32.xlu0 %v3101_v53, %s10147_s29  ;;  %v4159_v8 = vcombine.high %v4111_v46, %v4111_v46  ;;  %v3107_v5 = vsel %vm2963_vm4, %v3105_v17, %v3106_v24 }
 0x262   :  { %v3952_v29 = vmax.f32 %v3904_v35, 0.0  ;;  %v3618_v31 = vadd.f32 %v3523_v49, %v3330_v51  ;;  %v3747_v27 = vpop.permute.xlu0 %3746  ;;  %v3953_v30 = vmax.f32 %v3905_v14, 0.0  ;;  %v3619_v11 = vadd.f32 %v3524_v18, %v3331_v3  ;;  %v14223_v43 = vpop.permute.xlu1 %3748  ;;  %9529 = vmatpush3.bf16.msra.mxu1 %v9996_v37  ;;  %9509 = vmatpush3.bf16.msra.mxu0 %v9995_v1  ;;  %v10005_v37 = vld [vmem:[%s14945_s3 + $0x838] sm:$0xff]   ;;  %v10009_v18 = vld [vmem:[%s14945_s3 + $0x830] sm:$0xff]  }
 0x263   :  { %v3811_v42 = vsel %vm3780_vm2, %v14043_v2, %v3747_v27  ;;  %v3812_v9 = vsel %vm3780_vm2, %v3747_v27, %v14223_v43  ;;  %9530 = vmatprep.subr.bf16.mxu1 %v9998_v33  ;;  %v9999_v2 = vld [vmem:[%s14945_s3 + $0x700] sm:$0xff]   ;;  %9510 = vmatprep.subr.bf16.mxu0 %v9997_v20  ;;  %v3683_v35 = vrot.slane %v14128_v45, 4  ;;  %v10008_v3 = vld [vmem:[%s14945_s3 + $0x8f8] sm:$0xff]  }
 0x264   :  { %v3906_v55 = vadd.f32 %v3811_v42, %v3618_v31  ;;  %v4035_v41 = vcombine.low %v3952_v29, %v3953_v30  ;;  %v4220_v32 = vmul.f32 %v4110_v12, %v3952_v29  ;;  %v3907_v53 = vadd.f32 %v3812_v9, %v3619_v11  ;;  %3202 = vrot.lane.b32.xlu1 %v3107_v5, %s10147_s29  ;;  %v10010_v20 = vld [vmem:[%s14945_s3 + $0x8b8] sm:$0xff]  }
 0x265   :  { %v4221_v22 = vmul.f32 %v4158_v52, %v3953_v30  ;;  %3774 = vrot.lane.b32.xlu0 %v3681_v7, %s10146_s19  ;;  %v3395_v7 = vrot.slane %v14128_v45, 1 }
 0x266   :  { %v3954_v57 = vmax.f32 %v3906_v55, 0.0  ;;  %v14244_v12 = vpop.permute.xlu0 %2741  ;;  %4083 = vst [vmem:[%s14947_s5 + $0x70] sm:$0x77] %v4035_v41  ;;  %v3955_v50 = vmax.f32 %v3907_v53, 0.0  ;;  %v14253_v16 = vpop.permute.xlu1 %2743  ;;  %9531 = vmatpush3.bf16.msra.mxu1 %v10000_v60  ;;  %v4268_v40 = vpack.c.bf16 %v4220_v32, %v4220_v32  ;;  %9511 = vmatpush3.bf16.msra.mxu0 %v9999_v2  ;;  %v10011_v55 = vld [vmem:[%s14945_s3 + $0x868] sm:$0xff]   ;;  %v10014_v32 = vld [vmem:[%s14945_s3 + $0x8b0] sm:$0xff]  }
 0x267   :  { %v4269_v17 = vpack.c.bf16 %v4221_v22, %v4221_v22  ;;  %v9248_v1 = vpop.f32.mrf.mxu0  ;;  %9532 = vmatprep.subr.bf16.mxu1 %v10002_v13  ;;  %9540 = vmatprep.subr.bf16.mxu0 %v10003_v34  ;;  %v10016_v2 = vld [vmem:[%s14945_s3 + $0x8e8] sm:$0xff]   ;;  %v10017_v34 = vld [vmem:[%s14945_s3 + $0x820] sm:$0xff]  }
 0x268   :  { %v4222_v24 = vmul.f32 %v4111_v46, %v3954_v57  ;;  %v4036_v14 = vcombine.low %v3954_v57, %v3955_v50  ;;  %v4223_v51 = vmul.f32 %v4159_v8, %v3955_v50  ;;  %3778 = vrot.lane.b32.xlu1 %v3683_v35, %s10146_s19  ;;  %v10015_v8 = vld [vmem:[%s14945_s3 + $0x860] sm:$0xff]   ;;  %v10018_v50 = vld [vmem:[%s14945_s3 + $0x8a8] sm:$0xff]  }
 0x269   :  { %7956 = vmatprep.mubr.bf16.mxu0 %v4269_v17  ;;  %v9249_v49 = vpop.f32.mrf.mxu0  ;;  %3490 = vrot.lane.b32.xlu0 %v3395_v7, %s10145_s12  ;;  %v10020_v17 = vld [vmem:[%s14945_s3 + $0x8e0] sm:$0xff]   ;;  %v10019_v7 = vld [vmem:[%s14945_s3 + $0x858] sm:$0xff]  }
 0x26a   :  { %v14266_v46 = vpop.permute.xlu0 %2745  ;;  %v4270_v33 = vpack.c.bf16 %v4222_v24, %v4222_v24  ;;  %4084 = vst [vmem:[%s14947_s5 + $0x78] sm:$0x77] %v4036_v14  ;;  %v14276_v45 = vpop.permute.xlu1 %3464  ;;  %v9250_v52 = vadd.f32 %v9249_v49, %v9248_v1  ;;  %v4271_v29 = vpack.c.bf16 %v4223_v51, %v4223_v51  ;;  %7957 = vmatmul.mubr.bf16.vlgmr.msra.gmra.mxu0 %v4268_v40  ;;  %v10021_v40 = vld [vmem:[%s14945_s3 + $0x818] sm:$0xff]   ;;  %v10022_v35 = vld [vmem:[%s14945_s3 + $0x8a0] sm:$0xff]  }
 0x26b   :  { %9533 = vmatpush3.bf16.msra.mxu1 %v10004_v48  ;;  %v9251_v31 = vpop.f32.mrf.mxu0  ;;  %v9270_v27 = vpop.f32.mrf.mxu1  ;;  %9541 = vmatpush3.bf16.msra.mxu0 %v10005_v37  ;;  %v2804_v1 = vsel %vm2771_vm10, %v14105_v54, %v14244_v12  ;;  %v2805_v37 = vsel %vm2771_vm10, %v14244_v12, %v14253_v16  ;;  %v10024_v14 = vld [vmem:[%s14945_s3 + $0x8d8] sm:$0xff]   ;;  %v10023_v54 = vld [vmem:[%s14945_s3 + $0x850] sm:$0xff]  }
 0x26c   :  { %v7479_v30 = vadd.f32 %v9250_v52, %v14076_v47  ;;  %7996 = vmatprep.mubr.bf16.mxu1 %v4271_v29  ;;  %9542 = vmatprep.subr.bf16.mxu0 %v10007_v19  ;;  %v10013_v47 = vld [vmem:[%s14945_s3 + $0x828] sm:$0xff]   ;;  %v2899_v51 = vadd.f32 %v2804_v1, %v13033_v63  ;;  %v2900_v12 = vadd.f32 %v2805_v37, %v13198_v58  ;;  %v10026_v29 = vld [vmem:[%s14945_s3 + $0x898] sm:$0xff]  }
 0x26d   :  { %9562 = vmatprep.subr.bf16.mxu1 %v10008_v3  ;;  %v9252_v11 = vpop.f32.mrf.mxu0  ;;  %v9271_v60 = vpop.f32.mrf.mxu1  ;;  %v10025_v3 = vld [vmem:[%s14945_s3 + $0x810] sm:$0xff]  }
 0x26e   :  { %v3463_v42 = vpop.permute.xlu0 %3462  ;;  %7997 = vmatmul.mubr.bf16.vlgmr.msra.gmra.mxu1 %v4270_v33  ;;  %v14291_v9 = vpop.permute.xlu1 %3752  ;;  %v9272_v41 = vadd.f32 %v9271_v60, %v9270_v27  ;;  %v2806_v33 = vsel %vm2771_vm10, %v14253_v16, %v14266_v46  ;;  %v10027_v16 = vld [vmem:[%s14945_s3 + $0x848] sm:$0xff]   ;;  %v10028_v27 = vld [vmem:[%s14945_s3 + $0x8d0] sm:$0xff]  }
 0x26f   :  { %9563 = vmatpush3.bf16.msra.mxu1 %v10010_v20  ;;  %9543 = vmatpush3.bf16.msra.mxu0 %v10009_v18  ;;  %v9273_v53 = vpop.f32.mrf.mxu1  ;;  %v2901_v20 = vadd.f32 %v2806_v33, %v13227_v26 }
 0x270   :  { %9564 = vmatprep.subr.bf16.mxu1 %v10012_v36  ;;  %v14302_v22 = vadd.f32 %v9272_v41, %v7479_v30  ;;  %9544 = vmatprep.subr.bf16.mxu0 %v10011_v55 }
 0x271   :  { %v9274_v5 = vpop.f32.mrf.mxu1 }
 0x272   :  { %v14304_v13 = vpop.permute.xlu0 %3466  ;;  %v3177_v57 = vpop.permute.xlu1 %3176 }
 0x273   :  { %9565 = vmatpush3.bf16.msra.mxu1 %v10014_v32  ;;  %9545 = vmatpush3.bf16.msra.mxu0 %v10013_v47  ;;  %v10030_v32 = vld [vmem:[%s14945_s3 + $0x890] sm:$0xff]  }
 0x274   :  { %9566 = vmatprep.subr.bf16.mxu1 %v10016_v2  ;;  %9546 = vmatprep.subr.bf16.mxu0 %v10015_v8 }
 0x276   :  { %v3751_v48 = vpop.permute.xlu0 %3750  ;;  %v14321_v24 = vpop.permute.xlu1 %2747 }
 0x277   :  { %9567 = vmatpush3.bf16.msra.mxu1 %v10018_v50  ;;  %9547 = vmatpush3.bf16.msra.mxu0 %v10017_v34  ;;  %v2807_v52 = vsel %vm2771_vm10, %v14266_v46, %v14321_v24  ;;  %v3525_v46 = vsel %vm3492_vm3, %v14150_v23, %v3463_v42  ;;  %v10029_v23 = vld [vmem:[%s14945_s3 + $0x808] sm:$0xff]   ;;  %v3813_v41 = vsel %vm3780_vm2, %v14223_v43, %v3751_v48  ;;  %v10031_v50 = vld [vmem:[%s14945_s3 + $0x840] sm:$0xff]  }
 0x278   :  { %9568 = vmatprep.subr.bf16.mxu1 %v10020_v17  ;;  %9548 = vmatprep.subr.bf16.mxu0 %v10019_v7  ;;  %v2902_v30 = vadd.f32 %v2807_v52, %v13251_v21  ;;  %v3814_v26 = vsel %vm3780_vm2, %v3751_v48, %v14291_v9  ;;  %v10032_v43 = vld [vmem:[%s14945_s3 + $0x8c8] sm:$0xff]  }
 0x27a   :  { %v14343_v49 = vpop.permute.xlu1 %3468 }
 0x27b   :  { %v3175_v19 = vpop.permute.xlu0 %3174  ;;  %9569 = vmatpush3.bf16.msra.mxu1 %v10022_v35  ;;  %9549 = vmatpush3.bf16.msra.mxu0 %v10021_v40  ;;  %v3528_v34 = vsel %vm3492_vm3, %v14304_v13, %v14343_v49  ;;  %v4113_v40 = vld [vmem:[%s14946_s2 + $0x88] sm:$0x77] }
 0x27c   :  { %v3237_v63 = vsel %vm3204_vm11, %v14191_v4, %v3175_v19  ;;  %v3238_v58 = vsel %vm3204_vm11, %v3175_v19, %v3177_v57  ;;  %9570 = vmatprep.subr.bf16.mxu1 %v10024_v14  ;;  %v3526_v4 = vsel %vm3492_vm3, %v3463_v42, %v14276_v45  ;;  %9550 = vmatprep.subr.bf16.mxu0 %v10023_v54  ;;  %v4112_v42 = vld [vmem:[%s14946_s2 + $0x80] sm:$0x77]  ;;  %v10034_v54 = vld [vmem:[%s14945_s3 + $0x888] sm:$0xff]  }
 0x27d   :  { %v3332_v18 = vadd.f32 %v3237_v63, %v2899_v51  ;;  %v3333_v31 = vadd.f32 %v3238_v58, %v2900_v12  ;;  %v4160_v17 = vcombine.high %v4112_v42, %v4112_v42  ;;  %v10033_v19 = vld [vmem:[%s14945_s3 + $0x800] sm:$0xff]   ;;  %v4161_v63 = vcombine.high %v4113_v40, %v4113_v40 }
 0x27e   :  { %v14372_v60 = vpop.permute.xlu1 %3180 }
 0x27f   :  { %v3620_v36 = vadd.f32 %v3525_v46, %v3332_v18  ;;  %v3621_v11 = vadd.f32 %v3526_v4, %v3333_v31  ;;  %v3179_v55 = vpop.permute.xlu0 %3178  ;;  %9571 = vmatpush3.bf16.msra.mxu1 %v10026_v29  ;;  %9551 = vmatpush3.bf16.msra.mxu0 %v10025_v3 }
 0x280   :  { %v3239_v21 = vsel %vm3204_vm11, %v3177_v57, %v3179_v55  ;;  %v3240_v47 = vsel %vm3204_vm11, %v3179_v55, %v14372_v60  ;;  %v3527_v57 = vsel %vm3492_vm3, %v14276_v45, %v14304_v13  ;;  %9552 = vmatprep.subr.bf16.mxu0 %v10027_v16  ;;  %9572 = vmatprep.subr.bf16.mxu1 %v10028_v27  ;;  %v10037_v16 = vld [vmem:[%s14945_s3 + $0x978] sm:$0xff]   ;;  %v10038_v27 = vld [vmem:[%s14945_s3 + $0x880] sm:$0xff]  }
 0x281   :  { %v3908_v53 = vadd.f32 %v3813_v41, %v3620_v36  ;;  %v3909_v2 = vadd.f32 %v3814_v26, %v3621_v11  ;;  %v3334_v8 = vadd.f32 %v3239_v21, %v2901_v20  ;;  %v3335_v5 = vadd.f32 %v3240_v47, %v2902_v30  ;;  %v10039_v11 = vld [vmem:[%s14945_s3 + $0x938] sm:$0xff]  }
 0x282   :  { %v14405_v45 = vpop.permute.xlu1 %3756  ;;  %v10042_v55 = vld [vmem:[%s14945_s3 + $0x9f8] sm:$0xff]  }
 0x283   :  { %v3956_v48 = vmax.f32 %v3908_v53, 0.0  ;;  %v3622_v7 = vadd.f32 %v3527_v57, %v3334_v8  ;;  %v3755_v1 = vpop.permute.xlu0 %3754  ;;  %v3623_v37 = vadd.f32 %v3528_v34, %v3335_v5  ;;  %v3957_v35 = vmax.f32 %v3909_v2, 0.0  ;;  %9573 = vmatpush3.bf16.msra.mxu1 %v10030_v32  ;;  %9553 = vmatpush3.bf16.msra.mxu0 %v10029_v23  ;;  %v10044_v53 = vld [vmem:[%s14945_s3 + $0x9b8] sm:$0xff]   ;;  %v10043_v5 = vld [vmem:[%s14945_s3 + $0x930] sm:$0xff]   ;;  %v10045_v34 = vld [vmem:[%s14945_s3 + $0x968] sm:$0xff]  }
 0x284   :  { %v3815_v13 = vsel %vm3780_vm2, %v14291_v9, %v3755_v1  ;;  %v3816_v14 = vsel %vm3780_vm2, %v3755_v1, %v14405_v45  ;;  %9574 = vmatprep.subr.bf16.mxu1 %v10032_v43  ;;  %9554 = vmatprep.subr.bf16.mxu0 %v10031_v50  ;;  %v10036_v9 = vld [vmem:[%s14945_s3 + $0x8c0] sm:$0xff]   ;;  %v10046_v43 = vld [vmem:[%s14945_s3 + $0x9f0] sm:$0xff]  }
 0x285   :  { %v3910_v51 = vadd.f32 %v3815_v13, %v3622_v7  ;;  %v3911_v12 = vadd.f32 %v3816_v14, %v3623_v37  ;;  %v4037_v3 = vcombine.low %v3956_v48, %v3957_v35  ;;  %v4224_v33 = vmul.f32 %v4112_v42, %v3956_v48  ;;  %v10041_v42 = vld [vmem:[%s14945_s3 + $0x970] sm:$0xff]   ;;  %v10049_v14 = vld [vmem:[%s14945_s3 + $0x960] sm:$0xff]  }
 0x286   :  { %v4225_v52 = vmul.f32 %v4160_v17, %v3957_v35  ;;  %v14422_v31 = vpop.permute.xlu1 %2751  ;;  %v10048_v1 = vld [vmem:[%s14945_s3 + $0x9b0] sm:$0xff]   ;;  %v10047_v35 = vld [vmem:[%s14945_s3 + $0x928] sm:$0xff]  }
 0x287   :  { %v3958_v58 = vmax.f32 %v3910_v51, 0.0  ;;  %v3959_v29 = vmax.f32 %v3911_v12, 0.0  ;;  %v14420_v18 = vpop.permute.xlu0 %2749  ;;  %4085 = vst [vmem:[%s14947_s5 + $0x80] sm:$0x77] %v4037_v3  ;;  %9575 = vmatpush3.bf16.msra.mxu1 %v10034_v54  ;;  %v4272_v46 = vpack.c.bf16 %v4224_v33, %v4224_v33  ;;  %9555 = vmatpush3.bf16.msra.mxu0 %v10033_v19  ;;  %v10052_v3 = vld [vmem:[%s14945_s3 + $0x9a8] sm:$0xff]   ;;  %v10051_v33 = vld [vmem:[%s14945_s3 + $0x920] sm:$0xff]  }
 0x288   :  { %v4273_v4 = vpack.c.bf16 %v4225_v52, %v4225_v52  ;;  %9576 = vmatprep.subr.bf16.mxu1 %v10036_v9  ;;  %9584 = vmatprep.subr.bf16.mxu0 %v10037_v16  ;;  %v10054_v52 = vld [vmem:[%s14945_s3 + $0x9e0] sm:$0xff]   ;;  %v10053_v9 = vld [vmem:[%s14945_s3 + $0x958] sm:$0xff]   ;;  %v2809_v16 = vsel %vm2771_vm10, %v14420_v18, %v14422_v31 }
 0x289   :  { %v4226_v20 = vmul.f32 %v4113_v40, %v3958_v58  ;;  %v4038_v30 = vcombine.low %v3958_v58, %v3959_v29  ;;  %v9292_v36 = vpop.f32.mrf.mxu0  ;;  %v4227_v23 = vmul.f32 %v4161_v63, %v3959_v29  ;;  %v2808_v29 = vsel %vm2771_vm10, %v14321_v24, %v14420_v18  ;;  %v10057_v24 = vld [vmem:[%s14945_s3 + $0x950] sm:$0xff]  }
 0x28a   :  { %8036 = vmatprep.mubr.bf16.mxu0 %v4273_v4  ;;  %v14447_v21 = vpop.permute.xlu1 %3472  ;;  %v10055_v4 = vld [vmem:[%s14945_s3 + $0x918] sm:$0xff]   ;;  %v2903_v18 = vadd.f32 %v2808_v29, %v13330_v39 }
 0x28b   :  { %v4274_v41 = vpack.c.bf16 %v4226_v20, %v4226_v20  ;;  %4086 = vst [vmem:[%s14947_s5 + $0x88] sm:$0x77] %v4038_v30  ;;  %v14445_v26 = vpop.permute.xlu0 %2753  ;;  %8037 = vmatmul.mubr.bf16.vlgmr.msra.gmra.mxu0 %v4272_v46  ;;  %9577 = vmatpush3.bf16.msra.mxu1 %v10038_v27  ;;  %v9293_v47 = vpop.f32.mrf.mxu0  ;;  %v4275_v32 = vpack.c.bf16 %v4227_v23, %v4227_v23  ;;  %v10056_v46 = vld [vmem:[%s14945_s3 + $0x9a0] sm:$0xff]   ;;  %v10058_v27 = vld [vmem:[%s14945_s3 + $0x9d8] sm:$0xff]  }
 0x28c   :  { %9585 = vmatpush3.bf16.msra.mxu0 %v10039_v11  ;;  %v9294_v2 = vadd.f32 %v9293_v47, %v9292_v36  ;;  %9606 = vmatprep.subr.bf16.mxu1 %v10042_v55  ;;  %v9314_v8 = vpop.f32.mrf.mxu1  ;;  %v2904_v20 = vadd.f32 %v2809_v16, %v13497_v10  ;;  %v2810_v36 = vsel %vm2771_vm10, %v14422_v31, %v14445_v26  ;;  %v10068_v16 = vld [vmem:[%s14945_s3 + $0x988] sm:$0xff]  }
 0x28d   :  { %8076 = vmatprep.mubr.bf16.mxu1 %v4275_v32  ;;  %9586 = vmatprep.subr.bf16.mxu0 %v10041_v42  ;;  %v9295_v57 = vpop.f32.mrf.mxu0  ;;  %v10060_v42 = vld [vmem:[%s14945_s3 + $0x998] sm:$0xff]   ;;  %v10061_v32 = vld [vmem:[%s14945_s3 + $0x948] sm:$0xff]  }
 0x28e   :  { %v7559_v50 = vadd.f32 %v9294_v2, %v14302_v22  ;;  %8077 = vmatmul.mubr.bf16.vlgmr.msra.gmra.mxu1 %v4274_v41  ;;  %v14462_v17 = vpop.permute.xlu1 %3760  ;;  %v9315_v40 = vpop.f32.mrf.mxu1  ;;  %v10050_v22 = vld [vmem:[%s14945_s3 + $0x9e8] sm:$0xff]  }
 0x28f   :  { %v3471_v48 = vpop.permute.xlu0 %3470  ;;  %9607 = vmatpush3.bf16.msra.mxu1 %v10044_v53  ;;  %v9296_v7 = vpop.f32.mrf.mxu0  ;;  %v9316_v37 = vadd.f32 %v9315_v40, %v9314_v8  ;;  %v2905_v53 = vadd.f32 %v2810_v36, %v13505_v38  ;;  %v10064_v38 = vld [vmem:[%s14945_s3 + $0x990] sm:$0xff]  }
 0x290   :  { %9587 = vmatpush3.bf16.msra.mxu0 %v10043_v5  ;;  %9608 = vmatprep.subr.bf16.mxu1 %v10046_v43  ;;  %v9317_v13 = vpop.f32.mrf.mxu1  ;;  %v3529_v31 = vsel %vm3492_vm3, %v14343_v49, %v3471_v48  ;;  %v3530_v47 = vsel %vm3492_vm3, %v3471_v48, %v14447_v21  ;;  %v4114_v49 = vld [vmem:[%s14946_s2 + $0x90] sm:$0x77] }
 0x291   :  { %9588 = vmatprep.subr.bf16.mxu0 %v10045_v34  ;;  %v14476_v54 = vadd.f32 %v9316_v37, %v7559_v50  ;;  %v10066_v37 = vld [vmem:[%s14945_s3 + $0x9c8] sm:$0xff]   ;;  %v10065_v13 = vld [vmem:[%s14945_s3 + $0x940] sm:$0xff]  }
 0x292   :  { %v3185_v51 = vpop.permute.xlu1 %3184  ;;  %v9318_v19 = vpop.f32.mrf.mxu1 }
 0x293   :  { %v14478_v12 = vpop.permute.xlu0 %3474  ;;  %9609 = vmatpush3.bf16.msra.mxu1 %v10048_v1 }
 0x294   :  { %9589 = vmatpush3.bf16.msra.mxu0 %v10047_v35  ;;  %9610 = vmatprep.subr.bf16.mxu1 %v10050_v22  ;;  %v3531_v35 = vsel %vm3492_vm3, %v14447_v21, %v14478_v12 }
 0x295   :  { %9590 = vmatprep.subr.bf16.mxu0 %v10049_v14  ;;  %v4162_v14 = vcombine.high %v4114_v49, %v4114_v49 }
 0x296   :  { %v14492_v58 = vpop.permute.xlu1 %2755 }
 0x297   :  { %v3759_v63 = vpop.permute.xlu0 %3758  ;;  %9611 = vmatpush3.bf16.msra.mxu1 %v10052_v3  ;;  %v2811_v39 = vsel %vm2771_vm10, %v14445_v26, %v14492_v58  ;;  %v10062_v26 = vld [vmem:[%s14945_s3 + $0x9d0] sm:$0xff]  }
 0x298   :  { %9591 = vmatpush3.bf16.msra.mxu0 %v10051_v33  ;;  %9612 = vmatprep.subr.bf16.mxu1 %v10054_v52  ;;  %v3817_v43 = vsel %vm3780_vm2, %v14405_v45, %v3759_v63  ;;  %v3818_v57 = vsel %vm3780_vm2, %v3759_v63, %v14462_v17  ;;  %v2906_v34 = vadd.f32 %v2811_v39, %v13532_v28  ;;  %v10063_v28 = vld [vmem:[%s14945_s3 + $0x908] sm:$0xff]   ;;  %v4115_v33 = vld [vmem:[%s14946_s2 + $0x98] sm:$0x77] }
 0x299   :  { %9592 = vmatprep.subr.bf16.mxu0 %v10053_v9  ;;  %v4163_v36 = vcombine.high %v4115_v33, %v4115_v33 }
 0x29a   :  { %v14520_v23 = vpop.permute.xlu1 %3476 }
 0x29b   :  { %v3183_v30 = vpop.permute.xlu0 %3182  ;;  %9613 = vmatpush3.bf16.msra.mxu1 %v10056_v46  ;;  %v3532_v19 = vsel %vm3492_vm3, %v14478_v12, %v14520_v23 }
 0x29c   :  { %v3241_v11 = vsel %vm3204_vm11, %v14372_v60, %v3183_v30  ;;  %v3242_v55 = vsel %vm3204_vm11, %v3183_v30, %v3185_v51  ;;  %9593 = vmatpush3.bf16.msra.mxu0 %v10055_v4  ;;  %9614 = vmatprep.subr.bf16.mxu1 %v10058_v27  ;;  %v10059_v60 = vld [vmem:[%s14945_s3 + $0x910] sm:$0xff]   ;;  %v10067_v4 = vld [vmem:[%s14945_s3 + $0x900] sm:$0xff]   ;;  %v10071_v30 = vld [vmem:[%s14945_s3 + $0xa78] sm:$0xff]  }
 0x29d   :  { %v3336_v10 = vadd.f32 %v3241_v11, %v2903_v18  ;;  %v3337_v41 = vadd.f32 %v3242_v55, %v2904_v20  ;;  %9594 = vmatprep.subr.bf16.mxu0 %v10057_v24 }
 0x29e   :  { %v14551_v48 = vpop.permute.xlu1 %3188 }
 0x29f   :  { %v3624_v2 = vadd.f32 %v3529_v31, %v3336_v10  ;;  %v3625_v8 = vadd.f32 %v3530_v47, %v3337_v41  ;;  %v3187_v5 = vpop.permute.xlu0 %3186  ;;  %9615 = vmatpush3.bf16.msra.mxu1 %v10060_v42 }
 0x2a0   :  { %v3243_v50 = vsel %vm3204_vm11, %v3185_v51, %v3187_v5  ;;  %9595 = vmatpush3.bf16.msra.mxu0 %v10059_v60  ;;  %v3244_v45 = vsel %vm3204_vm11, %v3187_v5, %v14551_v48  ;;  %9616 = vmatprep.subr.bf16.mxu1 %v10062_v26  ;;  %v10072_v60 = vld [vmem:[%s14945_s3 + $0x980] sm:$0xff]   ;;  %v10076_v26 = vld [vmem:[%s14945_s3 + $0xaf8] sm:$0xff]  }
 0x2a1   :  { %v3912_v7 = vadd.f32 %v3817_v43, %v3624_v2  ;;  %v3913_v40 = vadd.f32 %v3818_v57, %v3625_v8  ;;  %v3338_v1 = vadd.f32 %v3243_v50, %v2905_v53  ;;  %v3339_v22 = vadd.f32 %v3244_v45, %v2906_v34  ;;  %9596 = vmatprep.subr.bf16.mxu0 %v10061_v32  ;;  %v10073_v32 = vld [vmem:[%s14945_s3 + $0xa38] sm:$0xff]   ;;  %v10075_v8 = vld [vmem:[%s14945_s3 + $0xa70] sm:$0xff]  }
 0x2a2   :  { %v14578_v29 = vpop.permute.xlu1 %3764  ;;  %v10080_v45 = vld [vmem:[%s14945_s3 + $0xaf0] sm:$0xff]  }
 0x2a3   :  { %v3960_v51 = vmax.f32 %v3912_v7, 0.0  ;;  %v3626_v3 = vadd.f32 %v3531_v35, %v3338_v1  ;;  %v3763_v52 = vpop.permute.xlu0 %3762  ;;  %v3961_v21 = vmax.f32 %v3913_v40, 0.0  ;;  %9617 = vmatpush3.bf16.msra.mxu1 %v10064_v38  ;;  %v3627_v63 = vadd.f32 %v3532_v19, %v3339_v22  ;;  %v10078_v38 = vld [vmem:[%s14945_s3 + $0xab8] sm:$0xff]   ;;  %v10077_v1 = vld [vmem:[%s14945_s3 + $0xa30] sm:$0xff]   ;;  %v10081_v19 = vld [vmem:[%s14945_s3 + $0xa28] sm:$0xff]  }
 0x2a4   :  { %v3819_v9 = vsel %vm3780_vm2, %v14462_v17, %v3763_v52  ;;  %9597 = vmatpush3.bf16.msra.mxu0 %v10063_v28  ;;  %v3820_v46 = vsel %vm3780_vm2, %v3763_v52, %v14578_v29  ;;  %9618 = vmatprep.subr.bf16.mxu1 %v10066_v37  ;;  %v10070_v17 = vld [vmem:[%s14945_s3 + $0x9c0] sm:$0xff]   ;;  %v10079_v37 = vld [vmem:[%s14945_s3 + $0xa68] sm:$0xff]  }
 0x2a5   :  { %v3914_v12 = vadd.f32 %v3819_v9, %v3626_v3  ;;  %v4039_v27 = vcombine.low %v3960_v51, %v3961_v21  ;;  %v3915_v24 = vadd.f32 %v3820_v46, %v3627_v63  ;;  %9598 = vmatprep.subr.bf16.mxu0 %v10065_v13  ;;  %v4228_v18 = vmul.f32 %v4114_v49, %v3960_v51  ;;  %v10082_v51 = vld [vmem:[%s14945_s3 + $0xab0] sm:$0xff]   ;;  %v10084_v3 = vld [vmem:[%s14945_s3 + $0xae8] sm:$0xff]   ;;  %v10083_v52 = vld [vmem:[%s14945_s3 + $0xa60] sm:$0xff]  }
 0x2a6   :  { %v4229_v20 = vmul.f32 %v4162_v14, %v3961_v21  ;;  %v14599_v39 = vpop.permute.xlu1 %2759  ;;  %v10085_v46 = vld [vmem:[%s14945_s3 + $0xa20] sm:$0xff]  }
 0x2a7   :  { %v3962_v11 = vmax.f32 %v3914_v12, 0.0  ;;  %v14594_v55 = vpop.permute.xlu0 %2757  ;;  %4087 = vst [vmem:[%s14947_s5 + $0x90] sm:$0x77] %v4039_v27  ;;  %v3963_v42 = vmax.f32 %v3915_v24, 0.0  ;;  %9619 = vmatpush3.bf16.msra.mxu1 %v10068_v16  ;;  %v4276_v10 = vpack.c.bf16 %v4228_v18, %v4228_v18  ;;  %v10086_v12 = vld [vmem:[%s14945_s3 + $0xaa8] sm:$0xff]   ;;  %v10087_v27 = vld [vmem:[%s14945_s3 + $0xa58] sm:$0xff]  }
 0x2a8   :  { %v4277_v41 = vpack.c.bf16 %v4229_v20, %v4229_v20  ;;  %9599 = vmatpush3.bf16.msra.mxu0 %v10067_v4  ;;  %9620 = vmatprep.subr.bf16.mxu1 %v10070_v17  ;;  %v10088_v4 = vld [vmem:[%s14945_s3 + $0xae0] sm:$0xff]   ;;  %v10149_v17 = vmov 1   ;;  %v2812_v20 = vsel %vm2771_vm10, %v14492_v58, %v14594_v55  ;;  %v10092_v58 = vld [vmem:[%s14945_s3 + $0xad8] sm:$0xff]  }
 0x2a9   :  { %v4230_v31 = vmul.f32 %v4115_v33, %v3962_v11  ;;  %v9336_v47 = vpop.f32.mrf.mxu0  ;;  %v4040_v53 = vcombine.low %v3962_v11, %v3963_v42  ;;  %9628 = vmatprep.subr.bf16.mxu0 %v10071_v30  ;;  %v4231_v2 = vmul.f32 %v4163_v36, %v3963_v42  ;;  %9728 = vset.pattern.permute.xlu1 %v10149_v17  ;;  %v8324_v24 = vld [vmem:[%s14948_s4] sm:$0xf]  ;;  %v10089_v42 = vld [vmem:[%s14945_s3 + $0xa18] sm:$0xff]   ;;  %v10102_v17 = vld [vmem:[%s14945_s3 + $0xa88] sm:$0xff]  }
 0x2aa   :  { %8116 = vmatprep.mubr.bf16.mxu0 %v4277_v41  ;;  %v14618_v57 = vpop.permute.xlu1 %3480  ;;  %8336 = vperm.xlu1 %9728, %v8324_v24   ;;  %v2813_v30 = vsel %vm2771_vm10, %v14594_v55, %v14599_v39  ;;  %v10090_v11 = vld [vmem:[%s14945_s3 + $0xaa0] sm:$0xff]   ;;  %v10091_v55 = vld [vmem:[%s14945_s3 + $0xa50] sm:$0xff]  }
 0x2ab   :  { %v4278_v5 = vpack.c.bf16 %v4230_v31, %v4230_v31  ;;  %v14613_v49 = vpop.permute.xlu0 %2761  ;;  %v9337_v43 = vpop.f32.mrf.mxu0  ;;  %4088 = vst [vmem:[%s14947_s5 + $0x98] sm:$0x77] %v4040_v53  ;;  %8117 = vmatmul.mubr.bf16.vlgmr.msra.gmra.mxu0 %v4276_v10  ;;  %9621 = vmatpush3.bf16.msra.mxu1 %v10072_v60  ;;  %v4279_v50 = vpack.c.bf16 %v4231_v2, %v4231_v2  ;;  %v10150_v31 = vmov 2  }
 0x2ac   :  { %v9338_v34 = vadd.f32 %v9337_v43, %v9336_v47  ;;  %9629 = vmatpush3.bf16.msra.mxu0 %v10073_v32  ;;  %9650 = vmatprep.subr.bf16.mxu1 %v10076_v26  ;;  %v2907_v10 = vadd.f32 %v2812_v20, %v13602_v59  ;;  %v2908_v41 = vadd.f32 %v2813_v30, %v13767_v25  ;;  %v10151_v47 = vmov 3   ;;  %v10094_v59 = vld [vmem:[%s14945_s3 + $0xa98] sm:$0xff]   ;;  %v10104_v30 = vld [vmem:[%s14945_s3 + $0xac0] sm:$0xff]  }
 0x2ad   :  { %v9339_v7 = vpop.f32.mrf.mxu0  ;;  %v9358_v40 = vpop.f32.mrf.mxu1  ;;  %8156 = vmatprep.mubr.bf16.mxu1 %v4279_v50  ;;  %9630 = vmatprep.subr.bf16.mxu0 %v10075_v8  ;;  %v2814_v32 = vsel %vm2771_vm10, %v14599_v39, %v14613_v49 }
 0x2ae   :  { %v7639_v28 = vadd.f32 %v9338_v34, %v14476_v54  ;;  %8157 = vmatmul.mubr.bf16.vlgmr.msra.gmra.mxu1 %v4278_v5  ;;  %v14635_v13 = vpop.permute.xlu1 %3768  ;;  %8327 = vperm.xlu0 %9727, %v8324_v24   ;;  %v10096_v5 = vld [vmem:[%s14945_s3 + $0xad0] sm:$0xff]   ;;  %v10095_v34 = vld [vmem:[%s14945_s3 + $0xa48] sm:$0xff]   ;;  %v4116_v7 = vld [vmem:[%s14946_s2 + $0xa0] sm:$0x77] }
 0x2af   :  { %v14633_v35 = vpop.permute.xlu0 %3478  ;;  %v9340_v22 = vpop.f32.mrf.mxu0  ;;  %9651 = vmatpush3.bf16.msra.mxu1 %v10078_v38  ;;  %9729 = vset.pattern.permute.xlu1 %v10150_v31 }
 0x2b0   :  { %v9359_v14 = vpop.f32.mrf.mxu1  ;;  %9631 = vmatpush3.bf16.msra.mxu0 %v10077_v1  ;;  %9652 = vmatprep.subr.bf16.mxu1 %v10080_v45  ;;  %v3533_v43 = vsel %vm3492_vm3, %v14520_v23, %v14633_v35 }
 0x2b1   :  { %v9360_v54 = vadd.f32 %v9359_v14, %v9358_v40  ;;  %9632 = vmatprep.subr.bf16.mxu0 %v10079_v37  ;;  %8346 = vperm.xlu1 %9729, %v8324_v24   ;;  %v2909_v40 = vadd.f32 %v2814_v32, %v13794_v44  ;;  %v10098_v37 = vld [vmem:[%s14945_s3 + $0xa90] sm:$0xff]  }
 0x2b2   :  { %v9361_v33 = vpop.f32.mrf.mxu1  ;;  %v14653_v63 = vpop.permute.xlu1 %3192  ;;  %9730 = vset.pattern.permute.xlu0 %v10151_v47 }
 0x2b3   :  { %v14649_v21 = vadd.f32 %v9360_v54, %v7639_v28  ;;  %v14651_v9 = vpop.permute.xlu0 %3482  ;;  %9653 = vmatpush3.bf16.msra.mxu1 %v10082_v51  ;;  %8356 = vperm.xlu0 %9730, %v8324_v24  }
 0x2b4   :  { %v9362_v16 = vpop.f32.mrf.mxu1  ;;  %9633 = vmatpush3.bf16.msra.mxu0 %v10081_v19  ;;  %9654 = vmatprep.subr.bf16.mxu1 %v10084_v3  ;;  %v10099_v19 = vld [vmem:[%s14945_s3 + $0xa40] sm:$0xff]   ;;  %v4164_v3 = vcombine.high %v4116_v7, %v4116_v7  ;;  %v3535_v33 = vsel %vm3492_vm3, %v14618_v57, %v14651_v9 }
 0x2b5   :  { %9634 = vmatprep.subr.bf16.mxu0 %v10083_v52 }
 0x2b6   :  { %v14676_v36 = vpop.permute.xlu1 %2763 }
 0x2b7   :  { %v3767_v18 = vpop.permute.xlu0 %3766  ;;  %9655 = vmatpush3.bf16.msra.mxu1 %v10086_v12  ;;  %v2815_v25 = vsel %vm2771_vm10, %v14613_v49, %v14676_v36  ;;  %v3534_v49 = vsel %vm3492_vm3, %v14633_v35, %v14618_v57 }
 0x2b8   :  { %9635 = vmatpush3.bf16.msra.mxu0 %v10085_v46  ;;  %9656 = vmatprep.subr.bf16.mxu1 %v10088_v4  ;;  %v3821_v23 = vsel %vm3780_vm2, %v14578_v29, %v3767_v18  ;;  %v3822_v1 = vsel %vm3780_vm2, %v3767_v18, %v14635_v13  ;;  %v2910_v45 = vadd.f32 %v2815_v25, %v13813_v0  ;;  %v10097_v29 = vld [vmem:[%s14945_s3 + $0xa08] sm:$0xff]   ;;  %v10107_v25 = vld [vmem:[%s14945_s3 + $0xb38] sm:$0xff]  }
 0x2b9   :  { %9636 = vmatprep.subr.bf16.mxu0 %v10087_v27  ;;  %v10100_v0 = vld [vmem:[%s14945_s3 + $0xac8] sm:$0xff]  }
 0x2ba   :  { %v14699_v2 = vpop.permute.xlu1 %3484  ;;  %v4117_v4 = vld [vmem:[%s14946_s2 + $0xa8] sm:$0x77] }
 0x2bb   :  { %v3191_v60 = vpop.permute.xlu0 %3190  ;;  %9657 = vmatpush3.bf16.msra.mxu1 %v10090_v11  ;;  %v3536_v12 = vsel %vm3492_vm3, %v14651_v9, %v14699_v2  ;;  %v10101_v9 = vld [vmem:[%s14945_s3 + $0xa00] sm:$0xff]  }
 0x2bc   :  { %v3245_v26 = vsel %vm3204_vm11, %v14551_v48, %v3191_v60  ;;  %v3246_v53 = vsel %vm3204_vm11, %v3191_v60, %v14653_v63  ;;  %9637 = vmatpush3.bf16.msra.mxu0 %v10089_v42  ;;  %9658 = vmatprep.subr.bf16.mxu1 %v10092_v58  ;;  %v10093_v48 = vld [vmem:[%s14945_s3 + $0xa10] sm:$0xff]  }
 0x2bd   :  { %v3340_v39 = vadd.f32 %v3245_v26, %v2907_v10  ;;  %v3341_v8 = vadd.f32 %v3246_v53, %v2908_v41  ;;  %9638 = vmatprep.subr.bf16.mxu0 %v10091_v55  ;;  %v10105_v55 = vld [vmem:[%s14945_s3 + $0xb78] sm:$0xff]   ;;  %v4165_v41 = vcombine.high %v4117_v4, %v4117_v4  ;;  %v10106_v26 = vld [vmem:[%s14945_s3 + $0xa80] sm:$0xff]  }
 0x2be   :  { %v14736_v14 = vpop.permute.xlu1 %3196 }
 0x2bf   :  { %v3628_v50 = vadd.f32 %v3533_v43, %v3340_v39  ;;  %v3629_v38 = vadd.f32 %v3534_v49, %v3341_v8  ;;  %9659 = vmatpush3.bf16.msra.mxu1 %v10094_v59  ;;  %v3195_v28 = vpop.permute.xlu0 %3194 }
 0x2c0   :  { %9639 = vmatpush3.bf16.msra.mxu0 %v10093_v48  ;;  %v3247_v44 = vsel %vm3204_vm11, %v14653_v63, %v3195_v28  ;;  %9660 = vmatprep.subr.bf16.mxu1 %v10096_v5  ;;  %v3248_v54 = vsel %vm3204_vm11, %v3195_v28, %v14736_v14  ;;  %v10109_v48 = vld [vmem:[%s14945_s3 + $0xb70] sm:$0xff]   ;;  %v10110_v5 = vld [vmem:[%s14945_s3 + $0xbf8] ss:$0 sps:$4 sm:$0xff]  }
 0x2c1   :  { %v3916_v35 = vadd.f32 %v3821_v23, %v3628_v50  ;;  %v3917_v22 = vadd.f32 %v3822_v1, %v3629_v38  ;;  %v3342_v51 = vadd.f32 %v3247_v44, %v2909_v40  ;;  %9640 = vmatprep.subr.bf16.mxu0 %v10095_v34  ;;  %v3343_v63 = vadd.f32 %v3248_v54, %v2910_v45  ;;  %v10111_v1 = vld [vmem:[%s14945_s3 + $0xb30] sm:$0xff]   ;;  %v10112_v45 = vld [vmem:[%s14945_s3 + $0xbb8] sm:$0xff]  }
 0x2c2   :  { %v14763_v18 = vpop.permute.xlu1 %3772 }
 0x2c3   :  { %v3964_v52 = vmax.f32 %v3916_v35, 0.0  ;;  %v3965_v16 = vmax.f32 %v3917_v22, 0.0  ;;  %9661 = vmatpush3.bf16.msra.mxu1 %v10098_v37  ;;  %v3630_v46 = vadd.f32 %v3535_v33, %v3342_v51  ;;  %v3771_v27 = vpop.permute.xlu0 %3770  ;;  %v3631_v24 = vadd.f32 %v3536_v12, %v3343_v63  ;;  %v10113_v35 = vld [vmem:[%s14945_s3 + $0xb68] sm:$0xff]   ;;  %v10114_v22 = vld [vmem:[%s14945_s3 + $0xbf0] sm:$0xff]  }
 0x2c4   :  { %9641 = vmatpush3.bf16.msra.mxu0 %v10097_v29  ;;  %v3823_v57 = vsel %vm3780_vm2, %v14635_v13, %v3771_v27  ;;  %9662 = vmatprep.subr.bf16.mxu1 %v10100_v0  ;;  %v3824_v42 = vsel %vm3780_vm2, %v3771_v27, %v14763_v18  ;;  %v10115_v33 = vld [vmem:[%s14945_s3 + $0xb28] sm:$0xff]  }
 0x2c5   :  { %v4041_v20 = vcombine.low %v3964_v52, %v3965_v16  ;;  %v3918_v11 = vadd.f32 %v3823_v57, %v3630_v46  ;;  %9642 = vmatprep.subr.bf16.mxu0 %v10099_v19  ;;  %v4232_v58 = vmul.f32 %v4116_v7, %v3964_v52  ;;  %v4233_v13 = vmul.f32 %v4164_v3, %v3965_v16  ;;  %v10118_v63 = vld [vmem:[%s14945_s3 + $0xbe8] sm:$0xff]  }
 0x2c6   :  { %v3919_v10 = vadd.f32 %v3824_v42, %v3631_v24  ;;  %v14782_v59 = vpop.permute.xlu1 %2767 }
 0x2c7   :  { %4089 = vst [vmem:[%s14947_s5 + $0xa0] sm:$0x77] %v4041_v20  ;;  %v3966_v60 = vmax.f32 %v3918_v11, 0.0  ;;  %9663 = vmatpush3.bf16.msra.mxu1 %v10102_v17  ;;  %v2766_v31 = vpop.permute.xlu0 %2765  ;;  %v4280_v47 = vpack.c.bf16 %v4232_v58, %v4232_v58  ;;  %v4281_v32 = vpack.c.bf16 %v4233_v13, %v4233_v13  ;;  %v10119_v20 = vld [vmem:[%s14945_s3 + $0xb20] sm:$0xff]  }
 0x2c8   :  { %v3967_v53 = vmax.f32 %v3919_v10, 0.0  ;;  %9643 = vmatpush3.bf16.msra.mxu0 %v10101_v9  ;;  %9664 = vmatprep.subr.bf16.mxu1 %v10104_v30  ;;  %v2816_v51 = vsel %vm2771_vm10, %v14676_v36, %v2766_v31  ;;  %v2817_v54 = vsel %vm2771_vm10, %v2766_v31, %v14782_v59  ;;  %v10117_v36 = vld [vmem:[%s14945_s3 + $0xb60] sm:$0xff]  }
 0x2c9   :  { %v4234_v39 = vmul.f32 %v4117_v4, %v3966_v60  ;;  %8196 = vmatprep.mubr.bf16.mxu0 %v4281_v32  ;;  %9672 = vmatprep.subr.bf16.mxu0 %v10105_v55  ;;  %v9380_v8 = vpop.f32.mrf.mxu0  ;;  %v2911_v12 = vadd.f32 %v2816_v51, %v13902_v56  ;;  %v2912_v46 = vadd.f32 %v2817_v54, %v14032_v61  ;;  %v10120_v56 = vld [vmem:[%s14945_s3 + $0xba8] sm:$0xff]   ;;  %v10122_v58 = vld [vmem:[%s14945_s3 + $0xbe0] sm:$0xff]   ;;  %v10123_v32 = vld [vmem:[%s14945_s3 + $0xb18] sm:$0xff]  }
 0x2ca   :  { %v4042_v43 = vcombine.low %v3966_v60, %v3967_v53  ;;  %v4235_v49 = vmul.f32 %v4165_v41, %v3967_v53  ;;  %v14798_v7 = vpop.permute.xlu1 %3200  ;;  %v14861_v41 = vld [vmem:[%s14946_s2 + $0xb0] sm:$0x77] }
 0x2cb   :  { %v4282_v34 = vpack.c.bf16 %v4234_v39, %v4234_v39  ;;  %8197 = vmatmul.mubr.bf16.vlgmr.msra.gmra.mxu0 %v4280_v47  ;;  %9665 = vmatpush3.bf16.msra.mxu1 %v10106_v26  ;;  %v14793_v50 = vpop.permute.xlu0 %2769  ;;  %v9381_v38 = vpop.f32.mrf.mxu0  ;;  %v10124_v26 = vld [vmem:[%s14945_s3 + $0xba0] sm:$0xff]  }
 0x2cc   :  { %4090 = vst [vmem:[%s14947_s5 + $0xa8] sm:$0x77] %v4042_v43  ;;  %9673 = vmatpush3.bf16.msra.mxu0 %v10107_v25  ;;  %v9382_v40 = vadd.f32 %v9381_v38, %v9380_v8  ;;  %v4283_v23 = vpack.c.bf16 %v4235_v49, %v4235_v49  ;;  %9716 = vmatprep.subr.msk.bf16.mxu1 %vm7360_vm7, %v10110_v5 }
 0x2cd   :  { %9674 = vmatprep.subr.bf16.mxu0 %v10109_v48  ;;  %v9383_v28 = vpop.f32.mrf.mxu0  ;;  %v9402_v37 = vpop.f32.mrf.mxu1  ;;  %v2818_v13 = vsel %vm2771_vm10, %v14782_v59, %v14793_v50  ;;  %v2914_v8 = vadd.f32 %v14793_v50, %v14066_v15  ;;  %v10127_v48 = vld [vmem:[%s14945_s3 + $0xbd8] sm:$0xff]   ;;  %v4166_v5 = vcombine.high %v14861_v41, %v14861_v41  ;;  %v10128_v50 = vld [vmem:[%s14945_s3 + $0xb10] sm:$0xff]  }
 0x2ce   :  { %v7719_v44 = vadd.f32 %v9382_v40, %v14649_v21  ;;  %8236 = vmatprep.mubr.bf16.mxu1 %v4283_v23  ;;  %v3487_v19 = vpop.permute.xlu1 %3486  ;;  %v10116_v21 = vld [vmem:[%s14945_s3 + $0xbb0] sm:$0xff]   ;;  %v2913_v39 = vadd.f32 %v2818_v13, %v14053_v62  ;;  %v4119_v62 = vld [vmem:[%s14946_s2 + $0xb8] sm:$0x77] }
 0x2cf   :  { %8237 = vmatmul.mubr.bf16.vlgmr.msra.gmra.mxu1 %v4282_v34  ;;  %v14813_v29 = vpop.permute.xlu0 %3488  ;;  %v9384_v0 = vpop.f32.mrf.mxu0  ;;  %v3537_v11 = vsel %vm3492_vm3, %v14699_v2, %v3487_v19  ;;  %v10129_v40 = vld [vmem:[%s14945_s3 + $0xb98] sm:$0xff]   ;;  %v10131_v28 = vld [vmem:[%s14945_s3 + $0xbd0] sm:$0xff]  }
 0x2d0   :  { %9675 = vmatpush3.bf16.msra.mxu0 %v10111_v1  ;;  %9695 = vmatpush3.bf16.msra.mxu1 %v10112_v45  ;;  %v9403_v3 = vpop.f32.mrf.mxu1  ;;  %v3538_v42 = vsel %vm3492_vm3, %v3487_v19, %v14813_v29  ;;  %v10130_v45 = vld [vmem:[%s14945_s3 + $0xb48] sm:$0xff]  }
 0x2d1   :  { %v9404_v52 = vadd.f32 %v9403_v3, %v9402_v37  ;;  %9676 = vmatprep.subr.bf16.mxu0 %v10113_v35  ;;  %9696 = vmatprep.subr.bf16.mxu1 %v10114_v22  ;;  %v10132_v19 = vld [vmem:[%s14945_s3 + $0xb08] sm:$0xff]   ;;  %v10133_v3 = vld [vmem:[%s14945_s3 + $0xb90] sm:$0xff]  }
 0x2d2   :  { %v9405_v16 = vpop.f32.mrf.mxu1  ;;  %v3777_v17 = vpop.permute.xlu1 %3776 }
 0x2d3   :  { %v14833_v4 = vadd.f32 %v9404_v52, %v7719_v44  ;;  %v3199_v27 = vpop.permute.xlu0 %3198 }
 0x2d4   :  { %9677 = vmatpush3.bf16.msra.mxu0 %v10115_v33  ;;  %9697 = vmatpush3.bf16.msra.mxu1 %v10116_v21  ;;  %v3249_v57 = vsel %vm3204_vm11, %v14736_v14, %v3199_v27  ;;  %v3250_v24 = vsel %vm3204_vm11, %v3199_v27, %v14798_v7  ;;  %v9406_v9 = vpop.f32.mrf.mxu1  ;;  %v10121_v14 = vld [vmem:[%s14945_s3 + $0xb58] sm:$0xff]   ;;  %v10134_v33 = vld [vmem:[%s14945_s3 + $0xb40] sm:$0xff]   ;;  %v10135_v21 = vld [vmem:[%s14945_s3 + $0xbc8] sm:$0xff]  }
 0x2d5   :  { %v3344_v61 = vadd.f32 %v3249_v57, %v2911_v12  ;;  %v3345_v30 = vadd.f32 %v3250_v24, %v2912_v46  ;;  %9678 = vmatprep.subr.bf16.mxu0 %v10117_v36  ;;  %9698 = vmatprep.subr.bf16.mxu1 %v10118_v63  ;;  %v10136_v12 = vld [vmem:[%s14945_s3 + $0xb00] sm:$0xff]   ;;  %v10137_v46 = vld [vmem:[%s14945_s3 + $0xb88] sm:$0xff]  }
 0x2d6   :  { %v3203_v2 = vpop.permute.xlu1 %3202  ;;  %v10139_v24 = vld [vmem:[%s14945_s3 + $0xb80] sm:$0xff]  }
 0x2d7   :  { %v3632_v55 = vadd.f32 %v3537_v11, %v3344_v61  ;;  %v3633_v10 = vadd.f32 %v3538_v42, %v3345_v30  ;;  %v3775_v60 = vpop.permute.xlu0 %3774  ;;  %v3251_v53 = vsel %vm3204_vm11, %v14798_v7, %v3203_v2  ;;  %v3347_v38 = vadd.f32 %v3203_v2, %v2914_v8 }
 0x2d8   :  { %9679 = vmatpush3.bf16.msra.mxu0 %v10119_v20  ;;  %9699 = vmatpush3.bf16.msra.mxu1 %v10120_v56  ;;  %v3825_v31 = vsel %vm3780_vm2, %v14763_v18, %v3775_v60  ;;  %v3826_v47 = vsel %vm3780_vm2, %v3775_v60, %v3777_v17  ;;  %v10126_v18 = vld [vmem:[%s14945_s3 + $0xb50] sm:$0xff]   ;;  %v3346_v34 = vadd.f32 %v3251_v53, %v2913_v39 }
 0x2d9   :  { %v3920_v59 = vadd.f32 %v3825_v31, %v3632_v55  ;;  %v3921_v25 = vadd.f32 %v3826_v47, %v3633_v10  ;;  %9680 = vmatprep.subr.bf16.mxu0 %v10121_v14  ;;  %9700 = vmatprep.subr.bf16.mxu1 %v10122_v58 }
 0x2da   :  { %v3779_v7 = vpop.permute.xlu1 %3778 }
 0x2db   :  { %v3968_v43 = vmax.f32 %v3920_v59, 0.0  ;;  %v3969_v49 = vmax.f32 %v3921_v25, 0.0  ;;  %v3491_v15 = vpop.permute.xlu0 %3490  ;;  %v3827_v44 = vsel %vm3780_vm2, %v3777_v17, %v3779_v7  ;;  %v10138_v17 = vld [vmem:[%s14945_s3 + $0xbc0] sm:$0xff]  }
 0x2dc   :  { %9681 = vmatpush3.bf16.msra.mxu0 %v10123_v32  ;;  %9701 = vmatpush3.bf16.msra.mxu1 %v10124_v26  ;;  %v3539_v1 = vsel %vm3492_vm3, %v14813_v29, %v3491_v15  ;;  %v3635_v35 = vadd.f32 %v3491_v15, %v3347_v38  ;;  %v4167_v29 = vcombine.high %v4119_v62, %v4119_v62 }
 0x2dd   :  { %v4043_v23 = vcombine.low %v3968_v43, %v3969_v49  ;;  %9682 = vmatprep.subr.bf16.mxu0 %v10126_v18  ;;  %v3634_v37 = vadd.f32 %v3539_v1, %v3346_v34  ;;  %9702 = vmatprep.subr.bf16.mxu1 %v10127_v48  ;;  %v4237_v22 = vmul.f32 %v4166_v5, %v3969_v49 }
 0x2de   :  { %v3923_v51 = vadd.f32 %v3779_v7, %v3635_v35  ;;  %v4236_v27 = vmul.f32 %v14861_v41, %v3968_v43 }
 0x2df   :  { %4091 = vst [vmem:[%s14947_s5 + $0xb0] sm:$0x77] %v4043_v23  ;;  %v3922_v0 = vadd.f32 %v3827_v44, %v3634_v37  ;;  %v4285_v54 = vpack.c.bf16 %v4237_v22, %v4237_v22 }
 0x2e0   :  { %9683 = vmatpush3.bf16.msra.mxu0 %v10128_v50  ;;  %9703 = vmatpush3.bf16.msra.mxu1 %v10129_v40  ;;  %v3971_v36 = vmax.f32 %v3923_v51, 0.0  ;;  %v4284_v9 = vpack.c.bf16 %v4236_v27, %v4236_v27 }
 0x2e1   :  { %9684 = vmatprep.subr.bf16.mxu0 %v10130_v45  ;;  %9704 = vmatprep.subr.bf16.mxu1 %v10131_v28  ;;  %v3970_v52 = vmax.f32 %v3922_v0, 0.0 }
 0x2e2   :  { %8276 = vmatprep.mubr.bf16.mxu0 %v4285_v54  ;;  %v4239_v16 = vmul.f32 %v4167_v29, %v3971_v36 }
 0x2e3   :  { %v4044_v63 = vcombine.low %v3970_v52, %v3971_v36  ;;  %v4238_v20 = vmul.f32 %v4119_v62, %v3970_v52 }
 0x2e4   :  { %9685 = vmatpush3.bf16.msra.mxu0 %v10132_v19  ;;  %9705 = vmatpush3.bf16.msra.mxu1 %v10133_v3  ;;  %v4287_v57 = vpack.c.bf16 %v4239_v16, %v4239_v16 }
 0x2e5   :  { %9686 = vmatprep.subr.bf16.mxu0 %v10134_v33  ;;  %9706 = vmatprep.subr.bf16.mxu1 %v10135_v21  ;;  %4095 = vst.msk [vmem:[%s14947_s5 + $0xb8] sm:$0x77] %vm4094_vm8, %v4044_v63  ;;  %v4286_v14 = vpack.c.bf16 %v4238_v20, %v4238_v20 }
 0x2e6   :  { %9187 = vmatprep.mubr.msk.bf16.mxu1 %vm7356_vm14, %v4287_v57 }
 0x2e8   :  { %9687 = vmatpush3.bf16.msra.mxu0 %v10136_v12  ;;  %9707 = vmatpush3.bf16.msra.mxu1 %v10137_v46 }
 0x2e9   :  { %9708 = vmatprep.subr.bf16.mxu1 %v10138_v17  ;;  %v9424_v56 = vpop.f32.mrf.mxu0 }
 0x2eb   :  { %8277 = vmatmul.mubr.bf16.vlgmr.msra.gmra.mxu0 %v4284_v9  ;;  %v9425_v61 = vpop.f32.mrf.mxu0 }
 0x2ec   :  { %9709 = vmatpush3.bf16.msra.mxu1 %v10139_v24  ;;  %v9426_v30 = vadd.f32 %v9425_v61, %v9424_v56 }
 0x2ed   :  { %v9427_v11 = vpop.f32.mrf.mxu0  ;;  %v9446_v42 = vpop.f32.mrf.mxu1 }
 0x2ee   :  { %v7799_v58 = vadd.f32 %v9426_v30, %v14833_v4 }
 0x2ef   :  { %8317 = vmatmul.mubr.bf16.vlgmr.msra.gmra.mxu1 %v4286_v14  ;;  %v9428_v13 = vpop.f32.mrf.mxu0  ;;  %v9447_v55 = vpop.f32.mrf.mxu1 }
 0x2f0   :  { %v9448_v10 = vadd.f32 %v9447_v55, %v9446_v42 }
 0x2f1   :  { %v9449_v41 = vpop.f32.mrf.mxu1 }
 0x2f2   :  { %v7839_v60 = vadd.f32 %v9448_v10, %v7799_v58 }
 0x2f3   :  { %v9450_v2 = vpop.f32.mrf.mxu1 }
 0x309   :  { %v9468_v31 = vpop.f32.mrf.mxu0 }
 0x30b   :  { %v9469_v47 = vpop.f32.mrf.mxu0 }
 0x30c   :  { %v9470_v32 = vadd.f32 %v9469_v47, %v9468_v31 }
 0x30d   :  { %v9490_v26 = vpop.f32.mrf.mxu1  ;;  %v9471_v53 = vpop.f32.mrf.mxu0 }
 0x30e   :  { %v7879_v59 = vadd.f32 %v9470_v32, %v7839_v60 }
 0x30f   :  { %v9491_v25 = vpop.f32.mrf.mxu1  ;;  %v9472_v18 = vpop.f32.mrf.mxu0 }
 0x310   :  { %v9492_v39 = vadd.f32 %v9491_v25, %v9490_v26 }
 0x311   :  { %v9493_v8 = vpop.f32.mrf.mxu1 }
 0x312   :  { %v7919_v48 = vadd.f32 %v9492_v39, %v7879_v59 }
 0x313   :  { %v9494_v5 = vpop.f32.mrf.mxu1 }
 0x325   :  { %v8337_v32 = vpop.permute.xlu1 %8336 }
 0x32a   :  { %v9512_v4 = vpop.f32.mrf.mxu0 }
 0x32c   :  { %v9513_v43 = vpop.f32.mrf.mxu0 }
 0x32d   :  { %v9514_v49 = vadd.f32 %v9513_v43, %v9512_v4  ;;  %v15112_v4 = vld [vmem:[#allocation3_spill] sm:$0xff] }
 0x32e   :  { %v9534_v34 = vpop.f32.mrf.mxu1  ;;  %v9515_v38 = vpop.f32.mrf.mxu0 }
 0x32f   :  { %v7959_v7 = vadd.f32 %v9514_v49, %v7919_v48  ;;  %v8328_v48 = vpop.permute.xlu0 %8327  ;;  %v15113_v49 = vld [vmem:[#allocation2_spill] sm:$0xff]  ;;  %v8347_v38 = vpop.permute.xlu1 %8346 }
 0x330   :  { %v9535_v62 = vpop.f32.mrf.mxu1  ;;  %v9516_v15 = vpop.f32.mrf.mxu0 }
 0x331   :  { %v9536_v50 = vadd.f32 %v9535_v62, %v9534_v34 }
 0x332   :  { %v9537_v40 = vpop.f32.mrf.mxu1 }
 0x333   :  { %v7999_v23 = vadd.f32 %v9536_v50, %v7959_v7  ;;  %v8357_v40 = vpop.permute.xlu0 %8356 }
 0x334   :  { %v9538_v1 = vpop.f32.mrf.mxu1 }
 0x34b   :  { %v9556_v45 = vpop.f32.mrf.mxu0 }
 0x34d   :  { %v9557_v28 = vpop.f32.mrf.mxu0 }
 0x34e   :  { %v9558_v37 = vadd.f32 %v9557_v28, %v9556_v45  ;;  %v9578_v35 = vpop.f32.mrf.mxu1 }
 0x34f   :  { %v9559_v22 = vpop.f32.mrf.mxu0 }
 0x350   :  { %v8039_v44 = vadd.f32 %v9558_v37, %v7999_v23  ;;  %v9579_v29 = vpop.f32.mrf.mxu1 }
 0x351   :  { %v9560_v0 = vpop.f32.mrf.mxu0  ;;  %v9580_v51 = vadd.f32 %v9579_v29, %v9578_v35 }
 0x352   :  { %v9581_v54 = vpop.f32.mrf.mxu1 }
 0x353   :  { %v8079_v19 = vadd.f32 %v9580_v51, %v8039_v44 }
 0x354   :  { %v9582_v3 = vpop.f32.mrf.mxu1 }
 0x36b   :  { %v9600_v33 = vpop.f32.mrf.mxu0 }
 0x36d   :  { %v9601_v21 = vpop.f32.mrf.mxu0 }
 0x36e   :  { %v9622_v52 = vpop.f32.mrf.mxu1  ;;  %v9602_v30 = vadd.f32 %v9601_v21, %v9600_v33 }
 0x36f   :  { %v9603_v36 = vpop.f32.mrf.mxu0 }
 0x370   :  { %v9623_v63 = vpop.f32.mrf.mxu1  ;;  %v8119_v11 = vadd.f32 %v9602_v30, %v8079_v19 }
 0x371   :  { %v9604_v16 = vpop.f32.mrf.mxu0  ;;  %v9624_v14 = vadd.f32 %v9623_v63, %v9622_v52 }
 0x372   :  { %v9625_v12 = vpop.f32.mrf.mxu1 }
 0x373   :  { %v8159_v13 = vadd.f32 %v9624_v14, %v8119_v11 }
 0x374   :  { %v9626_v46 = vpop.f32.mrf.mxu1 }
 0x38b   :  { %v9644_v27 = vpop.f32.mrf.mxu0 }
 0x38d   :  { %v9645_v17 = vpop.f32.mrf.mxu0 }
 0x38e   :  { %v9646_v42 = vadd.f32 %v9645_v17, %v9644_v27 }
 0x38f   :  { %v9647_v57 = vpop.f32.mrf.mxu0  ;;  %v9666_v24 = vpop.f32.mrf.mxu1 }
 0x390   :  { %v8199_v41 = vadd.f32 %v9646_v42, %v8159_v13 }
 0x391   :  { %v9648_v9 = vpop.f32.mrf.mxu0  ;;  %v9667_v20 = vpop.f32.mrf.mxu1 }
 0x392   :  { %v9668_v55 = vadd.f32 %v9667_v20, %v9666_v24 }
 0x393   :  { %v9669_v56 = vpop.f32.mrf.mxu1 }
 0x394   :  { %v8239_v47 = vadd.f32 %v9668_v55, %v8199_v41 }
 0x395   :  { %v9670_v61 = vpop.f32.mrf.mxu1 }
 0x3ab   :  { %v9688_v58 = vpop.f32.mrf.mxu0 }
 0x3ad   :  { %v9689_v10 = vpop.f32.mrf.mxu0 }
 0x3ae   :  { %v9690_v60 = vadd.f32 %v9689_v10, %v9688_v58 }
 0x3af   :  { %v9691_v2 = vpop.f32.mrf.mxu0  ;;  %v9710_v31 = vpop.f32.mrf.mxu1 }
 0x3b0   :  { %v8279_v59 = vadd.f32 %v9690_v60, %v8239_v47 }
 0x3b1   :  { %v9692_v26 = vpop.f32.mrf.mxu0  ;;  %v9711_v53 = vpop.f32.mrf.mxu1 }
 0x3b2   :  { %v9712_v25 = vadd.f32 %v9711_v53, %v9710_v31 }
 0x3b3   :  { %v9713_v18 = vpop.f32.mrf.mxu1 }
 0x3b4   :  { %v8319_v39 = vadd.f32 %v9712_v25, %v8279_v59 }
 0x3b5   :  { %v9714_v8 = vpop.f32.mrf.mxu1 }
 0x3b6   :  { %v8342_v5 = vrot.slane %v8319_v39, %v10204_v6  ;;  %v8352_v43 = vrot.slane %v8319_v39, %v15112_v4  ;;  %v8333_v34 = vrot.slane %v8319_v39, %v15113_v49 }
 0x3b8   :  { %v8343_v7 = vmul.f32 %v8342_v5, %v8337_v32  ;;  %v8334_v62 = vmul.f32 %v8333_v34, %v8328_v48  ;;  %v8353_v15 = vmul.f32 %v8352_v43, %v8347_v38 }
 0x3ba   :  { %v8344_v50 = vadd.f32 %v8343_v7, %v8334_v62 }
 0x3bc   :  { %v8354_v23 = vadd.f32 %v8353_v15, %v8344_v50 }
 0x3be   :  { %v8359_v1 = vadd.f32 %v8357_v40, %v8354_v23 }
 0x3c0   :  { %8360 = vst [vmem:[%s14949_s6] sm:$0xf] %v8359_v1 }

</bundles_post_ra>
